<compile_context>
chip_gen: v5e
topology: v5e:2x2
jax: 0.10.0
libtpu: 0.0.40
codegen_flags: <defaults>
</compile_context>

<pallas_src>
import jax
import jax.numpy as jnp
from jax.experimental import pallas as pl
from jax.experimental.pallas import tpu as pltpu


_COMPILER_PARAMS = pltpu.CompilerParams(
    dimension_semantics=("parallel",),
    vmem_limit_bytes=32 * 1024 * 1024,
)


def _round_up(a, b):
    return (a + b - 1) // b * b


# ----------------------------- Pallas kernels ------------------------------

def _conv1_kernel(p_ref, w_ref, b_ref, o_ref):
    # p_ref: (4, TM, 25) bf16 -- the 4 pool-corner im2col patch matrices,
    #        stacked on a leading dim (single DMA stream per step).
    # Fused: conv1 as ONE merged MXU dot over all 4 corners, corner max
    #        (== 2x2 max-pool), bias, ReLU.
    tm, k = p_ref.shape[1], p_ref.shape[2]
    c = w_ref.shape[1]
    z = jnp.dot(p_ref[...].reshape(4 * tm, k), w_ref[...],
                preferred_element_type=jnp.float32)        # (4*TM, C) one MXU push
    z = jnp.max(z.reshape(4, tm, c), axis=0)               # max over pool corners
    o_ref[...] = jnp.maximum(z + b_ref[...], 0.0).astype(o_ref.dtype)


def _conv2_head_kernel(p_ref, w2_ref, b2_ref, w1_ref, b1_ref, w3_ref, b3_ref,
                       o_ref):
    # p_ref: (4, 16, TB, 500) bf16 -- conv2 pool-corner patches with rows
    #        ordered (pooled spatial position p, image), so the flatten into
    #        the 800-wide fc1 input needs NO lane relayout.
    # Fused: conv2 + pool + bias + ReLU + flatten + fc1 + ReLU + fc2 + bias
    #        + log_softmax, entirely in VMEM.
    tb = o_ref.shape[0]
    k2 = p_ref.shape[3]
    w2 = w2_ref[...]                                       # (500, 50) bf16

    def corner(ci):
        # one long MXU push per corner: (16*TB, 500) @ (500, 50)
        return jnp.dot(p_ref[ci].reshape(16 * tb, k2), w2,
                       preferred_element_type=jnp.float32)

    z = corner(0)
    z = jnp.maximum(z, corner(1))
    z = jnp.maximum(z, corner(2))
    z = jnp.maximum(z, corner(3))
    y2 = jnp.maximum(z + b2_ref[...], 0.0).astype(jnp.bfloat16)   # (16*TB, 50)

    # fc1 decomposed over the 16 pooled spatial positions: rows p*TB:(p+1)*TB
    # of y2 are the (TB, 50) channel block of position p, so
    #   flatten + (800, 500) matmul  ==  sum_p  y2_p @ W1[p]
    h = jnp.zeros((tb, w1_ref.shape[2]), jnp.float32)
    for p in range(16):
        h = h + jnp.dot(y2[p * tb:(p + 1) * tb, :], w1_ref[p],
                        preferred_element_type=jnp.float32)
    h = jnp.maximum(h + b1_ref[...], 0.0).astype(jnp.bfloat16)    # (TB, 500)

    logits = jnp.dot(h, w3_ref[...], preferred_element_type=jnp.float32)
    logits = logits + b3_ref[...]                                  # (TB, 10)
    m = jnp.max(logits, axis=-1, keepdims=True)
    lse = m + jnp.log(jnp.sum(jnp.exp(logits - m), axis=-1, keepdims=True))
    o_ref[...] = logits - lse


# ------------------------------- wrappers -----------------------------------

def _conv1_relu_pool(patches, w, b, *, rows_per_step):
    _, m, k = patches.shape
    c = w.shape[1]
    grid = m // rows_per_step                       # exact (batch pre-padded)
    return pl.pallas_call(
        _conv1_kernel,
        out_shape=jax.ShapeDtypeStruct((m, c), jnp.bfloat16),
        grid=(grid,),
        in_specs=[pl.BlockSpec((4, rows_per_step, k), lambda i: (0, i, 0)),
                  pl.BlockSpec((k, c), lambda i: (0, 0)),
                  pl.BlockSpec((1, c), lambda i: (0, 0))],
        out_specs=pl.BlockSpec((rows_per_step, c), lambda i: (i, 0)),
        compiler_params=_COMPILER_PARAMS,
    )(patches, w, b)


def _conv2_mlp_head(patches, w2, b2, w1, b1, w3, b3, *, images_per_step):
    _, _, npad, k2 = patches.shape
    c_out = w3.shape[1]
    grid = npad // images_per_step                  # exact (batch pre-padded)
    return pl.pallas_call(
        _conv2_head_kernel,
        out_shape=jax.ShapeDtypeStruct((npad, c_out), jnp.float32),
        grid=(grid,),
        in_specs=[pl.BlockSpec((4, 16, images_per_step, k2),
                               lambda i: (0, 0, i, 0)),
                  pl.BlockSpec(w2.shape, lambda i: (0, 0)),
                  pl.BlockSpec(b2.shape, lambda i: (0, 0)),
                  pl.BlockSpec(w1.shape, lambda i: (0, 0, 0)),
                  pl.BlockSpec(b1.shape, lambda i: (0, 0)),
                  pl.BlockSpec(w3.shape, lambda i: (0, 0)),
                  pl.BlockSpec(b3.shape, lambda i: (0, 0))],
        out_specs=pl.BlockSpec((images_per_step, c_out), lambda i: (i, 0)),
        compiler_params=_COMPILER_PARAMS,
    )(patches, w2, b2, w1, b1, w3, b3)


# --------------------------- XLA glue (im2col) -------------------------------

def _conv1_patch_stack(x):
    # x: (N, 28, 28, 1) bf16 -> (4, N*144, 25): the 4 pool-corner im2col patch
    # matrices (k ordered (kh, kw, C_in)), stacked for a single DMA stream.
    n, h, w, c = x.shape
    kh = kw = 5
    oh, ow = h - kh + 1, w - kw + 1
    poh, pow_ = oh // 2, ow // 2

    def corner(dr, dc):
        cols = [x[:, dr + i: dr + i + oh: 2, dc + j: dc + j + ow: 2, :]
                for i in range(kh) for j in range(kw)]
        p = jnp.stack(cols, axis=3)                      # (N, POH, POW, 25, C)
        return p.reshape(n * poh * pow_, kh * kw * c)

    stack = jnp.stack([corner(0, 0), corner(0, 1), corner(1, 0), corner(1, 1)],
                      axis=0)
    return stack, poh, pow_


def _conv2_patch_stack(y1):
    # y1: (N, 12, 12, 20) bf16 -> (4, 16, N, 500): conv2 pool-corner patches
    # with rows ordered (pooled position, image) so the fused head kernel can
    # flatten / run fc1 with no lane relayout.
    n, h, w, c = y1.shape
    kh = kw = 5
    oh, ow = h - kh + 1, w - kw + 1
    poh, pow_ = oh // 2, ow // 2

    def corner(dr, dc):
        cols = [y1[:, dr + i: dr + i + oh: 2, dc + j: dc + j + ow: 2, :]
                for i in range(kh) for j in range(kw)]
        p = jnp.stack(cols, axis=3)                      # (N, 4, 4, 25, 20)
        p = p.reshape(n, poh * pow_, kh * kw * c)        # (N, 16, 500)
        return p.transpose(1, 0, 2)                      # (16, N, 500)

    return jnp.stack([corner(0, 0), corner(0, 1), corner(1, 0), corner(1, 1)],
                     axis=0)


# ------------------------------- the model ----------------------------------

def init_params(key):
    ks = jax.random.split(key, 8)

    def u(k, shape, fan_in, dtype):
        bound = 1.0 / float(fan_in) ** 0.5
        return jax.random.uniform(k, shape, jnp.float32, -bound, bound).astype(dtype)

    # Weights are stored pre-reshaped for the kernels (done ONCE, not per step):
    #   conv*_w : (kh*kw*C_in, C_out) with k ordered (kh, kw, C_in)
    #   fc1_w   : (16, 50, 500) == the (800, 500) matrix split per pooled
    #             spatial position (channels-last flatten order (ph, pw, c)).
    # (Torch-layout weights would need a one-time permutation into this layout.)
    return {
        "conv1_w": u(ks[0], (25, 20), 1 * 5 * 5, jnp.bfloat16),
        "conv1_b": u(ks[1], (1, 20), 1 * 5 * 5, jnp.float32),
        "conv2_w": u(ks[2], (500, 50), 20 * 5 * 5, jnp.bfloat16),
        "conv2_b": u(ks[3], (1, 50), 20 * 5 * 5, jnp.float32),
        "fc1_w":   u(ks[4], (16, 50, 500), 800, jnp.bfloat16),
        "fc1_b":   u(ks[5], (1, 500), 800, jnp.float32),
        "fc2_w":   u(ks[6], (500, 10), 500, jnp.bfloat16),
        "fc2_b":   u(ks[7], (1, 10), 500, jnp.float32),
    }


def net_forward(params, x):
    # x: (N, 1, 28, 28) f32 (PyTorch NCHW input).
    n = x.shape[0]
    # Images per grid step: large enough to hide the ~0.35us per-step overhead,
    # and the batch is zero-padded so every pallas_call has exact tiles and
    # >= 2 grid steps (megacore-shardable "parallel" axis on v7x, no
    # OOB-masked partial tiles).
    gb = 16 if n >= 32 else 8
    npad = max(_round_up(n, gb), 2 * gb)
    if npad != n:
        x = jnp.pad(x, ((0, npad - n), (0, 0), (0, 0), (0, 0)))
    x = x.transpose(0, 2, 3, 1).astype(jnp.bfloat16)       # NHWC (npad, 28, 28, 1)

    # conv1(1->20, 5x5, s=1) + relu + maxpool(2,2)  ->  (npad, 12, 12, 20)
    p1, poh1, pow1 = _conv1_patch_stack(x)                 # (4, npad*144, 25)
    y1 = _conv1_relu_pool(p1, params["conv1_w"], params["conv1_b"],
                          rows_per_step=gb * poh1 * pow1)  # (npad*144, 20)
    y1 = y1.reshape(npad, poh1, pow1, 20)

    # conv2(20->50) + relu + maxpool + flatten + fc1 + relu + fc2 + log_softmax
    # fused in ONE kernel (800-wide activation never leaves VMEM).
    p2 = _conv2_patch_stack(y1)                            # (4, 16, npad, 500)
    out = _conv2_mlp_head(p2, params["conv2_w"], params["conv2_b"],
                          params["fc1_w"], params["fc1_b"],
                          params["fc2_w"], params["fc2_b"],
                          images_per_step=gb)              # (npad, 10) f32
    return out[:n]


# --------------------------- pure-jnp reference ------------------------------

def _reference_forward(params, x):
    # Same math / same bf16 rounding points, all in plain jnp (XLA).
    n = x.shape[0]
    xx = x.transpose(0, 2, 3, 1).astype(jnp.bfloat16)

    def conv_relu_pool(inp, w, b, co):
        kh = kw = 5
        nn_, h, ww, c = inp.shape
        oh, ow = h - kh + 1, ww - kw + 1
        cols = [inp[:, i:i + oh, j:j + ow, :] for i in range(kh) for j in range(kw)]
        p = jnp.stack(cols, axis=3).reshape(nn_ * oh * ow, kh * kw * c)
        z = jnp.dot(p, w, preferred_element_type=jnp.float32) + b
        z = jnp.maximum(z, 0.0).reshape(nn_, oh, ow, co)
        z = jnp.max(jnp.stack([z[:, 0::2, 0::2], z[:, 0::2, 1::2],
                               z[:, 1::2, 0::2], z[:, 1::2, 1::2]], 0), 0)
        return z.astype(jnp.bfloat16)

    y1 = conv_relu_pool(xx, params["conv1_w"], params["conv1_b"], 20)
    y2 = conv_relu_pool(y1, params["conv2_w"], params["conv2_b"], 50)
    flat = y2.reshape(n, -1)                                       # (n, 800)
    w1 = params["fc1_w"].reshape(800, 500)
    h = jnp.maximum(jnp.dot(flat, w1, preferred_element_type=jnp.float32)
                    + params["fc1_b"], 0.0).astype(jnp.bfloat16)
    z = jnp.dot(h, params["fc2_w"], preferred_element_type=jnp.float32) + params["fc2_b"]
    return jax.nn.log_softmax(z, axis=-1)


if __name__ == "__main__":
    key = jax.random.PRNGKey(0)
    k_x, k_p = jax.random.split(key)
    # fc1 (4*4*50 = 800) implies 28x28 MNIST inputs; small batch of 2.
    x = jax.random.normal(k_x, (2, 1, 28, 28), dtype=jnp.float32)
    params = init_params(k_p)

    fwd = jax.jit(net_forward)
    out = fwd(params, x)
    jax.block_until_ready(out)

    assert out.shape == (2, 10)
    # log_softmax rows should sum (in prob space) to ~1
    assert jnp.allclose(jnp.exp(out).sum(axis=1), 1.0, atol=1e-4)
    # matches the pure-jnp reference (same bf16 rounding points)
    ref = _reference_forward(params, x)
    assert jnp.allclose(out, ref, atol=5e-2), (out, ref)
    print("KERNEL_OK")
</pallas_src>

<mosaic_0001>
module attributes {stable_mosaic.version = 11 : i64} {
  func.func @_conv1_kernel(%arg0: i32, %arg1: memref<4x1152x25xbf16, #tpu.memory_space<vmem>>, %arg2: memref<25x20xbf16, #tpu.memory_space<vmem>>, %arg3: memref<1x20xf32, #tpu.memory_space<vmem>>, %arg4: memref<1152x20xbf16, #tpu.memory_space<vmem>>) attributes {dimension_semantics = [#tpu.dimension_semantics<parallel>], iteration_bounds = array<i64: 2>, scalar_prefetch = 0 : i64, scratch_operands = 0 : i64, tpu.core_type = #tpu.core_type<tc>, window_params = [{transform_indices = @transform_0, window_bounds = array<i64: 4, 1152, 25>}, {pipeline_mode = #tpu.pipeline_mode<synchronous>, transform_indices = @transform_1, window_bounds = array<i64: 25, 20>}, {pipeline_mode = #tpu.pipeline_mode<synchronous>, transform_indices = @transform_2, window_bounds = array<i64: 1, 20>}, {transform_indices = @transform_3, window_bounds = array<i64: 1152, 20>}]} {
    %c0 = arith.constant 0 : index
    %c0_0 = arith.constant 0 : index
    %c0_1 = arith.constant 0 : index
    %0 = vector.load %arg1[%c0, %c0_0, %c0_1] : memref<4x1152x25xbf16, #tpu.memory_space<vmem>>, vector<4x1152x25xbf16>
    %1 = vector.shape_cast %0 : vector<4x1152x25xbf16> to vector<4608x25xbf16>
    %c0_2 = arith.constant 0 : index
    %c0_3 = arith.constant 0 : index
    %2 = vector.load %arg2[%c0_2, %c0_3] : memref<25x20xbf16, #tpu.memory_space<vmem>>, vector<25x20xbf16>
    %cst = arith.constant dense<0.000000e+00> : vector<4608x20xf32>
    %3 = tpu.matmul %1, %2, %cst {dimension_numbers = #tpu.dot_dimension_numbers<[1], [0], [0], [1], [0, 0, 1, 1], [], []>} : vector<4608x25xbf16>, vector<25x20xbf16>, vector<4608x20xf32> -> vector<4608x20xf32>
    %4 = vector.shape_cast %3 : vector<4608x20xf32> to vector<4x1152x20xf32>
    %cst_4 = arith.constant dense<0xFF800000> : vector<1152x20xf32>
    %5 = vector.multi_reduction <maximumf>, %4, %cst_4 [0] : vector<4x1152x20xf32> to vector<1152x20xf32>
    %c0_5 = arith.constant 0 : index
    %c0_6 = arith.constant 0 : index
    %6 = vector.load %arg3[%c0_5, %c0_6] : memref<1x20xf32, #tpu.memory_space<vmem>>, vector<1x20xf32>
    %7 = vector.broadcast %6 : vector<1x20xf32> to vector<1152x20xf32>
    %8 = arith.addf %5, %7 : vector<1152x20xf32>
    %cst_7 = arith.constant 0.000000e+00 : f32
    %9 = vector.broadcast %cst_7 : f32 to vector<1152x20xf32>
    %10 = arith.maximumf %8, %9 : vector<1152x20xf32>
    %11 = arith.truncf %10 : vector<1152x20xf32> to vector<1152x20xbf16>
    %c0_8 = arith.constant 0 : index
    %c0_9 = arith.constant 0 : index
    %12 = vector.load %arg4[%c0_8, %c0_9] : memref<1152x20xbf16, #tpu.memory_space<vmem>>, vector<1152x20xbf16>
    tpu.vector_store %arg4[%c0_8, %c0_9], %11 {strides = array<i32>} : memref<1152x20xbf16, #tpu.memory_space<vmem>>, vector<1152x20xbf16>,
    return
  }
  func.func @transform_0(%arg0: i32) -> (i32, i32, i32) {
    %c0_i32 = arith.constant 0 : i32
    %c0_i32_0 = arith.constant 0 : i32
    %c0_i32_1 = arith.constant 0 : i32
    return %c0_i32, %arg0, %c0_i32_0 : i32, i32, i32
  }
  func.func @transform_1(%arg0: i32) -> (i32, i32) {
    %c0_i32 = arith.constant 0 : i32
    %c0_i32_0 = arith.constant 0 : i32
    %c0_i32_1 = arith.constant 0 : i32
    return %c0_i32, %c0_i32_0 : i32, i32
  }
  func.func @transform_2(%arg0: i32) -> (i32, i32) {
    %c0_i32 = arith.constant 0 : i32
    %c0_i32_0 = arith.constant 0 : i32
    %c0_i32_1 = arith.constant 0 : i32
    return %c0_i32, %c0_i32_0 : i32, i32
  }
  func.func @transform_3(%arg0: i32) -> (i32, i32) {
    %c0_i32 = arith.constant 0 : i32
    %c0_i32_0 = arith.constant 0 : i32
    return %arg0, %c0_i32 : i32, i32
  }
}

module attributes {stable_mosaic.version = 11 : i64} {
  func.func @_conv2_head_kernel(%arg0: i32, %arg1: memref<4x16x8x500xbf16, #tpu.memory_space<vmem>>, %arg2: memref<500x50xbf16, #tpu.memory_space<vmem>>, %arg3: memref<1x50xf32, #tpu.memory_space<vmem>>, %arg4: memref<16x50x500xbf16, #tpu.memory_space<vmem>>, %arg5: memref<1x500xf32, #tpu.memory_space<vmem>>, %arg6: memref<500x10xbf16, #tpu.memory_space<vmem>>, %arg7: memref<1x10xf32, #tpu.memory_space<vmem>>, %arg8: memref<8x10xf32, #tpu.memory_space<vmem>>) attributes {dimension_semantics = [#tpu.dimension_semantics<parallel>], iteration_bounds = array<i64: 2>, scalar_prefetch = 0 : i64, scratch_operands = 0 : i64, tpu.core_type = #tpu.core_type<tc>, window_params = [{transform_indices = @transform_0, window_bounds = array<i64: 4, 16, 8, 500>}, {pipeline_mode = #tpu.pipeline_mode<synchronous>, transform_indices = @transform_1, window_bounds = array<i64: 500, 50>}, {pipeline_mode = #tpu.pipeline_mode<synchronous>, transform_indices = @transform_2, window_bounds = array<i64: 1, 50>}, {pipeline_mode = #tpu.pipeline_mode<synchronous>, transform_indices = @transform_3, window_bounds = array<i64: 16, 50, 500>}, {pipeline_mode = #tpu.pipeline_mode<synchronous>, transform_indices = @transform_4, window_bounds = array<i64: 1, 500>}, {pipeline_mode = #tpu.pipeline_mode<synchronous>, transform_indices = @transform_5, window_bounds = array<i64: 500, 10>}, {pipeline_mode = #tpu.pipeline_mode<synchronous>, transform_indices = @transform_6, window_bounds = array<i64: 1, 10>}, {transform_indices = @transform_7, window_bounds = array<i64: 8, 10>}]} {
    %c0 = arith.constant 0 : index
    %c0_0 = arith.constant 0 : index
    %0 = vector.load %arg2[%c0, %c0_0] : memref<500x50xbf16, #tpu.memory_space<vmem>>, vector<500x50xbf16>
    %c0_1 = arith.constant 0 : index
    %c0_2 = arith.constant 0 : index
    %c0_3 = arith.constant 0 : index
    %c0_4 = arith.constant 0 : index
    %1 = vector.load %arg1[%c0_1, %c0_2, %c0_3, %c0_4] : memref<4x16x8x500xbf16, #tpu.memory_space<vmem>>, vector<1x16x8x500xbf16>
    %2 = vector.shape_cast %1 : vector<1x16x8x500xbf16> to vector<16x8x500xbf16>
    %3 = vector.shape_cast %2 : vector<16x8x500xbf16> to vector<128x500xbf16>
    %cst = arith.constant dense<0.000000e+00> : vector<128x50xf32>
    %4 = tpu.matmul %3, %0, %cst {dimension_numbers = #tpu.dot_dimension_numbers<[1], [0], [0], [1], [0, 0, 1, 1], [], []>} : vector<128x500xbf16>, vector<500x50xbf16>, vector<128x50xf32> -> vector<128x50xf32>
    %c1 = arith.constant 1 : index
    %c0_5 = arith.constant 0 : index
    %c0_6 = arith.constant 0 : index
    %c0_7 = arith.constant 0 : index
    %5 = vector.load %arg1[%c1, %c0_5, %c0_6, %c0_7] : memref<4x16x8x500xbf16, #tpu.memory_space<vmem>>, vector<1x16x8x500xbf16>
    %6 = vector.shape_cast %5 : vector<1x16x8x500xbf16> to vector<16x8x500xbf16>
    %7 = vector.shape_cast %6 : vector<16x8x500xbf16> to vector<128x500xbf16>
    %cst_8 = arith.constant dense<0.000000e+00> : vector<128x50xf32>
    %8 = tpu.matmul %7, %0, %cst_8 {dimension_numbers = #tpu.dot_dimension_numbers<[1], [0], [0], [1], [0, 0, 1, 1], [], []>} : vector<128x500xbf16>, vector<500x50xbf16>, vector<128x50xf32> -> vector<128x50xf32>
    %9 = arith.maximumf %4, %8 : vector<128x50xf32>
    %c2 = arith.constant 2 : index
    %c0_9 = arith.constant 0 : index
    %c0_10 = arith.constant 0 : index
    %c0_11 = arith.constant 0 : index
    %10 = vector.load %arg1[%c2, %c0_9, %c0_10, %c0_11] : memref<4x16x8x500xbf16, #tpu.memory_space<vmem>>, vector<1x16x8x500xbf16>
    %11 = vector.shape_cast %10 : vector<1x16x8x500xbf16> to vector<16x8x500xbf16>
    %12 = vector.shape_cast %11 : vector<16x8x500xbf16> to vector<128x500xbf16>
    %cst_12 = arith.constant dense<0.000000e+00> : vector<128x50xf32>
    %13 = tpu.matmul %12, %0, %cst_12 {dimension_numbers = #tpu.dot_dimension_numbers<[1], [0], [0], [1], [0, 0, 1, 1], [], []>} : vector<128x500xbf16>, vector<500x50xbf16>, vector<128x50xf32> -> vector<128x50xf32>
    %14 = arith.maximumf %9, %13 : vector<128x50xf32>
    %c3 = arith.constant 3 : index
    %c0_13 = arith.constant 0 : index
    %c0_14 = arith.constant 0 : index
    %c0_15 = arith.constant 0 : index
    %15 = vector.load %arg1[%c3, %c0_13, %c0_14, %c0_15] : memref<4x16x8x500xbf16, #tpu.memory_space<vmem>>, vector<1x16x8x500xbf16>
    %16 = vector.shape_cast %15 : vector<1x16x8x500xbf16> to vector<16x8x500xbf16>
    %17 = vector.shape_cast %16 : vector<16x8x500xbf16> to vector<128x500xbf16>
    %cst_16 = arith.constant dense<0.000000e+00> : vector<128x50xf32>
    %18 = tpu.matmul %17, %0, %cst_16 {dimension_numbers = #tpu.dot_dimension_numbers<[1], [0], [0], [1], [0, 0, 1, 1], [], []>} : vector<128x500xbf16>, vector<500x50xbf16>, vector<128x50xf32> -> vector<128x50xf32>
    %19 = arith.maximumf %14, %18 : vector<128x50xf32>
    %c0_17 = arith.constant 0 : index
    %c0_18 = arith.constant 0 : index
    %20 = vector.load %arg3[%c0_17, %c0_18] : memref<1x50xf32, #tpu.memory_space<vmem>>, vector<1x50xf32>
    %21 = vector.broadcast %20 : vector<1x50xf32> to vector<128x50xf32>
    %22 = arith.addf %19, %21 : vector<128x50xf32>
    %cst_19 = arith.constant 0.000000e+00 : f32
    %23 = vector.broadcast %cst_19 : f32 to vector<128x50xf32>
    %24 = arith.maximumf %22, %23 : vector<128x50xf32>
    %25 = arith.truncf %24 : vector<128x50xf32> to vector<128x50xbf16>
    %cst_20 = arith.constant 0.000000e+00 : f32
    %26 = vector.broadcast %cst_20 : f32 to vector<8x500xf32>
    %27 = vector.extract_strided_slice %25 {offsets = [0, 0], sizes = [8, 50], strides = [1, 1]} : vector<128x50xbf16> to vector<8x50xbf16>
    %c0_21 = arith.constant 0 : index
    %c0_22 = arith.constant 0 : index
    %c0_23 = arith.constant 0 : index
    %28 = vector.load %arg4[%c0_21, %c0_22, %c0_23] : memref<16x50x500xbf16, #tpu.memory_space<vmem>>, vector<1x50x500xbf16>
    %29 = vector.shape_cast %28 : vector<1x50x500xbf16> to vector<50x500xbf16>
    %cst_24 = arith.constant dense<0.000000e+00> : vector<8x500xf32>
    %30 = tpu.matmul %27, %29, %cst_24 {dimension_numbers = #tpu.dot_dimension_numbers<[1], [0], [0], [1], [0, 0, 1, 1], [], []>} : vector<8x50xbf16>, vector<50x500xbf16>, vector<8x500xf32> -> vector<8x500xf32>
    %31 = arith.addf %26, %30 : vector<8x500xf32>
    %32 = vector.extract_strided_slice %25 {offsets = [8, 0], sizes = [8, 50], strides = [1, 1]} : vector<128x50xbf16> to vector<8x50xbf16>
    %c1_25 = arith.constant 1 : index
    %c0_26 = arith.constant 0 : index
    %c0_27 = arith.constant 0 : index
    %33 = vector.load %arg4[%c1_25, %c0_26, %c0_27] : memref<16x50x500xbf16, #tpu.memory_space<vmem>>, vector<1x50x500xbf16>
    %34 = vector.shape_cast %33 : vector<1x50x500xbf16> to vector<50x500xbf16>
    %cst_28 = arith.constant dense<0.000000e+00> : vector<8x500xf32>
    %35 = tpu.matmul %32, %34, %cst_28 {dimension_numbers = #tpu.dot_dimension_numbers<[1], [0], [0], [1], [0, 0, 1, 1], [], []>} : vector<8x50xbf16>, vector<50x500xbf16>, vector<8x500xf32> -> vector<8x500xf32>
    %36 = arith.addf %31, %35 : vector<8x500xf32>
    %37 = vector.extract_strided_slice %25 {offsets = [16, 0], sizes = [8, 50], strides = [1, 1]} : vector<128x50xbf16> to vector<8x50xbf16>
    %c2_29 = arith.constant 2 : index
    %c0_30 = arith.constant 0 : index
    %c0_31 = arith.constant 0 : index
    %38 = vector.load %arg4[%c2_29, %c0_30, %c0_31] : memref<16x50x500xbf16, #tpu.memory_space<vmem>>, vector<1x50x500xbf16>
    %39 = vector.shape_cast %38 : vector<1x50x500xbf16> to vector<50x500xbf16>
    %cst_32 = arith.constant dense<0.000000e+00> : vector<8x500xf32>
    %40 = tpu.matmul %37, %39, %cst_32 {dimension_numbers = #tpu.dot_dimension_numbers<[1], [0], [0], [1], [0, 0, 1, 1], [], []>} : vector<8x50xbf16>, vector<50x500xbf16>, vector<8x500xf32> -> vector<8x500xf32>
    %41 = arith.addf %36, %40 : vector<8x500xf32>
    %42 = vector.extract_strided_slice %25 {offsets = [24, 0], sizes = [8, 50], strides = [1, 1]} : vector<128x50xbf16> to vector<8x50xbf16>
    %c3_33 = arith.constant 3 : index
    %c0_34 = arith.constant 0 : index
    %c0_35 = arith.constant 0 : index
    %43 = vector.load %arg4[%c3_33, %c0_34, %c0_35] : memref<16x50x500xbf16, #tpu.memory_space<vmem>>, vector<1x50x500xbf16>
    %44 = vector.shape_cast %43 : vector<1x50x500xbf16> to vector<50x500xbf16>
    %cst_36 = arith.constant dense<0.000000e+00> : vector<8x500xf32>
    %45 = tpu.matmul %42, %44, %cst_36 {dimension_numbers = #tpu.dot_dimension_numbers<[1], [0], [0], [1], [0, 0, 1, 1], [], []>} : vector<8x50xbf16>, vector<50x500xbf16>, vector<8x500xf32> -> vector<8x500xf32>
    %46 = arith.addf %41, %45 : vector<8x500xf32>
    %47 = vector.extract_strided_slice %25 {offsets = [32, 0], sizes = [8, 50], strides = [1, 1]} : vector<128x50xbf16> to vector<8x50xbf16>
    %c4 = arith.constant 4 : index
    %c0_37 = arith.constant 0 : index
    %c0_38 = arith.constant 0 : index
    %48 = vector.load %arg4[%c4, %c0_37, %c0_38] : memref<16x50x500xbf16, #tpu.memory_space<vmem>>, vector<1x50x500xbf16>
    %49 = vector.shape_cast %48 : vector<1x50x500xbf16> to vector<50x500xbf16>
    %cst_39 = arith.constant dense<0.000000e+00> : vector<8x500xf32>
    %50 = tpu.matmul %47, %49, %cst_39 {dimension_numbers = #tpu.dot_dimension_numbers<[1], [0], [0], [1], [0, 0, 1, 1], [], []>} : vector<8x50xbf16>, vector<50x500xbf16>, vector<8x500xf32> -> vector<8x500xf32>
    %51 = arith.addf %46, %50 : vector<8x500xf32>
    %52 = vector.extract_strided_slice %25 {offsets = [40, 0], sizes = [8, 50], strides = [1, 1]} : vector<128x50xbf16> to vector<8x50xbf16>
    %c5 = arith.constant 5 : index
    %c0_40 = arith.constant 0 : index
    %c0_41 = arith.constant 0 : index
    %53 = vector.load %arg4[%c5, %c0_40, %c0_41] : memref<16x50x500xbf16, #tpu.memory_space<vmem>>, vector<1x50x500xbf16>
    %54 = vector.shape_cast %53 : vector<1x50x500xbf16> to vector<50x500xbf16>
    %cst_42 = arith.constant dense<0.000000e+00> : vector<8x500xf32>
    %55 = tpu.matmul %52, %54, %cst_42 {dimension_numbers = #tpu.dot_dimension_numbers<[1], [0], [0], [1], [0, 0, 1, 1], [], []>} : vector<8x50xbf16>, vector<50x500xbf16>, vector<8x500xf32> -> vector<8x500xf32>
    %56 = arith.addf %51, %55 : vector<8x500xf32>
    %57 = vector.extract_strided_slice %25 {offsets = [48, 0], sizes = [8, 50], strides = [1, 1]} : vector<128x50xbf16> to vector<8x50xbf16>
    %c6 = arith.constant 6 : index
    %c0_43 = arith.constant 0 : index
    %c0_44 = arith.constant 0 : index
    %58 = vector.load %arg4[%c6, %c0_43, %c0_44] : memref<16x50x500xbf16, #tpu.memory_space<vmem>>, vector<1x50x500xbf16>
    %59 = vector.shape_cast %58 : vector<1x50x500xbf16> to vector<50x500xbf16>
    %cst_45 = arith.constant dense<0.000000e+00> : vector<8x500xf32>
    %60 = tpu.matmul %57, %59, %cst_45 {dimension_numbers = #tpu.dot_dimension_numbers<[1], [0], [0], [1], [0, 0, 1, 1], [], []>} : vector<8x50xbf16>, vector<50x500xbf16>, vector<8x500xf32> -> vector<8x500xf32>
    %61 = arith.addf %56, %60 : vector<8x500xf32>
    %62 = vector.extract_strided_slice %25 {offsets = [56, 0], sizes = [8, 50], strides = [1, 1]} : vector<128x50xbf16> to vector<8x50xbf16>
    %c7 = arith.constant 7 : index
    %c0_46 = arith.constant 0 : index
    %c0_47 = arith.constant 0 : index
    %63 = vector.load %arg4[%c7, %c0_46, %c0_47] : memref<16x50x500xbf16, #tpu.memory_space<vmem>>, vector<1x50x500xbf16>
    %64 = vector.shape_cast %63 : vector<1x50x500xbf16> to vector<50x500xbf16>
    %cst_48 = arith.constant dense<0.000000e+00> : vector<8x500xf32>
    %65 = tpu.matmul %62, %64, %cst_48 {dimension_numbers = #tpu.dot_dimension_numbers<[1], [0], [0], [1], [0, 0, 1, 1], [], []>} : vector<8x50xbf16>, vector<50x500xbf16>, vector<8x500xf32> -> vector<8x500xf32>
    %66 = arith.addf %61, %65 : vector<8x500xf32>
    %67 = vector.extract_strided_slice %25 {offsets = [64, 0], sizes = [8, 50], strides = [1, 1]} : vector<128x50xbf16> to vector<8x50xbf16>
    %c8 = arith.constant 8 : index
    %c0_49 = arith.constant 0 : index
    %c0_50 = arith.constant 0 : index
    %68 = vector.load %arg4[%c8, %c0_49, %c0_50] : memref<16x50x500xbf16, #tpu.memory_space<vmem>>, vector<1x50x500xbf16>
    %69 = vector.shape_cast %68 : vector<1x50x500xbf16> to vector<50x500xbf16>
    %cst_51 = arith.constant dense<0.000000e+00> : vector<8x500xf32>
    %70 = tpu.matmul %67, %69, %cst_51 {dimension_numbers = #tpu.dot_dimension_numbers<[1], [0], [0], [1], [0, 0, 1, 1], [], []>} : vector<8x50xbf16>, vector<50x500xbf16>, vector<8x500xf32> -> vector<8x500xf32>
    %71 = arith.addf %66, %70 : vector<8x500xf32>
    %72 = vector.extract_strided_slice %25 {offsets = [72, 0], sizes = [8, 50], strides = [1, 1]} : vector<128x50xbf16> to vector<8x50xbf16>
    %c9 = arith.constant 9 : index
    %c0_52 = arith.constant 0 : index
    %c0_53 = arith.constant 0 : index
    %73 = vector.load %arg4[%c9, %c0_52, %c0_53] : memref<16x50x500xbf16, #tpu.memory_space<vmem>>, vector<1x50x500xbf16>
    %74 = vector.shape_cast %73 : vector<1x50x500xbf16> to vector<50x500xbf16>
    %cst_54 = arith.constant dense<0.000000e+00> : vector<8x500xf32>
    %75 = tpu.matmul %72, %74, %cst_54 {dimension_numbers = #tpu.dot_dimension_numbers<[1], [0], [0], [1], [0, 0, 1, 1], [], []>} : vector<8x50xbf16>, vector<50x500xbf16>, vector<8x500xf32> -> vector<8x500xf32>
    %76 = arith.addf %71, %75 : vector<8x500xf32>
    %77 = vector.extract_strided_slice %25 {offsets = [80, 0], sizes = [8, 50], strides = [1, 1]} : vector<128x50xbf16> to vector<8x50xbf16>
    %c10 = arith.constant 10 : index
    %c0_55 = arith.constant 0 : index
    %c0_56 = arith.constant 0 : index
    %78 = vector.load %arg4[%c10, %c0_55, %c0_56] : memref<16x50x500xbf16, #tpu.memory_space<vmem>>, vector<1x50x500xbf16>
    %79 = vector.shape_cast %78 : vector<1x50x500xbf16> to vector<50x500xbf16>
    %cst_57 = arith.constant dense<0.000000e+00> : vector<8x500xf32>
    %80 = tpu.matmul %77, %79, %cst_57 {dimension_numbers = #tpu.dot_dimension_numbers<[1], [0], [0], [1], [0, 0, 1, 1], [], []>} : vector<8x50xbf16>, vector<50x500xbf16>, vector<8x500xf32> -> vector<8x500xf32>
    %81 = arith.addf %76, %80 : vector<8x500xf32>
    %82 = vector.extract_strided_slice %25 {offsets = [88, 0], sizes = [8, 50], strides = [1, 1]} : vector<128x50xbf16> to vector<8x50xbf16>
    %c11 = arith.constant 11 : index
    %c0_58 = arith.constant 0 : index
    %c0_59 = arith.constant 0 : index
    %83 = vector.load %arg4[%c11, %c0_58, %c0_59] : memref<16x50x500xbf16, #tpu.memory_space<vmem>>, vector<1x50x500xbf16>
    %84 = vector.shape_cast %83 : vector<1x50x500xbf16> to vector<50x500xbf16>
    %cst_60 = arith.constant dense<0.000000e+00> : vector<8x500xf32>
    %85 = tpu.matmul %82, %84, %cst_60 {dimension_numbers = #tpu.dot_dimension_numbers<[1], [0], [0], [1], [0, 0, 1, 1], [], []>} : vector<8x50xbf16>, vector<50x500xbf16>, vector<8x500xf32> -> vector<8x500xf32>
    %86 = arith.addf %81, %85 : vector<8x500xf32>
    %87 = vector.extract_strided_slice %25 {offsets = [96, 0], sizes = [8, 50], strides = [1, 1]} : vector<128x50xbf16> to vector<8x50xbf16>
    %c12 = arith.constant 12 : index
    %c0_61 = arith.constant 0 : index
    %c0_62 = arith.constant 0 : index
    %88 = vector.load %arg4[%c12, %c0_61, %c0_62] : memref<16x50x500xbf16, #tpu.memory_space<vmem>>, vector<1x50x500xbf16>
    %89 = vector.shape_cast %88 : vector<1x50x500xbf16> to vector<50x500xbf16>
    %cst_63 = arith.constant dense<0.000000e+00> : vector<8x500xf32>
    %90 = tpu.matmul %87, %89, %cst_63 {dimension_numbers = #tpu.dot_dimension_numbers<[1], [0], [0], [1], [0, 0, 1, 1], [], []>} : vector<8x50xbf16>, vector<50x500xbf16>, vector<8x500xf32> -> vector<8x500xf32>
    %91 = arith.addf %86, %90 : vector<8x500xf32>
    %92 = vector.extract_strided_slice %25 {offsets = [104, 0], sizes = [8, 50], strides = [1, 1]} : vector<128x50xbf16> to vector<8x50xbf16>
    %c13 = arith.constant 13 : index
    %c0_64 = arith.constant 0 : index
    %c0_65 = arith.constant 0 : index
    %93 = vector.load %arg4[%c13, %c0_64, %c0_65] : memref<16x50x500xbf16, #tpu.memory_space<vmem>>, vector<1x50x500xbf16>
    %94 = vector.shape_cast %93 : vector<1x50x500xbf16> to vector<50x500xbf16>
    %cst_66 = arith.constant dense<0.000000e+00> : vector<8x500xf32>
    %95 = tpu.matmul %92, %94, %cst_66 {dimension_numbers = #tpu.dot_dimension_numbers<[1], [0], [0], [1], [0, 0, 1, 1], [], []>} : vector<8x50xbf16>, vector<50x500xbf16>, vector<8x500xf32> -> vector<8x500xf32>
    %96 = arith.addf %91, %95 : vector<8x500xf32>
    %97 = vector.extract_strided_slice %25 {offsets = [112, 0], sizes = [8, 50], strides = [1, 1]} : vector<128x50xbf16> to vector<8x50xbf16>
    %c14 = arith.constant 14 : index
    %c0_67 = arith.constant 0 : index
    %c0_68 = arith.constant 0 : index
    %98 = vector.load %arg4[%c14, %c0_67, %c0_68] : memref<16x50x500xbf16, #tpu.memory_space<vmem>>, vector<1x50x500xbf16>
    %99 = vector.shape_cast %98 : vector<1x50x500xbf16> to vector<50x500xbf16>
    %cst_69 = arith.constant dense<0.000000e+00> : vector<8x500xf32>
    %100 = tpu.matmul %97, %99, %cst_69 {dimension_numbers = #tpu.dot_dimension_numbers<[1], [0], [0], [1], [0, 0, 1, 1], [], []>} : vector<8x50xbf16>, vector<50x500xbf16>, vector<8x500xf32> -> vector<8x500xf32>
    %101 = arith.addf %96, %100 : vector<8x500xf32>
    %102 = vector.extract_strided_slice %25 {offsets = [120, 0], sizes = [8, 50], strides = [1, 1]} : vector<128x50xbf16> to vector<8x50xbf16>
    %c15 = arith.constant 15 : index
    %c0_70 = arith.constant 0 : index
    %c0_71 = arith.constant 0 : index
    %103 = vector.load %arg4[%c15, %c0_70, %c0_71] : memref<16x50x500xbf16, #tpu.memory_space<vmem>>, vector<1x50x500xbf16>
    %104 = vector.shape_cast %103 : vector<1x50x500xbf16> to vector<50x500xbf16>
    %cst_72 = arith.constant dense<0.000000e+00> : vector<8x500xf32>
    %105 = tpu.matmul %102, %104, %cst_72 {dimension_numbers = #tpu.dot_dimension_numbers<[1], [0], [0], [1], [0, 0, 1, 1], [], []>} : vector<8x50xbf16>, vector<50x500xbf16>, vector<8x500xf32> -> vector<8x500xf32>
    %106 = arith.addf %101, %105 : vector<8x500xf32>
    %c0_73 = arith.constant 0 : index
    %c0_74 = arith.constant 0 : index
    %107 = vector.load %arg5[%c0_73, %c0_74] : memref<1x500xf32, #tpu.memory_space<vmem>>, vector<1x500xf32>
    %108 = vector.broadcast %107 : vector<1x500xf32> to vector<8x500xf32>
    %109 = arith.addf %106, %108 : vector<8x500xf32>
    %cst_75 = arith.constant 0.000000e+00 : f32
    %110 = vector.broadcast %cst_75 : f32 to vector<8x500xf32>
    %111 = arith.maximumf %109, %110 : vector<8x500xf32>
    %112 = arith.truncf %111 : vector<8x500xf32> to vector<8x500xbf16>
    %c0_76 = arith.constant 0 : index
    %c0_77 = arith.constant 0 : index
    %113 = vector.load %arg6[%c0_76, %c0_77] : memref<500x10xbf16, #tpu.memory_space<vmem>>, vector<500x10xbf16>
    %cst_78 = arith.constant dense<0.000000e+00> : vector<8x10xf32>
    %114 = tpu.matmul %112, %113, %cst_78 {dimension_numbers = #tpu.dot_dimension_numbers<[1], [0], [0], [1], [0, 0, 1, 1], [], []>} : vector<8x500xbf16>, vector<500x10xbf16>, vector<8x10xf32> -> vector<8x10xf32>
    %c0_79 = arith.constant 0 : index
    %c0_80 = arith.constant 0 : index
    %115 = vector.load %arg7[%c0_79, %c0_80] : memref<1x10xf32, #tpu.memory_space<vmem>>, vector<1x10xf32>
    %116 = vector.broadcast %115 : vector<1x10xf32> to vector<8x10xf32>
    %117 = arith.addf %114, %116 : vector<8x10xf32>
    %cst_81 = arith.constant dense<0xFF800000> : vector<8xf32>
    %118 = vector.multi_reduction <maximumf>, %117, %cst_81 [1] : vector<8x10xf32> to vector<8xf32>
    %119 = vector.shape_cast %118 : vector<8xf32> to vector<8x1xf32>
    %120 = vector.broadcast %119 : vector<8x1xf32> to vector<8x10xf32>
    %121 = arith.subf %117, %120 : vector<8x10xf32>
    %122 = math.exp %121 : vector<8x10xf32>
    %cst_82 = arith.constant dense<0.000000e+00> : vector<8xf32>
    %123 = vector.multi_reduction <add>, %122, %cst_82 [1] : vector<8x10xf32> to vector<8xf32>
    %124 = vector.shape_cast %123 : vector<8xf32> to vector<8x1xf32>
    %125 = math.log %124 : vector<8x1xf32>
    %126 = arith.addf %119, %125 : vector<8x1xf32>
    %127 = vector.broadcast %126 : vector<8x1xf32> to vector<8x10xf32>
    %128 = arith.subf %117, %127 : vector<8x10xf32>
    %c0_83 = arith.constant 0 : index
    %c0_84 = arith.constant 0 : index
    %129 = vector.load %arg8[%c0_83, %c0_84] : memref<8x10xf32, #tpu.memory_space<vmem>>, vector<8x10xf32>
    tpu.vector_store %arg8[%c0_83, %c0_84], %128 {strides = array<i32>} : memref<8x10xf32, #tpu.memory_space<vmem>>, vector<8x10xf32>,
    return
  }
  func.func @transform_0(%arg0: i32) -> (i32, i32, i32, i32) {
    %c0_i32 = arith.constant 0 : i32
    %c0_i32_0 = arith.constant 0 : i32
    %c0_i32_1 = arith.constant 0 : i32
    %c0_i32_2 = arith.constant 0 : i32
    return %c0_i32, %c0_i32_0, %arg0, %c0_i32_1 : i32, i32, i32, i32
  }
  func.func @transform_1(%arg0: i32) -> (i32, i32) {
    %c0_i32 = arith.constant 0 : i32
    %c0_i32_0 = arith.constant 0 : i32
    %c0_i32_1 = arith.constant 0 : i32
    return %c0_i32, %c0_i32_0 : i32, i32
  }
  func.func @transform_2(%arg0: i32) -> (i32, i32) {
    %c0_i32 = arith.constant 0 : i32
    %c0_i32_0 = arith.constant 0 : i32
    %c0_i32_1 = arith.constant 0 : i32
    return %c0_i32, %c0_i32_0 : i32, i32
  }
  func.func @transform_3(%arg0: i32) -> (i32, i32, i32) {
    %c0_i32 = arith.constant 0 : i32
    %c0_i32_0 = arith.constant 0 : i32
    %c0_i32_1 = arith.constant 0 : i32
    %c0_i32_2 = arith.constant 0 : i32
    return %c0_i32, %c0_i32_0, %c0_i32_1 : i32, i32, i32
  }
  func.func @transform_4(%arg0: i32) -> (i32, i32) {
    %c0_i32 = arith.constant 0 : i32
    %c0_i32_0 = arith.constant 0 : i32
    %c0_i32_1 = arith.constant 0 : i32
    return %c0_i32, %c0_i32_0 : i32, i32
  }
  func.func @transform_5(%arg0: i32) -> (i32, i32) {
    %c0_i32 = arith.constant 0 : i32
    %c0_i32_0 = arith.constant 0 : i32
    %c0_i32_1 = arith.constant 0 : i32
    return %c0_i32, %c0_i32_0 : i32, i32
  }
  func.func @transform_6(%arg0: i32) -> (i32, i32) {
    %c0_i32 = arith.constant 0 : i32
    %c0_i32_0 = arith.constant 0 : i32
    %c0_i32_1 = arith.constant 0 : i32
    return %c0_i32, %c0_i32_0 : i32, i32
  }
  func.func @transform_7(%arg0: i32) -> (i32, i32) {
    %c0_i32 = arith.constant 0 : i32
    %c0_i32_0 = arith.constant 0 : i32
    return %arg0, %c0_i32 : i32, i32
  }
}

</mosaic_0001>

<bundles_post_ra>
// kernel: net_forward.2
= control target key start
LH: loop header
LB: loop body
LE: loop exit
PB: predicated region body
PF: predicated region fallthrough
CT: control target
= control target key end

     0   :  { %s12692_s12 = smov 0   ;;  %s12694_s13 = smov 0   ;;  %s14947_s0 = inlined_call_operand.vmem [shape: bf16[4,2304,25], index: 0, kind: input, shape index: {}]   ;;  %s14948_s1 = inlined_call_operand.vmem [shape: bf16[25,20], index: 1, kind: input, shape index: {}]   ;;  %s14949_s2 = inlined_call_operand.vmem [shape: f32[1,20], index: 2, kind: input, shape index: {}]   ;;  %s14950_s3 = inlined_call_operand.vmem [shape: bf16[2304,20], index: 3, kind: output, shape index: {}]  }
   0x1   :  { %s12696_s14 = smov 0  }
   0x2 LB: > { %s10860_s15 = sadd.s32 4294967295, %s12669_s14   ;;  %s12709_s16 = sadd.s32 1, %s12669_s14   ;;  %s12669_s14 = sphi %s12696_s14, %s14953_s14   ;;  %s12665_s13 = sphi %s12694_s13, %s14952_s13   ;;  %s12661_s12 = sphi %s12692_s12, %s14951_s12  }
   0x3   : > { %s17_s17 = ssub.s32 %s12669_s14, %s12709_s16  ;;  %s20_s18 = sadd.s32 1, %s12665_s13 }
   0x4   : > { %p18_p0 = scmp.eq.s32.totalorder %s17_s17, 0  ;;  %p27_p1 = scmp.ne.s32.totalorder %s12665_s13, %s12661_s12 }
   0x5   : > { %p28_p2 = scmp.eq.s32.totalorder %s12669_s14, 0  ;;  %p10863_p4 = scmp.ge.s32.totalorder %s12669_s14, 2 }
   0x6   : > { %s12718_s19 = scalar_select %p18_p0, %s12665_s13, %s20_s18  }
   0x7   : > { %p29_p3 = por %p28_p2, %p27_p1  ;;  %127 = sbr.rel (%p10863_p4) target bundleno = 305 (0x131), region = 24 }
   0xc   : > { %130 = sbr.rel (!%p29_p3) target bundleno = 305 (0x131), region = 28  ;;  %s132_s20 = sand.u32 (%p29_p3), 1, %s12665_s13  }
   0xd   : > { %s12317_s21 = smul.u32 (%p29_p3), 576, %s12669_s14 }
   0xe   : > { %s12614_s22 = smul.u32 (%p29_p3), 2304, %s132_s20 }
   0xf   : > { %s12726_s25 = scalar_lea.vmem (%p29_p3), %s14947_s0, %s12317_s21 }
  0x10   : > { %v154_v0 = vld [vmem:[%s12726_s25] sm:$0xff] (%p29_p3)   ;;  %v158_v1 = vld [vmem:[%s12726_s25 + $0x8] sm:$0xff] (%p29_p3)   ;;  %v162_v2 = vld [vmem:[%s12726_s25 + $0x10] sm:$0xff] (%p29_p3)   ;;  %s12731_s26 = scalar_lea.vmem (%p29_p3), [#allocation2], %s12614_s22 }
  0x11   : > { %155 = vst [vmem:[%s12731_s26] sm:$0xff] %v154_v0   ;;  %v166_v3 = vld [vmem:[%s12726_s25 + $0x18] sm:$0xff]   ;;  %v170_v4 = vld [vmem:[%s12726_s25 + $0x20] sm:$0xff]   ;;  %v174_v5 = vld [vmem:[%s12726_s25 + $0x28] sm:$0xff]  }
  0x12   : > { %159 = vst [vmem:[%s12731_s26 + $0x8] sm:$0xff] %v158_v1   ;;  %v178_v6 = vld [vmem:[%s12726_s25 + $0x30] sm:$0xff]   ;;  %v182_v7 = vld [vmem:[%s12726_s25 + $0x38] sm:$0xff]   ;;  %v186_v8 = vld [vmem:[%s12726_s25 + $0x40] sm:$0xff]  }
  0x13   : > { %163 = vst [vmem:[%s12731_s26 + $0x10] sm:$0xff] %v162_v2   ;;  %v190_v9 = vld [vmem:[%s12726_s25 + $0x48] sm:$0xff]   ;;  %v194_v10 = vld [vmem:[%s12726_s25 + $0x50] sm:$0xff]   ;;  %v198_v11 = vld [vmem:[%s12726_s25 + $0x58] sm:$0xff]  }
  0x14   : > { %167 = vst [vmem:[%s12731_s26 + $0x18] sm:$0xff] %v166_v3   ;;  %v202_v12 = vld [vmem:[%s12726_s25 + $0x60] sm:$0xff]   ;;  %v206_v13 = vld [vmem:[%s12726_s25 + $0x68] sm:$0xff]   ;;  %v210_v14 = vld [vmem:[%s12726_s25 + $0x70] sm:$0xff]  }
  0x15   : > { %171 = vst [vmem:[%s12731_s26 + $0x20] sm:$0xff] %v170_v4   ;;  %v214_v15 = vld [vmem:[%s12726_s25 + $0x78] sm:$0xff]   ;;  %v218_v16 = vld [vmem:[%s12726_s25 + $0x80] sm:$0xff]   ;;  %v222_v17 = vld [vmem:[%s12726_s25 + $0x88] sm:$0xff]  }
  0x16   : > { %175 = vst [vmem:[%s12731_s26 + $0x28] sm:$0xff] %v174_v5   ;;  %v226_v18 = vld [vmem:[%s12726_s25 + $0x90] sm:$0xff]   ;;  %v230_v19 = vld [vmem:[%s12726_s25 + $0x98] sm:$0xff]   ;;  %v234_v20 = vld [vmem:[%s12726_s25 + $0xa0] sm:$0xff]  }
  0x17   : > { %179 = vst [vmem:[%s12731_s26 + $0x30] sm:$0xff] %v178_v6   ;;  %v238_v21 = vld [vmem:[%s12726_s25 + $0xa8] sm:$0xff]   ;;  %v242_v22 = vld [vmem:[%s12726_s25 + $0xb0] sm:$0xff]   ;;  %v246_v23 = vld [vmem:[%s12726_s25 + $0xb8] sm:$0xff]  }
  0x18   : > { %183 = vst [vmem:[%s12731_s26 + $0x38] sm:$0xff] %v182_v7   ;;  %v250_v24 = vld [vmem:[%s12726_s25 + $0xc0] sm:$0xff]   ;;  %v254_v25 = vld [vmem:[%s12726_s25 + $0xc8] sm:$0xff]   ;;  %v258_v26 = vld [vmem:[%s12726_s25 + $0xd0] sm:$0xff]  }
  0x19   : > { %187 = vst [vmem:[%s12731_s26 + $0x40] sm:$0xff] %v186_v8   ;;  %v262_v27 = vld [vmem:[%s12726_s25 + $0xd8] sm:$0xff]   ;;  %v266_v28 = vld [vmem:[%s12726_s25 + $0xe0] sm:$0xff]   ;;  %v270_v29 = vld [vmem:[%s12726_s25 + $0xe8] sm:$0xff]  }
  0x1a   : > { %191 = vst [vmem:[%s12731_s26 + $0x48] sm:$0xff] %v190_v9   ;;  %v274_v30 = vld [vmem:[%s12726_s25 + $0xf0] sm:$0xff]   ;;  %v278_v31 = vld [vmem:[%s12726_s25 + $0xf8] sm:$0xff]   ;;  %v282_v32 = vld [vmem:[%s12726_s25 + $0x100] sm:$0xff]  }
  0x1b   : > { %195 = vst [vmem:[%s12731_s26 + $0x50] sm:$0xff] %v194_v10   ;;  %v286_v33 = vld [vmem:[%s12726_s25 + $0x108] sm:$0xff]   ;;  %v290_v34 = vld [vmem:[%s12726_s25 + $0x110] sm:$0xff]   ;;  %v294_v35 = vld [vmem:[%s12726_s25 + $0x118] sm:$0xff]  }
  0x1c   : > { %199 = vst [vmem:[%s12731_s26 + $0x58] sm:$0xff] %v198_v11   ;;  %v298_v36 = vld [vmem:[%s12726_s25 + $0x120] sm:$0xff]   ;;  %v302_v37 = vld [vmem:[%s12726_s25 + $0x128] sm:$0xff]   ;;  %v306_v38 = vld [vmem:[%s12726_s25 + $0x130] sm:$0xff]  }
  0x1d   : > { %203 = vst [vmem:[%s12731_s26 + $0x60] sm:$0xff] %v202_v12   ;;  %v310_v39 = vld [vmem:[%s12726_s25 + $0x138] sm:$0xff]   ;;  %v314_v40 = vld [vmem:[%s12726_s25 + $0x140] sm:$0xff]   ;;  %v318_v41 = vld [vmem:[%s12726_s25 + $0x148] sm:$0xff]  }
  0x1e   : > { %207 = vst [vmem:[%s12731_s26 + $0x68] sm:$0xff] %v206_v13   ;;  %v322_v42 = vld [vmem:[%s12726_s25 + $0x150] sm:$0xff]   ;;  %v326_v43 = vld [vmem:[%s12726_s25 + $0x158] sm:$0xff]   ;;  %v330_v44 = vld [vmem:[%s12726_s25 + $0x160] sm:$0xff]  }
  0x1f   : > { %211 = vst [vmem:[%s12731_s26 + $0x70] sm:$0xff] %v210_v14   ;;  %v334_v45 = vld [vmem:[%s12726_s25 + $0x168] sm:$0xff]   ;;  %v338_v46 = vld [vmem:[%s12726_s25 + $0x170] sm:$0xff]   ;;  %v342_v47 = vld [vmem:[%s12726_s25 + $0x178] sm:$0xff]  }
  0x20   : > { %215 = vst [vmem:[%s12731_s26 + $0x78] sm:$0xff] %v214_v15   ;;  %v346_v48 = vld [vmem:[%s12726_s25 + $0x180] sm:$0xff]   ;;  %v350_v49 = vld [vmem:[%s12726_s25 + $0x188] sm:$0xff]   ;;  %v354_v50 = vld [vmem:[%s12726_s25 + $0x190] sm:$0xff]  }
  0x21   : > { %219 = vst [vmem:[%s12731_s26 + $0x80] sm:$0xff] %v218_v16   ;;  %v358_v51 = vld [vmem:[%s12726_s25 + $0x198] sm:$0xff]   ;;  %v362_v52 = vld [vmem:[%s12726_s25 + $0x1a0] sm:$0xff]   ;;  %v366_v53 = vld [vmem:[%s12726_s25 + $0x1a8] sm:$0xff]  }
  0x22   : > { %223 = vst [vmem:[%s12731_s26 + $0x88] sm:$0xff] %v222_v17   ;;  %v370_v54 = vld [vmem:[%s12726_s25 + $0x1b0] sm:$0xff]   ;;  %v374_v55 = vld [vmem:[%s12726_s25 + $0x1b8] sm:$0xff]   ;;  %v378_v56 = vld [vmem:[%s12726_s25 + $0x1c0] sm:$0xff]  }
  0x23   : > { %227 = vst [vmem:[%s12731_s26 + $0x90] sm:$0xff] %v226_v18   ;;  %v382_v57 = vld [vmem:[%s12726_s25 + $0x1c8] sm:$0xff]   ;;  %v386_v58 = vld [vmem:[%s12726_s25 + $0x1d0] sm:$0xff]   ;;  %v390_v59 = vld [vmem:[%s12726_s25 + $0x1d8] sm:$0xff]  }
  0x24   : > { %231 = vst [vmem:[%s12731_s26 + $0x98] sm:$0xff] %v230_v19   ;;  %v394_v60 = vld [vmem:[%s12726_s25 + $0x1e0] sm:$0xff]   ;;  %v398_v61 = vld [vmem:[%s12726_s25 + $0x1e8] sm:$0xff]   ;;  %v402_v62 = vld [vmem:[%s12726_s25 + $0x1f0] sm:$0xff]  }
  0x25   : > { %235 = vst [vmem:[%s12731_s26 + $0xa0] sm:$0xff] %v234_v20   ;;  %v406_v63 = vld [vmem:[%s12726_s25 + $0x1f8] sm:$0xff]   ;;  %v410_v0 = vld [vmem:[%s12726_s25 + $0x200] sm:$0xff]   ;;  %v414_v1 = vld [vmem:[%s12726_s25 + $0x208] sm:$0xff]  }
  0x26   : > { %239 = vst [vmem:[%s12731_s26 + $0xa8] sm:$0xff] %v238_v21   ;;  %v418_v2 = vld [vmem:[%s12726_s25 + $0x210] sm:$0xff]   ;;  %v422_v3 = vld [vmem:[%s12726_s25 + $0x218] sm:$0xff]   ;;  %v426_v4 = vld [vmem:[%s12726_s25 + $0x220] sm:$0xff]  }
  0x27   : > { %243 = vst [vmem:[%s12731_s26 + $0xb0] sm:$0xff] %v242_v22   ;;  %v430_v5 = vld [vmem:[%s12726_s25 + $0x228] sm:$0xff]   ;;  %v434_v6 = vld [vmem:[%s12726_s25 + $0x230] sm:$0xff]   ;;  %v438_v7 = vld [vmem:[%s12726_s25 + $0x238] sm:$0xff]  }
  0x28   : > { %247 = vst [vmem:[%s12731_s26 + $0xb8] sm:$0xff] %v246_v23   ;;  %v442_v8 = vld [vmem:[%s12726_s25 + $0x480] sm:$0xff]   ;;  %v446_v9 = vld [vmem:[%s12726_s25 + $0x488] sm:$0xff]   ;;  %v450_v10 = vld [vmem:[%s12726_s25 + $0x490] sm:$0xff]  }
  0x29   : > { %251 = vst [vmem:[%s12731_s26 + $0xc0] sm:$0xff] %v250_v24   ;;  %v454_v11 = vld [vmem:[%s12726_s25 + $0x498] sm:$0xff]   ;;  %v458_v12 = vld [vmem:[%s12726_s25 + $0x4a0] sm:$0xff]   ;;  %v462_v13 = vld [vmem:[%s12726_s25 + $0x4a8] sm:$0xff]  }
  0x2a   : > { %255 = vst [vmem:[%s12731_s26 + $0xc8] sm:$0xff] %v254_v25   ;;  %v466_v14 = vld [vmem:[%s12726_s25 + $0x4b0] sm:$0xff]   ;;  %v470_v15 = vld [vmem:[%s12726_s25 + $0x4b8] sm:$0xff]   ;;  %v474_v16 = vld [vmem:[%s12726_s25 + $0x4c0] sm:$0xff]  }
  0x2b   : > { %259 = vst [vmem:[%s12731_s26 + $0xd0] sm:$0xff] %v258_v26   ;;  %v478_v17 = vld [vmem:[%s12726_s25 + $0x4c8] sm:$0xff]   ;;  %v482_v18 = vld [vmem:[%s12726_s25 + $0x4d0] sm:$0xff]   ;;  %v486_v19 = vld [vmem:[%s12726_s25 + $0x4d8] sm:$0xff]  }
  0x2c   : > { %263 = vst [vmem:[%s12731_s26 + $0xd8] sm:$0xff] %v262_v27   ;;  %v490_v20 = vld [vmem:[%s12726_s25 + $0x4e0] sm:$0xff]   ;;  %v494_v21 = vld [vmem:[%s12726_s25 + $0x4e8] sm:$0xff]   ;;  %v498_v22 = vld [vmem:[%s12726_s25 + $0x4f0] sm:$0xff]  }
  0x2d   : > { %267 = vst [vmem:[%s12731_s26 + $0xe0] sm:$0xff] %v266_v28   ;;  %v502_v23 = vld [vmem:[%s12726_s25 + $0x4f8] sm:$0xff]   ;;  %v506_v24 = vld [vmem:[%s12726_s25 + $0x500] sm:$0xff]   ;;  %v510_v25 = vld [vmem:[%s12726_s25 + $0x508] sm:$0xff]  }
  0x2e   : > { %271 = vst [vmem:[%s12731_s26 + $0xe8] sm:$0xff] %v270_v29   ;;  %v514_v26 = vld [vmem:[%s12726_s25 + $0x510] sm:$0xff]   ;;  %v518_v27 = vld [vmem:[%s12726_s25 + $0x518] sm:$0xff]   ;;  %v522_v28 = vld [vmem:[%s12726_s25 + $0x520] sm:$0xff]  }
  0x2f   : > { %275 = vst [vmem:[%s12731_s26 + $0xf0] sm:$0xff] %v274_v30   ;;  %v526_v29 = vld [vmem:[%s12726_s25 + $0x528] sm:$0xff]   ;;  %v530_v30 = vld [vmem:[%s12726_s25 + $0x530] sm:$0xff]  }
  0x30   : > { %279 = vst [vmem:[%s12731_s26 + $0xf8] sm:$0xff] %v278_v31   ;;  %v534_v31 = vld [vmem:[%s12726_s25 + $0x538] sm:$0xff]  }
  0x31   : > { %283 = vst [vmem:[%s12731_s26 + $0x100] sm:$0xff] %v282_v32   ;;  %v538_v32 = vld [vmem:[%s12726_s25 + $0x540] sm:$0xff]  }
  0x32   : > { %287 = vst [vmem:[%s12731_s26 + $0x108] sm:$0xff] %v286_v33   ;;  %v542_v33 = vld [vmem:[%s12726_s25 + $0x548] sm:$0xff]  }
  0x33   : > { %291 = vst [vmem:[%s12731_s26 + $0x110] sm:$0xff] %v290_v34   ;;  %v546_v34 = vld [vmem:[%s12726_s25 + $0x550] sm:$0xff]  }
  0x34   : > { %295 = vst [vmem:[%s12731_s26 + $0x118] sm:$0xff] %v294_v35   ;;  %v550_v35 = vld [vmem:[%s12726_s25 + $0x558] sm:$0xff]  }
  0x35   : > { %299 = vst [vmem:[%s12731_s26 + $0x120] sm:$0xff] %v298_v36   ;;  %v554_v36 = vld [vmem:[%s12726_s25 + $0x560] sm:$0xff]  }
  0x36   : > { %303 = vst [vmem:[%s12731_s26 + $0x128] sm:$0xff] %v302_v37   ;;  %v558_v37 = vld [vmem:[%s12726_s25 + $0x568] sm:$0xff]  }
  0x37   : > { %307 = vst [vmem:[%s12731_s26 + $0x130] sm:$0xff] %v306_v38   ;;  %v562_v38 = vld [vmem:[%s12726_s25 + $0x570] sm:$0xff]  }
  0x38   : > { %311 = vst [vmem:[%s12731_s26 + $0x138] sm:$0xff] %v310_v39   ;;  %v566_v39 = vld [vmem:[%s12726_s25 + $0x578] sm:$0xff]  }
  0x39   : > { %315 = vst [vmem:[%s12731_s26 + $0x140] sm:$0xff] %v314_v40   ;;  %v570_v40 = vld [vmem:[%s12726_s25 + $0x580] sm:$0xff]  }
  0x3a   : > { %319 = vst [vmem:[%s12731_s26 + $0x148] sm:$0xff] %v318_v41   ;;  %v574_v41 = vld [vmem:[%s12726_s25 + $0x588] sm:$0xff]  }
  0x3b   : > { %323 = vst [vmem:[%s12731_s26 + $0x150] sm:$0xff] %v322_v42   ;;  %v578_v42 = vld [vmem:[%s12726_s25 + $0x590] sm:$0xff]  }
  0x3c   : > { %327 = vst [vmem:[%s12731_s26 + $0x158] sm:$0xff] %v326_v43   ;;  %v582_v43 = vld [vmem:[%s12726_s25 + $0x598] sm:$0xff]  }
  0x3d   : > { %331 = vst [vmem:[%s12731_s26 + $0x160] sm:$0xff] %v330_v44   ;;  %v586_v44 = vld [vmem:[%s12726_s25 + $0x5a0] sm:$0xff]  }
  0x3e   : > { %335 = vst [vmem:[%s12731_s26 + $0x168] sm:$0xff] %v334_v45   ;;  %v590_v45 = vld [vmem:[%s12726_s25 + $0x5a8] sm:$0xff]  }
  0x3f   : > { %339 = vst [vmem:[%s12731_s26 + $0x170] sm:$0xff] %v338_v46   ;;  %v594_v46 = vld [vmem:[%s12726_s25 + $0x5b0] sm:$0xff]  }
  0x40   : > { %343 = vst [vmem:[%s12731_s26 + $0x178] sm:$0xff] %v342_v47   ;;  %v598_v47 = vld [vmem:[%s12726_s25 + $0x5b8] sm:$0xff]  }
  0x41   : > { %347 = vst [vmem:[%s12731_s26 + $0x180] sm:$0xff] %v346_v48   ;;  %v602_v48 = vld [vmem:[%s12726_s25 + $0x5c0] sm:$0xff]  }
  0x42   : > { %351 = vst [vmem:[%s12731_s26 + $0x188] sm:$0xff] %v350_v49   ;;  %v606_v49 = vld [vmem:[%s12726_s25 + $0x5c8] sm:$0xff]  }
  0x43   : > { %355 = vst [vmem:[%s12731_s26 + $0x190] sm:$0xff] %v354_v50   ;;  %v610_v50 = vld [vmem:[%s12726_s25 + $0x5d0] sm:$0xff]  }
  0x44   : > { %359 = vst [vmem:[%s12731_s26 + $0x198] sm:$0xff] %v358_v51   ;;  %v614_v51 = vld [vmem:[%s12726_s25 + $0x5d8] sm:$0xff]  }
  0x45   : > { %363 = vst [vmem:[%s12731_s26 + $0x1a0] sm:$0xff] %v362_v52   ;;  %v618_v52 = vld [vmem:[%s12726_s25 + $0x5e0] sm:$0xff]  }
  0x46   : > { %367 = vst [vmem:[%s12731_s26 + $0x1a8] sm:$0xff] %v366_v53   ;;  %v622_v53 = vld [vmem:[%s12726_s25 + $0x5e8] sm:$0xff]  }
  0x47   : > { %371 = vst [vmem:[%s12731_s26 + $0x1b0] sm:$0xff] %v370_v54   ;;  %v626_v54 = vld [vmem:[%s12726_s25 + $0x5f0] sm:$0xff]  }
  0x48   : > { %375 = vst [vmem:[%s12731_s26 + $0x1b8] sm:$0xff] %v374_v55   ;;  %v630_v55 = vld [vmem:[%s12726_s25 + $0x5f8] sm:$0xff]  }
  0x49   : > { %379 = vst [vmem:[%s12731_s26 + $0x1c0] sm:$0xff] %v378_v56   ;;  %v634_v56 = vld [vmem:[%s12726_s25 + $0x600] sm:$0xff]  }
  0x4a   : > { %383 = vst [vmem:[%s12731_s26 + $0x1c8] sm:$0xff] %v382_v57   ;;  %v638_v57 = vld [vmem:[%s12726_s25 + $0x608] sm:$0xff]  }
  0x4b   : > { %387 = vst [vmem:[%s12731_s26 + $0x1d0] sm:$0xff] %v386_v58   ;;  %v642_v58 = vld [vmem:[%s12726_s25 + $0x610] sm:$0xff]  }
  0x4c   : > { %391 = vst [vmem:[%s12731_s26 + $0x1d8] sm:$0xff] %v390_v59   ;;  %v646_v59 = vld [vmem:[%s12726_s25 + $0x618] sm:$0xff]  }
  0x4d   : > { %395 = vst [vmem:[%s12731_s26 + $0x1e0] sm:$0xff] %v394_v60   ;;  %v650_v60 = vld [vmem:[%s12726_s25 + $0x620] sm:$0xff]  }
  0x4e   : > { %399 = vst [vmem:[%s12731_s26 + $0x1e8] sm:$0xff] %v398_v61   ;;  %v654_v61 = vld [vmem:[%s12726_s25 + $0x628] sm:$0xff]  }
  0x4f   : > { %403 = vst [vmem:[%s12731_s26 + $0x1f0] sm:$0xff] %v402_v62   ;;  %v658_v62 = vld [vmem:[%s12726_s25 + $0x630] sm:$0xff]  }
  0x50   : > { %407 = vst [vmem:[%s12731_s26 + $0x1f8] sm:$0xff] %v406_v63   ;;  %v662_v63 = vld [vmem:[%s12726_s25 + $0x638] sm:$0xff]  }
  0x51   : > { %411 = vst [vmem:[%s12731_s26 + $0x200] sm:$0xff] %v410_v0   ;;  %v666_v0 = vld [vmem:[%s12726_s25 + $0x640] sm:$0xff]  }
  0x52   : > { %415 = vst [vmem:[%s12731_s26 + $0x208] sm:$0xff] %v414_v1   ;;  %v670_v1 = vld [vmem:[%s12726_s25 + $0x648] sm:$0xff]  }
  0x53   : > { %419 = vst [vmem:[%s12731_s26 + $0x210] sm:$0xff] %v418_v2   ;;  %v674_v2 = vld [vmem:[%s12726_s25 + $0x650] sm:$0xff]  }
  0x54   : > { %423 = vst [vmem:[%s12731_s26 + $0x218] sm:$0xff] %v422_v3   ;;  %v678_v3 = vld [vmem:[%s12726_s25 + $0x658] sm:$0xff]  }
  0x55   : > { %427 = vst [vmem:[%s12731_s26 + $0x220] sm:$0xff] %v426_v4   ;;  %v682_v4 = vld [vmem:[%s12726_s25 + $0x660] sm:$0xff]  }
  0x56   : > { %431 = vst [vmem:[%s12731_s26 + $0x228] sm:$0xff] %v430_v5   ;;  %v686_v5 = vld [vmem:[%s12726_s25 + $0x668] sm:$0xff]  }
  0x57   : > { %435 = vst [vmem:[%s12731_s26 + $0x230] sm:$0xff] %v434_v6   ;;  %v690_v6 = vld [vmem:[%s12726_s25 + $0x670] sm:$0xff]  }
  0x58   : > { %439 = vst [vmem:[%s12731_s26 + $0x238] sm:$0xff] %v438_v7   ;;  %v694_v7 = vld [vmem:[%s12726_s25 + $0x678] sm:$0xff]  }
  0x59   : > { %443 = vst [vmem:[%s12731_s26 + $0x240] sm:$0xff] %v442_v8   ;;  %v698_v8 = vld [vmem:[%s12726_s25 + $0x680] sm:$0xff]  }
  0x5a   : > { %447 = vst [vmem:[%s12731_s26 + $0x248] sm:$0xff] %v446_v9   ;;  %v702_v9 = vld [vmem:[%s12726_s25 + $0x688] sm:$0xff]  }
  0x5b   : > { %451 = vst [vmem:[%s12731_s26 + $0x250] sm:$0xff] %v450_v10   ;;  %v706_v10 = vld [vmem:[%s12726_s25 + $0x690] sm:$0xff]  }
  0x5c   : > { %455 = vst [vmem:[%s12731_s26 + $0x258] sm:$0xff] %v454_v11   ;;  %v710_v11 = vld [vmem:[%s12726_s25 + $0x698] sm:$0xff]  }
  0x5d   : > { %459 = vst [vmem:[%s12731_s26 + $0x260] sm:$0xff] %v458_v12   ;;  %v714_v12 = vld [vmem:[%s12726_s25 + $0x6a0] sm:$0xff]  }
  0x5e   : > { %463 = vst [vmem:[%s12731_s26 + $0x268] sm:$0xff] %v462_v13   ;;  %v718_v13 = vld [vmem:[%s12726_s25 + $0x6a8] sm:$0xff]  }
  0x5f   : > { %467 = vst [vmem:[%s12731_s26 + $0x270] sm:$0xff] %v466_v14   ;;  %v722_v14 = vld [vmem:[%s12726_s25 + $0x6b0] sm:$0xff]  }
  0x60   : > { %471 = vst [vmem:[%s12731_s26 + $0x278] sm:$0xff] %v470_v15   ;;  %v726_v15 = vld [vmem:[%s12726_s25 + $0x6b8] sm:$0xff]  }
  0x61   : > { %475 = vst [vmem:[%s12731_s26 + $0x280] sm:$0xff] %v474_v16   ;;  %v730_v16 = vld [vmem:[%s12726_s25 + $0x900] sm:$0xff]  }
  0x62   : > { %479 = vst [vmem:[%s12731_s26 + $0x288] sm:$0xff] %v478_v17   ;;  %v734_v17 = vld [vmem:[%s12726_s25 + $0x908] sm:$0xff]  }
  0x63   : > { %483 = vst [vmem:[%s12731_s26 + $0x290] sm:$0xff] %v482_v18   ;;  %v738_v18 = vld [vmem:[%s12726_s25 + $0x910] sm:$0xff]  }
  0x64   : > { %487 = vst [vmem:[%s12731_s26 + $0x298] sm:$0xff] %v486_v19   ;;  %v742_v19 = vld [vmem:[%s12726_s25 + $0x918] sm:$0xff]  }
  0x65   : > { %491 = vst [vmem:[%s12731_s26 + $0x2a0] sm:$0xff] %v490_v20   ;;  %v746_v20 = vld [vmem:[%s12726_s25 + $0x920] sm:$0xff]  }
  0x66   : > { %495 = vst [vmem:[%s12731_s26 + $0x2a8] sm:$0xff] %v494_v21   ;;  %v750_v21 = vld [vmem:[%s12726_s25 + $0x928] sm:$0xff]  }
  0x67   : > { %499 = vst [vmem:[%s12731_s26 + $0x2b0] sm:$0xff] %v498_v22   ;;  %v754_v22 = vld [vmem:[%s12726_s25 + $0x930] sm:$0xff]  }
  0x68   : > { %503 = vst [vmem:[%s12731_s26 + $0x2b8] sm:$0xff] %v502_v23   ;;  %v758_v23 = vld [vmem:[%s12726_s25 + $0x938] sm:$0xff]  }
  0x69   : > { %507 = vst [vmem:[%s12731_s26 + $0x2c0] sm:$0xff] %v506_v24   ;;  %v762_v24 = vld [vmem:[%s12726_s25 + $0x940] sm:$0xff]  }
  0x6a   : > { %511 = vst [vmem:[%s12731_s26 + $0x2c8] sm:$0xff] %v510_v25   ;;  %v766_v25 = vld [vmem:[%s12726_s25 + $0x948] sm:$0xff]  }
  0x6b   : > { %515 = vst [vmem:[%s12731_s26 + $0x2d0] sm:$0xff] %v514_v26   ;;  %v770_v26 = vld [vmem:[%s12726_s25 + $0x950] sm:$0xff]  }
  0x6c   : > { %519 = vst [vmem:[%s12731_s26 + $0x2d8] sm:$0xff] %v518_v27   ;;  %v774_v27 = vld [vmem:[%s12726_s25 + $0x958] sm:$0xff]  }
  0x6d   : > { %523 = vst [vmem:[%s12731_s26 + $0x2e0] sm:$0xff] %v522_v28   ;;  %v778_v28 = vld [vmem:[%s12726_s25 + $0x960] sm:$0xff]  }
  0x6e   : > { %527 = vst [vmem:[%s12731_s26 + $0x2e8] sm:$0xff] %v526_v29   ;;  %v782_v29 = vld [vmem:[%s12726_s25 + $0x968] sm:$0xff]  }
  0x6f   : > { %531 = vst [vmem:[%s12731_s26 + $0x2f0] sm:$0xff] %v530_v30   ;;  %v786_v30 = vld [vmem:[%s12726_s25 + $0x970] sm:$0xff]  }
  0x70   : > { %535 = vst [vmem:[%s12731_s26 + $0x2f8] sm:$0xff] %v534_v31   ;;  %v790_v31 = vld [vmem:[%s12726_s25 + $0x978] sm:$0xff]  }
  0x71   : > { %539 = vst [vmem:[%s12731_s26 + $0x300] sm:$0xff] %v538_v32   ;;  %v794_v32 = vld [vmem:[%s12726_s25 + $0x980] sm:$0xff]  }
  0x72   : > { %543 = vst [vmem:[%s12731_s26 + $0x308] sm:$0xff] %v542_v33   ;;  %v798_v33 = vld [vmem:[%s12726_s25 + $0x988] sm:$0xff]  }
  0x73   : > { %547 = vst [vmem:[%s12731_s26 + $0x310] sm:$0xff] %v546_v34   ;;  %v802_v34 = vld [vmem:[%s12726_s25 + $0x990] sm:$0xff]  }
  0x74   : > { %551 = vst [vmem:[%s12731_s26 + $0x318] sm:$0xff] %v550_v35   ;;  %v806_v35 = vld [vmem:[%s12726_s25 + $0x998] sm:$0xff]  }
  0x75   : > { %555 = vst [vmem:[%s12731_s26 + $0x320] sm:$0xff] %v554_v36   ;;  %v810_v36 = vld [vmem:[%s12726_s25 + $0x9a0] sm:$0xff]  }
  0x76   : > { %559 = vst [vmem:[%s12731_s26 + $0x328] sm:$0xff] %v558_v37   ;;  %v814_v37 = vld [vmem:[%s12726_s25 + $0x9a8] sm:$0xff]  }
  0x77   : > { %563 = vst [vmem:[%s12731_s26 + $0x330] sm:$0xff] %v562_v38   ;;  %v818_v38 = vld [vmem:[%s12726_s25 + $0x9b0] sm:$0xff]  }
  0x78   : > { %567 = vst [vmem:[%s12731_s26 + $0x338] sm:$0xff] %v566_v39   ;;  %v822_v39 = vld [vmem:[%s12726_s25 + $0x9b8] sm:$0xff]  }
  0x79   : > { %571 = vst [vmem:[%s12731_s26 + $0x340] sm:$0xff] %v570_v40   ;;  %v826_v40 = vld [vmem:[%s12726_s25 + $0x9c0] sm:$0xff]  }
  0x7a   : > { %575 = vst [vmem:[%s12731_s26 + $0x348] sm:$0xff] %v574_v41   ;;  %v830_v41 = vld [vmem:[%s12726_s25 + $0x9c8] sm:$0xff]  }
  0x7b   : > { %579 = vst [vmem:[%s12731_s26 + $0x350] sm:$0xff] %v578_v42   ;;  %v834_v42 = vld [vmem:[%s12726_s25 + $0x9d0] sm:$0xff]  }
  0x7c   : > { %583 = vst [vmem:[%s12731_s26 + $0x358] sm:$0xff] %v582_v43   ;;  %v838_v43 = vld [vmem:[%s12726_s25 + $0x9d8] sm:$0xff]  }
  0x7d   : > { %587 = vst [vmem:[%s12731_s26 + $0x360] sm:$0xff] %v586_v44   ;;  %v842_v44 = vld [vmem:[%s12726_s25 + $0x9e0] sm:$0xff]  }
  0x7e   : > { %591 = vst [vmem:[%s12731_s26 + $0x368] sm:$0xff] %v590_v45   ;;  %v846_v45 = vld [vmem:[%s12726_s25 + $0x9e8] sm:$0xff]  }
  0x7f   : > { %595 = vst [vmem:[%s12731_s26 + $0x370] sm:$0xff] %v594_v46   ;;  %v850_v46 = vld [vmem:[%s12726_s25 + $0x9f0] sm:$0xff]  }
  0x80   : > { %599 = vst [vmem:[%s12731_s26 + $0x378] sm:$0xff] %v598_v47   ;;  %v854_v47 = vld [vmem:[%s12726_s25 + $0x9f8] sm:$0xff]  }
  0x81   : > { %603 = vst [vmem:[%s12731_s26 + $0x380] sm:$0xff] %v602_v48   ;;  %v858_v48 = vld [vmem:[%s12726_s25 + $0xa00] sm:$0xff]  }
  0x82   : > { %607 = vst [vmem:[%s12731_s26 + $0x388] sm:$0xff] %v606_v49   ;;  %v862_v49 = vld [vmem:[%s12726_s25 + $0xa08] sm:$0xff]  }
  0x83   : > { %611 = vst [vmem:[%s12731_s26 + $0x390] sm:$0xff] %v610_v50   ;;  %v866_v50 = vld [vmem:[%s12726_s25 + $0xa10] sm:$0xff]  }
  0x84   : > { %615 = vst [vmem:[%s12731_s26 + $0x398] sm:$0xff] %v614_v51   ;;  %v870_v51 = vld [vmem:[%s12726_s25 + $0xa18] sm:$0xff]  }
  0x85   : > { %619 = vst [vmem:[%s12731_s26 + $0x3a0] sm:$0xff] %v618_v52   ;;  %v874_v52 = vld [vmem:[%s12726_s25 + $0xa20] sm:$0xff]  }
  0x86   : > { %623 = vst [vmem:[%s12731_s26 + $0x3a8] sm:$0xff] %v622_v53   ;;  %v878_v53 = vld [vmem:[%s12726_s25 + $0xa28] sm:$0xff]  }
  0x87   : > { %627 = vst [vmem:[%s12731_s26 + $0x3b0] sm:$0xff] %v626_v54   ;;  %v882_v54 = vld [vmem:[%s12726_s25 + $0xa30] sm:$0xff]  }
  0x88   : > { %631 = vst [vmem:[%s12731_s26 + $0x3b8] sm:$0xff] %v630_v55   ;;  %v886_v55 = vld [vmem:[%s12726_s25 + $0xa38] sm:$0xff]  }
  0x89   : > { %635 = vst [vmem:[%s12731_s26 + $0x3c0] sm:$0xff] %v634_v56   ;;  %v890_v56 = vld [vmem:[%s12726_s25 + $0xa40] sm:$0xff]  }
  0x8a   : > { %639 = vst [vmem:[%s12731_s26 + $0x3c8] sm:$0xff] %v638_v57   ;;  %v894_v57 = vld [vmem:[%s12726_s25 + $0xa48] sm:$0xff]  }
  0x8b   : > { %643 = vst [vmem:[%s12731_s26 + $0x3d0] sm:$0xff] %v642_v58   ;;  %v898_v58 = vld [vmem:[%s12726_s25 + $0xa50] sm:$0xff]  }
  0x8c   : > { %647 = vst [vmem:[%s12731_s26 + $0x3d8] sm:$0xff] %v646_v59   ;;  %v902_v59 = vld [vmem:[%s12726_s25 + $0xa58] sm:$0xff]  }
  0x8d   : > { %651 = vst [vmem:[%s12731_s26 + $0x3e0] sm:$0xff] %v650_v60   ;;  %v906_v60 = vld [vmem:[%s12726_s25 + $0xa60] sm:$0xff]  }
  0x8e   : > { %655 = vst [vmem:[%s12731_s26 + $0x3e8] sm:$0xff] %v654_v61   ;;  %v910_v61 = vld [vmem:[%s12726_s25 + $0xa68] sm:$0xff]  }
  0x8f   : > { %659 = vst [vmem:[%s12731_s26 + $0x3f0] sm:$0xff] %v658_v62   ;;  %v914_v62 = vld [vmem:[%s12726_s25 + $0xa70] sm:$0xff]  }
  0x90   : > { %663 = vst [vmem:[%s12731_s26 + $0x3f8] sm:$0xff] %v662_v63   ;;  %v918_v63 = vld [vmem:[%s12726_s25 + $0xa78] sm:$0xff]  }
  0x91   : > { %667 = vst [vmem:[%s12731_s26 + $0x400] sm:$0xff] %v666_v0   ;;  %v922_v0 = vld [vmem:[%s12726_s25 + $0xa80] sm:$0xff]  }
  0x92   : > { %671 = vst [vmem:[%s12731_s26 + $0x408] sm:$0xff] %v670_v1   ;;  %v926_v1 = vld [vmem:[%s12726_s25 + $0xa88] sm:$0xff]  }
  0x93   : > { %675 = vst [vmem:[%s12731_s26 + $0x410] sm:$0xff] %v674_v2   ;;  %v930_v2 = vld [vmem:[%s12726_s25 + $0xa90] sm:$0xff]  }
  0x94   : > { %679 = vst [vmem:[%s12731_s26 + $0x418] sm:$0xff] %v678_v3   ;;  %v934_v3 = vld [vmem:[%s12726_s25 + $0xa98] sm:$0xff]  }
  0x95   : > { %683 = vst [vmem:[%s12731_s26 + $0x420] sm:$0xff] %v682_v4   ;;  %v938_v4 = vld [vmem:[%s12726_s25 + $0xaa0] sm:$0xff]  }
  0x96   : > { %687 = vst [vmem:[%s12731_s26 + $0x428] sm:$0xff] %v686_v5   ;;  %v942_v5 = vld [vmem:[%s12726_s25 + $0xaa8] sm:$0xff]  }
  0x97   : > { %691 = vst [vmem:[%s12731_s26 + $0x430] sm:$0xff] %v690_v6   ;;  %v946_v6 = vld [vmem:[%s12726_s25 + $0xab0] sm:$0xff]  }
  0x98   : > { %695 = vst [vmem:[%s12731_s26 + $0x438] sm:$0xff] %v694_v7   ;;  %v950_v7 = vld [vmem:[%s12726_s25 + $0xab8] sm:$0xff]  }
  0x99   : > { %699 = vst [vmem:[%s12731_s26 + $0x440] sm:$0xff] %v698_v8   ;;  %v954_v8 = vld [vmem:[%s12726_s25 + $0xac0] sm:$0xff]  }
  0x9a   : > { %703 = vst [vmem:[%s12731_s26 + $0x448] sm:$0xff] %v702_v9   ;;  %v958_v9 = vld [vmem:[%s12726_s25 + $0xac8] sm:$0xff]  }
  0x9b   : > { %707 = vst [vmem:[%s12731_s26 + $0x450] sm:$0xff] %v706_v10   ;;  %v962_v10 = vld [vmem:[%s12726_s25 + $0xad0] sm:$0xff]  }
  0x9c   : > { %711 = vst [vmem:[%s12731_s26 + $0x458] sm:$0xff] %v710_v11   ;;  %v966_v11 = vld [vmem:[%s12726_s25 + $0xad8] sm:$0xff]  }
  0x9d   : > { %715 = vst [vmem:[%s12731_s26 + $0x460] sm:$0xff] %v714_v12   ;;  %v970_v12 = vld [vmem:[%s12726_s25 + $0xae0] sm:$0xff]  }
  0x9e   : > { %719 = vst [vmem:[%s12731_s26 + $0x468] sm:$0xff] %v718_v13   ;;  %v974_v13 = vld [vmem:[%s12726_s25 + $0xae8] sm:$0xff]  }
  0x9f   : > { %723 = vst [vmem:[%s12731_s26 + $0x470] sm:$0xff] %v722_v14   ;;  %v978_v14 = vld [vmem:[%s12726_s25 + $0xaf0] sm:$0xff]  }
  0xa0   : > { %727 = vst [vmem:[%s12731_s26 + $0x478] sm:$0xff] %v726_v15   ;;  %v982_v15 = vld [vmem:[%s12726_s25 + $0xaf8] sm:$0xff]  }
  0xa1   : > { %731 = vst [vmem:[%s12731_s26 + $0x480] sm:$0xff] %v730_v16   ;;  %v986_v16 = vld [vmem:[%s12726_s25 + $0xb00] sm:$0xff]  }
  0xa2   : > { %735 = vst [vmem:[%s12731_s26 + $0x488] sm:$0xff] %v734_v17   ;;  %v990_v17 = vld [vmem:[%s12726_s25 + $0xb08] sm:$0xff]  }
  0xa3   : > { %739 = vst [vmem:[%s12731_s26 + $0x490] sm:$0xff] %v738_v18   ;;  %v994_v18 = vld [vmem:[%s12726_s25 + $0xb10] sm:$0xff]  }
  0xa4   : > { %743 = vst [vmem:[%s12731_s26 + $0x498] sm:$0xff] %v742_v19   ;;  %v998_v19 = vld [vmem:[%s12726_s25 + $0xb18] sm:$0xff]  }
  0xa5   : > { %747 = vst [vmem:[%s12731_s26 + $0x4a0] sm:$0xff] %v746_v20   ;;  %v1002_v20 = vld [vmem:[%s12726_s25 + $0xb20] sm:$0xff]  }
  0xa6   : > { %751 = vst [vmem:[%s12731_s26 + $0x4a8] sm:$0xff] %v750_v21   ;;  %v1006_v21 = vld [vmem:[%s12726_s25 + $0xb28] sm:$0xff]  }
  0xa7   : > { %755 = vst [vmem:[%s12731_s26 + $0x4b0] sm:$0xff] %v754_v22   ;;  %v1010_v22 = vld [vmem:[%s12726_s25 + $0xb30] sm:$0xff]  }
  0xa8   : > { %759 = vst [vmem:[%s12731_s26 + $0x4b8] sm:$0xff] %v758_v23   ;;  %v1014_v23 = vld [vmem:[%s12726_s25 + $0xb38] sm:$0xff]  }
  0xa9   : > { %763 = vst [vmem:[%s12731_s26 + $0x4c0] sm:$0xff] %v762_v24   ;;  %v1018_v24 = vld [vmem:[%s12726_s25 + $0xd80] sm:$0xff]  }
  0xaa   : > { %767 = vst [vmem:[%s12731_s26 + $0x4c8] sm:$0xff] %v766_v25   ;;  %v1022_v25 = vld [vmem:[%s12726_s25 + $0xd88] sm:$0xff]  }
  0xab   : > { %771 = vst [vmem:[%s12731_s26 + $0x4d0] sm:$0xff] %v770_v26   ;;  %v1026_v26 = vld [vmem:[%s12726_s25 + $0xd90] sm:$0xff]  }
  0xac   : > { %775 = vst [vmem:[%s12731_s26 + $0x4d8] sm:$0xff] %v774_v27   ;;  %v1030_v27 = vld [vmem:[%s12726_s25 + $0xd98] sm:$0xff]  }
  0xad   : > { %779 = vst [vmem:[%s12731_s26 + $0x4e0] sm:$0xff] %v778_v28   ;;  %v1034_v28 = vld [vmem:[%s12726_s25 + $0xda0] sm:$0xff]  }
  0xae   : > { %783 = vst [vmem:[%s12731_s26 + $0x4e8] sm:$0xff] %v782_v29   ;;  %v1038_v29 = vld [vmem:[%s12726_s25 + $0xda8] sm:$0xff]  }
  0xaf   : > { %787 = vst [vmem:[%s12731_s26 + $0x4f0] sm:$0xff] %v786_v30   ;;  %v1042_v30 = vld [vmem:[%s12726_s25 + $0xdb0] sm:$0xff]  }
  0xb0   : > { %791 = vst [vmem:[%s12731_s26 + $0x4f8] sm:$0xff] %v790_v31   ;;  %v1046_v31 = vld [vmem:[%s12726_s25 + $0xdb8] sm:$0xff]  }
  0xb1   : > { %795 = vst [vmem:[%s12731_s26 + $0x500] sm:$0xff] %v794_v32   ;;  %v1050_v32 = vld [vmem:[%s12726_s25 + $0xdc0] sm:$0xff]  }
  0xb2   : > { %799 = vst [vmem:[%s12731_s26 + $0x508] sm:$0xff] %v798_v33   ;;  %v1054_v33 = vld [vmem:[%s12726_s25 + $0xdc8] sm:$0xff]  }
  0xb3   : > { %803 = vst [vmem:[%s12731_s26 + $0x510] sm:$0xff] %v802_v34   ;;  %v1058_v34 = vld [vmem:[%s12726_s25 + $0xdd0] sm:$0xff]  }
  0xb4   : > { %807 = vst [vmem:[%s12731_s26 + $0x518] sm:$0xff] %v806_v35   ;;  %v1062_v35 = vld [vmem:[%s12726_s25 + $0xdd8] sm:$0xff]  }
  0xb5   : > { %811 = vst [vmem:[%s12731_s26 + $0x520] sm:$0xff] %v810_v36   ;;  %v1066_v36 = vld [vmem:[%s12726_s25 + $0xde0] sm:$0xff]  }
  0xb6   : > { %815 = vst [vmem:[%s12731_s26 + $0x528] sm:$0xff] %v814_v37   ;;  %v1070_v37 = vld [vmem:[%s12726_s25 + $0xde8] sm:$0xff]  }
  0xb7   : > { %819 = vst [vmem:[%s12731_s26 + $0x530] sm:$0xff] %v818_v38   ;;  %v1074_v38 = vld [vmem:[%s12726_s25 + $0xdf0] sm:$0xff]  }
  0xb8   : > { %823 = vst [vmem:[%s12731_s26 + $0x538] sm:$0xff] %v822_v39   ;;  %v1078_v39 = vld [vmem:[%s12726_s25 + $0xdf8] sm:$0xff]  }
  0xb9   : > { %827 = vst [vmem:[%s12731_s26 + $0x540] sm:$0xff] %v826_v40   ;;  %v1082_v40 = vld [vmem:[%s12726_s25 + $0xe00] sm:$0xff]  }
  0xba   : > { %831 = vst [vmem:[%s12731_s26 + $0x548] sm:$0xff] %v830_v41   ;;  %v1086_v41 = vld [vmem:[%s12726_s25 + $0xe08] sm:$0xff]  }
  0xbb   : > { %835 = vst [vmem:[%s12731_s26 + $0x550] sm:$0xff] %v834_v42   ;;  %v1090_v42 = vld [vmem:[%s12726_s25 + $0xe10] sm:$0xff]  }
  0xbc   : > { %839 = vst [vmem:[%s12731_s26 + $0x558] sm:$0xff] %v838_v43   ;;  %v1094_v43 = vld [vmem:[%s12726_s25 + $0xe18] sm:$0xff]  }
  0xbd   : > { %843 = vst [vmem:[%s12731_s26 + $0x560] sm:$0xff] %v842_v44   ;;  %v1098_v44 = vld [vmem:[%s12726_s25 + $0xe20] sm:$0xff]  }
  0xbe   : > { %847 = vst [vmem:[%s12731_s26 + $0x568] sm:$0xff] %v846_v45   ;;  %v1102_v45 = vld [vmem:[%s12726_s25 + $0xe28] sm:$0xff]  }
  0xbf   : > { %851 = vst [vmem:[%s12731_s26 + $0x570] sm:$0xff] %v850_v46   ;;  %v1106_v46 = vld [vmem:[%s12726_s25 + $0xe30] sm:$0xff]  }
  0xc0   : > { %855 = vst [vmem:[%s12731_s26 + $0x578] sm:$0xff] %v854_v47   ;;  %v1110_v47 = vld [vmem:[%s12726_s25 + $0xe38] sm:$0xff]  }
  0xc1   : > { %859 = vst [vmem:[%s12731_s26 + $0x580] sm:$0xff] %v858_v48   ;;  %v1114_v48 = vld [vmem:[%s12726_s25 + $0xe40] sm:$0xff]  }
  0xc2   : > { %863 = vst [vmem:[%s12731_s26 + $0x588] sm:$0xff] %v862_v49   ;;  %v1118_v49 = vld [vmem:[%s12726_s25 + $0xe48] sm:$0xff]  }
  0xc3   : > { %867 = vst [vmem:[%s12731_s26 + $0x590] sm:$0xff] %v866_v50   ;;  %v1122_v50 = vld [vmem:[%s12726_s25 + $0xe50] sm:$0xff]  }
  0xc4   : > { %871 = vst [vmem:[%s12731_s26 + $0x598] sm:$0xff] %v870_v51   ;;  %v1126_v51 = vld [vmem:[%s12726_s25 + $0xe58] sm:$0xff]  }
  0xc5   : > { %875 = vst [vmem:[%s12731_s26 + $0x5a0] sm:$0xff] %v874_v52   ;;  %v1130_v52 = vld [vmem:[%s12726_s25 + $0xe60] sm:$0xff]  }
  0xc6   : > { %879 = vst [vmem:[%s12731_s26 + $0x5a8] sm:$0xff] %v878_v53   ;;  %v1134_v53 = vld [vmem:[%s12726_s25 + $0xe68] sm:$0xff]  }
  0xc7   : > { %883 = vst [vmem:[%s12731_s26 + $0x5b0] sm:$0xff] %v882_v54   ;;  %v1138_v54 = vld [vmem:[%s12726_s25 + $0xe70] sm:$0xff]  }
  0xc8   : > { %887 = vst [vmem:[%s12731_s26 + $0x5b8] sm:$0xff] %v886_v55   ;;  %v1142_v55 = vld [vmem:[%s12726_s25 + $0xe78] sm:$0xff]  }
  0xc9   : > { %891 = vst [vmem:[%s12731_s26 + $0x5c0] sm:$0xff] %v890_v56   ;;  %v1146_v56 = vld [vmem:[%s12726_s25 + $0xe80] sm:$0xff]  }
  0xca   : > { %895 = vst [vmem:[%s12731_s26 + $0x5c8] sm:$0xff] %v894_v57   ;;  %v1150_v57 = vld [vmem:[%s12726_s25 + $0xe88] sm:$0xff]  }
  0xcb   : > { %899 = vst [vmem:[%s12731_s26 + $0x5d0] sm:$0xff] %v898_v58   ;;  %v1154_v58 = vld [vmem:[%s12726_s25 + $0xe90] sm:$0xff]  }
  0xcc   : > { %903 = vst [vmem:[%s12731_s26 + $0x5d8] sm:$0xff] %v902_v59   ;;  %v1158_v59 = vld [vmem:[%s12726_s25 + $0xe98] sm:$0xff]  }
  0xcd   : > { %907 = vst [vmem:[%s12731_s26 + $0x5e0] sm:$0xff] %v906_v60   ;;  %v1162_v60 = vld [vmem:[%s12726_s25 + $0xea0] sm:$0xff]  }
  0xce   : > { %911 = vst [vmem:[%s12731_s26 + $0x5e8] sm:$0xff] %v910_v61   ;;  %v1166_v61 = vld [vmem:[%s12726_s25 + $0xea8] sm:$0xff]  }
  0xcf   : > { %915 = vst [vmem:[%s12731_s26 + $0x5f0] sm:$0xff] %v914_v62   ;;  %v1170_v62 = vld [vmem:[%s12726_s25 + $0xeb0] sm:$0xff]  }
  0xd0   : > { %919 = vst [vmem:[%s12731_s26 + $0x5f8] sm:$0xff] %v918_v63   ;;  %v1174_v63 = vld [vmem:[%s12726_s25 + $0xeb8] sm:$0xff]  }
  0xd1   : > { %923 = vst [vmem:[%s12731_s26 + $0x600] sm:$0xff] %v922_v0   ;;  %v1178_v0 = vld [vmem:[%s12726_s25 + $0xec0] sm:$0xff]  }
  0xd2   : > { %927 = vst [vmem:[%s12731_s26 + $0x608] sm:$0xff] %v926_v1   ;;  %v1182_v1 = vld [vmem:[%s12726_s25 + $0xec8] sm:$0xff]  }
  0xd3   : > { %931 = vst [vmem:[%s12731_s26 + $0x610] sm:$0xff] %v930_v2   ;;  %v1186_v2 = vld [vmem:[%s12726_s25 + $0xed0] sm:$0xff]  }
  0xd4   : > { %935 = vst [vmem:[%s12731_s26 + $0x618] sm:$0xff] %v934_v3   ;;  %v1190_v3 = vld [vmem:[%s12726_s25 + $0xed8] sm:$0xff]  }
  0xd5   : > { %939 = vst [vmem:[%s12731_s26 + $0x620] sm:$0xff] %v938_v4   ;;  %v1194_v4 = vld [vmem:[%s12726_s25 + $0xee0] sm:$0xff]  }
  0xd6   : > { %943 = vst [vmem:[%s12731_s26 + $0x628] sm:$0xff] %v942_v5   ;;  %v1198_v5 = vld [vmem:[%s12726_s25 + $0xee8] sm:$0xff]  }
  0xd7   : > { %947 = vst [vmem:[%s12731_s26 + $0x630] sm:$0xff] %v946_v6   ;;  %v1202_v6 = vld [vmem:[%s12726_s25 + $0xef0] sm:$0xff]  }
  0xd8   : > { %951 = vst [vmem:[%s12731_s26 + $0x638] sm:$0xff] %v950_v7   ;;  %v1206_v7 = vld [vmem:[%s12726_s25 + $0xef8] sm:$0xff]  }
  0xd9   : > { %955 = vst [vmem:[%s12731_s26 + $0x640] sm:$0xff] %v954_v8   ;;  %v1210_v8 = vld [vmem:[%s12726_s25 + $0xf00] sm:$0xff]  }
  0xda   : > { %959 = vst [vmem:[%s12731_s26 + $0x648] sm:$0xff] %v958_v9   ;;  %v1214_v9 = vld [vmem:[%s12726_s25 + $0xf08] sm:$0xff]  }
  0xdb   : > { %963 = vst [vmem:[%s12731_s26 + $0x650] sm:$0xff] %v962_v10   ;;  %v1218_v10 = vld [vmem:[%s12726_s25 + $0xf10] sm:$0xff]  }
  0xdc   : > { %967 = vst [vmem:[%s12731_s26 + $0x658] sm:$0xff] %v966_v11   ;;  %v1222_v11 = vld [vmem:[%s12726_s25 + $0xf18] sm:$0xff]  }
  0xdd   : > { %971 = vst [vmem:[%s12731_s26 + $0x660] sm:$0xff] %v970_v12   ;;  %v1226_v12 = vld [vmem:[%s12726_s25 + $0xf20] sm:$0xff]  }
  0xde   : > { %975 = vst [vmem:[%s12731_s26 + $0x668] sm:$0xff] %v974_v13   ;;  %v1230_v13 = vld [vmem:[%s12726_s25 + $0xf28] sm:$0xff]  }
  0xdf   : > { %979 = vst [vmem:[%s12731_s26 + $0x670] sm:$0xff] %v978_v14   ;;  %v1234_v14 = vld [vmem:[%s12726_s25 + $0xf30] sm:$0xff]  }
  0xe0   : > { %983 = vst [vmem:[%s12731_s26 + $0x678] sm:$0xff] %v982_v15   ;;  %v1238_v15 = vld [vmem:[%s12726_s25 + $0xf38] sm:$0xff]  }
  0xe1   : > { %987 = vst [vmem:[%s12731_s26 + $0x680] sm:$0xff] %v986_v16   ;;  %v1242_v16 = vld [vmem:[%s12726_s25 + $0xf40] sm:$0xff]  }
  0xe2   : > { %991 = vst [vmem:[%s12731_s26 + $0x688] sm:$0xff] %v990_v17   ;;  %v1246_v17 = vld [vmem:[%s12726_s25 + $0xf48] sm:$0xff]  }
  0xe3   : > { %995 = vst [vmem:[%s12731_s26 + $0x690] sm:$0xff] %v994_v18   ;;  %v1250_v18 = vld [vmem:[%s12726_s25 + $0xf50] sm:$0xff]  }
  0xe4   : > { %999 = vst [vmem:[%s12731_s26 + $0x698] sm:$0xff] %v998_v19   ;;  %v1254_v19 = vld [vmem:[%s12726_s25 + $0xf58] sm:$0xff]  }
  0xe5   : > { %1003 = vst [vmem:[%s12731_s26 + $0x6a0] sm:$0xff] %v1002_v20   ;;  %v1258_v20 = vld [vmem:[%s12726_s25 + $0xf60] sm:$0xff]  }
  0xe6   : > { %1007 = vst [vmem:[%s12731_s26 + $0x6a8] sm:$0xff] %v1006_v21   ;;  %v1262_v21 = vld [vmem:[%s12726_s25 + $0xf68] sm:$0xff]  }
  0xe7   : > { %1011 = vst [vmem:[%s12731_s26 + $0x6b0] sm:$0xff] %v1010_v22   ;;  %v1266_v22 = vld [vmem:[%s12726_s25 + $0xf70] sm:$0xff]  }
  0xe8   : > { %1015 = vst [vmem:[%s12731_s26 + $0x6b8] sm:$0xff] %v1014_v23   ;;  %v1270_v23 = vld [vmem:[%s12726_s25 + $0xf78] sm:$0xff]  }
  0xe9   : > { %1019 = vst [vmem:[%s12731_s26 + $0x6c0] sm:$0xff] %v1018_v24   ;;  %v1274_v24 = vld [vmem:[%s12726_s25 + $0xf80] sm:$0xff]  }
  0xea   : > { %1023 = vst [vmem:[%s12731_s26 + $0x6c8] sm:$0xff] %v1022_v25   ;;  %v1278_v25 = vld [vmem:[%s12726_s25 + $0xf88] sm:$0xff]  }
  0xeb   : > { %1027 = vst [vmem:[%s12731_s26 + $0x6d0] sm:$0xff] %v1026_v26   ;;  %v1282_v26 = vld [vmem:[%s12726_s25 + $0xf90] sm:$0xff]  }
  0xec   : > { %1031 = vst [vmem:[%s12731_s26 + $0x6d8] sm:$0xff] %v1030_v27   ;;  %v1286_v27 = vld [vmem:[%s12726_s25 + $0xf98] sm:$0xff]  }
  0xed   : > { %1035 = vst [vmem:[%s12731_s26 + $0x6e0] sm:$0xff] %v1034_v28   ;;  %v1290_v28 = vld [vmem:[%s12726_s25 + $0xfa0] sm:$0xff]  }
  0xee   : > { %1039 = vst [vmem:[%s12731_s26 + $0x6e8] sm:$0xff] %v1038_v29   ;;  %v1294_v29 = vld [vmem:[%s12726_s25 + $0xfa8] sm:$0xff]  }
  0xef   : > { %1043 = vst [vmem:[%s12731_s26 + $0x6f0] sm:$0xff] %v1042_v30   ;;  %v1298_v30 = vld [vmem:[%s12726_s25 + $0xfb0] sm:$0xff]  }
  0xf0   : > { %1047 = vst [vmem:[%s12731_s26 + $0x6f8] sm:$0xff] %v1046_v31   ;;  %v1302_v31 = vld [vmem:[%s12726_s25 + $0xfb8] sm:$0xff]  }
  0xf1   : > { %1051 = vst [vmem:[%s12731_s26 + $0x700] sm:$0xff] %v1050_v32  }
  0xf2   : > { %1055 = vst [vmem:[%s12731_s26 + $0x708] sm:$0xff] %v1054_v33  }
  0xf3   : > { %1059 = vst [vmem:[%s12731_s26 + $0x710] sm:$0xff] %v1058_v34  }
  0xf4   : > { %1063 = vst [vmem:[%s12731_s26 + $0x718] sm:$0xff] %v1062_v35  }
  0xf5   : > { %1067 = vst [vmem:[%s12731_s26 + $0x720] sm:$0xff] %v1066_v36  }
  0xf6   : > { %1071 = vst [vmem:[%s12731_s26 + $0x728] sm:$0xff] %v1070_v37  }
  0xf7   : > { %1075 = vst [vmem:[%s12731_s26 + $0x730] sm:$0xff] %v1074_v38  }
  0xf8   : > { %1079 = vst [vmem:[%s12731_s26 + $0x738] sm:$0xff] %v1078_v39  }
  0xf9   : > { %1083 = vst [vmem:[%s12731_s26 + $0x740] sm:$0xff] %v1082_v40  }
  0xfa   : > { %1087 = vst [vmem:[%s12731_s26 + $0x748] sm:$0xff] %v1086_v41  }
  0xfb   : > { %1091 = vst [vmem:[%s12731_s26 + $0x750] sm:$0xff] %v1090_v42  }
  0xfc   : > { %1095 = vst [vmem:[%s12731_s26 + $0x758] sm:$0xff] %v1094_v43  }
  0xfd   : > { %1099 = vst [vmem:[%s12731_s26 + $0x760] sm:$0xff] %v1098_v44  }
  0xfe   : > { %1103 = vst [vmem:[%s12731_s26 + $0x768] sm:$0xff] %v1102_v45  }
  0xff   : > { %1107 = vst [vmem:[%s12731_s26 + $0x770] sm:$0xff] %v1106_v46  }
 0x100   : > { %1111 = vst [vmem:[%s12731_s26 + $0x778] sm:$0xff] %v1110_v47  }
 0x101   : > { %1115 = vst [vmem:[%s12731_s26 + $0x780] sm:$0xff] %v1114_v48  }
 0x102   : > { %1119 = vst [vmem:[%s12731_s26 + $0x788] sm:$0xff] %v1118_v49  }
 0x103   : > { %1123 = vst [vmem:[%s12731_s26 + $0x790] sm:$0xff] %v1122_v50  }
 0x104   : > { %1127 = vst [vmem:[%s12731_s26 + $0x798] sm:$0xff] %v1126_v51  }
 0x105   : > { %1131 = vst [vmem:[%s12731_s26 + $0x7a0] sm:$0xff] %v1130_v52  }
 0x106   : > { %1135 = vst [vmem:[%s12731_s26 + $0x7a8] sm:$0xff] %v1134_v53  }
 0x107   : > { %1139 = vst [vmem:[%s12731_s26 + $0x7b0] sm:$0xff] %v1138_v54  }
 0x108   : > { %1143 = vst [vmem:[%s12731_s26 + $0x7b8] sm:$0xff] %v1142_v55  }
 0x109   : > { %1147 = vst [vmem:[%s12731_s26 + $0x7c0] sm:$0xff] %v1146_v56  }
 0x10a   : > { %1151 = vst [vmem:[%s12731_s26 + $0x7c8] sm:$0xff] %v1150_v57  }
 0x10b   : > { %1155 = vst [vmem:[%s12731_s26 + $0x7d0] sm:$0xff] %v1154_v58  }
 0x10c   : > { %1159 = vst [vmem:[%s12731_s26 + $0x7d8] sm:$0xff] %v1158_v59  }
 0x10d   : > { %1163 = vst [vmem:[%s12731_s26 + $0x7e0] sm:$0xff] %v1162_v60  }
 0x10e   : > { %1167 = vst [vmem:[%s12731_s26 + $0x7e8] sm:$0xff] %v1166_v61  }
 0x10f   : > { %1171 = vst [vmem:[%s12731_s26 + $0x7f0] sm:$0xff] %v1170_v62  }
 0x110   : > { %1175 = vst [vmem:[%s12731_s26 + $0x7f8] sm:$0xff] %v1174_v63  }
 0x111   : > { %1179 = vst [vmem:[%s12731_s26 + $0x800] sm:$0xff] %v1178_v0  }
 0x112   : > { %1183 = vst [vmem:[%s12731_s26 + $0x808] sm:$0xff] %v1182_v1  }
 0x113   : > { %1187 = vst [vmem:[%s12731_s26 + $0x810] sm:$0xff] %v1186_v2  }
 0x114   : > { %1191 = vst [vmem:[%s12731_s26 + $0x818] sm:$0xff] %v1190_v3  }
 0x115   : > { %1195 = vst [vmem:[%s12731_s26 + $0x820] sm:$0xff] %v1194_v4  }
 0x116   : > { %1199 = vst [vmem:[%s12731_s26 + $0x828] sm:$0xff] %v1198_v5  }
 0x117   : > { %1203 = vst [vmem:[%s12731_s26 + $0x830] sm:$0xff] %v1202_v6  }
 0x118   : > { %1207 = vst [vmem:[%s12731_s26 + $0x838] sm:$0xff] %v1206_v7  }
 0x119   : > { %1211 = vst [vmem:[%s12731_s26 + $0x840] sm:$0xff] %v1210_v8  }
 0x11a   : > { %1215 = vst [vmem:[%s12731_s26 + $0x848] sm:$0xff] %v1214_v9  }
 0x11b   : > { %1219 = vst [vmem:[%s12731_s26 + $0x850] sm:$0xff] %v1218_v10  }
 0x11c   : > { %1223 = vst [vmem:[%s12731_s26 + $0x858] sm:$0xff] %v1222_v11  }
 0x11d   : > { %1227 = vst [vmem:[%s12731_s26 + $0x860] sm:$0xff] %v1226_v12  }
 0x11e   : > { %1231 = vst [vmem:[%s12731_s26 + $0x868] sm:$0xff] %v1230_v13  }
 0x11f   : > { %1235 = vst [vmem:[%s12731_s26 + $0x870] sm:$0xff] %v1234_v14  }
 0x120   : > { %1239 = vst [vmem:[%s12731_s26 + $0x878] sm:$0xff] %v1238_v15  }
 0x121   : > { %1243 = vst [vmem:[%s12731_s26 + $0x880] sm:$0xff] %v1242_v16  }
 0x122   : > { %1247 = vst [vmem:[%s12731_s26 + $0x888] sm:$0xff] %v1246_v17  }
 0x123   : > { %1251 = vst [vmem:[%s12731_s26 + $0x890] sm:$0xff] %v1250_v18  }
 0x124   : > { %1255 = vst [vmem:[%s12731_s26 + $0x898] sm:$0xff] %v1254_v19  }
 0x125   : > { %1259 = vst [vmem:[%s12731_s26 + $0x8a0] sm:$0xff] %v1258_v20  }
 0x126   : > { %1263 = vst [vmem:[%s12731_s26 + $0x8a8] sm:$0xff] %v1262_v21  }
 0x127   : > { %1267 = vst [vmem:[%s12731_s26 + $0x8b0] sm:$0xff] %v1266_v22  }
 0x128   : > { %1271 = vst [vmem:[%s12731_s26 + $0x8b8] sm:$0xff] %v1270_v23  }
 0x129   : > { %1275 = vst [vmem:[%s12731_s26 + $0x8c0] sm:$0xff] %v1274_v24  }
 0x12a   : > { %1279 = vst [vmem:[%s12731_s26 + $0x8c8] sm:$0xff] %v1278_v25  }
 0x12b   : > { %1283 = vst [vmem:[%s12731_s26 + $0x8d0] sm:$0xff] %v1282_v26  }
 0x12c   : > { %1287 = vst [vmem:[%s12731_s26 + $0x8d8] sm:$0xff] %v1286_v27  }
 0x12d   : > { %1291 = vst [vmem:[%s12731_s26 + $0x8e0] sm:$0xff] %v1290_v28  }
 0x12e   : > { %1295 = vst [vmem:[%s12731_s26 + $0x8e8] sm:$0xff] %v1294_v29  }
 0x12f   : > { %1299 = vst [vmem:[%s12731_s26 + $0x8f0] sm:$0xff] %v1298_v30  }
 0x130   : > { %1303 = vst [vmem:[%s12731_s26 + $0x8f8] sm:$0xff] %v1302_v31  }
 0x131 PF: > { %p10865_p5 = scmp.ge.s32.totalorder %s12669_s14, 1  ;;  %p4810_p6 = scmp.lt.s32.totalorder %s12669_s14, 3 }
 0x133   : > { %p4811_p7 = pnand %p10865_p5, %p4810_p6 }
 0x134   : > { %s4817_s4 = sand.u32 (!%p4811_p7), 1, %s12661_s12   ;;  %s4841_s9 = smul.u32 (!%p4811_p7), 144, %s10860_s15 }
 0x135   : > { %4814 = sbr.rel (%p4811_p7) target bundleno = 1616 (0x650), region = 80 }
 0x136   : > { %s12615_s5 = smul.u32 (!%p4811_p7), 2304, %s4817_s4  ;;  %p4842_p8 = scmp.lt.s32.totalorder (!%p4811_p7), %s4841_s9, 287 }
 0x138   : > { %s13318_s8 = scalar_lea.vmem (!%p4811_p7), [#allocation2], %s12615_s5 }
 0x13a   : > { %v12025_v32 = vld [vmem:[%s14948_s1 + $0x8] sm:$0xf]  ;;  %v12607_v33 = vld [vmem:[%s14948_s1 + $0x8] sm:$0x10]  ;;  %vm7744_vm0 = vcmask 1043456   ;;  %vm7745_vm1 = vcmask 1044480  }
 0x13b   : > { %v12026_v34 = vor.u32 %v12607_v33, %v12025_v32  ;;  %v12671_v35 = vmov 65535   ;;  %v12606_v39 = vld [vmem:[%s14948_s1] sm:$0xff]  ;;  %vm6879_vm2 = vcmask 203776   ;;  %v12319_v44 = vld [vmem:[%s13318_s8 + $0x8] sm:$0xff]  ;;  %v12320_v48 = vld [vmem:[%s13318_s8 + $0x10] sm:$0xff]  ;;  %vm9200_vm3 = vcmask 162816  }
 0x13c   : > { %v7746_v36 = vsel %vm7744_vm0, 4294967295, %v12671_v35  ;;  %v12318_v40 = vld [vmem:[%s13318_s8] sm:$0xff]  ;;  %v12391_v45 = vld [vmem:[%s13318_s8 + $0x248] sm:$0xff]  ;;  %v12392_v49 = vld [vmem:[%s13318_s8 + $0x250] sm:$0xff]  ;;  %s14955_s9 = smov (!%p4842_p8, %s4841_s9), 287  ;;  %vm10645_vm4 = vcmask 158720  }
 0x13d   : > { %v7747_v37 = vsel %vm7745_vm1, %v7746_v36, 0  ;;  %v12390_v41 = vld [vmem:[%s13318_s8 + $0x240] sm:$0xff]  ;;  %v12463_v46 = vld [vmem:[%s13318_s8 + $0x488] sm:$0xff]  ;;  %v12464_v50 = vld [vmem:[%s13318_s8 + $0x490] sm:$0xff]  ;;  %s10866_s12 = sshll.u32 %s14955_s9, 2 }
 0x13e   : > { %v7749_v38 = vand.u32 %v12026_v34, %v7747_v37  ;;  %v12462_v42 = vld [vmem:[%s13318_s8 + $0x480] sm:$0xff]  ;;  %v12535_v47 = vld [vmem:[%s13318_s8 + $0x6c8] sm:$0xff]  ;;  %v12536_v51 = vld [vmem:[%s13318_s8 + $0x6d0] sm:$0xff]  ;;  %s13411_s17 = scalar_lea.vmem %s14950_s3, %s10866_s12 }
 0x13f   : > { %v12534_v43 = vld [vmem:[%s13318_s8 + $0x6c0] sm:$0xff]  ;;  %v12321_v52 = vld [vmem:[%s13318_s8 + $0x18] sm:$0xff]  ;;  %v12323_v60 = vld [vmem:[%s13318_s8 + $0x28] sm:$0xff] }
 0x140   : > { %7757 = vmatpush.bf16.msra.mxu0 %v7749_v38  ;;  %12608 = vmatpush.bf16.msra.mxu1 %v7749_v38  ;;  %v12393_v53 = vld [vmem:[%s13318_s8 + $0x258] sm:$0xff]  ;;  %v12322_v56 = vld [vmem:[%s13318_s8 + $0x20] sm:$0xff]  ;;  %v12395_v61 = vld [vmem:[%s13318_s8 + $0x268] sm:$0xff] }
 0x141   : > { %12609 = vmatpush.bf16.msra.mxu2 %v7749_v38  ;;  %12610 = vmatpush.bf16.msra.mxu3 %v7749_v38  ;;  %v12465_v54 = vld [vmem:[%s13318_s8 + $0x498] sm:$0xff]  ;;  %v12394_v57 = vld [vmem:[%s13318_s8 + $0x260] sm:$0xff]  ;;  %v12467_v62 = vld [vmem:[%s13318_s8 + $0x4a8] sm:$0xff] }
 0x142   : > { %v12537_v55 = vld [vmem:[%s13318_s8 + $0x6d8] sm:$0xff]  ;;  %v12466_v58 = vld [vmem:[%s13318_s8 + $0x4a0] sm:$0xff]  ;;  %v12539_v63 = vld [vmem:[%s13318_s8 + $0x6e8] sm:$0xff] }
 0x143   : > { %v12538_v59 = vld [vmem:[%s13318_s8 + $0x6e0] sm:$0xff]  ;;  %v12324_v0 = vld [vmem:[%s13318_s8 + $0x30] sm:$0xff]  ;;  %v12325_v4 = vld [vmem:[%s13318_s8 + $0x38] sm:$0xff] }
 0x144   : > { %7758 = vmatpush.bf16.msra.mxu0 %v12606_v39  ;;  %12611 = vmatpush.bf16.msra.mxu1 %v12606_v39  ;;  %v12396_v1 = vld [vmem:[%s13318_s8 + $0x270] sm:$0xff]  ;;  %v12397_v5 = vld [vmem:[%s13318_s8 + $0x278] sm:$0xff]  ;;  %v12326_v8 = vld [vmem:[%s13318_s8 + $0x40] sm:$0xff] }
 0x145   : > { %12612 = vmatpush.bf16.msra.mxu2 %v12606_v39  ;;  %12613 = vmatpush.bf16.msra.mxu3 %v12606_v39  ;;  %v12468_v2 = vld [vmem:[%s13318_s8 + $0x4b0] sm:$0xff]  ;;  %v12469_v6 = vld [vmem:[%s13318_s8 + $0x4b8] sm:$0xff]  ;;  %v12398_v9 = vld [vmem:[%s13318_s8 + $0x280] sm:$0xff] }
 0x146   : > { %v12540_v3 = vld [vmem:[%s13318_s8 + $0x6f0] sm:$0xff]  ;;  %v12541_v7 = vld [vmem:[%s13318_s8 + $0x6f8] sm:$0xff]  ;;  %v12470_v12 = vld [vmem:[%s13318_s8 + $0x4c0] sm:$0xff] }
 0x147   : > { %12027 = vmatmul.msk.bf16.vlgmr.msra.gmra.mxu0 %vm6879_vm2, %v12318_v40  ;;  %12099 = vmatmul.msk.bf16.vlgmr.msra.gmra.mxu1 %vm6879_vm2, %v12390_v41  ;;  %v12542_v13 = vld [vmem:[%s13318_s8 + $0x700] sm:$0xff]  ;;  %v12327_v33 = vld [vmem:[%s13318_s8 + $0x48] sm:$0xff] }
 0x148   : > { %12171 = vmatmul.msk.bf16.vlgmr.msra.gmra.mxu2 %vm6879_vm2, %v12462_v42  ;;  %12243 = vmatmul.msk.bf16.vlgmr.msra.gmra.mxu3 %vm6879_vm2, %v12534_v43  ;;  %v13401_v24 = vld [vmem:[%s14949_s2] ss:$0 sm:$0xff]  ;;  %v12399_v34 = vld [vmem:[%s13318_s8 + $0x288] sm:$0xff] }
 0x149   : > { %v12471_v38 = vld [vmem:[%s13318_s8 + $0x4c8] sm:$0xff] }
 0x14a   : > { %v12543_v39 = vld [vmem:[%s13318_s8 + $0x708] sm:$0xff] }
 0x157   : > { %12028 = vmatmul.msk.bf16.gmra.mxu0 %vm6879_vm2, %v12319_v44  ;;  %12100 = vmatmul.msk.bf16.gmra.mxu1 %vm6879_vm2, %v12391_v45 }
 0x158   : > { %12172 = vmatmul.msk.bf16.gmra.mxu2 %vm6879_vm2, %v12463_v46  ;;  %12244 = vmatmul.msk.bf16.gmra.mxu3 %vm6879_vm2, %v12535_v47 }
 0x167   : > { %12029 = vmatmul.msk.bf16.gmra.mxu0 %vm6879_vm2, %v12320_v48  ;;  %12101 = vmatmul.msk.bf16.gmra.mxu1 %vm6879_vm2, %v12392_v49 }
 0x168   : > { %12173 = vmatmul.msk.bf16.gmra.mxu2 %vm6879_vm2, %v12464_v50  ;;  %12245 = vmatmul.msk.bf16.gmra.mxu3 %vm6879_vm2, %v12536_v51 }
 0x177   : > { %12030 = vmatmul.msk.bf16.gmra.mxu0 %vm6879_vm2, %v12321_v52  ;;  %12102 = vmatmul.msk.bf16.gmra.mxu1 %vm6879_vm2, %v12393_v53 }
 0x178   : > { %12174 = vmatmul.msk.bf16.gmra.mxu2 %vm6879_vm2, %v12465_v54  ;;  %12246 = vmatmul.msk.bf16.gmra.mxu3 %vm6879_vm2, %v12537_v55 }
 0x187   : > { %12031 = vmatmul.msk.bf16.gmra.mxu0 %vm6879_vm2, %v12322_v56  ;;  %12103 = vmatmul.msk.bf16.gmra.mxu1 %vm6879_vm2, %v12394_v57 }
 0x188   : > { %12175 = vmatmul.msk.bf16.gmra.mxu2 %vm6879_vm2, %v12466_v58  ;;  %12247 = vmatmul.msk.bf16.gmra.mxu3 %vm6879_vm2, %v12538_v59 }
 0x197   : > { %12032 = vmatmul.msk.bf16.gmra.mxu0 %vm6879_vm2, %v12323_v60  ;;  %12104 = vmatmul.msk.bf16.gmra.mxu1 %vm6879_vm2, %v12395_v61 }
 0x198   : > { %12176 = vmatmul.msk.bf16.gmra.mxu2 %vm6879_vm2, %v12467_v62  ;;  %12248 = vmatmul.msk.bf16.gmra.mxu3 %vm6879_vm2, %v12539_v63 }
 0x1a7   : > { %12033 = vmatmul.msk.bf16.gmra.mxu0 %vm6879_vm2, %v12324_v0  ;;  %12105 = vmatmul.msk.bf16.gmra.mxu1 %vm6879_vm2, %v12396_v1  ;;  %v12328_v1 = vld [vmem:[%s13318_s8 + $0x50] sm:$0xff] }
 0x1a8   : > { %12177 = vmatmul.msk.bf16.gmra.mxu2 %vm6879_vm2, %v12468_v2  ;;  %12249 = vmatmul.msk.bf16.gmra.mxu3 %vm6879_vm2, %v12540_v3  ;;  %v12400_v2 = vld [vmem:[%s13318_s8 + $0x290] sm:$0xff] }
 0x1b7   : > { %12034 = vmatmul.msk.bf16.gmra.mxu0 %vm6879_vm2, %v12325_v4  ;;  %12106 = vmatmul.msk.bf16.gmra.mxu1 %vm6879_vm2, %v12397_v5 }
 0x1b8   : > { %12178 = vmatmul.msk.bf16.gmra.mxu2 %vm6879_vm2, %v12469_v6  ;;  %12250 = vmatmul.msk.bf16.gmra.mxu3 %vm6879_vm2, %v12541_v7  ;;  %v12472_v6 = vld [vmem:[%s13318_s8 + $0x4d0] sm:$0xff] }
 0x1b9   : > { %v12544_v7 = vld [vmem:[%s13318_s8 + $0x710] sm:$0xff] }
 0x1c4   : > { %v7760_v10 = vpop.f32.mrf.mxu0  ;;  %v8120_v11 = vpop.f32.mrf.mxu1 }
 0x1c5   : > { %v9201_v14 = vsel %vm9200_vm3, %v7760_v10, -inf  ;;  %v9202_v15 = vsel %vm9200_vm3, %v8120_v11, -inf }
 0x1c6   : > { %v9203_v16 = vmax.f32 %v9201_v14, %v9202_v15 }
 0x1c7   : > { %12035 = vmatmul.msk.bf16.gmra.mxu0 %vm6879_vm2, %v12326_v8  ;;  %12107 = vmatmul.msk.bf16.gmra.mxu1 %vm6879_vm2, %v12398_v9 }
 0x1c8   : > { %12179 = vmatmul.msk.bf16.gmra.mxu2 %vm6879_vm2, %v12470_v12  ;;  %12251 = vmatmul.msk.bf16.gmra.mxu3 %vm6879_vm2, %v12542_v13 }
 0x1cb   : > { %v8480_v17 = vpop.f32.mrf.mxu2  ;;  %v8840_v18 = vpop.f32.mrf.mxu3 }
 0x1cc   : > { %v9204_v19 = vsel %vm9200_vm3, %v8480_v17, -inf  ;;  %v9206_v20 = vsel %vm9200_vm3, %v8840_v18, -inf  ;;  %v7762_v21 = vpop.f32.mrf.mxu0  ;;  %v8122_v22 = vpop.f32.mrf.mxu1 }
 0x1cd   : > { %v9205_v23 = vmax.f32 %v9203_v16, %v9204_v19  ;;  %v9208_v26 = vsel %vm9200_vm3, %v7762_v21, -inf  ;;  %v9209_v27 = vsel %vm9200_vm3, %v8122_v22, -inf }
 0x1ce   : > { %v9210_v30 = vmax.f32 %v9208_v26, %v9209_v27 }
 0x1cf   : > { %v9207_v25 = vmax.f32 %v9205_v23, %v9206_v20 }
 0x1d1   : > { %v10213_v28 = vadd.f32 %v13401_v24, %v9207_v25 }
 0x1d3   : > { %v10357_v29 = vmax.f32 %v10213_v28, 0.0  ;;  %v8482_v31 = vpop.f32.mrf.mxu2  ;;  %v8842_v32 = vpop.f32.mrf.mxu3 }
 0x1d4   : > { %v9211_v35 = vsel %vm9200_vm3, %v8482_v31, -inf  ;;  %v7765_v36 = vpop.f32.mrf.mxu0  ;;  %v8125_v37 = vpop.f32.mrf.mxu1  ;;  %v9213_v42 = vsel %vm9200_vm3, %v8842_v32, -inf }
 0x1d5   : > { %v10501_v40 = vpack.c.bf16 %v10357_v29, %v10357_v29  ;;  %v9212_v41 = vmax.f32 %v9210_v30, %v9211_v35  ;;  %v9215_v43 = vsel %vm9200_vm3, %v7765_v36, -inf  ;;  %v9216_v44 = vsel %vm9200_vm3, %v8125_v37, -inf  ;;  %v12401_v35 = vld [vmem:[%s13318_s8 + $0x298] sm:$0xff] }
 0x1d6   : > { %v9217_v47 = vmax.f32 %v9215_v43, %v9216_v44 }
 0x1d7   : > { %10646 = vst.msk [vmem:[%s13411_s17] sm:$0xf] %vm10645_vm4, %v10501_v40  ;;  %v9214_v45 = vmax.f32 %v9212_v41, %v9213_v42  ;;  %12036 = vmatmul.msk.bf16.gmra.mxu0 %vm6879_vm2, %v12327_v33  ;;  %12108 = vmatmul.msk.bf16.gmra.mxu1 %vm6879_vm2, %v12399_v34  ;;  %v12329_v34 = vld [vmem:[%s13318_s8 + $0x58] sm:$0xff] }
 0x1d8   : > { %12180 = vmatmul.msk.bf16.gmra.mxu2 %vm6879_vm2, %v12471_v38  ;;  %12252 = vmatmul.msk.bf16.gmra.mxu3 %vm6879_vm2, %v12543_v39  ;;  %v12473_v39 = vld [vmem:[%s13318_s8 + $0x4d8] sm:$0xff] }
 0x1d9   : > { %v10214_v46 = vadd.f32 %v13401_v24, %v9214_v45  ;;  %v12545_v40 = vld [vmem:[%s13318_s8 + $0x718] sm:$0xff] }
 0x1db   : > { %v10358_v48 = vmax.f32 %v10214_v46, 0.0  ;;  %v8485_v49 = vpop.f32.mrf.mxu2  ;;  %v8845_v50 = vpop.f32.mrf.mxu3 }
 0x1dc   : > { %v9218_v51 = vsel %vm9200_vm3, %v8485_v49, -inf  ;;  %v9220_v52 = vsel %vm9200_vm3, %v8845_v50, -inf  ;;  %v7767_v53 = vpop.f32.mrf.mxu0  ;;  %v8127_v54 = vpop.f32.mrf.mxu1 }
 0x1dd   : > { %v10502_v55 = vpack.c.bf16 %v10358_v48, %v10358_v48  ;;  %v9219_v56 = vmax.f32 %v9217_v47, %v9218_v51  ;;  %v9222_v58 = vsel %vm9200_vm3, %v7767_v53, -inf  ;;  %v9223_v59 = vsel %vm9200_vm3, %v8127_v54, -inf }
 0x1de   : > { %v9224_v62 = vmax.f32 %v9222_v58, %v9223_v59 }
 0x1df   : > { %10647 = vst.msk [vmem:[%s13411_s17 + $0x4] sm:$0xf] %vm10645_vm4, %v10502_v55  ;;  %v9221_v57 = vmax.f32 %v9219_v56, %v9220_v52 }
 0x1e1   : > { %v10215_v60 = vadd.f32 %v13401_v24, %v9221_v57 }
 0x1e3   : > { %v10359_v61 = vmax.f32 %v10215_v60, 0.0  ;;  %v8487_v63 = vpop.f32.mrf.mxu2  ;;  %v8847_v0 = vpop.f32.mrf.mxu3 }
 0x1e4   : > { %v9225_v3 = vsel %vm9200_vm3, %v8487_v63, -inf  ;;  %v7770_v4 = vpop.f32.mrf.mxu0  ;;  %v8130_v5 = vpop.f32.mrf.mxu1  ;;  %v9227_v10 = vsel %vm9200_vm3, %v8847_v0, -inf }
 0x1e5   : > { %v10503_v8 = vpack.c.bf16 %v10359_v61, %v10359_v61  ;;  %v9226_v9 = vmax.f32 %v9224_v62, %v9225_v3  ;;  %v9229_v11 = vsel %vm9200_vm3, %v7770_v4, -inf  ;;  %v9230_v12 = vsel %vm9200_vm3, %v8130_v5, -inf  ;;  %v12402_v3 = vld [vmem:[%s13318_s8 + $0x2a0] sm:$0xff] }
 0x1e6   : > { %v9231_v15 = vmax.f32 %v9229_v11, %v9230_v12 }
 0x1e7   : > { %10648 = vst.msk [vmem:[%s13411_s17 + $0x8] sm:$0xf] %vm10645_vm4, %v10503_v8  ;;  %v9228_v13 = vmax.f32 %v9226_v9, %v9227_v10  ;;  %12037 = vmatmul.msk.bf16.gmra.mxu0 %vm6879_vm2, %v12328_v1  ;;  %12109 = vmatmul.msk.bf16.gmra.mxu1 %vm6879_vm2, %v12400_v2  ;;  %v12330_v2 = vld [vmem:[%s13318_s8 + $0x60] sm:$0xff] }
 0x1e8   : > { %12181 = vmatmul.msk.bf16.gmra.mxu2 %vm6879_vm2, %v12472_v6  ;;  %12253 = vmatmul.msk.bf16.gmra.mxu3 %vm6879_vm2, %v12544_v7  ;;  %v12474_v7 = vld [vmem:[%s13318_s8 + $0x4e0] sm:$0xff] }
 0x1e9   : > { %v10216_v14 = vadd.f32 %v13401_v24, %v9228_v13  ;;  %v12546_v8 = vld [vmem:[%s13318_s8 + $0x720] sm:$0xff] }
 0x1eb   : > { %v10360_v16 = vmax.f32 %v10216_v14, 0.0  ;;  %v8490_v17 = vpop.f32.mrf.mxu2  ;;  %v8850_v18 = vpop.f32.mrf.mxu3 }
 0x1ec   : > { %v9232_v19 = vsel %vm9200_vm3, %v8490_v17, -inf  ;;  %v9234_v20 = vsel %vm9200_vm3, %v8850_v18, -inf  ;;  %v7772_v21 = vpop.f32.mrf.mxu0  ;;  %v8132_v22 = vpop.f32.mrf.mxu1 }
 0x1ed   : > { %v10504_v23 = vpack.c.bf16 %v10360_v16, %v10360_v16  ;;  %v9233_v25 = vmax.f32 %v9231_v15, %v9232_v19  ;;  %v9236_v27 = vsel %vm9200_vm3, %v7772_v21, -inf  ;;  %v9237_v28 = vsel %vm9200_vm3, %v8132_v22, -inf }
 0x1ee   : > { %v9238_v31 = vmax.f32 %v9236_v27, %v9237_v28 }
 0x1ef   : > { %10649 = vst.msk [vmem:[%s13411_s17 + $0xc] sm:$0xf] %vm10645_vm4, %v10504_v23  ;;  %v9235_v26 = vmax.f32 %v9233_v25, %v9234_v20 }
 0x1f1   : > { %v10217_v29 = vadd.f32 %v13401_v24, %v9235_v26 }
 0x1f3   : > { %v10361_v30 = vmax.f32 %v10217_v29, 0.0  ;;  %v8492_v32 = vpop.f32.mrf.mxu2  ;;  %v8852_v33 = vpop.f32.mrf.mxu3 }
 0x1f4   : > { %v9239_v36 = vsel %vm9200_vm3, %v8492_v32, -inf  ;;  %v7775_v37 = vpop.f32.mrf.mxu0  ;;  %v8135_v38 = vpop.f32.mrf.mxu1  ;;  %v9241_v43 = vsel %vm9200_vm3, %v8852_v33, -inf }
 0x1f5   : > { %v10505_v41 = vpack.c.bf16 %v10361_v30, %v10361_v30  ;;  %v9240_v42 = vmax.f32 %v9238_v31, %v9239_v36  ;;  %v9243_v44 = vsel %vm9200_vm3, %v7775_v37, -inf  ;;  %v9244_v45 = vsel %vm9200_vm3, %v8135_v38, -inf  ;;  %v12403_v36 = vld [vmem:[%s13318_s8 + $0x2a8] sm:$0xff] }
 0x1f6   : > { %v9245_v48 = vmax.f32 %v9243_v44, %v9244_v45 }
 0x1f7   : > { %10650 = vst.msk [vmem:[%s13411_s17 + $0x10] sm:$0xf] %vm10645_vm4, %v10505_v41  ;;  %v9242_v46 = vmax.f32 %v9240_v42, %v9241_v43  ;;  %12038 = vmatmul.msk.bf16.gmra.mxu0 %vm6879_vm2, %v12329_v34  ;;  %12110 = vmatmul.msk.bf16.gmra.mxu1 %vm6879_vm2, %v12401_v35  ;;  %v12331_v35 = vld [vmem:[%s13318_s8 + $0x68] sm:$0xff] }
 0x1f8   : > { %12182 = vmatmul.msk.bf16.gmra.mxu2 %vm6879_vm2, %v12473_v39  ;;  %12254 = vmatmul.msk.bf16.gmra.mxu3 %vm6879_vm2, %v12545_v40  ;;  %v12475_v40 = vld [vmem:[%s13318_s8 + $0x4e8] sm:$0xff] }
 0x1f9   : > { %v10218_v47 = vadd.f32 %v13401_v24, %v9242_v46  ;;  %v12547_v41 = vld [vmem:[%s13318_s8 + $0x728] sm:$0xff] }
 0x1fb   : > { %v10362_v49 = vmax.f32 %v10218_v47, 0.0  ;;  %v8495_v50 = vpop.f32.mrf.mxu2  ;;  %v8855_v51 = vpop.f32.mrf.mxu3 }
 0x1fc   : > { %v9246_v52 = vsel %vm9200_vm3, %v8495_v50, -inf  ;;  %v9248_v53 = vsel %vm9200_vm3, %v8855_v51, -inf  ;;  %v7777_v54 = vpop.f32.mrf.mxu0  ;;  %v8137_v55 = vpop.f32.mrf.mxu1 }
 0x1fd   : > { %v10506_v56 = vpack.c.bf16 %v10362_v49, %v10362_v49  ;;  %v9247_v57 = vmax.f32 %v9245_v48, %v9246_v52  ;;  %v9250_v59 = vsel %vm9200_vm3, %v7777_v54, -inf  ;;  %v9251_v60 = vsel %vm9200_vm3, %v8137_v55, -inf }
 0x1fe   : > { %v9252_v63 = vmax.f32 %v9250_v59, %v9251_v60 }
 0x1ff   : > { %10651 = vst.msk [vmem:[%s13411_s17 + $0x14] sm:$0xf] %vm10645_vm4, %v10506_v56  ;;  %v9249_v58 = vmax.f32 %v9247_v57, %v9248_v53 }
 0x201   : > { %v10219_v61 = vadd.f32 %v13401_v24, %v9249_v58 }
 0x203   : > { %v10363_v62 = vmax.f32 %v10219_v61, 0.0  ;;  %v8497_v0 = vpop.f32.mrf.mxu2  ;;  %v8857_v1 = vpop.f32.mrf.mxu3 }
 0x204   : > { %v9253_v4 = vsel %vm9200_vm3, %v8497_v0, -inf  ;;  %v7780_v5 = vpop.f32.mrf.mxu0  ;;  %v8140_v6 = vpop.f32.mrf.mxu1  ;;  %v9255_v11 = vsel %vm9200_vm3, %v8857_v1, -inf }
 0x205   : > { %v10507_v9 = vpack.c.bf16 %v10363_v62, %v10363_v62  ;;  %v9254_v10 = vmax.f32 %v9252_v63, %v9253_v4  ;;  %v9257_v12 = vsel %vm9200_vm3, %v7780_v5, -inf  ;;  %v9258_v13 = vsel %vm9200_vm3, %v8140_v6, -inf  ;;  %v12404_v4 = vld [vmem:[%s13318_s8 + $0x2b0] sm:$0xff] }
 0x206   : > { %v9259_v16 = vmax.f32 %v9257_v12, %v9258_v13 }
 0x207   : > { %10652 = vst.msk [vmem:[%s13411_s17 + $0x18] sm:$0xf] %vm10645_vm4, %v10507_v9  ;;  %v9256_v14 = vmax.f32 %v9254_v10, %v9255_v11  ;;  %12039 = vmatmul.msk.bf16.gmra.mxu0 %vm6879_vm2, %v12330_v2  ;;  %12111 = vmatmul.msk.bf16.gmra.mxu1 %vm6879_vm2, %v12402_v3  ;;  %v12332_v3 = vld [vmem:[%s13318_s8 + $0x70] sm:$0xff] }
 0x208   : > { %12183 = vmatmul.msk.bf16.gmra.mxu2 %vm6879_vm2, %v12474_v7  ;;  %12255 = vmatmul.msk.bf16.gmra.mxu3 %vm6879_vm2, %v12546_v8  ;;  %v12476_v8 = vld [vmem:[%s13318_s8 + $0x4f0] sm:$0xff] }
 0x209   : > { %v10220_v15 = vadd.f32 %v13401_v24, %v9256_v14  ;;  %v12548_v9 = vld [vmem:[%s13318_s8 + $0x730] sm:$0xff] }
 0x20b   : > { %v10364_v17 = vmax.f32 %v10220_v15, 0.0  ;;  %v8500_v18 = vpop.f32.mrf.mxu2  ;;  %v8860_v19 = vpop.f32.mrf.mxu3 }
 0x20c   : > { %v9260_v20 = vsel %vm9200_vm3, %v8500_v18, -inf  ;;  %v9262_v21 = vsel %vm9200_vm3, %v8860_v19, -inf  ;;  %v7782_v22 = vpop.f32.mrf.mxu0  ;;  %v8142_v23 = vpop.f32.mrf.mxu1 }
 0x20d   : > { %v10508_v25 = vpack.c.bf16 %v10364_v17, %v10364_v17  ;;  %v9261_v26 = vmax.f32 %v9259_v16, %v9260_v20  ;;  %v9264_v28 = vsel %vm9200_vm3, %v7782_v22, -inf  ;;  %v9265_v29 = vsel %vm9200_vm3, %v8142_v23, -inf }
 0x20e   : > { %v9266_v32 = vmax.f32 %v9264_v28, %v9265_v29 }
 0x20f   : > { %10653 = vst.msk [vmem:[%s13411_s17 + $0x1c] sm:$0xf] %vm10645_vm4, %v10508_v25  ;;  %v9263_v27 = vmax.f32 %v9261_v26, %v9262_v21 }
 0x211   : > { %v10221_v30 = vadd.f32 %v13401_v24, %v9263_v27 }
 0x213   : > { %v10365_v31 = vmax.f32 %v10221_v30, 0.0  ;;  %v8502_v33 = vpop.f32.mrf.mxu2  ;;  %v8862_v34 = vpop.f32.mrf.mxu3 }
 0x214   : > { %v9267_v37 = vsel %vm9200_vm3, %v8502_v33, -inf  ;;  %v7785_v38 = vpop.f32.mrf.mxu0  ;;  %v8145_v39 = vpop.f32.mrf.mxu1  ;;  %v9269_v44 = vsel %vm9200_vm3, %v8862_v34, -inf }
 0x215   : > { %v10509_v42 = vpack.c.bf16 %v10365_v31, %v10365_v31  ;;  %v9268_v43 = vmax.f32 %v9266_v32, %v9267_v37  ;;  %v9271_v45 = vsel %vm9200_vm3, %v7785_v38, -inf  ;;  %v9272_v46 = vsel %vm9200_vm3, %v8145_v39, -inf  ;;  %v12405_v37 = vld [vmem:[%s13318_s8 + $0x2b8] sm:$0xff] }
 0x216   : > { %v9273_v49 = vmax.f32 %v9271_v45, %v9272_v46 }
 0x217   : > { %10654 = vst.msk [vmem:[%s13411_s17 + $0x20] sm:$0xf] %vm10645_vm4, %v10509_v42  ;;  %v9270_v47 = vmax.f32 %v9268_v43, %v9269_v44  ;;  %12040 = vmatmul.msk.bf16.gmra.mxu0 %vm6879_vm2, %v12331_v35  ;;  %12112 = vmatmul.msk.bf16.gmra.mxu1 %vm6879_vm2, %v12403_v36  ;;  %v12333_v36 = vld [vmem:[%s13318_s8 + $0x78] sm:$0xff] }
 0x218   : > { %12184 = vmatmul.msk.bf16.gmra.mxu2 %vm6879_vm2, %v12475_v40  ;;  %12256 = vmatmul.msk.bf16.gmra.mxu3 %vm6879_vm2, %v12547_v41  ;;  %v12477_v41 = vld [vmem:[%s13318_s8 + $0x4f8] sm:$0xff] }
 0x219   : > { %v10222_v48 = vadd.f32 %v13401_v24, %v9270_v47  ;;  %v12549_v42 = vld [vmem:[%s13318_s8 + $0x738] sm:$0xff] }
 0x21b   : > { %v10366_v50 = vmax.f32 %v10222_v48, 0.0  ;;  %v8505_v51 = vpop.f32.mrf.mxu2  ;;  %v8865_v52 = vpop.f32.mrf.mxu3 }
 0x21c   : > { %v9274_v53 = vsel %vm9200_vm3, %v8505_v51, -inf  ;;  %v9276_v54 = vsel %vm9200_vm3, %v8865_v52, -inf  ;;  %v7787_v55 = vpop.f32.mrf.mxu0  ;;  %v8147_v56 = vpop.f32.mrf.mxu1 }
 0x21d   : > { %v10510_v57 = vpack.c.bf16 %v10366_v50, %v10366_v50  ;;  %v9275_v58 = vmax.f32 %v9273_v49, %v9274_v53  ;;  %v9278_v60 = vsel %vm9200_vm3, %v7787_v55, -inf  ;;  %v9279_v61 = vsel %vm9200_vm3, %v8147_v56, -inf }
 0x21e   : > { %v9280_v0 = vmax.f32 %v9278_v60, %v9279_v61 }
 0x21f   : > { %10655 = vst.msk [vmem:[%s13411_s17 + $0x24] sm:$0xf] %vm10645_vm4, %v10510_v57  ;;  %v9277_v59 = vmax.f32 %v9275_v58, %v9276_v54 }
 0x221   : > { %v10223_v62 = vadd.f32 %v13401_v24, %v9277_v59 }
 0x223   : > { %v10367_v63 = vmax.f32 %v10223_v62, 0.0  ;;  %v8507_v1 = vpop.f32.mrf.mxu2  ;;  %v8867_v2 = vpop.f32.mrf.mxu3 }
 0x224   : > { %v9281_v5 = vsel %vm9200_vm3, %v8507_v1, -inf  ;;  %v7790_v6 = vpop.f32.mrf.mxu0  ;;  %v8150_v7 = vpop.f32.mrf.mxu1  ;;  %v9283_v12 = vsel %vm9200_vm3, %v8867_v2, -inf }
 0x225   : > { %v10511_v10 = vpack.c.bf16 %v10367_v63, %v10367_v63  ;;  %v9282_v11 = vmax.f32 %v9280_v0, %v9281_v5  ;;  %v9285_v13 = vsel %vm9200_vm3, %v7790_v6, -inf  ;;  %v9286_v14 = vsel %vm9200_vm3, %v8150_v7, -inf  ;;  %v12406_v5 = vld [vmem:[%s13318_s8 + $0x2c0] sm:$0xff] }
 0x226   : > { %v9287_v17 = vmax.f32 %v9285_v13, %v9286_v14 }
 0x227   : > { %10656 = vst.msk [vmem:[%s13411_s17 + $0x28] sm:$0xf] %vm10645_vm4, %v10511_v10  ;;  %v9284_v15 = vmax.f32 %v9282_v11, %v9283_v12  ;;  %12041 = vmatmul.msk.bf16.gmra.mxu0 %vm6879_vm2, %v12332_v3  ;;  %12113 = vmatmul.msk.bf16.gmra.mxu1 %vm6879_vm2, %v12404_v4  ;;  %v12334_v4 = vld [vmem:[%s13318_s8 + $0x80] sm:$0xff] }
 0x228   : > { %12185 = vmatmul.msk.bf16.gmra.mxu2 %vm6879_vm2, %v12476_v8  ;;  %12257 = vmatmul.msk.bf16.gmra.mxu3 %vm6879_vm2, %v12548_v9  ;;  %v12478_v9 = vld [vmem:[%s13318_s8 + $0x500] sm:$0xff] }
 0x229   : > { %v10224_v16 = vadd.f32 %v13401_v24, %v9284_v15  ;;  %v12550_v10 = vld [vmem:[%s13318_s8 + $0x740] sm:$0xff] }
 0x22b   : > { %v10368_v18 = vmax.f32 %v10224_v16, 0.0  ;;  %v8510_v19 = vpop.f32.mrf.mxu2  ;;  %v8870_v20 = vpop.f32.mrf.mxu3 }
 0x22c   : > { %v9288_v21 = vsel %vm9200_vm3, %v8510_v19, -inf  ;;  %v9290_v22 = vsel %vm9200_vm3, %v8870_v20, -inf  ;;  %v7792_v23 = vpop.f32.mrf.mxu0  ;;  %v8152_v25 = vpop.f32.mrf.mxu1 }
 0x22d   : > { %v10512_v26 = vpack.c.bf16 %v10368_v18, %v10368_v18  ;;  %v9289_v27 = vmax.f32 %v9287_v17, %v9288_v21  ;;  %v9292_v29 = vsel %vm9200_vm3, %v7792_v23, -inf  ;;  %v9293_v30 = vsel %vm9200_vm3, %v8152_v25, -inf }
 0x22e   : > { %v9294_v33 = vmax.f32 %v9292_v29, %v9293_v30 }
 0x22f   : > { %10657 = vst.msk [vmem:[%s13411_s17 + $0x2c] sm:$0xf] %vm10645_vm4, %v10512_v26  ;;  %v9291_v28 = vmax.f32 %v9289_v27, %v9290_v22 }
 0x231   : > { %v10225_v31 = vadd.f32 %v13401_v24, %v9291_v28 }
 0x233   : > { %v10369_v32 = vmax.f32 %v10225_v31, 0.0  ;;  %v8512_v34 = vpop.f32.mrf.mxu2  ;;  %v8872_v35 = vpop.f32.mrf.mxu3 }
 0x234   : > { %v9295_v38 = vsel %vm9200_vm3, %v8512_v34, -inf  ;;  %v7795_v39 = vpop.f32.mrf.mxu0  ;;  %v8155_v40 = vpop.f32.mrf.mxu1  ;;  %v9297_v45 = vsel %vm9200_vm3, %v8872_v35, -inf }
 0x235   : > { %v10513_v43 = vpack.c.bf16 %v10369_v32, %v10369_v32  ;;  %v9296_v44 = vmax.f32 %v9294_v33, %v9295_v38  ;;  %v9299_v46 = vsel %vm9200_vm3, %v7795_v39, -inf  ;;  %v9300_v47 = vsel %vm9200_vm3, %v8155_v40, -inf  ;;  %v12407_v38 = vld [vmem:[%s13318_s8 + $0x2c8] sm:$0xff] }
 0x236   : > { %v9301_v50 = vmax.f32 %v9299_v46, %v9300_v47 }
 0x237   : > { %10658 = vst.msk [vmem:[%s13411_s17 + $0x30] sm:$0xf] %vm10645_vm4, %v10513_v43  ;;  %v9298_v48 = vmax.f32 %v9296_v44, %v9297_v45  ;;  %12042 = vmatmul.msk.bf16.gmra.mxu0 %vm6879_vm2, %v12333_v36  ;;  %12114 = vmatmul.msk.bf16.gmra.mxu1 %vm6879_vm2, %v12405_v37  ;;  %v12335_v37 = vld [vmem:[%s13318_s8 + $0x88] sm:$0xff] }
 0x238   : > { %12186 = vmatmul.msk.bf16.gmra.mxu2 %vm6879_vm2, %v12477_v41  ;;  %12258 = vmatmul.msk.bf16.gmra.mxu3 %vm6879_vm2, %v12549_v42  ;;  %v12479_v42 = vld [vmem:[%s13318_s8 + $0x508] sm:$0xff] }
 0x239   : > { %v10226_v49 = vadd.f32 %v13401_v24, %v9298_v48  ;;  %v12551_v43 = vld [vmem:[%s13318_s8 + $0x748] sm:$0xff] }
 0x23b   : > { %v10370_v51 = vmax.f32 %v10226_v49, 0.0  ;;  %v8515_v52 = vpop.f32.mrf.mxu2  ;;  %v8875_v53 = vpop.f32.mrf.mxu3 }
 0x23c   : > { %v9302_v54 = vsel %vm9200_vm3, %v8515_v52, -inf  ;;  %v9304_v55 = vsel %vm9200_vm3, %v8875_v53, -inf  ;;  %v7797_v56 = vpop.f32.mrf.mxu0  ;;  %v8157_v57 = vpop.f32.mrf.mxu1 }
 0x23d   : > { %v10514_v58 = vpack.c.bf16 %v10370_v51, %v10370_v51  ;;  %v9303_v59 = vmax.f32 %v9301_v50, %v9302_v54  ;;  %v9306_v61 = vsel %vm9200_vm3, %v7797_v56, -inf  ;;  %v9307_v62 = vsel %vm9200_vm3, %v8157_v57, -inf }
 0x23e   : > { %v9308_v1 = vmax.f32 %v9306_v61, %v9307_v62 }
 0x23f   : > { %10659 = vst.msk [vmem:[%s13411_s17 + $0x34] sm:$0xf] %vm10645_vm4, %v10514_v58  ;;  %v9305_v60 = vmax.f32 %v9303_v59, %v9304_v55 }
 0x241   : > { %v10227_v63 = vadd.f32 %v13401_v24, %v9305_v60 }
 0x243   : > { %v10371_v0 = vmax.f32 %v10227_v63, 0.0  ;;  %v8517_v2 = vpop.f32.mrf.mxu2  ;;  %v8877_v3 = vpop.f32.mrf.mxu3 }
 0x244   : > { %v9309_v6 = vsel %vm9200_vm3, %v8517_v2, -inf  ;;  %v7800_v7 = vpop.f32.mrf.mxu0  ;;  %v8160_v8 = vpop.f32.mrf.mxu1  ;;  %v9311_v13 = vsel %vm9200_vm3, %v8877_v3, -inf }
 0x245   : > { %v10515_v11 = vpack.c.bf16 %v10371_v0, %v10371_v0  ;;  %v9310_v12 = vmax.f32 %v9308_v1, %v9309_v6  ;;  %v9313_v14 = vsel %vm9200_vm3, %v7800_v7, -inf  ;;  %v9314_v15 = vsel %vm9200_vm3, %v8160_v8, -inf  ;;  %v12408_v6 = vld [vmem:[%s13318_s8 + $0x2d0] sm:$0xff] }
 0x246   : > { %v9315_v18 = vmax.f32 %v9313_v14, %v9314_v15 }
 0x247   : > { %10660 = vst.msk [vmem:[%s13411_s17 + $0x38] sm:$0xf] %vm10645_vm4, %v10515_v11  ;;  %v9312_v16 = vmax.f32 %v9310_v12, %v9311_v13  ;;  %12043 = vmatmul.msk.bf16.gmra.mxu0 %vm6879_vm2, %v12334_v4  ;;  %12115 = vmatmul.msk.bf16.gmra.mxu1 %vm6879_vm2, %v12406_v5  ;;  %v12336_v5 = vld [vmem:[%s13318_s8 + $0x90] sm:$0xff] }
 0x248   : > { %12187 = vmatmul.msk.bf16.gmra.mxu2 %vm6879_vm2, %v12478_v9  ;;  %12259 = vmatmul.msk.bf16.gmra.mxu3 %vm6879_vm2, %v12550_v10  ;;  %v12480_v10 = vld [vmem:[%s13318_s8 + $0x510] sm:$0xff] }
 0x249   : > { %v10228_v17 = vadd.f32 %v13401_v24, %v9312_v16  ;;  %v12552_v11 = vld [vmem:[%s13318_s8 + $0x750] sm:$0xff] }
 0x24b   : > { %v10372_v19 = vmax.f32 %v10228_v17, 0.0  ;;  %v8520_v20 = vpop.f32.mrf.mxu2  ;;  %v8880_v21 = vpop.f32.mrf.mxu3 }
 0x24c   : > { %v9316_v22 = vsel %vm9200_vm3, %v8520_v20, -inf  ;;  %v9318_v23 = vsel %vm9200_vm3, %v8880_v21, -inf  ;;  %v7802_v25 = vpop.f32.mrf.mxu0  ;;  %v8162_v26 = vpop.f32.mrf.mxu1 }
 0x24d   : > { %v10516_v27 = vpack.c.bf16 %v10372_v19, %v10372_v19  ;;  %v9317_v28 = vmax.f32 %v9315_v18, %v9316_v22  ;;  %v9320_v30 = vsel %vm9200_vm3, %v7802_v25, -inf  ;;  %v9321_v31 = vsel %vm9200_vm3, %v8162_v26, -inf }
 0x24e   : > { %v9322_v34 = vmax.f32 %v9320_v30, %v9321_v31 }
 0x24f   : > { %10661 = vst.msk [vmem:[%s13411_s17 + $0x3c] sm:$0xf] %vm10645_vm4, %v10516_v27  ;;  %v9319_v29 = vmax.f32 %v9317_v28, %v9318_v23 }
 0x251   : > { %v10229_v32 = vadd.f32 %v13401_v24, %v9319_v29 }
 0x253   : > { %v10373_v33 = vmax.f32 %v10229_v32, 0.0  ;;  %v8522_v35 = vpop.f32.mrf.mxu2  ;;  %v8882_v36 = vpop.f32.mrf.mxu3 }
 0x254   : > { %v9323_v39 = vsel %vm9200_vm3, %v8522_v35, -inf  ;;  %v7805_v40 = vpop.f32.mrf.mxu0  ;;  %v8165_v41 = vpop.f32.mrf.mxu1  ;;  %v9325_v46 = vsel %vm9200_vm3, %v8882_v36, -inf }
 0x255   : > { %v10517_v44 = vpack.c.bf16 %v10373_v33, %v10373_v33  ;;  %v9324_v45 = vmax.f32 %v9322_v34, %v9323_v39  ;;  %v9327_v47 = vsel %vm9200_vm3, %v7805_v40, -inf  ;;  %v9328_v48 = vsel %vm9200_vm3, %v8165_v41, -inf  ;;  %v12409_v39 = vld [vmem:[%s13318_s8 + $0x2d8] sm:$0xff] }
 0x256   : > { %v9329_v51 = vmax.f32 %v9327_v47, %v9328_v48 }
 0x257   : > { %10662 = vst.msk [vmem:[%s13411_s17 + $0x40] sm:$0xf] %vm10645_vm4, %v10517_v44  ;;  %v9326_v49 = vmax.f32 %v9324_v45, %v9325_v46  ;;  %12044 = vmatmul.msk.bf16.gmra.mxu0 %vm6879_vm2, %v12335_v37  ;;  %12116 = vmatmul.msk.bf16.gmra.mxu1 %vm6879_vm2, %v12407_v38  ;;  %v12337_v38 = vld [vmem:[%s13318_s8 + $0x98] sm:$0xff] }
 0x258   : > { %12188 = vmatmul.msk.bf16.gmra.mxu2 %vm6879_vm2, %v12479_v42  ;;  %12260 = vmatmul.msk.bf16.gmra.mxu3 %vm6879_vm2, %v12551_v43  ;;  %v12481_v43 = vld [vmem:[%s13318_s8 + $0x518] sm:$0xff] }
 0x259   : > { %v10230_v50 = vadd.f32 %v13401_v24, %v9326_v49  ;;  %v12553_v44 = vld [vmem:[%s13318_s8 + $0x758] sm:$0xff] }
 0x25b   : > { %v10374_v52 = vmax.f32 %v10230_v50, 0.0  ;;  %v8525_v53 = vpop.f32.mrf.mxu2  ;;  %v8885_v54 = vpop.f32.mrf.mxu3 }
 0x25c   : > { %v9330_v55 = vsel %vm9200_vm3, %v8525_v53, -inf  ;;  %v9332_v56 = vsel %vm9200_vm3, %v8885_v54, -inf  ;;  %v7807_v57 = vpop.f32.mrf.mxu0  ;;  %v8167_v58 = vpop.f32.mrf.mxu1 }
 0x25d   : > { %v10518_v59 = vpack.c.bf16 %v10374_v52, %v10374_v52  ;;  %v9331_v60 = vmax.f32 %v9329_v51, %v9330_v55  ;;  %v9334_v62 = vsel %vm9200_vm3, %v7807_v57, -inf  ;;  %v9335_v63 = vsel %vm9200_vm3, %v8167_v58, -inf }
 0x25e   : > { %v9336_v2 = vmax.f32 %v9334_v62, %v9335_v63 }
 0x25f   : > { %10663 = vst.msk [vmem:[%s13411_s17 + $0x44] sm:$0xf] %vm10645_vm4, %v10518_v59  ;;  %v9333_v61 = vmax.f32 %v9331_v60, %v9332_v56 }
 0x261   : > { %v10231_v0 = vadd.f32 %v13401_v24, %v9333_v61 }
 0x263   : > { %v10375_v1 = vmax.f32 %v10231_v0, 0.0  ;;  %v8527_v3 = vpop.f32.mrf.mxu2  ;;  %v8887_v4 = vpop.f32.mrf.mxu3 }
 0x264   : > { %v9337_v7 = vsel %vm9200_vm3, %v8527_v3, -inf  ;;  %v7810_v8 = vpop.f32.mrf.mxu0  ;;  %v8170_v9 = vpop.f32.mrf.mxu1  ;;  %v9339_v14 = vsel %vm9200_vm3, %v8887_v4, -inf }
 0x265   : > { %v10519_v12 = vpack.c.bf16 %v10375_v1, %v10375_v1  ;;  %v9338_v13 = vmax.f32 %v9336_v2, %v9337_v7  ;;  %v9341_v15 = vsel %vm9200_vm3, %v7810_v8, -inf  ;;  %v9342_v16 = vsel %vm9200_vm3, %v8170_v9, -inf  ;;  %v12410_v7 = vld [vmem:[%s13318_s8 + $0x2e0] sm:$0xff] }
 0x266   : > { %v9343_v19 = vmax.f32 %v9341_v15, %v9342_v16 }
 0x267   : > { %10664 = vst.msk [vmem:[%s13411_s17 + $0x48] sm:$0xf] %vm10645_vm4, %v10519_v12  ;;  %v9340_v17 = vmax.f32 %v9338_v13, %v9339_v14  ;;  %12045 = vmatmul.msk.bf16.gmra.mxu0 %vm6879_vm2, %v12336_v5  ;;  %12117 = vmatmul.msk.bf16.gmra.mxu1 %vm6879_vm2, %v12408_v6  ;;  %v12338_v6 = vld [vmem:[%s13318_s8 + $0xa0] sm:$0xff] }
 0x268   : > { %12189 = vmatmul.msk.bf16.gmra.mxu2 %vm6879_vm2, %v12480_v10  ;;  %12261 = vmatmul.msk.bf16.gmra.mxu3 %vm6879_vm2, %v12552_v11  ;;  %v12482_v11 = vld [vmem:[%s13318_s8 + $0x520] sm:$0xff] }
 0x269   : > { %v10232_v18 = vadd.f32 %v13401_v24, %v9340_v17  ;;  %v12554_v12 = vld [vmem:[%s13318_s8 + $0x760] sm:$0xff] }
 0x26b   : > { %v10376_v20 = vmax.f32 %v10232_v18, 0.0  ;;  %v8530_v21 = vpop.f32.mrf.mxu2  ;;  %v8890_v22 = vpop.f32.mrf.mxu3 }
 0x26c   : > { %v9344_v23 = vsel %vm9200_vm3, %v8530_v21, -inf  ;;  %v9346_v25 = vsel %vm9200_vm3, %v8890_v22, -inf  ;;  %v7812_v26 = vpop.f32.mrf.mxu0  ;;  %v8172_v27 = vpop.f32.mrf.mxu1 }
 0x26d   : > { %v10520_v28 = vpack.c.bf16 %v10376_v20, %v10376_v20  ;;  %v9345_v29 = vmax.f32 %v9343_v19, %v9344_v23  ;;  %v9348_v31 = vsel %vm9200_vm3, %v7812_v26, -inf  ;;  %v9349_v32 = vsel %vm9200_vm3, %v8172_v27, -inf }
 0x26e   : > { %v9350_v35 = vmax.f32 %v9348_v31, %v9349_v32 }
 0x26f   : > { %10665 = vst.msk [vmem:[%s13411_s17 + $0x4c] sm:$0xf] %vm10645_vm4, %v10520_v28  ;;  %v9347_v30 = vmax.f32 %v9345_v29, %v9346_v25 }
 0x271   : > { %v10233_v33 = vadd.f32 %v13401_v24, %v9347_v30 }
 0x273   : > { %v10377_v34 = vmax.f32 %v10233_v33, 0.0  ;;  %v8532_v36 = vpop.f32.mrf.mxu2  ;;  %v8892_v37 = vpop.f32.mrf.mxu3 }
 0x274   : > { %v9351_v40 = vsel %vm9200_vm3, %v8532_v36, -inf  ;;  %v7815_v41 = vpop.f32.mrf.mxu0  ;;  %v8175_v42 = vpop.f32.mrf.mxu1  ;;  %v9353_v47 = vsel %vm9200_vm3, %v8892_v37, -inf }
 0x275   : > { %v10521_v45 = vpack.c.bf16 %v10377_v34, %v10377_v34  ;;  %v9352_v46 = vmax.f32 %v9350_v35, %v9351_v40  ;;  %v9355_v48 = vsel %vm9200_vm3, %v7815_v41, -inf  ;;  %v9356_v49 = vsel %vm9200_vm3, %v8175_v42, -inf  ;;  %v12411_v40 = vld [vmem:[%s13318_s8 + $0x2e8] sm:$0xff] }
 0x276   : > { %v9357_v52 = vmax.f32 %v9355_v48, %v9356_v49 }
 0x277   : > { %10666 = vst.msk [vmem:[%s13411_s17 + $0x50] sm:$0xf] %vm10645_vm4, %v10521_v45  ;;  %v9354_v50 = vmax.f32 %v9352_v46, %v9353_v47  ;;  %12046 = vmatmul.msk.bf16.gmra.mxu0 %vm6879_vm2, %v12337_v38  ;;  %12118 = vmatmul.msk.bf16.gmra.mxu1 %vm6879_vm2, %v12409_v39  ;;  %v12339_v39 = vld [vmem:[%s13318_s8 + $0xa8] sm:$0xff] }
 0x278   : > { %12190 = vmatmul.msk.bf16.gmra.mxu2 %vm6879_vm2, %v12481_v43  ;;  %12262 = vmatmul.msk.bf16.gmra.mxu3 %vm6879_vm2, %v12553_v44  ;;  %v12483_v44 = vld [vmem:[%s13318_s8 + $0x528] sm:$0xff] }
 0x279   : > { %v10234_v51 = vadd.f32 %v13401_v24, %v9354_v50  ;;  %v12555_v45 = vld [vmem:[%s13318_s8 + $0x768] sm:$0xff] }
 0x27b   : > { %v10378_v53 = vmax.f32 %v10234_v51, 0.0  ;;  %v8535_v54 = vpop.f32.mrf.mxu2  ;;  %v8895_v55 = vpop.f32.mrf.mxu3 }
 0x27c   : > { %v9358_v56 = vsel %vm9200_vm3, %v8535_v54, -inf  ;;  %v9360_v57 = vsel %vm9200_vm3, %v8895_v55, -inf  ;;  %v7817_v58 = vpop.f32.mrf.mxu0  ;;  %v8177_v59 = vpop.f32.mrf.mxu1 }
 0x27d   : > { %v10522_v60 = vpack.c.bf16 %v10378_v53, %v10378_v53  ;;  %v9359_v61 = vmax.f32 %v9357_v52, %v9358_v56  ;;  %v9362_v63 = vsel %vm9200_vm3, %v7817_v58, -inf  ;;  %v9363_v0 = vsel %vm9200_vm3, %v8177_v59, -inf }
 0x27e   : > { %v9364_v3 = vmax.f32 %v9362_v63, %v9363_v0 }
 0x27f   : > { %10667 = vst.msk [vmem:[%s13411_s17 + $0x54] sm:$0xf] %vm10645_vm4, %v10522_v60  ;;  %v9361_v62 = vmax.f32 %v9359_v61, %v9360_v57 }
 0x281   : > { %v10235_v1 = vadd.f32 %v13401_v24, %v9361_v62 }
 0x283   : > { %v10379_v2 = vmax.f32 %v10235_v1, 0.0  ;;  %v8537_v4 = vpop.f32.mrf.mxu2  ;;  %v8897_v5 = vpop.f32.mrf.mxu3 }
 0x284   : > { %v9365_v8 = vsel %vm9200_vm3, %v8537_v4, -inf  ;;  %v7820_v9 = vpop.f32.mrf.mxu0  ;;  %v8180_v10 = vpop.f32.mrf.mxu1  ;;  %v9367_v15 = vsel %vm9200_vm3, %v8897_v5, -inf }
 0x285   : > { %v10523_v13 = vpack.c.bf16 %v10379_v2, %v10379_v2  ;;  %v9366_v14 = vmax.f32 %v9364_v3, %v9365_v8  ;;  %v9369_v16 = vsel %vm9200_vm3, %v7820_v9, -inf  ;;  %v9370_v17 = vsel %vm9200_vm3, %v8180_v10, -inf  ;;  %v12412_v8 = vld [vmem:[%s13318_s8 + $0x2f0] sm:$0xff] }
 0x286   : > { %v9371_v20 = vmax.f32 %v9369_v16, %v9370_v17 }
 0x287   : > { %10668 = vst.msk [vmem:[%s13411_s17 + $0x58] sm:$0xf] %vm10645_vm4, %v10523_v13  ;;  %v9368_v18 = vmax.f32 %v9366_v14, %v9367_v15  ;;  %12047 = vmatmul.msk.bf16.gmra.mxu0 %vm6879_vm2, %v12338_v6  ;;  %12119 = vmatmul.msk.bf16.gmra.mxu1 %vm6879_vm2, %v12410_v7  ;;  %v12340_v7 = vld [vmem:[%s13318_s8 + $0xb0] sm:$0xff] }
 0x288   : > { %12191 = vmatmul.msk.bf16.gmra.mxu2 %vm6879_vm2, %v12482_v11  ;;  %12263 = vmatmul.msk.bf16.gmra.mxu3 %vm6879_vm2, %v12554_v12  ;;  %v12484_v12 = vld [vmem:[%s13318_s8 + $0x530] sm:$0xff] }
 0x289   : > { %v10236_v19 = vadd.f32 %v13401_v24, %v9368_v18  ;;  %v12556_v13 = vld [vmem:[%s13318_s8 + $0x770] sm:$0xff] }
 0x28b   : > { %v10380_v21 = vmax.f32 %v10236_v19, 0.0  ;;  %v8540_v22 = vpop.f32.mrf.mxu2  ;;  %v8900_v23 = vpop.f32.mrf.mxu3  ;;  %v13714_v19 = vld [vmem:[%s14949_s2] ss:$0 sm:$0xff] }
 0x28c   : > { %v9372_v25 = vsel %vm9200_vm3, %v8540_v22, -inf  ;;  %v9374_v26 = vsel %vm9200_vm3, %v8900_v23, -inf  ;;  %v7822_v27 = vpop.f32.mrf.mxu0  ;;  %v8182_v28 = vpop.f32.mrf.mxu1 }
 0x28d   : > { %v10524_v29 = vpack.c.bf16 %v10380_v21, %v10380_v21  ;;  %v9373_v30 = vmax.f32 %v9371_v20, %v9372_v25  ;;  %v9376_v32 = vsel %vm9200_vm3, %v7822_v27, -inf  ;;  %v9377_v33 = vsel %vm9200_vm3, %v8182_v28, -inf }
 0x28e   : > { %v9378_v36 = vmax.f32 %v9376_v32, %v9377_v33 }
 0x28f   : > { %10669 = vst.msk [vmem:[%s13411_s17 + $0x5c] sm:$0xf] %vm10645_vm4, %v10524_v29  ;;  %v9375_v31 = vmax.f32 %v9373_v30, %v9374_v26 }
 0x291   : > { %v10237_v34 = vadd.f32 %v13401_v24, %v9375_v31 }
 0x293   : > { %v10381_v35 = vmax.f32 %v10237_v34, 0.0  ;;  %v8542_v37 = vpop.f32.mrf.mxu2  ;;  %v8902_v38 = vpop.f32.mrf.mxu3 }
 0x294   : > { %v9379_v41 = vsel %vm9200_vm3, %v8542_v37, -inf  ;;  %v7825_v42 = vpop.f32.mrf.mxu0  ;;  %v8185_v43 = vpop.f32.mrf.mxu1  ;;  %v9381_v48 = vsel %vm9200_vm3, %v8902_v38, -inf }
 0x295   : > { %v10525_v46 = vpack.c.bf16 %v10381_v35, %v10381_v35  ;;  %v9380_v47 = vmax.f32 %v9378_v36, %v9379_v41  ;;  %v9383_v49 = vsel %vm9200_vm3, %v7825_v42, -inf  ;;  %v9384_v50 = vsel %vm9200_vm3, %v8185_v43, -inf  ;;  %v12413_v41 = vld [vmem:[%s13318_s8 + $0x2f8] sm:$0xff] }
 0x296   : > { %v9385_v53 = vmax.f32 %v9383_v49, %v9384_v50 }
 0x297   : > { %10670 = vst.msk [vmem:[%s13411_s17 + $0x60] sm:$0xf] %vm10645_vm4, %v10525_v46  ;;  %v9382_v51 = vmax.f32 %v9380_v47, %v9381_v48  ;;  %12048 = vmatmul.msk.bf16.gmra.mxu0 %vm6879_vm2, %v12339_v39  ;;  %12120 = vmatmul.msk.bf16.gmra.mxu1 %vm6879_vm2, %v12411_v40  ;;  %v12341_v40 = vld [vmem:[%s13318_s8 + $0xb8] sm:$0xff] }
 0x298   : > { %12192 = vmatmul.msk.bf16.gmra.mxu2 %vm6879_vm2, %v12483_v44  ;;  %12264 = vmatmul.msk.bf16.gmra.mxu3 %vm6879_vm2, %v12555_v45  ;;  %v12485_v45 = vld [vmem:[%s13318_s8 + $0x538] sm:$0xff] }
 0x299   : > { %v10238_v52 = vadd.f32 %v13401_v24, %v9382_v51  ;;  %v12557_v46 = vld [vmem:[%s13318_s8 + $0x778] sm:$0xff] }
 0x29b   : > { %v10382_v54 = vmax.f32 %v10238_v52, 0.0  ;;  %v8545_v55 = vpop.f32.mrf.mxu2  ;;  %v8905_v56 = vpop.f32.mrf.mxu3 }
 0x29c   : > { %v9386_v57 = vsel %vm9200_vm3, %v8545_v55, -inf  ;;  %v9388_v58 = vsel %vm9200_vm3, %v8905_v56, -inf  ;;  %v7827_v59 = vpop.f32.mrf.mxu0  ;;  %v8187_v60 = vpop.f32.mrf.mxu1 }
 0x29d   : > { %v10526_v61 = vpack.c.bf16 %v10382_v54, %v10382_v54  ;;  %v9387_v62 = vmax.f32 %v9385_v53, %v9386_v57  ;;  %v9390_v0 = vsel %vm9200_vm3, %v7827_v59, -inf  ;;  %v9391_v1 = vsel %vm9200_vm3, %v8187_v60, -inf }
 0x29e   : > { %v9392_v4 = vmax.f32 %v9390_v0, %v9391_v1 }
 0x29f   : > { %10671 = vst.msk [vmem:[%s13411_s17 + $0x64] sm:$0xf] %vm10645_vm4, %v10526_v61  ;;  %v9389_v63 = vmax.f32 %v9387_v62, %v9388_v58 }
 0x2a1   : > { %v10239_v2 = vadd.f32 %v13401_v24, %v9389_v63 }
 0x2a3   : > { %v10383_v3 = vmax.f32 %v10239_v2, 0.0  ;;  %v8547_v5 = vpop.f32.mrf.mxu2  ;;  %v8907_v6 = vpop.f32.mrf.mxu3 }
 0x2a4   : > { %v9393_v9 = vsel %vm9200_vm3, %v8547_v5, -inf  ;;  %v7830_v10 = vpop.f32.mrf.mxu0  ;;  %v8190_v11 = vpop.f32.mrf.mxu1  ;;  %v9395_v16 = vsel %vm9200_vm3, %v8907_v6, -inf }
 0x2a5   : > { %v10527_v14 = vpack.c.bf16 %v10383_v3, %v10383_v3  ;;  %v9394_v15 = vmax.f32 %v9392_v4, %v9393_v9  ;;  %v9397_v17 = vsel %vm9200_vm3, %v7830_v10, -inf  ;;  %v9398_v24 = vsel %vm9200_vm3, %v8190_v11, -inf  ;;  %v12414_v9 = vld [vmem:[%s13318_s8 + $0x300] sm:$0xff] }
 0x2a6   : > { %v9399_v21 = vmax.f32 %v9397_v17, %v9398_v24 }
 0x2a7   : > { %10672 = vst.msk [vmem:[%s13411_s17 + $0x68] sm:$0xf] %vm10645_vm4, %v10527_v14  ;;  %v9396_v18 = vmax.f32 %v9394_v15, %v9395_v16  ;;  %12049 = vmatmul.msk.bf16.gmra.mxu0 %vm6879_vm2, %v12340_v7  ;;  %12121 = vmatmul.msk.bf16.gmra.mxu1 %vm6879_vm2, %v12412_v8  ;;  %v12342_v8 = vld [vmem:[%s13318_s8 + $0xc0] sm:$0xff] }
 0x2a8   : > { %12193 = vmatmul.msk.bf16.gmra.mxu2 %vm6879_vm2, %v12484_v12  ;;  %12265 = vmatmul.msk.bf16.gmra.mxu3 %vm6879_vm2, %v12556_v13  ;;  %v12486_v13 = vld [vmem:[%s13318_s8 + $0x540] sm:$0xff] }
 0x2a9   : > { %v10240_v20 = vadd.f32 %v13714_v19, %v9396_v18  ;;  %v12558_v14 = vld [vmem:[%s13318_s8 + $0x780] sm:$0xff] }
 0x2ab   : > { %v10384_v22 = vmax.f32 %v10240_v20, 0.0  ;;  %v8550_v23 = vpop.f32.mrf.mxu2  ;;  %v8910_v25 = vpop.f32.mrf.mxu3 }
 0x2ac   : > { %v9400_v26 = vsel %vm9200_vm3, %v8550_v23, -inf  ;;  %v9402_v27 = vsel %vm9200_vm3, %v8910_v25, -inf  ;;  %v7832_v28 = vpop.f32.mrf.mxu0  ;;  %v8192_v29 = vpop.f32.mrf.mxu1 }
 0x2ad   : > { %v10528_v30 = vpack.c.bf16 %v10384_v22, %v10384_v22  ;;  %v9401_v31 = vmax.f32 %v9399_v21, %v9400_v26  ;;  %v9404_v33 = vsel %vm9200_vm3, %v7832_v28, -inf  ;;  %v9405_v34 = vsel %vm9200_vm3, %v8192_v29, -inf }
 0x2ae   : > { %v9406_v37 = vmax.f32 %v9404_v33, %v9405_v34 }
 0x2af   : > { %10673 = vst.msk [vmem:[%s13411_s17 + $0x6c] sm:$0xf] %vm10645_vm4, %v10528_v30  ;;  %v9403_v32 = vmax.f32 %v9401_v31, %v9402_v27 }
 0x2b1   : > { %v10241_v35 = vadd.f32 %v13714_v19, %v9403_v32 }
 0x2b3   : > { %v10385_v36 = vmax.f32 %v10241_v35, 0.0  ;;  %v8552_v38 = vpop.f32.mrf.mxu2  ;;  %v8912_v39 = vpop.f32.mrf.mxu3 }
 0x2b4   : > { %v9407_v42 = vsel %vm9200_vm3, %v8552_v38, -inf  ;;  %v7835_v43 = vpop.f32.mrf.mxu0  ;;  %v8195_v44 = vpop.f32.mrf.mxu1  ;;  %v9409_v49 = vsel %vm9200_vm3, %v8912_v39, -inf }
 0x2b5   : > { %v10529_v47 = vpack.c.bf16 %v10385_v36, %v10385_v36  ;;  %v9408_v48 = vmax.f32 %v9406_v37, %v9407_v42  ;;  %v9411_v50 = vsel %vm9200_vm3, %v7835_v43, -inf  ;;  %v9412_v51 = vsel %vm9200_vm3, %v8195_v44, -inf  ;;  %v12415_v42 = vld [vmem:[%s13318_s8 + $0x308] sm:$0xff] }
 0x2b6   : > { %v9413_v54 = vmax.f32 %v9411_v50, %v9412_v51 }
 0x2b7   : > { %10674 = vst.msk [vmem:[%s13411_s17 + $0x70] sm:$0xf] %vm10645_vm4, %v10529_v47  ;;  %v9410_v52 = vmax.f32 %v9408_v48, %v9409_v49  ;;  %12050 = vmatmul.msk.bf16.gmra.mxu0 %vm6879_vm2, %v12341_v40  ;;  %12122 = vmatmul.msk.bf16.gmra.mxu1 %vm6879_vm2, %v12413_v41  ;;  %v12343_v41 = vld [vmem:[%s13318_s8 + $0xc8] sm:$0xff] }
 0x2b8   : > { %12194 = vmatmul.msk.bf16.gmra.mxu2 %vm6879_vm2, %v12485_v45  ;;  %12266 = vmatmul.msk.bf16.gmra.mxu3 %vm6879_vm2, %v12557_v46  ;;  %v12487_v46 = vld [vmem:[%s13318_s8 + $0x548] sm:$0xff] }
 0x2b9   : > { %v10242_v53 = vadd.f32 %v13714_v19, %v9410_v52  ;;  %v12559_v47 = vld [vmem:[%s13318_s8 + $0x788] sm:$0xff] }
 0x2bb   : > { %v10386_v55 = vmax.f32 %v10242_v53, 0.0  ;;  %v8555_v56 = vpop.f32.mrf.mxu2  ;;  %v8915_v57 = vpop.f32.mrf.mxu3 }
 0x2bc   : > { %v9414_v58 = vsel %vm9200_vm3, %v8555_v56, -inf  ;;  %v9416_v59 = vsel %vm9200_vm3, %v8915_v57, -inf  ;;  %v7837_v60 = vpop.f32.mrf.mxu0  ;;  %v8197_v61 = vpop.f32.mrf.mxu1 }
 0x2bd   : > { %v10530_v62 = vpack.c.bf16 %v10386_v55, %v10386_v55  ;;  %v9415_v63 = vmax.f32 %v9413_v54, %v9414_v58  ;;  %v9418_v1 = vsel %vm9200_vm3, %v7837_v60, -inf  ;;  %v9419_v2 = vsel %vm9200_vm3, %v8197_v61, -inf }
 0x2be   : > { %v9420_v5 = vmax.f32 %v9418_v1, %v9419_v2 }
 0x2bf   : > { %10675 = vst.msk [vmem:[%s13411_s17 + $0x74] sm:$0xf] %vm10645_vm4, %v10530_v62  ;;  %v9417_v0 = vmax.f32 %v9415_v63, %v9416_v59 }
 0x2c1   : > { %v10243_v3 = vadd.f32 %v13714_v19, %v9417_v0 }
 0x2c3   : > { %v10387_v4 = vmax.f32 %v10243_v3, 0.0  ;;  %v8557_v6 = vpop.f32.mrf.mxu2  ;;  %v8917_v7 = vpop.f32.mrf.mxu3 }
 0x2c4   : > { %v9421_v10 = vsel %vm9200_vm3, %v8557_v6, -inf  ;;  %v7840_v11 = vpop.f32.mrf.mxu0  ;;  %v8200_v12 = vpop.f32.mrf.mxu1  ;;  %v9423_v17 = vsel %vm9200_vm3, %v8917_v7, -inf }
 0x2c5   : > { %v10531_v15 = vpack.c.bf16 %v10387_v4, %v10387_v4  ;;  %v9422_v16 = vmax.f32 %v9420_v5, %v9421_v10  ;;  %v9425_v24 = vsel %vm9200_vm3, %v7840_v11, -inf  ;;  %v9426_v18 = vsel %vm9200_vm3, %v8200_v12, -inf  ;;  %v12416_v10 = vld [vmem:[%s13318_s8 + $0x310] sm:$0xff] }
 0x2c6   : > { %v9427_v22 = vmax.f32 %v9425_v24, %v9426_v18 }
 0x2c7   : > { %10676 = vst.msk [vmem:[%s13411_s17 + $0x78] sm:$0xf] %vm10645_vm4, %v10531_v15  ;;  %v9424_v20 = vmax.f32 %v9422_v16, %v9423_v17  ;;  %12051 = vmatmul.msk.bf16.gmra.mxu0 %vm6879_vm2, %v12342_v8  ;;  %12123 = vmatmul.msk.bf16.gmra.mxu1 %vm6879_vm2, %v12414_v9  ;;  %v12344_v9 = vld [vmem:[%s13318_s8 + $0xd0] sm:$0xff] }
 0x2c8   : > { %12195 = vmatmul.msk.bf16.gmra.mxu2 %vm6879_vm2, %v12486_v13  ;;  %12267 = vmatmul.msk.bf16.gmra.mxu3 %vm6879_vm2, %v12558_v14  ;;  %v12488_v14 = vld [vmem:[%s13318_s8 + $0x550] sm:$0xff] }
 0x2c9   : > { %v10244_v21 = vadd.f32 %v13714_v19, %v9424_v20  ;;  %v12560_v15 = vld [vmem:[%s13318_s8 + $0x790] sm:$0xff] }
 0x2cb   : > { %v10388_v23 = vmax.f32 %v10244_v21, 0.0  ;;  %v8560_v25 = vpop.f32.mrf.mxu2  ;;  %v8920_v26 = vpop.f32.mrf.mxu3 }
 0x2cc   : > { %v9428_v27 = vsel %vm9200_vm3, %v8560_v25, -inf  ;;  %v9430_v28 = vsel %vm9200_vm3, %v8920_v26, -inf  ;;  %v7842_v29 = vpop.f32.mrf.mxu0  ;;  %v8202_v30 = vpop.f32.mrf.mxu1 }
 0x2cd   : > { %v10532_v31 = vpack.c.bf16 %v10388_v23, %v10388_v23  ;;  %v9429_v32 = vmax.f32 %v9427_v22, %v9428_v27  ;;  %v9432_v34 = vsel %vm9200_vm3, %v7842_v29, -inf  ;;  %v9433_v35 = vsel %vm9200_vm3, %v8202_v30, -inf }
 0x2ce   : > { %v9434_v38 = vmax.f32 %v9432_v34, %v9433_v35 }
 0x2cf   : > { %10677 = vst.msk [vmem:[%s13411_s17 + $0x7c] sm:$0xf] %vm10645_vm4, %v10532_v31  ;;  %v9431_v33 = vmax.f32 %v9429_v32, %v9430_v28 }
 0x2d1   : > { %v10245_v36 = vadd.f32 %v13714_v19, %v9431_v33 }
 0x2d3   : > { %v10389_v37 = vmax.f32 %v10245_v36, 0.0  ;;  %v8562_v39 = vpop.f32.mrf.mxu2  ;;  %v8922_v40 = vpop.f32.mrf.mxu3 }
 0x2d4   : > { %v9435_v43 = vsel %vm9200_vm3, %v8562_v39, -inf  ;;  %v7845_v44 = vpop.f32.mrf.mxu0  ;;  %v8205_v45 = vpop.f32.mrf.mxu1  ;;  %v9437_v50 = vsel %vm9200_vm3, %v8922_v40, -inf }
 0x2d5   : > { %v10533_v48 = vpack.c.bf16 %v10389_v37, %v10389_v37  ;;  %v9436_v49 = vmax.f32 %v9434_v38, %v9435_v43  ;;  %v9439_v51 = vsel %vm9200_vm3, %v7845_v44, -inf  ;;  %v9440_v52 = vsel %vm9200_vm3, %v8205_v45, -inf  ;;  %v12417_v43 = vld [vmem:[%s13318_s8 + $0x318] sm:$0xff] }
 0x2d6   : > { %v9441_v55 = vmax.f32 %v9439_v51, %v9440_v52 }
 0x2d7   : > { %10678 = vst.msk [vmem:[%s13411_s17 + $0x80] sm:$0xf] %vm10645_vm4, %v10533_v48  ;;  %v9438_v53 = vmax.f32 %v9436_v49, %v9437_v50  ;;  %12052 = vmatmul.msk.bf16.gmra.mxu0 %vm6879_vm2, %v12343_v41  ;;  %12124 = vmatmul.msk.bf16.gmra.mxu1 %vm6879_vm2, %v12415_v42  ;;  %v12345_v42 = vld [vmem:[%s13318_s8 + $0xd8] sm:$0xff] }
 0x2d8   : > { %12196 = vmatmul.msk.bf16.gmra.mxu2 %vm6879_vm2, %v12487_v46  ;;  %12268 = vmatmul.msk.bf16.gmra.mxu3 %vm6879_vm2, %v12559_v47  ;;  %v12489_v47 = vld [vmem:[%s13318_s8 + $0x558] sm:$0xff] }
 0x2d9   : > { %v10246_v54 = vadd.f32 %v13714_v19, %v9438_v53  ;;  %v12561_v48 = vld [vmem:[%s13318_s8 + $0x798] sm:$0xff] }
 0x2db   : > { %v10390_v56 = vmax.f32 %v10246_v54, 0.0  ;;  %v8565_v57 = vpop.f32.mrf.mxu2  ;;  %v8925_v58 = vpop.f32.mrf.mxu3 }
 0x2dc   : > { %v9442_v59 = vsel %vm9200_vm3, %v8565_v57, -inf  ;;  %v9444_v60 = vsel %vm9200_vm3, %v8925_v58, -inf  ;;  %v7847_v61 = vpop.f32.mrf.mxu0  ;;  %v8207_v62 = vpop.f32.mrf.mxu1 }
 0x2dd   : > { %v10534_v63 = vpack.c.bf16 %v10390_v56, %v10390_v56  ;;  %v9443_v0 = vmax.f32 %v9441_v55, %v9442_v59  ;;  %v9446_v2 = vsel %vm9200_vm3, %v7847_v61, -inf  ;;  %v9447_v3 = vsel %vm9200_vm3, %v8207_v62, -inf }
 0x2de   : > { %v9448_v6 = vmax.f32 %v9446_v2, %v9447_v3 }
 0x2df   : > { %10679 = vst.msk [vmem:[%s13411_s17 + $0x84] sm:$0xf] %vm10645_vm4, %v10534_v63  ;;  %v9445_v1 = vmax.f32 %v9443_v0, %v9444_v60 }
 0x2e1   : > { %v10247_v4 = vadd.f32 %v13714_v19, %v9445_v1 }
 0x2e3   : > { %v10391_v5 = vmax.f32 %v10247_v4, 0.0  ;;  %v8567_v7 = vpop.f32.mrf.mxu2  ;;  %v8927_v8 = vpop.f32.mrf.mxu3 }
 0x2e4   : > { %v9449_v11 = vsel %vm9200_vm3, %v8567_v7, -inf  ;;  %v7850_v12 = vpop.f32.mrf.mxu0  ;;  %v8210_v13 = vpop.f32.mrf.mxu1  ;;  %v9451_v24 = vsel %vm9200_vm3, %v8927_v8, -inf }
 0x2e5   : > { %v10535_v16 = vpack.c.bf16 %v10391_v5, %v10391_v5  ;;  %v9450_v17 = vmax.f32 %v9448_v6, %v9449_v11  ;;  %v9453_v18 = vsel %vm9200_vm3, %v7850_v12, -inf  ;;  %v9454_v20 = vsel %vm9200_vm3, %v8210_v13, -inf  ;;  %v12418_v11 = vld [vmem:[%s13318_s8 + $0x320] sm:$0xff] }
 0x2e6   : > { %v9455_v23 = vmax.f32 %v9453_v18, %v9454_v20 }
 0x2e7   : > { %10680 = vst.msk [vmem:[%s13411_s17 + $0x88] sm:$0xf] %vm10645_vm4, %v10535_v16  ;;  %v9452_v21 = vmax.f32 %v9450_v17, %v9451_v24  ;;  %12053 = vmatmul.msk.bf16.gmra.mxu0 %vm6879_vm2, %v12344_v9  ;;  %12125 = vmatmul.msk.bf16.gmra.mxu1 %vm6879_vm2, %v12416_v10  ;;  %v12346_v10 = vld [vmem:[%s13318_s8 + $0xe0] sm:$0xff] }
 0x2e8   : > { %12197 = vmatmul.msk.bf16.gmra.mxu2 %vm6879_vm2, %v12488_v14  ;;  %12269 = vmatmul.msk.bf16.gmra.mxu3 %vm6879_vm2, %v12560_v15  ;;  %v12490_v15 = vld [vmem:[%s13318_s8 + $0x560] sm:$0xff] }
 0x2e9   : > { %v10248_v22 = vadd.f32 %v13714_v19, %v9452_v21  ;;  %v12562_v16 = vld [vmem:[%s13318_s8 + $0x7a0] sm:$0xff] }
 0x2eb   : > { %v10392_v25 = vmax.f32 %v10248_v22, 0.0  ;;  %v8570_v26 = vpop.f32.mrf.mxu2  ;;  %v8930_v27 = vpop.f32.mrf.mxu3 }
 0x2ec   : > { %v9456_v28 = vsel %vm9200_vm3, %v8570_v26, -inf  ;;  %v9458_v29 = vsel %vm9200_vm3, %v8930_v27, -inf  ;;  %v7852_v30 = vpop.f32.mrf.mxu0  ;;  %v8212_v31 = vpop.f32.mrf.mxu1 }
 0x2ed   : > { %v10536_v32 = vpack.c.bf16 %v10392_v25, %v10392_v25  ;;  %v9457_v33 = vmax.f32 %v9455_v23, %v9456_v28  ;;  %v9460_v35 = vsel %vm9200_vm3, %v7852_v30, -inf  ;;  %v9461_v36 = vsel %vm9200_vm3, %v8212_v31, -inf }
 0x2ee   : > { %v9462_v39 = vmax.f32 %v9460_v35, %v9461_v36 }
 0x2ef   : > { %10681 = vst.msk [vmem:[%s13411_s17 + $0x8c] sm:$0xf] %vm10645_vm4, %v10536_v32  ;;  %v9459_v34 = vmax.f32 %v9457_v33, %v9458_v29 }
 0x2f1   : > { %v10249_v37 = vadd.f32 %v13714_v19, %v9459_v34 }
 0x2f3   : > { %v10393_v38 = vmax.f32 %v10249_v37, 0.0  ;;  %v8572_v40 = vpop.f32.mrf.mxu2  ;;  %v8932_v41 = vpop.f32.mrf.mxu3 }
 0x2f4   : > { %v9463_v44 = vsel %vm9200_vm3, %v8572_v40, -inf  ;;  %v7855_v45 = vpop.f32.mrf.mxu0  ;;  %v8215_v46 = vpop.f32.mrf.mxu1  ;;  %v9465_v51 = vsel %vm9200_vm3, %v8932_v41, -inf }
 0x2f5   : > { %v10537_v49 = vpack.c.bf16 %v10393_v38, %v10393_v38  ;;  %v9464_v50 = vmax.f32 %v9462_v39, %v9463_v44  ;;  %v9467_v52 = vsel %vm9200_vm3, %v7855_v45, -inf  ;;  %v9468_v53 = vsel %vm9200_vm3, %v8215_v46, -inf  ;;  %v12419_v44 = vld [vmem:[%s13318_s8 + $0x328] sm:$0xff] }
 0x2f6   : > { %v9469_v56 = vmax.f32 %v9467_v52, %v9468_v53 }
 0x2f7   : > { %10682 = vst.msk [vmem:[%s13411_s17 + $0x90] sm:$0xf] %vm10645_vm4, %v10537_v49  ;;  %v9466_v54 = vmax.f32 %v9464_v50, %v9465_v51  ;;  %12054 = vmatmul.msk.bf16.gmra.mxu0 %vm6879_vm2, %v12345_v42  ;;  %12126 = vmatmul.msk.bf16.gmra.mxu1 %vm6879_vm2, %v12417_v43  ;;  %v12347_v43 = vld [vmem:[%s13318_s8 + $0xe8] sm:$0xff] }
 0x2f8   : > { %12198 = vmatmul.msk.bf16.gmra.mxu2 %vm6879_vm2, %v12489_v47  ;;  %12270 = vmatmul.msk.bf16.gmra.mxu3 %vm6879_vm2, %v12561_v48  ;;  %v12491_v48 = vld [vmem:[%s13318_s8 + $0x568] sm:$0xff] }
 0x2f9   : > { %v10250_v55 = vadd.f32 %v13714_v19, %v9466_v54  ;;  %v12563_v49 = vld [vmem:[%s13318_s8 + $0x7a8] sm:$0xff] }
 0x2fb   : > { %v10394_v57 = vmax.f32 %v10250_v55, 0.0  ;;  %v8575_v58 = vpop.f32.mrf.mxu2  ;;  %v8935_v59 = vpop.f32.mrf.mxu3 }
 0x2fc   : > { %v9470_v60 = vsel %vm9200_vm3, %v8575_v58, -inf  ;;  %v9472_v61 = vsel %vm9200_vm3, %v8935_v59, -inf  ;;  %v7857_v62 = vpop.f32.mrf.mxu0  ;;  %v8217_v63 = vpop.f32.mrf.mxu1 }
 0x2fd   : > { %v10538_v0 = vpack.c.bf16 %v10394_v57, %v10394_v57  ;;  %v9471_v1 = vmax.f32 %v9469_v56, %v9470_v60  ;;  %v9474_v3 = vsel %vm9200_vm3, %v7857_v62, -inf  ;;  %v9475_v4 = vsel %vm9200_vm3, %v8217_v63, -inf }
 0x2fe   : > { %v9476_v7 = vmax.f32 %v9474_v3, %v9475_v4 }
 0x2ff   : > { %10683 = vst.msk [vmem:[%s13411_s17 + $0x94] sm:$0xf] %vm10645_vm4, %v10538_v0  ;;  %v9473_v2 = vmax.f32 %v9471_v1, %v9472_v61 }
 0x301   : > { %v10251_v5 = vadd.f32 %v13714_v19, %v9473_v2 }
 0x303   : > { %v10395_v6 = vmax.f32 %v10251_v5, 0.0  ;;  %v8577_v8 = vpop.f32.mrf.mxu2  ;;  %v8937_v9 = vpop.f32.mrf.mxu3 }
 0x304   : > { %v9477_v12 = vsel %vm9200_vm3, %v8577_v8, -inf  ;;  %v7860_v13 = vpop.f32.mrf.mxu0  ;;  %v8220_v14 = vpop.f32.mrf.mxu1  ;;  %v9479_v18 = vsel %vm9200_vm3, %v8937_v9, -inf }
 0x305   : > { %v10539_v17 = vpack.c.bf16 %v10395_v6, %v10395_v6  ;;  %v9478_v24 = vmax.f32 %v9476_v7, %v9477_v12  ;;  %v9481_v20 = vsel %vm9200_vm3, %v7860_v13, -inf  ;;  %v9482_v21 = vsel %vm9200_vm3, %v8220_v14, -inf  ;;  %v12420_v12 = vld [vmem:[%s13318_s8 + $0x330] sm:$0xff] }
 0x306   : > { %v9483_v25 = vmax.f32 %v9481_v20, %v9482_v21 }
 0x307   : > { %10684 = vst.msk [vmem:[%s13411_s17 + $0x98] sm:$0xf] %vm10645_vm4, %v10539_v17  ;;  %v9480_v22 = vmax.f32 %v9478_v24, %v9479_v18  ;;  %12055 = vmatmul.msk.bf16.gmra.mxu0 %vm6879_vm2, %v12346_v10  ;;  %12127 = vmatmul.msk.bf16.gmra.mxu1 %vm6879_vm2, %v12418_v11  ;;  %v12348_v11 = vld [vmem:[%s13318_s8 + $0xf0] sm:$0xff] }
 0x308   : > { %12199 = vmatmul.msk.bf16.gmra.mxu2 %vm6879_vm2, %v12490_v15  ;;  %12271 = vmatmul.msk.bf16.gmra.mxu3 %vm6879_vm2, %v12562_v16  ;;  %v12492_v16 = vld [vmem:[%s13318_s8 + $0x570] sm:$0xff] }
 0x309   : > { %v10252_v23 = vadd.f32 %v13714_v19, %v9480_v22  ;;  %v12564_v17 = vld [vmem:[%s13318_s8 + $0x7b0] sm:$0xff] }
 0x30b   : > { %v10396_v26 = vmax.f32 %v10252_v23, 0.0  ;;  %v8580_v27 = vpop.f32.mrf.mxu2  ;;  %v8940_v28 = vpop.f32.mrf.mxu3 }
 0x30c   : > { %v9484_v29 = vsel %vm9200_vm3, %v8580_v27, -inf  ;;  %v9486_v30 = vsel %vm9200_vm3, %v8940_v28, -inf  ;;  %v7862_v31 = vpop.f32.mrf.mxu0  ;;  %v8222_v32 = vpop.f32.mrf.mxu1 }
 0x30d   : > { %v10540_v33 = vpack.c.bf16 %v10396_v26, %v10396_v26  ;;  %v9485_v34 = vmax.f32 %v9483_v25, %v9484_v29  ;;  %v9488_v36 = vsel %vm9200_vm3, %v7862_v31, -inf  ;;  %v9489_v37 = vsel %vm9200_vm3, %v8222_v32, -inf }
 0x30e   : > { %v9490_v40 = vmax.f32 %v9488_v36, %v9489_v37 }
 0x30f   : > { %10685 = vst.msk [vmem:[%s13411_s17 + $0x9c] sm:$0xf] %vm10645_vm4, %v10540_v33  ;;  %v9487_v35 = vmax.f32 %v9485_v34, %v9486_v30 }
 0x311   : > { %v10253_v38 = vadd.f32 %v13714_v19, %v9487_v35 }
 0x313   : > { %v10397_v39 = vmax.f32 %v10253_v38, 0.0  ;;  %v8582_v41 = vpop.f32.mrf.mxu2  ;;  %v8942_v42 = vpop.f32.mrf.mxu3 }
 0x314   : > { %v9491_v45 = vsel %vm9200_vm3, %v8582_v41, -inf  ;;  %v7865_v46 = vpop.f32.mrf.mxu0  ;;  %v8225_v47 = vpop.f32.mrf.mxu1  ;;  %v9493_v52 = vsel %vm9200_vm3, %v8942_v42, -inf }
 0x315   : > { %v10541_v50 = vpack.c.bf16 %v10397_v39, %v10397_v39  ;;  %v9492_v51 = vmax.f32 %v9490_v40, %v9491_v45  ;;  %v9495_v53 = vsel %vm9200_vm3, %v7865_v46, -inf  ;;  %v9496_v54 = vsel %vm9200_vm3, %v8225_v47, -inf  ;;  %v12421_v45 = vld [vmem:[%s13318_s8 + $0x338] sm:$0xff] }
 0x316   : > { %v9497_v57 = vmax.f32 %v9495_v53, %v9496_v54 }
 0x317   : > { %10686 = vst.msk [vmem:[%s13411_s17 + $0xa0] sm:$0xf] %vm10645_vm4, %v10541_v50  ;;  %v9494_v55 = vmax.f32 %v9492_v51, %v9493_v52  ;;  %12056 = vmatmul.msk.bf16.gmra.mxu0 %vm6879_vm2, %v12347_v43  ;;  %12128 = vmatmul.msk.bf16.gmra.mxu1 %vm6879_vm2, %v12419_v44  ;;  %v12349_v44 = vld [vmem:[%s13318_s8 + $0xf8] sm:$0xff] }
 0x318   : > { %12200 = vmatmul.msk.bf16.gmra.mxu2 %vm6879_vm2, %v12491_v48  ;;  %12272 = vmatmul.msk.bf16.gmra.mxu3 %vm6879_vm2, %v12563_v49  ;;  %v12493_v49 = vld [vmem:[%s13318_s8 + $0x578] sm:$0xff] }
 0x319   : > { %v10254_v56 = vadd.f32 %v13714_v19, %v9494_v55  ;;  %v12565_v50 = vld [vmem:[%s13318_s8 + $0x7b8] sm:$0xff] }
 0x31b   : > { %v10398_v58 = vmax.f32 %v10254_v56, 0.0  ;;  %v8585_v59 = vpop.f32.mrf.mxu2  ;;  %v8945_v60 = vpop.f32.mrf.mxu3 }
 0x31c   : > { %v9498_v61 = vsel %vm9200_vm3, %v8585_v59, -inf  ;;  %v9500_v62 = vsel %vm9200_vm3, %v8945_v60, -inf  ;;  %v7867_v63 = vpop.f32.mrf.mxu0  ;;  %v8227_v0 = vpop.f32.mrf.mxu1 }
 0x31d   : > { %v10542_v1 = vpack.c.bf16 %v10398_v58, %v10398_v58  ;;  %v9499_v2 = vmax.f32 %v9497_v57, %v9498_v61  ;;  %v9502_v4 = vsel %vm9200_vm3, %v7867_v63, -inf  ;;  %v9503_v5 = vsel %vm9200_vm3, %v8227_v0, -inf }
 0x31e   : > { %v9504_v8 = vmax.f32 %v9502_v4, %v9503_v5 }
 0x31f   : > { %10687 = vst.msk [vmem:[%s13411_s17 + $0xa4] sm:$0xf] %vm10645_vm4, %v10542_v1  ;;  %v9501_v3 = vmax.f32 %v9499_v2, %v9500_v62 }
 0x321   : > { %v10255_v6 = vadd.f32 %v13714_v19, %v9501_v3 }
 0x323   : > { %v10399_v7 = vmax.f32 %v10255_v6, 0.0  ;;  %v8587_v9 = vpop.f32.mrf.mxu2  ;;  %v8947_v10 = vpop.f32.mrf.mxu3 }
 0x324   : > { %v9505_v13 = vsel %vm9200_vm3, %v8587_v9, -inf  ;;  %v7870_v14 = vpop.f32.mrf.mxu0  ;;  %v8230_v15 = vpop.f32.mrf.mxu1  ;;  %v9507_v20 = vsel %vm9200_vm3, %v8947_v10, -inf }
 0x325   : > { %v10543_v24 = vpack.c.bf16 %v10399_v7, %v10399_v7  ;;  %v9506_v18 = vmax.f32 %v9504_v8, %v9505_v13  ;;  %v9509_v21 = vsel %vm9200_vm3, %v7870_v14, -inf  ;;  %v9510_v22 = vsel %vm9200_vm3, %v8230_v15, -inf  ;;  %v12422_v13 = vld [vmem:[%s13318_s8 + $0x340] sm:$0xff] }
 0x326   : > { %v9511_v26 = vmax.f32 %v9509_v21, %v9510_v22 }
 0x327   : > { %10688 = vst.msk [vmem:[%s13411_s17 + $0xa8] sm:$0xf] %vm10645_vm4, %v10543_v24  ;;  %v9508_v23 = vmax.f32 %v9506_v18, %v9507_v20  ;;  %12057 = vmatmul.msk.bf16.gmra.mxu0 %vm6879_vm2, %v12348_v11  ;;  %12129 = vmatmul.msk.bf16.gmra.mxu1 %vm6879_vm2, %v12420_v12  ;;  %v12350_v12 = vld [vmem:[%s13318_s8 + $0x100] sm:$0xff] }
 0x328   : > { %12201 = vmatmul.msk.bf16.gmra.mxu2 %vm6879_vm2, %v12492_v16  ;;  %12273 = vmatmul.msk.bf16.gmra.mxu3 %vm6879_vm2, %v12564_v17  ;;  %v12494_v17 = vld [vmem:[%s13318_s8 + $0x580] sm:$0xff] }
 0x329   : > { %v10256_v25 = vadd.f32 %v13714_v19, %v9508_v23  ;;  %v12566_v24 = vld [vmem:[%s13318_s8 + $0x7c0] sm:$0xff] }
 0x32b   : > { %v10400_v27 = vmax.f32 %v10256_v25, 0.0  ;;  %v8590_v28 = vpop.f32.mrf.mxu2  ;;  %v8950_v29 = vpop.f32.mrf.mxu3 }
 0x32c   : > { %v9512_v30 = vsel %vm9200_vm3, %v8590_v28, -inf  ;;  %v9514_v31 = vsel %vm9200_vm3, %v8950_v29, -inf  ;;  %v7872_v32 = vpop.f32.mrf.mxu0  ;;  %v8232_v33 = vpop.f32.mrf.mxu1 }
 0x32d   : > { %v10544_v34 = vpack.c.bf16 %v10400_v27, %v10400_v27  ;;  %v9513_v35 = vmax.f32 %v9511_v26, %v9512_v30  ;;  %v9516_v37 = vsel %vm9200_vm3, %v7872_v32, -inf  ;;  %v9517_v38 = vsel %vm9200_vm3, %v8232_v33, -inf }
 0x32e   : > { %v9518_v41 = vmax.f32 %v9516_v37, %v9517_v38 }
 0x32f   : > { %10689 = vst.msk [vmem:[%s13411_s17 + $0xac] sm:$0xf] %vm10645_vm4, %v10544_v34  ;;  %v9515_v36 = vmax.f32 %v9513_v35, %v9514_v31 }
 0x331   : > { %v10257_v39 = vadd.f32 %v13714_v19, %v9515_v36 }
 0x333   : > { %v10401_v40 = vmax.f32 %v10257_v39, 0.0  ;;  %v8592_v42 = vpop.f32.mrf.mxu2  ;;  %v8952_v43 = vpop.f32.mrf.mxu3 }
 0x334   : > { %v9519_v46 = vsel %vm9200_vm3, %v8592_v42, -inf  ;;  %v7875_v47 = vpop.f32.mrf.mxu0  ;;  %v8235_v48 = vpop.f32.mrf.mxu1  ;;  %v9521_v53 = vsel %vm9200_vm3, %v8952_v43, -inf }
 0x335   : > { %v10545_v51 = vpack.c.bf16 %v10401_v40, %v10401_v40  ;;  %v9520_v52 = vmax.f32 %v9518_v41, %v9519_v46  ;;  %v9523_v54 = vsel %vm9200_vm3, %v7875_v47, -inf  ;;  %v9524_v55 = vsel %vm9200_vm3, %v8235_v48, -inf  ;;  %v12423_v46 = vld [vmem:[%s13318_s8 + $0x348] sm:$0xff] }
 0x336   : > { %v9525_v58 = vmax.f32 %v9523_v54, %v9524_v55 }
 0x337   : > { %10690 = vst.msk [vmem:[%s13411_s17 + $0xb0] sm:$0xf] %vm10645_vm4, %v10545_v51  ;;  %v9522_v56 = vmax.f32 %v9520_v52, %v9521_v53  ;;  %12058 = vmatmul.msk.bf16.gmra.mxu0 %vm6879_vm2, %v12349_v44  ;;  %12130 = vmatmul.msk.bf16.gmra.mxu1 %vm6879_vm2, %v12421_v45  ;;  %v12351_v45 = vld [vmem:[%s13318_s8 + $0x108] sm:$0xff] }
 0x338   : > { %12202 = vmatmul.msk.bf16.gmra.mxu2 %vm6879_vm2, %v12493_v49  ;;  %12274 = vmatmul.msk.bf16.gmra.mxu3 %vm6879_vm2, %v12565_v50  ;;  %v12495_v50 = vld [vmem:[%s13318_s8 + $0x588] sm:$0xff] }
 0x339   : > { %v10258_v57 = vadd.f32 %v13714_v19, %v9522_v56  ;;  %v12567_v51 = vld [vmem:[%s13318_s8 + $0x7c8] sm:$0xff] }
 0x33b   : > { %v10402_v59 = vmax.f32 %v10258_v57, 0.0  ;;  %v8595_v60 = vpop.f32.mrf.mxu2  ;;  %v8955_v61 = vpop.f32.mrf.mxu3 }
 0x33c   : > { %v9526_v62 = vsel %vm9200_vm3, %v8595_v60, -inf  ;;  %v9528_v63 = vsel %vm9200_vm3, %v8955_v61, -inf  ;;  %v7877_v0 = vpop.f32.mrf.mxu0  ;;  %v8237_v1 = vpop.f32.mrf.mxu1 }
 0x33d   : > { %v10546_v2 = vpack.c.bf16 %v10402_v59, %v10402_v59  ;;  %v9527_v3 = vmax.f32 %v9525_v58, %v9526_v62  ;;  %v9530_v5 = vsel %vm9200_vm3, %v7877_v0, -inf  ;;  %v9531_v6 = vsel %vm9200_vm3, %v8237_v1, -inf }
 0x33e   : > { %v9532_v9 = vmax.f32 %v9530_v5, %v9531_v6 }
 0x33f   : > { %10691 = vst.msk [vmem:[%s13411_s17 + $0xb4] sm:$0xf] %vm10645_vm4, %v10546_v2  ;;  %v9529_v4 = vmax.f32 %v9527_v3, %v9528_v63 }
 0x341   : > { %v10259_v7 = vadd.f32 %v13714_v19, %v9529_v4 }
 0x343   : > { %v10403_v8 = vmax.f32 %v10259_v7, 0.0  ;;  %v8597_v10 = vpop.f32.mrf.mxu2  ;;  %v8957_v11 = vpop.f32.mrf.mxu3 }
 0x344   : > { %v9533_v14 = vsel %vm9200_vm3, %v8597_v10, -inf  ;;  %v7880_v15 = vpop.f32.mrf.mxu0  ;;  %v8240_v16 = vpop.f32.mrf.mxu1  ;;  %v9535_v21 = vsel %vm9200_vm3, %v8957_v11, -inf }
 0x345   : > { %v10547_v18 = vpack.c.bf16 %v10403_v8, %v10403_v8  ;;  %v9534_v20 = vmax.f32 %v9532_v9, %v9533_v14  ;;  %v9537_v22 = vsel %vm9200_vm3, %v7880_v15, -inf  ;;  %v9538_v23 = vsel %vm9200_vm3, %v8240_v16, -inf  ;;  %v12424_v14 = vld [vmem:[%s13318_s8 + $0x350] sm:$0xff] }
 0x346   : > { %v9539_v27 = vmax.f32 %v9537_v22, %v9538_v23 }
 0x347   : > { %10692 = vst.msk [vmem:[%s13411_s17 + $0xb8] sm:$0xf] %vm10645_vm4, %v10547_v18  ;;  %v9536_v25 = vmax.f32 %v9534_v20, %v9535_v21  ;;  %12059 = vmatmul.msk.bf16.gmra.mxu0 %vm6879_vm2, %v12350_v12  ;;  %12131 = vmatmul.msk.bf16.gmra.mxu1 %vm6879_vm2, %v12422_v13  ;;  %v12352_v13 = vld [vmem:[%s13318_s8 + $0x110] sm:$0xff] }
 0x348   : > { %12203 = vmatmul.msk.bf16.gmra.mxu2 %vm6879_vm2, %v12494_v17  ;;  %12275 = vmatmul.msk.bf16.gmra.mxu3 %vm6879_vm2, %v12566_v24  ;;  %v12496_v24 = vld [vmem:[%s13318_s8 + $0x590] sm:$0xff] }
 0x349   : > { %v10260_v26 = vadd.f32 %v13714_v19, %v9536_v25  ;;  %v12568_v18 = vld [vmem:[%s13318_s8 + $0x7d0] sm:$0xff] }
 0x34b   : > { %v10404_v28 = vmax.f32 %v10260_v26, 0.0  ;;  %v8600_v29 = vpop.f32.mrf.mxu2  ;;  %v8960_v30 = vpop.f32.mrf.mxu3 }
 0x34c   : > { %v9540_v31 = vsel %vm9200_vm3, %v8600_v29, -inf  ;;  %v9542_v32 = vsel %vm9200_vm3, %v8960_v30, -inf  ;;  %v7882_v33 = vpop.f32.mrf.mxu0  ;;  %v8242_v34 = vpop.f32.mrf.mxu1 }
 0x34d   : > { %v10548_v35 = vpack.c.bf16 %v10404_v28, %v10404_v28  ;;  %v9541_v36 = vmax.f32 %v9539_v27, %v9540_v31  ;;  %v9544_v38 = vsel %vm9200_vm3, %v7882_v33, -inf  ;;  %v9545_v39 = vsel %vm9200_vm3, %v8242_v34, -inf }
 0x34e   : > { %v9546_v42 = vmax.f32 %v9544_v38, %v9545_v39 }
 0x34f   : > { %10693 = vst.msk [vmem:[%s13411_s17 + $0xbc] sm:$0xf] %vm10645_vm4, %v10548_v35  ;;  %v9543_v37 = vmax.f32 %v9541_v36, %v9542_v32 }
 0x351   : > { %v10261_v40 = vadd.f32 %v13714_v19, %v9543_v37 }
 0x353   : > { %v10405_v41 = vmax.f32 %v10261_v40, 0.0  ;;  %v8602_v43 = vpop.f32.mrf.mxu2  ;;  %v8962_v44 = vpop.f32.mrf.mxu3 }
 0x354   : > { %v9547_v47 = vsel %vm9200_vm3, %v8602_v43, -inf  ;;  %v7885_v48 = vpop.f32.mrf.mxu0  ;;  %v8245_v49 = vpop.f32.mrf.mxu1  ;;  %v9549_v54 = vsel %vm9200_vm3, %v8962_v44, -inf }
 0x355   : > { %v10549_v52 = vpack.c.bf16 %v10405_v41, %v10405_v41  ;;  %v9548_v53 = vmax.f32 %v9546_v42, %v9547_v47  ;;  %v9551_v55 = vsel %vm9200_vm3, %v7885_v48, -inf  ;;  %v9552_v56 = vsel %vm9200_vm3, %v8245_v49, -inf  ;;  %v12425_v47 = vld [vmem:[%s13318_s8 + $0x358] sm:$0xff] }
 0x356   : > { %v9553_v59 = vmax.f32 %v9551_v55, %v9552_v56 }
 0x357   : > { %10694 = vst.msk [vmem:[%s13411_s17 + $0xc0] sm:$0xf] %vm10645_vm4, %v10549_v52  ;;  %v9550_v57 = vmax.f32 %v9548_v53, %v9549_v54  ;;  %12060 = vmatmul.msk.bf16.gmra.mxu0 %vm6879_vm2, %v12351_v45  ;;  %12132 = vmatmul.msk.bf16.gmra.mxu1 %vm6879_vm2, %v12423_v46  ;;  %v12353_v46 = vld [vmem:[%s13318_s8 + $0x118] sm:$0xff] }
 0x358   : > { %12204 = vmatmul.msk.bf16.gmra.mxu2 %vm6879_vm2, %v12495_v50  ;;  %12276 = vmatmul.msk.bf16.gmra.mxu3 %vm6879_vm2, %v12567_v51  ;;  %v12497_v51 = vld [vmem:[%s13318_s8 + $0x598] sm:$0xff] }
 0x359   : > { %v10262_v58 = vadd.f32 %v13714_v19, %v9550_v57  ;;  %v12569_v52 = vld [vmem:[%s13318_s8 + $0x7d8] sm:$0xff] }
 0x35b   : > { %v10406_v60 = vmax.f32 %v10262_v58, 0.0  ;;  %v8605_v61 = vpop.f32.mrf.mxu2  ;;  %v8965_v62 = vpop.f32.mrf.mxu3 }
 0x35c   : > { %v9554_v63 = vsel %vm9200_vm3, %v8605_v61, -inf  ;;  %v9556_v0 = vsel %vm9200_vm3, %v8965_v62, -inf  ;;  %v7887_v1 = vpop.f32.mrf.mxu0  ;;  %v8247_v2 = vpop.f32.mrf.mxu1 }
 0x35d   : > { %v10550_v3 = vpack.c.bf16 %v10406_v60, %v10406_v60  ;;  %v9555_v4 = vmax.f32 %v9553_v59, %v9554_v63  ;;  %v9558_v6 = vsel %vm9200_vm3, %v7887_v1, -inf  ;;  %v9559_v7 = vsel %vm9200_vm3, %v8247_v2, -inf }
 0x35e   : > { %v9560_v10 = vmax.f32 %v9558_v6, %v9559_v7 }
 0x35f   : > { %10695 = vst.msk [vmem:[%s13411_s17 + $0xc4] sm:$0xf] %vm10645_vm4, %v10550_v3  ;;  %v9557_v5 = vmax.f32 %v9555_v4, %v9556_v0 }
 0x361   : > { %v10263_v8 = vadd.f32 %v13714_v19, %v9557_v5 }
 0x363   : > { %v10407_v9 = vmax.f32 %v10263_v8, 0.0  ;;  %v8607_v11 = vpop.f32.mrf.mxu2  ;;  %v8967_v12 = vpop.f32.mrf.mxu3 }
 0x364   : > { %v9561_v15 = vsel %vm9200_vm3, %v8607_v11, -inf  ;;  %v7890_v16 = vpop.f32.mrf.mxu0  ;;  %v8250_v17 = vpop.f32.mrf.mxu1  ;;  %v9563_v22 = vsel %vm9200_vm3, %v8967_v12, -inf }
 0x365   : > { %v10551_v20 = vpack.c.bf16 %v10407_v9, %v10407_v9  ;;  %v9562_v21 = vmax.f32 %v9560_v10, %v9561_v15  ;;  %v9565_v23 = vsel %vm9200_vm3, %v7890_v16, -inf  ;;  %v9566_v25 = vsel %vm9200_vm3, %v8250_v17, -inf  ;;  %v12426_v15 = vld [vmem:[%s13318_s8 + $0x360] sm:$0xff] }
 0x366   : > { %v9567_v28 = vmax.f32 %v9565_v23, %v9566_v25 }
 0x367   : > { %10696 = vst.msk [vmem:[%s13411_s17 + $0xc8] sm:$0xf] %vm10645_vm4, %v10551_v20  ;;  %v9564_v26 = vmax.f32 %v9562_v21, %v9563_v22  ;;  %12061 = vmatmul.msk.bf16.gmra.mxu0 %vm6879_vm2, %v12352_v13  ;;  %12133 = vmatmul.msk.bf16.gmra.mxu1 %vm6879_vm2, %v12424_v14  ;;  %v12354_v14 = vld [vmem:[%s13318_s8 + $0x120] sm:$0xff] }
 0x368   : > { %12205 = vmatmul.msk.bf16.gmra.mxu2 %vm6879_vm2, %v12496_v24  ;;  %12277 = vmatmul.msk.bf16.gmra.mxu3 %vm6879_vm2, %v12568_v18  ;;  %v12498_v18 = vld [vmem:[%s13318_s8 + $0x5a0] sm:$0xff] }
 0x369   : > { %v10264_v27 = vadd.f32 %v13714_v19, %v9564_v26  ;;  %v12570_v20 = vld [vmem:[%s13318_s8 + $0x7e0] sm:$0xff] }
 0x36b   : > { %v10408_v29 = vmax.f32 %v10264_v27, 0.0  ;;  %v8610_v30 = vpop.f32.mrf.mxu2  ;;  %v8970_v31 = vpop.f32.mrf.mxu3  ;;  %v14027_v27 = vld [vmem:[%s14949_s2] ss:$0 sm:$0xff] }
 0x36c   : > { %v9568_v32 = vsel %vm9200_vm3, %v8610_v30, -inf  ;;  %v9570_v33 = vsel %vm9200_vm3, %v8970_v31, -inf  ;;  %v7892_v34 = vpop.f32.mrf.mxu0  ;;  %v8252_v35 = vpop.f32.mrf.mxu1 }
 0x36d   : > { %v10552_v36 = vpack.c.bf16 %v10408_v29, %v10408_v29  ;;  %v9569_v37 = vmax.f32 %v9567_v28, %v9568_v32  ;;  %v9572_v39 = vsel %vm9200_vm3, %v7892_v34, -inf  ;;  %v9573_v40 = vsel %vm9200_vm3, %v8252_v35, -inf }
 0x36e   : > { %v9574_v43 = vmax.f32 %v9572_v39, %v9573_v40 }
 0x36f   : > { %10697 = vst.msk [vmem:[%s13411_s17 + $0xcc] sm:$0xf] %vm10645_vm4, %v10552_v36  ;;  %v9571_v38 = vmax.f32 %v9569_v37, %v9570_v33 }
 0x371   : > { %v10265_v41 = vadd.f32 %v13714_v19, %v9571_v38 }
 0x373   : > { %v10409_v42 = vmax.f32 %v10265_v41, 0.0  ;;  %v8612_v44 = vpop.f32.mrf.mxu2  ;;  %v8972_v45 = vpop.f32.mrf.mxu3 }
 0x374   : > { %v9575_v48 = vsel %vm9200_vm3, %v8612_v44, -inf  ;;  %v7895_v49 = vpop.f32.mrf.mxu0  ;;  %v8255_v50 = vpop.f32.mrf.mxu1  ;;  %v9577_v55 = vsel %vm9200_vm3, %v8972_v45, -inf }
 0x375   : > { %v10553_v53 = vpack.c.bf16 %v10409_v42, %v10409_v42  ;;  %v9576_v54 = vmax.f32 %v9574_v43, %v9575_v48  ;;  %v9579_v56 = vsel %vm9200_vm3, %v7895_v49, -inf  ;;  %v9580_v57 = vsel %vm9200_vm3, %v8255_v50, -inf  ;;  %v12427_v48 = vld [vmem:[%s13318_s8 + $0x368] sm:$0xff] }
 0x376   : > { %v9581_v60 = vmax.f32 %v9579_v56, %v9580_v57 }
 0x377   : > { %10698 = vst.msk [vmem:[%s13411_s17 + $0xd0] sm:$0xf] %vm10645_vm4, %v10553_v53  ;;  %v9578_v58 = vmax.f32 %v9576_v54, %v9577_v55  ;;  %12062 = vmatmul.msk.bf16.gmra.mxu0 %vm6879_vm2, %v12353_v46  ;;  %12134 = vmatmul.msk.bf16.gmra.mxu1 %vm6879_vm2, %v12425_v47  ;;  %v12355_v47 = vld [vmem:[%s13318_s8 + $0x128] sm:$0xff] }
 0x378   : > { %12206 = vmatmul.msk.bf16.gmra.mxu2 %vm6879_vm2, %v12497_v51  ;;  %12278 = vmatmul.msk.bf16.gmra.mxu3 %vm6879_vm2, %v12569_v52  ;;  %v12499_v52 = vld [vmem:[%s13318_s8 + $0x5a8] sm:$0xff] }
 0x379   : > { %v10266_v59 = vadd.f32 %v13714_v19, %v9578_v58  ;;  %v12571_v53 = vld [vmem:[%s13318_s8 + $0x7e8] sm:$0xff] }
 0x37b   : > { %v10410_v61 = vmax.f32 %v10266_v59, 0.0  ;;  %v8615_v62 = vpop.f32.mrf.mxu2  ;;  %v8975_v63 = vpop.f32.mrf.mxu3 }
 0x37c   : > { %v9582_v0 = vsel %vm9200_vm3, %v8615_v62, -inf  ;;  %v9584_v1 = vsel %vm9200_vm3, %v8975_v63, -inf  ;;  %v7897_v2 = vpop.f32.mrf.mxu0  ;;  %v8257_v3 = vpop.f32.mrf.mxu1 }
 0x37d   : > { %v10554_v4 = vpack.c.bf16 %v10410_v61, %v10410_v61  ;;  %v9583_v5 = vmax.f32 %v9581_v60, %v9582_v0  ;;  %v9586_v7 = vsel %vm9200_vm3, %v7897_v2, -inf  ;;  %v9587_v8 = vsel %vm9200_vm3, %v8257_v3, -inf }
 0x37e   : > { %v9588_v11 = vmax.f32 %v9586_v7, %v9587_v8 }
 0x37f   : > { %10699 = vst.msk [vmem:[%s13411_s17 + $0xd4] sm:$0xf] %vm10645_vm4, %v10554_v4  ;;  %v9585_v6 = vmax.f32 %v9583_v5, %v9584_v1 }
 0x381   : > { %v10267_v9 = vadd.f32 %v13714_v19, %v9585_v6 }
 0x383   : > { %v10411_v10 = vmax.f32 %v10267_v9, 0.0  ;;  %v8617_v12 = vpop.f32.mrf.mxu2  ;;  %v8977_v13 = vpop.f32.mrf.mxu3 }
 0x384   : > { %v9589_v16 = vsel %vm9200_vm3, %v8617_v12, -inf  ;;  %v7900_v17 = vpop.f32.mrf.mxu0  ;;  %v8260_v24 = vpop.f32.mrf.mxu1  ;;  %v9591_v23 = vsel %vm9200_vm3, %v8977_v13, -inf }
 0x385   : > { %v10555_v21 = vpack.c.bf16 %v10411_v10, %v10411_v10  ;;  %v9590_v22 = vmax.f32 %v9588_v11, %v9589_v16  ;;  %v9593_v25 = vsel %vm9200_vm3, %v7900_v17, -inf  ;;  %v9594_v19 = vsel %vm9200_vm3, %v8260_v24, -inf  ;;  %v12428_v16 = vld [vmem:[%s13318_s8 + $0x370] sm:$0xff] }
 0x386   : > { %v9595_v29 = vmax.f32 %v9593_v25, %v9594_v19 }
 0x387   : > { %10700 = vst.msk [vmem:[%s13411_s17 + $0xd8] sm:$0xf] %vm10645_vm4, %v10555_v21  ;;  %v9592_v26 = vmax.f32 %v9590_v22, %v9591_v23  ;;  %12063 = vmatmul.msk.bf16.gmra.mxu0 %vm6879_vm2, %v12354_v14  ;;  %12135 = vmatmul.msk.bf16.gmra.mxu1 %vm6879_vm2, %v12426_v15  ;;  %v12356_v15 = vld [vmem:[%s13318_s8 + $0x130] sm:$0xff] }
 0x388   : > { %12207 = vmatmul.msk.bf16.gmra.mxu2 %vm6879_vm2, %v12498_v18  ;;  %12279 = vmatmul.msk.bf16.gmra.mxu3 %vm6879_vm2, %v12570_v20  ;;  %v12500_v20 = vld [vmem:[%s13318_s8 + $0x5b0] sm:$0xff] }
 0x389   : > { %v10268_v28 = vadd.f32 %v14027_v27, %v9592_v26  ;;  %v12572_v21 = vld [vmem:[%s13318_s8 + $0x7f0] sm:$0xff] }
 0x38b   : > { %v10412_v30 = vmax.f32 %v10268_v28, 0.0  ;;  %v8620_v31 = vpop.f32.mrf.mxu2  ;;  %v8980_v32 = vpop.f32.mrf.mxu3 }
 0x38c   : > { %v9596_v33 = vsel %vm9200_vm3, %v8620_v31, -inf  ;;  %v9598_v34 = vsel %vm9200_vm3, %v8980_v32, -inf  ;;  %v7902_v35 = vpop.f32.mrf.mxu0  ;;  %v8262_v36 = vpop.f32.mrf.mxu1 }
 0x38d   : > { %v10556_v37 = vpack.c.bf16 %v10412_v30, %v10412_v30  ;;  %v9597_v38 = vmax.f32 %v9595_v29, %v9596_v33  ;;  %v9600_v40 = vsel %vm9200_vm3, %v7902_v35, -inf  ;;  %v9601_v41 = vsel %vm9200_vm3, %v8262_v36, -inf }
 0x38e   : > { %v9602_v44 = vmax.f32 %v9600_v40, %v9601_v41 }
 0x38f   : > { %10701 = vst.msk [vmem:[%s13411_s17 + $0xdc] sm:$0xf] %vm10645_vm4, %v10556_v37  ;;  %v9599_v39 = vmax.f32 %v9597_v38, %v9598_v34 }
 0x391   : > { %v10269_v42 = vadd.f32 %v14027_v27, %v9599_v39 }
 0x393   : > { %v10413_v43 = vmax.f32 %v10269_v42, 0.0  ;;  %v8622_v45 = vpop.f32.mrf.mxu2  ;;  %v8982_v46 = vpop.f32.mrf.mxu3 }
 0x394   : > { %v9603_v49 = vsel %vm9200_vm3, %v8622_v45, -inf  ;;  %v7905_v50 = vpop.f32.mrf.mxu0  ;;  %v8265_v51 = vpop.f32.mrf.mxu1  ;;  %v9605_v56 = vsel %vm9200_vm3, %v8982_v46, -inf }
 0x395   : > { %v10557_v54 = vpack.c.bf16 %v10413_v43, %v10413_v43  ;;  %v9604_v55 = vmax.f32 %v9602_v44, %v9603_v49  ;;  %v9607_v57 = vsel %vm9200_vm3, %v7905_v50, -inf  ;;  %v9608_v58 = vsel %vm9200_vm3, %v8265_v51, -inf  ;;  %v12429_v49 = vld [vmem:[%s13318_s8 + $0x378] sm:$0xff] }
 0x396   : > { %v9609_v61 = vmax.f32 %v9607_v57, %v9608_v58 }
 0x397   : > { %10702 = vst.msk [vmem:[%s13411_s17 + $0xe0] sm:$0xf] %vm10645_vm4, %v10557_v54  ;;  %v9606_v59 = vmax.f32 %v9604_v55, %v9605_v56  ;;  %12064 = vmatmul.msk.bf16.gmra.mxu0 %vm6879_vm2, %v12355_v47  ;;  %12136 = vmatmul.msk.bf16.gmra.mxu1 %vm6879_vm2, %v12427_v48  ;;  %v12357_v48 = vld [vmem:[%s13318_s8 + $0x138] sm:$0xff] }
 0x398   : > { %12208 = vmatmul.msk.bf16.gmra.mxu2 %vm6879_vm2, %v12499_v52  ;;  %12280 = vmatmul.msk.bf16.gmra.mxu3 %vm6879_vm2, %v12571_v53  ;;  %v12501_v53 = vld [vmem:[%s13318_s8 + $0x5b8] sm:$0xff] }
 0x399   : > { %v10270_v60 = vadd.f32 %v14027_v27, %v9606_v59  ;;  %v12573_v54 = vld [vmem:[%s13318_s8 + $0x7f8] sm:$0xff] }
 0x39b   : > { %v10414_v62 = vmax.f32 %v10270_v60, 0.0  ;;  %v8625_v63 = vpop.f32.mrf.mxu2  ;;  %v8985_v0 = vpop.f32.mrf.mxu3 }
 0x39c   : > { %v9610_v1 = vsel %vm9200_vm3, %v8625_v63, -inf  ;;  %v9612_v2 = vsel %vm9200_vm3, %v8985_v0, -inf  ;;  %v7907_v3 = vpop.f32.mrf.mxu0  ;;  %v8267_v4 = vpop.f32.mrf.mxu1 }
 0x39d   : > { %v10558_v5 = vpack.c.bf16 %v10414_v62, %v10414_v62  ;;  %v9611_v6 = vmax.f32 %v9609_v61, %v9610_v1  ;;  %v9614_v8 = vsel %vm9200_vm3, %v7907_v3, -inf  ;;  %v9615_v9 = vsel %vm9200_vm3, %v8267_v4, -inf }
 0x39e   : > { %v9616_v12 = vmax.f32 %v9614_v8, %v9615_v9 }
 0x39f   : > { %10703 = vst.msk [vmem:[%s13411_s17 + $0xe4] sm:$0xf] %vm10645_vm4, %v10558_v5  ;;  %v9613_v7 = vmax.f32 %v9611_v6, %v9612_v2 }
 0x3a1   : > { %v10271_v10 = vadd.f32 %v14027_v27, %v9613_v7 }
 0x3a3   : > { %v10415_v11 = vmax.f32 %v10271_v10, 0.0  ;;  %v8627_v13 = vpop.f32.mrf.mxu2  ;;  %v8987_v14 = vpop.f32.mrf.mxu3 }
 0x3a4   : > { %v9617_v17 = vsel %vm9200_vm3, %v8627_v13, -inf  ;;  %v7910_v24 = vpop.f32.mrf.mxu0  ;;  %v8270_v18 = vpop.f32.mrf.mxu1  ;;  %v9619_v25 = vsel %vm9200_vm3, %v8987_v14, -inf }
 0x3a5   : > { %v10559_v22 = vpack.c.bf16 %v10415_v11, %v10415_v11  ;;  %v9618_v23 = vmax.f32 %v9616_v12, %v9617_v17  ;;  %v9621_v19 = vsel %vm9200_vm3, %v7910_v24, -inf  ;;  %v9622_v26 = vsel %vm9200_vm3, %v8270_v18, -inf  ;;  %v12430_v17 = vld [vmem:[%s13318_s8 + $0x380] sm:$0xff] }
 0x3a6   : > { %v9623_v30 = vmax.f32 %v9621_v19, %v9622_v26 }
 0x3a7   : > { %10704 = vst.msk [vmem:[%s13411_s17 + $0xe8] sm:$0xf] %vm10645_vm4, %v10559_v22  ;;  %v9620_v28 = vmax.f32 %v9618_v23, %v9619_v25  ;;  %12065 = vmatmul.msk.bf16.gmra.mxu0 %vm6879_vm2, %v12356_v15  ;;  %12137 = vmatmul.msk.bf16.gmra.mxu1 %vm6879_vm2, %v12428_v16  ;;  %v12358_v16 = vld [vmem:[%s13318_s8 + $0x140] sm:$0xff] }
 0x3a8   : > { %12209 = vmatmul.msk.bf16.gmra.mxu2 %vm6879_vm2, %v12500_v20  ;;  %12281 = vmatmul.msk.bf16.gmra.mxu3 %vm6879_vm2, %v12572_v21  ;;  %v12502_v21 = vld [vmem:[%s13318_s8 + $0x5c0] sm:$0xff] }
 0x3a9   : > { %v10272_v29 = vadd.f32 %v14027_v27, %v9620_v28  ;;  %v12574_v22 = vld [vmem:[%s13318_s8 + $0x800] sm:$0xff] }
 0x3ab   : > { %v10416_v31 = vmax.f32 %v10272_v29, 0.0  ;;  %v8630_v32 = vpop.f32.mrf.mxu2  ;;  %v8990_v33 = vpop.f32.mrf.mxu3 }
 0x3ac   : > { %v9624_v34 = vsel %vm9200_vm3, %v8630_v32, -inf  ;;  %v9626_v35 = vsel %vm9200_vm3, %v8990_v33, -inf  ;;  %v7912_v36 = vpop.f32.mrf.mxu0  ;;  %v8272_v37 = vpop.f32.mrf.mxu1 }
 0x3ad   : > { %v10560_v38 = vpack.c.bf16 %v10416_v31, %v10416_v31  ;;  %v9625_v39 = vmax.f32 %v9623_v30, %v9624_v34  ;;  %v9628_v41 = vsel %vm9200_vm3, %v7912_v36, -inf  ;;  %v9629_v42 = vsel %vm9200_vm3, %v8272_v37, -inf }
 0x3ae   : > { %v9630_v45 = vmax.f32 %v9628_v41, %v9629_v42 }
 0x3af   : > { %10705 = vst.msk [vmem:[%s13411_s17 + $0xec] sm:$0xf] %vm10645_vm4, %v10560_v38  ;;  %v9627_v40 = vmax.f32 %v9625_v39, %v9626_v35 }
 0x3b1   : > { %v10273_v43 = vadd.f32 %v14027_v27, %v9627_v40 }
 0x3b3   : > { %v10417_v44 = vmax.f32 %v10273_v43, 0.0  ;;  %v8632_v46 = vpop.f32.mrf.mxu2  ;;  %v8992_v47 = vpop.f32.mrf.mxu3 }
 0x3b4   : > { %v9631_v50 = vsel %vm9200_vm3, %v8632_v46, -inf  ;;  %v7915_v51 = vpop.f32.mrf.mxu0  ;;  %v8275_v52 = vpop.f32.mrf.mxu1  ;;  %v9633_v57 = vsel %vm9200_vm3, %v8992_v47, -inf }
 0x3b5   : > { %v10561_v55 = vpack.c.bf16 %v10417_v44, %v10417_v44  ;;  %v9632_v56 = vmax.f32 %v9630_v45, %v9631_v50  ;;  %v9635_v58 = vsel %vm9200_vm3, %v7915_v51, -inf  ;;  %v9636_v59 = vsel %vm9200_vm3, %v8275_v52, -inf  ;;  %v12431_v50 = vld [vmem:[%s13318_s8 + $0x388] sm:$0xff] }
 0x3b6   : > { %v9637_v62 = vmax.f32 %v9635_v58, %v9636_v59 }
 0x3b7   : > { %10706 = vst.msk [vmem:[%s13411_s17 + $0xf0] sm:$0xf] %vm10645_vm4, %v10561_v55  ;;  %v9634_v60 = vmax.f32 %v9632_v56, %v9633_v57  ;;  %12066 = vmatmul.msk.bf16.gmra.mxu0 %vm6879_vm2, %v12357_v48  ;;  %12138 = vmatmul.msk.bf16.gmra.mxu1 %vm6879_vm2, %v12429_v49  ;;  %v12359_v49 = vld [vmem:[%s13318_s8 + $0x148] sm:$0xff] }
 0x3b8   : > { %12210 = vmatmul.msk.bf16.gmra.mxu2 %vm6879_vm2, %v12501_v53  ;;  %12282 = vmatmul.msk.bf16.gmra.mxu3 %vm6879_vm2, %v12573_v54  ;;  %v12503_v54 = vld [vmem:[%s13318_s8 + $0x5c8] sm:$0xff] }
 0x3b9   : > { %v10274_v61 = vadd.f32 %v14027_v27, %v9634_v60  ;;  %v12575_v55 = vld [vmem:[%s13318_s8 + $0x808] sm:$0xff] }
 0x3bb   : > { %v10418_v63 = vmax.f32 %v10274_v61, 0.0  ;;  %v8635_v0 = vpop.f32.mrf.mxu2  ;;  %v8995_v1 = vpop.f32.mrf.mxu3 }
 0x3bc   : > { %v9638_v2 = vsel %vm9200_vm3, %v8635_v0, -inf  ;;  %v9640_v3 = vsel %vm9200_vm3, %v8995_v1, -inf  ;;  %v7917_v4 = vpop.f32.mrf.mxu0  ;;  %v8277_v5 = vpop.f32.mrf.mxu1 }
 0x3bd   : > { %v10562_v6 = vpack.c.bf16 %v10418_v63, %v10418_v63  ;;  %v9639_v7 = vmax.f32 %v9637_v62, %v9638_v2  ;;  %v9642_v9 = vsel %vm9200_vm3, %v7917_v4, -inf  ;;  %v9643_v10 = vsel %vm9200_vm3, %v8277_v5, -inf }
 0x3be   : > { %v9644_v13 = vmax.f32 %v9642_v9, %v9643_v10 }
 0x3bf   : > { %10707 = vst.msk [vmem:[%s13411_s17 + $0xf4] sm:$0xf] %vm10645_vm4, %v10562_v6  ;;  %v9641_v8 = vmax.f32 %v9639_v7, %v9640_v3 }
 0x3c1   : > { %v10275_v11 = vadd.f32 %v14027_v27, %v9641_v8 }
 0x3c3   : > { %v10419_v12 = vmax.f32 %v10275_v11, 0.0  ;;  %v8637_v14 = vpop.f32.mrf.mxu2  ;;  %v8997_v15 = vpop.f32.mrf.mxu3 }
 0x3c4   : > { %v9645_v24 = vsel %vm9200_vm3, %v8637_v14, -inf  ;;  %v7920_v18 = vpop.f32.mrf.mxu0  ;;  %v8280_v20 = vpop.f32.mrf.mxu1  ;;  %v9647_v19 = vsel %vm9200_vm3, %v8997_v15, -inf }
 0x3c5   : > { %v10563_v23 = vpack.c.bf16 %v10419_v12, %v10419_v12  ;;  %v9646_v25 = vmax.f32 %v9644_v13, %v9645_v24  ;;  %v9649_v26 = vsel %vm9200_vm3, %v7920_v18, -inf  ;;  %v9650_v28 = vsel %vm9200_vm3, %v8280_v20, -inf  ;;  %v12432_v24 = vld [vmem:[%s13318_s8 + $0x390] sm:$0xff] }
 0x3c6   : > { %v9651_v31 = vmax.f32 %v9649_v26, %v9650_v28 }
 0x3c7   : > { %10708 = vst.msk [vmem:[%s13411_s17 + $0xf8] sm:$0xf] %vm10645_vm4, %v10563_v23  ;;  %v9648_v29 = vmax.f32 %v9646_v25, %v9647_v19  ;;  %12067 = vmatmul.msk.bf16.gmra.mxu0 %vm6879_vm2, %v12358_v16  ;;  %12139 = vmatmul.msk.bf16.gmra.mxu1 %vm6879_vm2, %v12430_v17  ;;  %v12360_v17 = vld [vmem:[%s13318_s8 + $0x150] sm:$0xff] }
 0x3c8   : > { %12211 = vmatmul.msk.bf16.gmra.mxu2 %vm6879_vm2, %v12502_v21  ;;  %12283 = vmatmul.msk.bf16.gmra.mxu3 %vm6879_vm2, %v12574_v22  ;;  %v12504_v22 = vld [vmem:[%s13318_s8 + $0x5d0] sm:$0xff] }
 0x3c9   : > { %v10276_v30 = vadd.f32 %v14027_v27, %v9648_v29  ;;  %v12576_v23 = vld [vmem:[%s13318_s8 + $0x810] sm:$0xff] }
 0x3cb   : > { %v10420_v32 = vmax.f32 %v10276_v30, 0.0  ;;  %v8640_v33 = vpop.f32.mrf.mxu2  ;;  %v9000_v34 = vpop.f32.mrf.mxu3 }
 0x3cc   : > { %v9652_v35 = vsel %vm9200_vm3, %v8640_v33, -inf  ;;  %v9654_v36 = vsel %vm9200_vm3, %v9000_v34, -inf  ;;  %v7922_v37 = vpop.f32.mrf.mxu0  ;;  %v8282_v38 = vpop.f32.mrf.mxu1 }
 0x3cd   : > { %v10564_v39 = vpack.c.bf16 %v10420_v32, %v10420_v32  ;;  %v9653_v40 = vmax.f32 %v9651_v31, %v9652_v35  ;;  %v9656_v42 = vsel %vm9200_vm3, %v7922_v37, -inf  ;;  %v9657_v43 = vsel %vm9200_vm3, %v8282_v38, -inf }
 0x3ce   : > { %v9658_v46 = vmax.f32 %v9656_v42, %v9657_v43 }
 0x3cf   : > { %10709 = vst.msk [vmem:[%s13411_s17 + $0xfc] sm:$0xf] %vm10645_vm4, %v10564_v39  ;;  %v9655_v41 = vmax.f32 %v9653_v40, %v9654_v36 }
 0x3d1   : > { %v10277_v44 = vadd.f32 %v14027_v27, %v9655_v41 }
 0x3d3   : > { %v10421_v45 = vmax.f32 %v10277_v44, 0.0  ;;  %v8642_v47 = vpop.f32.mrf.mxu2  ;;  %v9002_v48 = vpop.f32.mrf.mxu3 }
 0x3d4   : > { %v9659_v51 = vsel %vm9200_vm3, %v8642_v47, -inf  ;;  %v7925_v52 = vpop.f32.mrf.mxu0  ;;  %v8285_v53 = vpop.f32.mrf.mxu1  ;;  %v9661_v58 = vsel %vm9200_vm3, %v9002_v48, -inf }
 0x3d5   : > { %v10565_v56 = vpack.c.bf16 %v10421_v45, %v10421_v45  ;;  %v9660_v57 = vmax.f32 %v9658_v46, %v9659_v51  ;;  %v9663_v59 = vsel %vm9200_vm3, %v7925_v52, -inf  ;;  %v9664_v60 = vsel %vm9200_vm3, %v8285_v53, -inf  ;;  %v12433_v51 = vld [vmem:[%s13318_s8 + $0x398] sm:$0xff] }
 0x3d6   : > { %v9665_v63 = vmax.f32 %v9663_v59, %v9664_v60 }
 0x3d7   : > { %10710 = vst.msk [vmem:[%s13411_s17 + $0x100] sm:$0xf] %vm10645_vm4, %v10565_v56  ;;  %v9662_v61 = vmax.f32 %v9660_v57, %v9661_v58  ;;  %12068 = vmatmul.msk.bf16.gmra.mxu0 %vm6879_vm2, %v12359_v49  ;;  %12140 = vmatmul.msk.bf16.gmra.mxu1 %vm6879_vm2, %v12431_v50  ;;  %v12361_v50 = vld [vmem:[%s13318_s8 + $0x158] sm:$0xff] }
 0x3d8   : > { %12212 = vmatmul.msk.bf16.gmra.mxu2 %vm6879_vm2, %v12503_v54  ;;  %12284 = vmatmul.msk.bf16.gmra.mxu3 %vm6879_vm2, %v12575_v55  ;;  %v12505_v55 = vld [vmem:[%s13318_s8 + $0x5d8] sm:$0xff] }
 0x3d9   : > { %v10278_v62 = vadd.f32 %v14027_v27, %v9662_v61  ;;  %v12577_v56 = vld [vmem:[%s13318_s8 + $0x818] sm:$0xff] }
 0x3db   : > { %v10422_v0 = vmax.f32 %v10278_v62, 0.0  ;;  %v8645_v1 = vpop.f32.mrf.mxu2  ;;  %v9005_v2 = vpop.f32.mrf.mxu3 }
 0x3dc   : > { %v9666_v3 = vsel %vm9200_vm3, %v8645_v1, -inf  ;;  %v9668_v4 = vsel %vm9200_vm3, %v9005_v2, -inf  ;;  %v7927_v5 = vpop.f32.mrf.mxu0  ;;  %v8287_v6 = vpop.f32.mrf.mxu1 }
 0x3dd   : > { %v10566_v7 = vpack.c.bf16 %v10422_v0, %v10422_v0  ;;  %v9667_v8 = vmax.f32 %v9665_v63, %v9666_v3  ;;  %v9670_v10 = vsel %vm9200_vm3, %v7927_v5, -inf  ;;  %v9671_v11 = vsel %vm9200_vm3, %v8287_v6, -inf }
 0x3de   : > { %v9672_v14 = vmax.f32 %v9670_v10, %v9671_v11 }
 0x3df   : > { %10711 = vst.msk [vmem:[%s13411_s17 + $0x104] sm:$0xf] %vm10645_vm4, %v10566_v7  ;;  %v9669_v9 = vmax.f32 %v9667_v8, %v9668_v4 }
 0x3e1   : > { %v10279_v12 = vadd.f32 %v14027_v27, %v9669_v9 }
 0x3e3   : > { %v10423_v13 = vmax.f32 %v10279_v12, 0.0  ;;  %v8647_v15 = vpop.f32.mrf.mxu2  ;;  %v9007_v16 = vpop.f32.mrf.mxu3 }
 0x3e4   : > { %v9673_v18 = vsel %vm9200_vm3, %v8647_v15, -inf  ;;  %v7930_v20 = vpop.f32.mrf.mxu0  ;;  %v8290_v21 = vpop.f32.mrf.mxu1  ;;  %v9675_v26 = vsel %vm9200_vm3, %v9007_v16, -inf }
 0x3e5   : > { %v10567_v25 = vpack.c.bf16 %v10423_v13, %v10423_v13  ;;  %v9674_v19 = vmax.f32 %v9672_v14, %v9673_v18  ;;  %v9677_v28 = vsel %vm9200_vm3, %v7930_v20, -inf  ;;  %v9678_v29 = vsel %vm9200_vm3, %v8290_v21, -inf  ;;  %v12434_v18 = vld [vmem:[%s13318_s8 + $0x3a0] sm:$0xff] }
 0x3e6   : > { %v9679_v32 = vmax.f32 %v9677_v28, %v9678_v29 }
 0x3e7   : > { %10712 = vst.msk [vmem:[%s13411_s17 + $0x108] sm:$0xf] %vm10645_vm4, %v10567_v25  ;;  %v9676_v30 = vmax.f32 %v9674_v19, %v9675_v26  ;;  %12069 = vmatmul.msk.bf16.gmra.mxu0 %vm6879_vm2, %v12360_v17  ;;  %12141 = vmatmul.msk.bf16.gmra.mxu1 %vm6879_vm2, %v12432_v24  ;;  %v12362_v24 = vld [vmem:[%s13318_s8 + $0x160] sm:$0xff] }
 0x3e8   : > { %12213 = vmatmul.msk.bf16.gmra.mxu2 %vm6879_vm2, %v12504_v22  ;;  %12285 = vmatmul.msk.bf16.gmra.mxu3 %vm6879_vm2, %v12576_v23  ;;  %v12506_v23 = vld [vmem:[%s13318_s8 + $0x5e0] sm:$0xff] }
 0x3e9   : > { %v10280_v31 = vadd.f32 %v14027_v27, %v9676_v30  ;;  %v12578_v25 = vld [vmem:[%s13318_s8 + $0x820] sm:$0xff] }
 0x3eb   : > { %v10424_v33 = vmax.f32 %v10280_v31, 0.0  ;;  %v8650_v34 = vpop.f32.mrf.mxu2  ;;  %v9010_v35 = vpop.f32.mrf.mxu3 }
 0x3ec   : > { %v9680_v36 = vsel %vm9200_vm3, %v8650_v34, -inf  ;;  %v9682_v37 = vsel %vm9200_vm3, %v9010_v35, -inf  ;;  %v7932_v38 = vpop.f32.mrf.mxu0  ;;  %v8292_v39 = vpop.f32.mrf.mxu1 }
 0x3ed   : > { %v10568_v40 = vpack.c.bf16 %v10424_v33, %v10424_v33  ;;  %v9681_v41 = vmax.f32 %v9679_v32, %v9680_v36  ;;  %v9684_v43 = vsel %vm9200_vm3, %v7932_v38, -inf  ;;  %v9685_v44 = vsel %vm9200_vm3, %v8292_v39, -inf }
 0x3ee   : > { %v9686_v47 = vmax.f32 %v9684_v43, %v9685_v44 }
 0x3ef   : > { %10713 = vst.msk [vmem:[%s13411_s17 + $0x10c] sm:$0xf] %vm10645_vm4, %v10568_v40  ;;  %v9683_v42 = vmax.f32 %v9681_v41, %v9682_v37 }
 0x3f1   : > { %v10281_v45 = vadd.f32 %v14027_v27, %v9683_v42 }
 0x3f3   : > { %v10425_v46 = vmax.f32 %v10281_v45, 0.0  ;;  %v8652_v48 = vpop.f32.mrf.mxu2  ;;  %v9012_v49 = vpop.f32.mrf.mxu3 }
 0x3f4   : > { %v9687_v52 = vsel %vm9200_vm3, %v8652_v48, -inf  ;;  %v7935_v53 = vpop.f32.mrf.mxu0  ;;  %v8295_v54 = vpop.f32.mrf.mxu1  ;;  %v9689_v59 = vsel %vm9200_vm3, %v9012_v49, -inf }
 0x3f5   : > { %v10569_v57 = vpack.c.bf16 %v10425_v46, %v10425_v46  ;;  %v9688_v58 = vmax.f32 %v9686_v47, %v9687_v52  ;;  %v9691_v60 = vsel %vm9200_vm3, %v7935_v53, -inf  ;;  %v9692_v61 = vsel %vm9200_vm3, %v8295_v54, -inf  ;;  %v12435_v52 = vld [vmem:[%s13318_s8 + $0x3a8] sm:$0xff] }
 0x3f6   : > { %v9693_v0 = vmax.f32 %v9691_v60, %v9692_v61 }
 0x3f7   : > { %10714 = vst.msk [vmem:[%s13411_s17 + $0x110] sm:$0xf] %vm10645_vm4, %v10569_v57  ;;  %v9690_v62 = vmax.f32 %v9688_v58, %v9689_v59  ;;  %12070 = vmatmul.msk.bf16.gmra.mxu0 %vm6879_vm2, %v12361_v50  ;;  %12142 = vmatmul.msk.bf16.gmra.mxu1 %vm6879_vm2, %v12433_v51  ;;  %v12363_v51 = vld [vmem:[%s13318_s8 + $0x168] sm:$0xff] }
 0x3f8   : > { %12214 = vmatmul.msk.bf16.gmra.mxu2 %vm6879_vm2, %v12505_v55  ;;  %12286 = vmatmul.msk.bf16.gmra.mxu3 %vm6879_vm2, %v12577_v56  ;;  %v12507_v56 = vld [vmem:[%s13318_s8 + $0x5e8] sm:$0xff] }
 0x3f9   : > { %v10282_v63 = vadd.f32 %v14027_v27, %v9690_v62  ;;  %v12579_v57 = vld [vmem:[%s13318_s8 + $0x828] sm:$0xff] }
 0x3fb   : > { %v10426_v1 = vmax.f32 %v10282_v63, 0.0  ;;  %v8655_v2 = vpop.f32.mrf.mxu2  ;;  %v9015_v3 = vpop.f32.mrf.mxu3 }
 0x3fc   : > { %v9694_v4 = vsel %vm9200_vm3, %v8655_v2, -inf  ;;  %v9696_v5 = vsel %vm9200_vm3, %v9015_v3, -inf  ;;  %v7937_v6 = vpop.f32.mrf.mxu0  ;;  %v8297_v7 = vpop.f32.mrf.mxu1 }
 0x3fd   : > { %v10570_v8 = vpack.c.bf16 %v10426_v1, %v10426_v1  ;;  %v9695_v9 = vmax.f32 %v9693_v0, %v9694_v4  ;;  %v9698_v11 = vsel %vm9200_vm3, %v7937_v6, -inf  ;;  %v9699_v12 = vsel %vm9200_vm3, %v8297_v7, -inf }
 0x3fe   : > { %v9700_v15 = vmax.f32 %v9698_v11, %v9699_v12 }
 0x3ff   : > { %10715 = vst.msk [vmem:[%s13411_s17 + $0x114] sm:$0xf] %vm10645_vm4, %v10570_v8  ;;  %v9697_v10 = vmax.f32 %v9695_v9, %v9696_v5 }
 0x401   : > { %v10283_v13 = vadd.f32 %v14027_v27, %v9697_v10 }
 0x403   : > { %v10427_v14 = vmax.f32 %v10283_v13, 0.0  ;;  %v8657_v16 = vpop.f32.mrf.mxu2  ;;  %v9017_v17 = vpop.f32.mrf.mxu3 }
 0x404   : > { %v9701_v20 = vsel %vm9200_vm3, %v8657_v16, -inf  ;;  %v7940_v21 = vpop.f32.mrf.mxu0  ;;  %v8300_v22 = vpop.f32.mrf.mxu1  ;;  %v9703_v28 = vsel %vm9200_vm3, %v9017_v17, -inf }
 0x405   : > { %v10571_v19 = vpack.c.bf16 %v10427_v14, %v10427_v14  ;;  %v9702_v26 = vmax.f32 %v9700_v15, %v9701_v20  ;;  %v9705_v29 = vsel %vm9200_vm3, %v7940_v21, -inf  ;;  %v9706_v30 = vsel %vm9200_vm3, %v8300_v22, -inf  ;;  %v12436_v20 = vld [vmem:[%s13318_s8 + $0x3b0] sm:$0xff] }
 0x406   : > { %v9707_v33 = vmax.f32 %v9705_v29, %v9706_v30 }
 0x407   : > { %10716 = vst.msk [vmem:[%s13411_s17 + $0x118] sm:$0xf] %vm10645_vm4, %v10571_v19  ;;  %v9704_v31 = vmax.f32 %v9702_v26, %v9703_v28  ;;  %12071 = vmatmul.msk.bf16.gmra.mxu0 %vm6879_vm2, %v12362_v24  ;;  %12143 = vmatmul.msk.bf16.gmra.mxu1 %vm6879_vm2, %v12434_v18  ;;  %v12364_v18 = vld [vmem:[%s13318_s8 + $0x170] sm:$0xff] }
 0x408   : > { %12215 = vmatmul.msk.bf16.gmra.mxu2 %vm6879_vm2, %v12506_v23  ;;  %12287 = vmatmul.msk.bf16.gmra.mxu3 %vm6879_vm2, %v12578_v25  ;;  %v12508_v25 = vld [vmem:[%s13318_s8 + $0x5f0] sm:$0xff] }
 0x409   : > { %v10284_v32 = vadd.f32 %v14027_v27, %v9704_v31  ;;  %v12580_v19 = vld [vmem:[%s13318_s8 + $0x830] sm:$0xff] }
 0x40b   : > { %v10428_v34 = vmax.f32 %v10284_v32, 0.0  ;;  %v8660_v35 = vpop.f32.mrf.mxu2  ;;  %v9020_v36 = vpop.f32.mrf.mxu3 }
 0x40c   : > { %v9708_v37 = vsel %vm9200_vm3, %v8660_v35, -inf  ;;  %v9710_v38 = vsel %vm9200_vm3, %v9020_v36, -inf  ;;  %v7942_v39 = vpop.f32.mrf.mxu0  ;;  %v8302_v40 = vpop.f32.mrf.mxu1 }
 0x40d   : > { %v10572_v41 = vpack.c.bf16 %v10428_v34, %v10428_v34  ;;  %v9709_v42 = vmax.f32 %v9707_v33, %v9708_v37  ;;  %v9712_v44 = vsel %vm9200_vm3, %v7942_v39, -inf  ;;  %v9713_v45 = vsel %vm9200_vm3, %v8302_v40, -inf }
 0x40e   : > { %v9714_v48 = vmax.f32 %v9712_v44, %v9713_v45 }
 0x40f   : > { %10717 = vst.msk [vmem:[%s13411_s17 + $0x11c] sm:$0xf] %vm10645_vm4, %v10572_v41  ;;  %v9711_v43 = vmax.f32 %v9709_v42, %v9710_v38 }
 0x411   : > { %v10285_v46 = vadd.f32 %v14027_v27, %v9711_v43 }
 0x413   : > { %v10429_v47 = vmax.f32 %v10285_v46, 0.0  ;;  %v8662_v49 = vpop.f32.mrf.mxu2  ;;  %v9022_v50 = vpop.f32.mrf.mxu3 }
 0x414   : > { %v9715_v53 = vsel %vm9200_vm3, %v8662_v49, -inf  ;;  %v7945_v54 = vpop.f32.mrf.mxu0  ;;  %v8305_v55 = vpop.f32.mrf.mxu1  ;;  %v9717_v60 = vsel %vm9200_vm3, %v9022_v50, -inf }
 0x415   : > { %v10573_v58 = vpack.c.bf16 %v10429_v47, %v10429_v47  ;;  %v9716_v59 = vmax.f32 %v9714_v48, %v9715_v53  ;;  %v9719_v61 = vsel %vm9200_vm3, %v7945_v54, -inf  ;;  %v9720_v62 = vsel %vm9200_vm3, %v8305_v55, -inf  ;;  %v12437_v53 = vld [vmem:[%s13318_s8 + $0x3b8] sm:$0xff] }
 0x416   : > { %v9721_v1 = vmax.f32 %v9719_v61, %v9720_v62 }
 0x417   : > { %10718 = vst.msk [vmem:[%s13411_s17 + $0x120] sm:$0xf] %vm10645_vm4, %v10573_v58  ;;  %v9718_v63 = vmax.f32 %v9716_v59, %v9717_v60  ;;  %12072 = vmatmul.msk.bf16.gmra.mxu0 %vm6879_vm2, %v12363_v51  ;;  %12144 = vmatmul.msk.bf16.gmra.mxu1 %vm6879_vm2, %v12435_v52  ;;  %v12365_v52 = vld [vmem:[%s13318_s8 + $0x178] sm:$0xff] }
 0x418   : > { %12216 = vmatmul.msk.bf16.gmra.mxu2 %vm6879_vm2, %v12507_v56  ;;  %12288 = vmatmul.msk.bf16.gmra.mxu3 %vm6879_vm2, %v12579_v57  ;;  %v12509_v57 = vld [vmem:[%s13318_s8 + $0x5f8] sm:$0xff] }
 0x419   : > { %v10286_v0 = vadd.f32 %v14027_v27, %v9718_v63  ;;  %v12581_v58 = vld [vmem:[%s13318_s8 + $0x838] sm:$0xff] }
 0x41b   : > { %v10430_v2 = vmax.f32 %v10286_v0, 0.0  ;;  %v8665_v3 = vpop.f32.mrf.mxu2  ;;  %v9025_v4 = vpop.f32.mrf.mxu3 }
 0x41c   : > { %v9722_v5 = vsel %vm9200_vm3, %v8665_v3, -inf  ;;  %v9724_v6 = vsel %vm9200_vm3, %v9025_v4, -inf  ;;  %v7947_v7 = vpop.f32.mrf.mxu0  ;;  %v8307_v8 = vpop.f32.mrf.mxu1 }
 0x41d   : > { %v10574_v9 = vpack.c.bf16 %v10430_v2, %v10430_v2  ;;  %v9723_v10 = vmax.f32 %v9721_v1, %v9722_v5  ;;  %v9726_v12 = vsel %vm9200_vm3, %v7947_v7, -inf  ;;  %v9727_v13 = vsel %vm9200_vm3, %v8307_v8, -inf }
 0x41e   : > { %v9728_v16 = vmax.f32 %v9726_v12, %v9727_v13 }
 0x41f   : > { %10719 = vst.msk [vmem:[%s13411_s17 + $0x124] sm:$0xf] %vm10645_vm4, %v10574_v9  ;;  %v9725_v11 = vmax.f32 %v9723_v10, %v9724_v6 }
 0x421   : > { %v10287_v14 = vadd.f32 %v14027_v27, %v9725_v11 }
 0x423   : > { %v10431_v15 = vmax.f32 %v10287_v14, 0.0  ;;  %v8667_v17 = vpop.f32.mrf.mxu2  ;;  %v9027_v24 = vpop.f32.mrf.mxu3 }
 0x424   : > { %v9729_v21 = vsel %vm9200_vm3, %v8667_v17, -inf  ;;  %v7950_v22 = vpop.f32.mrf.mxu0  ;;  %v8310_v23 = vpop.f32.mrf.mxu1  ;;  %v9731_v29 = vsel %vm9200_vm3, %v9027_v24, -inf }
 0x425   : > { %v10575_v26 = vpack.c.bf16 %v10431_v15, %v10431_v15  ;;  %v9730_v28 = vmax.f32 %v9728_v16, %v9729_v21  ;;  %v9733_v30 = vsel %vm9200_vm3, %v7950_v22, -inf  ;;  %v9734_v31 = vsel %vm9200_vm3, %v8310_v23, -inf  ;;  %v12438_v21 = vld [vmem:[%s13318_s8 + $0x3c0] sm:$0xff] }
 0x426   : > { %v9735_v34 = vmax.f32 %v9733_v30, %v9734_v31 }
 0x427   : > { %10720 = vst.msk [vmem:[%s13411_s17 + $0x128] sm:$0xf] %vm10645_vm4, %v10575_v26  ;;  %v9732_v32 = vmax.f32 %v9730_v28, %v9731_v29  ;;  %12073 = vmatmul.msk.bf16.gmra.mxu0 %vm6879_vm2, %v12364_v18  ;;  %12145 = vmatmul.msk.bf16.gmra.mxu1 %vm6879_vm2, %v12436_v20  ;;  %v12366_v20 = vld [vmem:[%s13318_s8 + $0x180] sm:$0xff] }
 0x428   : > { %12217 = vmatmul.msk.bf16.gmra.mxu2 %vm6879_vm2, %v12508_v25  ;;  %12289 = vmatmul.msk.bf16.gmra.mxu3 %vm6879_vm2, %v12580_v19  ;;  %v12510_v19 = vld [vmem:[%s13318_s8 + $0x600] sm:$0xff] }
 0x429   : > { %v10288_v33 = vadd.f32 %v14027_v27, %v9732_v32  ;;  %v12582_v26 = vld [vmem:[%s13318_s8 + $0x840] sm:$0xff] }
 0x42b   : > { %v10432_v35 = vmax.f32 %v10288_v33, 0.0  ;;  %v8670_v36 = vpop.f32.mrf.mxu2  ;;  %v9030_v37 = vpop.f32.mrf.mxu3 }
 0x42c   : > { %v9736_v38 = vsel %vm9200_vm3, %v8670_v36, -inf  ;;  %v9738_v39 = vsel %vm9200_vm3, %v9030_v37, -inf  ;;  %v7952_v40 = vpop.f32.mrf.mxu0  ;;  %v8312_v41 = vpop.f32.mrf.mxu1 }
 0x42d   : > { %v10576_v42 = vpack.c.bf16 %v10432_v35, %v10432_v35  ;;  %v9737_v43 = vmax.f32 %v9735_v34, %v9736_v38  ;;  %v9740_v45 = vsel %vm9200_vm3, %v7952_v40, -inf  ;;  %v9741_v46 = vsel %vm9200_vm3, %v8312_v41, -inf }
 0x42e   : > { %v9742_v49 = vmax.f32 %v9740_v45, %v9741_v46 }
 0x42f   : > { %10721 = vst.msk [vmem:[%s13411_s17 + $0x12c] sm:$0xf] %vm10645_vm4, %v10576_v42  ;;  %v9739_v44 = vmax.f32 %v9737_v43, %v9738_v39 }
 0x431   : > { %v10289_v47 = vadd.f32 %v14027_v27, %v9739_v44 }
 0x433   : > { %v10433_v48 = vmax.f32 %v10289_v47, 0.0  ;;  %v8672_v50 = vpop.f32.mrf.mxu2  ;;  %v9032_v51 = vpop.f32.mrf.mxu3 }
 0x434   : > { %v9743_v54 = vsel %vm9200_vm3, %v8672_v50, -inf  ;;  %v7955_v55 = vpop.f32.mrf.mxu0  ;;  %v8315_v56 = vpop.f32.mrf.mxu1  ;;  %v9745_v61 = vsel %vm9200_vm3, %v9032_v51, -inf }
 0x435   : > { %v10577_v59 = vpack.c.bf16 %v10433_v48, %v10433_v48  ;;  %v9744_v60 = vmax.f32 %v9742_v49, %v9743_v54  ;;  %v9747_v62 = vsel %vm9200_vm3, %v7955_v55, -inf  ;;  %v9748_v63 = vsel %vm9200_vm3, %v8315_v56, -inf  ;;  %v12439_v54 = vld [vmem:[%s13318_s8 + $0x3c8] sm:$0xff] }
 0x436   : > { %v9749_v2 = vmax.f32 %v9747_v62, %v9748_v63 }
 0x437   : > { %10722 = vst.msk [vmem:[%s13411_s17 + $0x130] sm:$0xf] %vm10645_vm4, %v10577_v59  ;;  %v9746_v0 = vmax.f32 %v9744_v60, %v9745_v61  ;;  %12074 = vmatmul.msk.bf16.gmra.mxu0 %vm6879_vm2, %v12365_v52  ;;  %12146 = vmatmul.msk.bf16.gmra.mxu1 %vm6879_vm2, %v12437_v53  ;;  %v12367_v53 = vld [vmem:[%s13318_s8 + $0x188] sm:$0xff] }
 0x438   : > { %12218 = vmatmul.msk.bf16.gmra.mxu2 %vm6879_vm2, %v12509_v57  ;;  %12290 = vmatmul.msk.bf16.gmra.mxu3 %vm6879_vm2, %v12581_v58  ;;  %v12511_v58 = vld [vmem:[%s13318_s8 + $0x608] sm:$0xff] }
 0x439   : > { %v10290_v1 = vadd.f32 %v14027_v27, %v9746_v0  ;;  %v12583_v59 = vld [vmem:[%s13318_s8 + $0x848] sm:$0xff] }
 0x43b   : > { %v10434_v3 = vmax.f32 %v10290_v1, 0.0  ;;  %v8675_v4 = vpop.f32.mrf.mxu2  ;;  %v9035_v5 = vpop.f32.mrf.mxu3 }
 0x43c   : > { %v9750_v6 = vsel %vm9200_vm3, %v8675_v4, -inf  ;;  %v9752_v7 = vsel %vm9200_vm3, %v9035_v5, -inf  ;;  %v7957_v8 = vpop.f32.mrf.mxu0  ;;  %v8317_v9 = vpop.f32.mrf.mxu1 }
 0x43d   : > { %v10578_v10 = vpack.c.bf16 %v10434_v3, %v10434_v3  ;;  %v9751_v11 = vmax.f32 %v9749_v2, %v9750_v6  ;;  %v9754_v13 = vsel %vm9200_vm3, %v7957_v8, -inf  ;;  %v9755_v14 = vsel %vm9200_vm3, %v8317_v9, -inf }
 0x43e   : > { %v9756_v17 = vmax.f32 %v9754_v13, %v9755_v14 }
 0x43f   : > { %10723 = vst.msk [vmem:[%s13411_s17 + $0x134] sm:$0xf] %vm10645_vm4, %v10578_v10  ;;  %v9753_v12 = vmax.f32 %v9751_v11, %v9752_v7 }
 0x441   : > { %v10291_v15 = vadd.f32 %v14027_v27, %v9753_v12 }
 0x443   : > { %v10435_v16 = vmax.f32 %v10291_v15, 0.0  ;;  %v8677_v24 = vpop.f32.mrf.mxu2  ;;  %v9037_v18 = vpop.f32.mrf.mxu3 }
 0x444   : > { %v9757_v22 = vsel %vm9200_vm3, %v8677_v24, -inf  ;;  %v7960_v23 = vpop.f32.mrf.mxu0  ;;  %v8320_v25 = vpop.f32.mrf.mxu1  ;;  %v9759_v30 = vsel %vm9200_vm3, %v9037_v18, -inf }
 0x445   : > { %v10579_v28 = vpack.c.bf16 %v10435_v16, %v10435_v16  ;;  %v9758_v29 = vmax.f32 %v9756_v17, %v9757_v22  ;;  %v9761_v31 = vsel %vm9200_vm3, %v7960_v23, -inf  ;;  %v9762_v32 = vsel %vm9200_vm3, %v8320_v25, -inf  ;;  %v12440_v22 = vld [vmem:[%s13318_s8 + $0x3d0] sm:$0xff] }
 0x446   : > { %v9763_v35 = vmax.f32 %v9761_v31, %v9762_v32 }
 0x447   : > { %10724 = vst.msk [vmem:[%s13411_s17 + $0x138] sm:$0xf] %vm10645_vm4, %v10579_v28  ;;  %v9760_v33 = vmax.f32 %v9758_v29, %v9759_v30  ;;  %12075 = vmatmul.msk.bf16.gmra.mxu0 %vm6879_vm2, %v12366_v20  ;;  %12147 = vmatmul.msk.bf16.gmra.mxu1 %vm6879_vm2, %v12438_v21  ;;  %v12368_v21 = vld [vmem:[%s13318_s8 + $0x190] sm:$0xff] }
 0x448   : > { %12219 = vmatmul.msk.bf16.gmra.mxu2 %vm6879_vm2, %v12510_v19  ;;  %12291 = vmatmul.msk.bf16.gmra.mxu3 %vm6879_vm2, %v12582_v26  ;;  %v12512_v26 = vld [vmem:[%s13318_s8 + $0x610] sm:$0xff] }
 0x449   : > { %v10292_v34 = vadd.f32 %v14027_v27, %v9760_v33  ;;  %v12584_v28 = vld [vmem:[%s13318_s8 + $0x850] sm:$0xff] }
 0x44b   : > { %v10436_v36 = vmax.f32 %v10292_v34, 0.0  ;;  %v8680_v37 = vpop.f32.mrf.mxu2  ;;  %v9040_v38 = vpop.f32.mrf.mxu3  ;;  %v14340_v34 = vld [vmem:[%s14949_s2] ss:$0 sm:$0xff] }
 0x44c   : > { %v9764_v39 = vsel %vm9200_vm3, %v8680_v37, -inf  ;;  %v9766_v40 = vsel %vm9200_vm3, %v9040_v38, -inf  ;;  %v7962_v41 = vpop.f32.mrf.mxu0  ;;  %v8322_v42 = vpop.f32.mrf.mxu1 }
 0x44d   : > { %v10580_v43 = vpack.c.bf16 %v10436_v36, %v10436_v36  ;;  %v9765_v44 = vmax.f32 %v9763_v35, %v9764_v39  ;;  %v9768_v46 = vsel %vm9200_vm3, %v7962_v41, -inf  ;;  %v9769_v47 = vsel %vm9200_vm3, %v8322_v42, -inf }
 0x44e   : > { %v9770_v50 = vmax.f32 %v9768_v46, %v9769_v47 }
 0x44f   : > { %10725 = vst.msk [vmem:[%s13411_s17 + $0x13c] sm:$0xf] %vm10645_vm4, %v10580_v43  ;;  %v9767_v45 = vmax.f32 %v9765_v44, %v9766_v40 }
 0x451   : > { %v10293_v48 = vadd.f32 %v14027_v27, %v9767_v45 }
 0x453   : > { %v10437_v49 = vmax.f32 %v10293_v48, 0.0  ;;  %v8682_v51 = vpop.f32.mrf.mxu2  ;;  %v9042_v52 = vpop.f32.mrf.mxu3 }
 0x454   : > { %v9771_v55 = vsel %vm9200_vm3, %v8682_v51, -inf  ;;  %v7965_v56 = vpop.f32.mrf.mxu0  ;;  %v8325_v57 = vpop.f32.mrf.mxu1  ;;  %v9773_v62 = vsel %vm9200_vm3, %v9042_v52, -inf }
 0x455   : > { %v10581_v60 = vpack.c.bf16 %v10437_v49, %v10437_v49  ;;  %v9772_v61 = vmax.f32 %v9770_v50, %v9771_v55  ;;  %v9775_v63 = vsel %vm9200_vm3, %v7965_v56, -inf  ;;  %v9776_v0 = vsel %vm9200_vm3, %v8325_v57, -inf  ;;  %v12441_v55 = vld [vmem:[%s13318_s8 + $0x3d8] sm:$0xff] }
 0x456   : > { %v9777_v3 = vmax.f32 %v9775_v63, %v9776_v0 }
 0x457   : > { %10726 = vst.msk [vmem:[%s13411_s17 + $0x140] sm:$0xf] %vm10645_vm4, %v10581_v60  ;;  %v9774_v1 = vmax.f32 %v9772_v61, %v9773_v62  ;;  %12076 = vmatmul.msk.bf16.gmra.mxu0 %vm6879_vm2, %v12367_v53  ;;  %12148 = vmatmul.msk.bf16.gmra.mxu1 %vm6879_vm2, %v12439_v54  ;;  %v12369_v54 = vld [vmem:[%s13318_s8 + $0x198] sm:$0xff] }
 0x458   : > { %12220 = vmatmul.msk.bf16.gmra.mxu2 %vm6879_vm2, %v12511_v58  ;;  %12292 = vmatmul.msk.bf16.gmra.mxu3 %vm6879_vm2, %v12583_v59  ;;  %v12513_v59 = vld [vmem:[%s13318_s8 + $0x618] sm:$0xff] }
 0x459   : > { %v10294_v2 = vadd.f32 %v14027_v27, %v9774_v1  ;;  %v12585_v60 = vld [vmem:[%s13318_s8 + $0x858] sm:$0xff] }
 0x45b   : > { %v10438_v4 = vmax.f32 %v10294_v2, 0.0  ;;  %v8685_v5 = vpop.f32.mrf.mxu2  ;;  %v9045_v6 = vpop.f32.mrf.mxu3 }
 0x45c   : > { %v9778_v7 = vsel %vm9200_vm3, %v8685_v5, -inf  ;;  %v9780_v8 = vsel %vm9200_vm3, %v9045_v6, -inf  ;;  %v7967_v9 = vpop.f32.mrf.mxu0  ;;  %v8327_v10 = vpop.f32.mrf.mxu1 }
 0x45d   : > { %v10582_v11 = vpack.c.bf16 %v10438_v4, %v10438_v4  ;;  %v9779_v12 = vmax.f32 %v9777_v3, %v9778_v7  ;;  %v9782_v14 = vsel %vm9200_vm3, %v7967_v9, -inf  ;;  %v9783_v15 = vsel %vm9200_vm3, %v8327_v10, -inf }
 0x45e   : > { %v9784_v24 = vmax.f32 %v9782_v14, %v9783_v15 }
 0x45f   : > { %10727 = vst.msk [vmem:[%s13411_s17 + $0x144] sm:$0xf] %vm10645_vm4, %v10582_v11  ;;  %v9781_v13 = vmax.f32 %v9779_v12, %v9780_v8 }
 0x461   : > { %v10295_v16 = vadd.f32 %v14027_v27, %v9781_v13 }
 0x463   : > { %v10439_v17 = vmax.f32 %v10295_v16, 0.0  ;;  %v8687_v18 = vpop.f32.mrf.mxu2  ;;  %v9047_v20 = vpop.f32.mrf.mxu3 }
 0x464   : > { %v9785_v23 = vsel %vm9200_vm3, %v8687_v18, -inf  ;;  %v7970_v25 = vpop.f32.mrf.mxu0  ;;  %v8330_v19 = vpop.f32.mrf.mxu1  ;;  %v9787_v31 = vsel %vm9200_vm3, %v9047_v20, -inf }
 0x465   : > { %v10583_v29 = vpack.c.bf16 %v10439_v17, %v10439_v17  ;;  %v9786_v30 = vmax.f32 %v9784_v24, %v9785_v23  ;;  %v9789_v32 = vsel %vm9200_vm3, %v7970_v25, -inf  ;;  %v9790_v27 = vsel %vm9200_vm3, %v8330_v19, -inf  ;;  %v12442_v23 = vld [vmem:[%s13318_s8 + $0x3e0] sm:$0xff] }
 0x466   : > { %v9791_v36 = vmax.f32 %v9789_v32, %v9790_v27 }
 0x467   : > { %10728 = vst.msk [vmem:[%s13411_s17 + $0x148] sm:$0xf] %vm10645_vm4, %v10583_v29  ;;  %v9788_v33 = vmax.f32 %v9786_v30, %v9787_v31  ;;  %12077 = vmatmul.msk.bf16.gmra.mxu0 %vm6879_vm2, %v12368_v21  ;;  %12149 = vmatmul.msk.bf16.gmra.mxu1 %vm6879_vm2, %v12440_v22  ;;  %v12370_v22 = vld [vmem:[%s13318_s8 + $0x1a0] sm:$0xff] }
 0x468   : > { %12221 = vmatmul.msk.bf16.gmra.mxu2 %vm6879_vm2, %v12512_v26  ;;  %12293 = vmatmul.msk.bf16.gmra.mxu3 %vm6879_vm2, %v12584_v28  ;;  %v12514_v28 = vld [vmem:[%s13318_s8 + $0x620] sm:$0xff] }
 0x469   : > { %v10296_v35 = vadd.f32 %v14340_v34, %v9788_v33  ;;  %v12586_v29 = vld [vmem:[%s13318_s8 + $0x860] sm:$0xff] }
 0x46b   : > { %v10440_v37 = vmax.f32 %v10296_v35, 0.0  ;;  %v8690_v38 = vpop.f32.mrf.mxu2  ;;  %v9050_v39 = vpop.f32.mrf.mxu3 }
 0x46c   : > { %v9792_v40 = vsel %vm9200_vm3, %v8690_v38, -inf  ;;  %v9794_v41 = vsel %vm9200_vm3, %v9050_v39, -inf  ;;  %v7972_v42 = vpop.f32.mrf.mxu0  ;;  %v8332_v43 = vpop.f32.mrf.mxu1 }
 0x46d   : > { %v10584_v44 = vpack.c.bf16 %v10440_v37, %v10440_v37  ;;  %v9793_v45 = vmax.f32 %v9791_v36, %v9792_v40  ;;  %v9796_v47 = vsel %vm9200_vm3, %v7972_v42, -inf  ;;  %v9797_v48 = vsel %vm9200_vm3, %v8332_v43, -inf }
 0x46e   : > { %v9798_v51 = vmax.f32 %v9796_v47, %v9797_v48 }
 0x46f   : > { %10729 = vst.msk [vmem:[%s13411_s17 + $0x14c] sm:$0xf] %vm10645_vm4, %v10584_v44  ;;  %v9795_v46 = vmax.f32 %v9793_v45, %v9794_v41 }
 0x471   : > { %v10297_v49 = vadd.f32 %v14340_v34, %v9795_v46 }
 0x473   : > { %v10441_v50 = vmax.f32 %v10297_v49, 0.0  ;;  %v8692_v52 = vpop.f32.mrf.mxu2  ;;  %v9052_v53 = vpop.f32.mrf.mxu3 }
 0x474   : > { %v9799_v56 = vsel %vm9200_vm3, %v8692_v52, -inf  ;;  %v7975_v57 = vpop.f32.mrf.mxu0  ;;  %v8335_v58 = vpop.f32.mrf.mxu1  ;;  %v9801_v63 = vsel %vm9200_vm3, %v9052_v53, -inf }
 0x475   : > { %v10585_v61 = vpack.c.bf16 %v10441_v50, %v10441_v50  ;;  %v9800_v62 = vmax.f32 %v9798_v51, %v9799_v56  ;;  %v9803_v0 = vsel %vm9200_vm3, %v7975_v57, -inf  ;;  %v9804_v1 = vsel %vm9200_vm3, %v8335_v58, -inf  ;;  %v12443_v56 = vld [vmem:[%s13318_s8 + $0x3e8] sm:$0xff] }
 0x476   : > { %v9805_v4 = vmax.f32 %v9803_v0, %v9804_v1 }
 0x477   : > { %10730 = vst.msk [vmem:[%s13411_s17 + $0x150] sm:$0xf] %vm10645_vm4, %v10585_v61  ;;  %v9802_v2 = vmax.f32 %v9800_v62, %v9801_v63  ;;  %12078 = vmatmul.msk.bf16.gmra.mxu0 %vm6879_vm2, %v12369_v54  ;;  %12150 = vmatmul.msk.bf16.gmra.mxu1 %vm6879_vm2, %v12441_v55  ;;  %v12371_v55 = vld [vmem:[%s13318_s8 + $0x1a8] sm:$0xff] }
 0x478   : > { %12222 = vmatmul.msk.bf16.gmra.mxu2 %vm6879_vm2, %v12513_v59  ;;  %12294 = vmatmul.msk.bf16.gmra.mxu3 %vm6879_vm2, %v12585_v60  ;;  %v12515_v60 = vld [vmem:[%s13318_s8 + $0x628] sm:$0xff] }
 0x479   : > { %v10298_v3 = vadd.f32 %v14340_v34, %v9802_v2  ;;  %v12587_v61 = vld [vmem:[%s13318_s8 + $0x868] sm:$0xff] }
 0x47b   : > { %v10442_v5 = vmax.f32 %v10298_v3, 0.0  ;;  %v8695_v6 = vpop.f32.mrf.mxu2  ;;  %v9055_v7 = vpop.f32.mrf.mxu3 }
 0x47c   : > { %v9806_v8 = vsel %vm9200_vm3, %v8695_v6, -inf  ;;  %v9808_v9 = vsel %vm9200_vm3, %v9055_v7, -inf  ;;  %v7977_v10 = vpop.f32.mrf.mxu0  ;;  %v8337_v11 = vpop.f32.mrf.mxu1 }
 0x47d   : > { %v10586_v12 = vpack.c.bf16 %v10442_v5, %v10442_v5  ;;  %v9807_v13 = vmax.f32 %v9805_v4, %v9806_v8  ;;  %v9810_v15 = vsel %vm9200_vm3, %v7977_v10, -inf  ;;  %v9811_v16 = vsel %vm9200_vm3, %v8337_v11, -inf }
 0x47e   : > { %v9812_v18 = vmax.f32 %v9810_v15, %v9811_v16 }
 0x47f   : > { %10731 = vst.msk [vmem:[%s13411_s17 + $0x154] sm:$0xf] %vm10645_vm4, %v10586_v12  ;;  %v9809_v14 = vmax.f32 %v9807_v13, %v9808_v9 }
 0x481   : > { %v10299_v17 = vadd.f32 %v14340_v34, %v9809_v14 }
 0x483   : > { %v10443_v24 = vmax.f32 %v10299_v17, 0.0  ;;  %v8697_v20 = vpop.f32.mrf.mxu2  ;;  %v9057_v21 = vpop.f32.mrf.mxu3 }
 0x484   : > { %v9813_v25 = vsel %vm9200_vm3, %v8697_v20, -inf  ;;  %v7980_v19 = vpop.f32.mrf.mxu0  ;;  %v8340_v26 = vpop.f32.mrf.mxu1  ;;  %v9815_v32 = vsel %vm9200_vm3, %v9057_v21, -inf }
 0x485   : > { %v10587_v30 = vpack.c.bf16 %v10443_v24, %v10443_v24  ;;  %v9814_v31 = vmax.f32 %v9812_v18, %v9813_v25  ;;  %v9817_v27 = vsel %vm9200_vm3, %v7980_v19, -inf  ;;  %v9818_v33 = vsel %vm9200_vm3, %v8340_v26, -inf  ;;  %v12444_v25 = vld [vmem:[%s13318_s8 + $0x3f0] sm:$0xff] }
 0x486   : > { %v9819_v37 = vmax.f32 %v9817_v27, %v9818_v33 }
 0x487   : > { %10732 = vst.msk [vmem:[%s13411_s17 + $0x158] sm:$0xf] %vm10645_vm4, %v10587_v30  ;;  %v9816_v35 = vmax.f32 %v9814_v31, %v9815_v32  ;;  %12079 = vmatmul.msk.bf16.gmra.mxu0 %vm6879_vm2, %v12370_v22  ;;  %12151 = vmatmul.msk.bf16.gmra.mxu1 %vm6879_vm2, %v12442_v23  ;;  %v12372_v23 = vld [vmem:[%s13318_s8 + $0x1b0] sm:$0xff] }
 0x488   : > { %12223 = vmatmul.msk.bf16.gmra.mxu2 %vm6879_vm2, %v12514_v28  ;;  %12295 = vmatmul.msk.bf16.gmra.mxu3 %vm6879_vm2, %v12586_v29  ;;  %v12516_v29 = vld [vmem:[%s13318_s8 + $0x630] sm:$0xff] }
 0x489   : > { %v10300_v36 = vadd.f32 %v14340_v34, %v9816_v35  ;;  %v12588_v30 = vld [vmem:[%s13318_s8 + $0x870] sm:$0xff] }
 0x48b   : > { %v10444_v38 = vmax.f32 %v10300_v36, 0.0  ;;  %v8700_v39 = vpop.f32.mrf.mxu2  ;;  %v9060_v40 = vpop.f32.mrf.mxu3 }
 0x48c   : > { %v9820_v41 = vsel %vm9200_vm3, %v8700_v39, -inf  ;;  %v9822_v42 = vsel %vm9200_vm3, %v9060_v40, -inf  ;;  %v7982_v43 = vpop.f32.mrf.mxu0  ;;  %v8342_v44 = vpop.f32.mrf.mxu1 }
 0x48d   : > { %v10588_v45 = vpack.c.bf16 %v10444_v38, %v10444_v38  ;;  %v9821_v46 = vmax.f32 %v9819_v37, %v9820_v41  ;;  %v9824_v48 = vsel %vm9200_vm3, %v7982_v43, -inf  ;;  %v9825_v49 = vsel %vm9200_vm3, %v8342_v44, -inf }
 0x48e   : > { %v9826_v52 = vmax.f32 %v9824_v48, %v9825_v49 }
 0x48f   : > { %10733 = vst.msk [vmem:[%s13411_s17 + $0x15c] sm:$0xf] %vm10645_vm4, %v10588_v45  ;;  %v9823_v47 = vmax.f32 %v9821_v46, %v9822_v42 }
 0x491   : > { %v10301_v50 = vadd.f32 %v14340_v34, %v9823_v47 }
 0x493   : > { %v10445_v51 = vmax.f32 %v10301_v50, 0.0  ;;  %v8702_v53 = vpop.f32.mrf.mxu2  ;;  %v9062_v54 = vpop.f32.mrf.mxu3 }
 0x494   : > { %v9827_v57 = vsel %vm9200_vm3, %v8702_v53, -inf  ;;  %v7985_v58 = vpop.f32.mrf.mxu0  ;;  %v8345_v59 = vpop.f32.mrf.mxu1  ;;  %v9829_v0 = vsel %vm9200_vm3, %v9062_v54, -inf }
 0x495   : > { %v10589_v62 = vpack.c.bf16 %v10445_v51, %v10445_v51  ;;  %v9828_v63 = vmax.f32 %v9826_v52, %v9827_v57  ;;  %v9831_v1 = vsel %vm9200_vm3, %v7985_v58, -inf  ;;  %v9832_v2 = vsel %vm9200_vm3, %v8345_v59, -inf  ;;  %v12445_v57 = vld [vmem:[%s13318_s8 + $0x3f8] sm:$0xff] }
 0x496   : > { %v9833_v5 = vmax.f32 %v9831_v1, %v9832_v2 }
 0x497   : > { %10734 = vst.msk [vmem:[%s13411_s17 + $0x160] sm:$0xf] %vm10645_vm4, %v10589_v62  ;;  %v9830_v3 = vmax.f32 %v9828_v63, %v9829_v0  ;;  %12080 = vmatmul.msk.bf16.gmra.mxu0 %vm6879_vm2, %v12371_v55  ;;  %12152 = vmatmul.msk.bf16.gmra.mxu1 %vm6879_vm2, %v12443_v56  ;;  %v12373_v56 = vld [vmem:[%s13318_s8 + $0x1b8] sm:$0xff] }
 0x498   : > { %12224 = vmatmul.msk.bf16.gmra.mxu2 %vm6879_vm2, %v12515_v60  ;;  %12296 = vmatmul.msk.bf16.gmra.mxu3 %vm6879_vm2, %v12587_v61  ;;  %v12517_v61 = vld [vmem:[%s13318_s8 + $0x638] sm:$0xff] }
 0x499   : > { %v10302_v4 = vadd.f32 %v14340_v34, %v9830_v3  ;;  %v12589_v62 = vld [vmem:[%s13318_s8 + $0x878] sm:$0xff] }
 0x49b   : > { %v10446_v6 = vmax.f32 %v10302_v4, 0.0  ;;  %v8705_v7 = vpop.f32.mrf.mxu2  ;;  %v9065_v8 = vpop.f32.mrf.mxu3 }
 0x49c   : > { %v9834_v9 = vsel %vm9200_vm3, %v8705_v7, -inf  ;;  %v9836_v10 = vsel %vm9200_vm3, %v9065_v8, -inf  ;;  %v7987_v11 = vpop.f32.mrf.mxu0  ;;  %v8347_v12 = vpop.f32.mrf.mxu1 }
 0x49d   : > { %v10590_v13 = vpack.c.bf16 %v10446_v6, %v10446_v6  ;;  %v9835_v14 = vmax.f32 %v9833_v5, %v9834_v9  ;;  %v9838_v16 = vsel %vm9200_vm3, %v7987_v11, -inf  ;;  %v9839_v17 = vsel %vm9200_vm3, %v8347_v12, -inf }
 0x49e   : > { %v9840_v20 = vmax.f32 %v9838_v16, %v9839_v17 }
 0x49f   : > { %10735 = vst.msk [vmem:[%s13411_s17 + $0x164] sm:$0xf] %vm10645_vm4, %v10590_v13  ;;  %v9837_v15 = vmax.f32 %v9835_v14, %v9836_v10 }
 0x4a1   : > { %v10303_v24 = vadd.f32 %v14340_v34, %v9837_v15 }
 0x4a3   : > { %v10447_v18 = vmax.f32 %v10303_v24, 0.0  ;;  %v8707_v21 = vpop.f32.mrf.mxu2  ;;  %v9067_v22 = vpop.f32.mrf.mxu3 }
 0x4a4   : > { %v9841_v19 = vsel %vm9200_vm3, %v8707_v21, -inf  ;;  %v7990_v26 = vpop.f32.mrf.mxu0  ;;  %v8350_v28 = vpop.f32.mrf.mxu1  ;;  %v9843_v27 = vsel %vm9200_vm3, %v9067_v22, -inf }
 0x4a5   : > { %v10591_v31 = vpack.c.bf16 %v10447_v18, %v10447_v18  ;;  %v9842_v32 = vmax.f32 %v9840_v20, %v9841_v19  ;;  %v9845_v33 = vsel %vm9200_vm3, %v7990_v26, -inf  ;;  %v9846_v35 = vsel %vm9200_vm3, %v8350_v28, -inf  ;;  %v12446_v19 = vld [vmem:[%s13318_s8 + $0x400] sm:$0xff] }
 0x4a6   : > { %v9847_v38 = vmax.f32 %v9845_v33, %v9846_v35 }
 0x4a7   : > { %10736 = vst.msk [vmem:[%s13411_s17 + $0x168] sm:$0xf] %vm10645_vm4, %v10591_v31  ;;  %v9844_v36 = vmax.f32 %v9842_v32, %v9843_v27  ;;  %12081 = vmatmul.msk.bf16.gmra.mxu0 %vm6879_vm2, %v12372_v23  ;;  %12153 = vmatmul.msk.bf16.gmra.mxu1 %vm6879_vm2, %v12444_v25  ;;  %v12374_v25 = vld [vmem:[%s13318_s8 + $0x1c0] sm:$0xff] }
 0x4a8   : > { %12225 = vmatmul.msk.bf16.gmra.mxu2 %vm6879_vm2, %v12516_v29  ;;  %12297 = vmatmul.msk.bf16.gmra.mxu3 %vm6879_vm2, %v12588_v30  ;;  %v12518_v30 = vld [vmem:[%s13318_s8 + $0x640] sm:$0xff] }
 0x4a9   : > { %v10304_v37 = vadd.f32 %v14340_v34, %v9844_v36  ;;  %v12590_v31 = vld [vmem:[%s13318_s8 + $0x880] sm:$0xff] }
 0x4ab   : > { %v10448_v39 = vmax.f32 %v10304_v37, 0.0  ;;  %v8710_v40 = vpop.f32.mrf.mxu2  ;;  %v9070_v41 = vpop.f32.mrf.mxu3 }
 0x4ac   : > { %v9848_v42 = vsel %vm9200_vm3, %v8710_v40, -inf  ;;  %v9850_v43 = vsel %vm9200_vm3, %v9070_v41, -inf  ;;  %v7992_v44 = vpop.f32.mrf.mxu0  ;;  %v8352_v45 = vpop.f32.mrf.mxu1 }
 0x4ad   : > { %v10592_v46 = vpack.c.bf16 %v10448_v39, %v10448_v39  ;;  %v9849_v47 = vmax.f32 %v9847_v38, %v9848_v42  ;;  %v9852_v49 = vsel %vm9200_vm3, %v7992_v44, -inf  ;;  %v9853_v50 = vsel %vm9200_vm3, %v8352_v45, -inf }
 0x4ae   : > { %v9854_v53 = vmax.f32 %v9852_v49, %v9853_v50 }
 0x4af   : > { %10737 = vst.msk [vmem:[%s13411_s17 + $0x16c] sm:$0xf] %vm10645_vm4, %v10592_v46  ;;  %v9851_v48 = vmax.f32 %v9849_v47, %v9850_v43 }
 0x4b1   : > { %v10305_v51 = vadd.f32 %v14340_v34, %v9851_v48 }
 0x4b3   : > { %v10449_v52 = vmax.f32 %v10305_v51, 0.0  ;;  %v8712_v54 = vpop.f32.mrf.mxu2  ;;  %v9072_v55 = vpop.f32.mrf.mxu3 }
 0x4b4   : > { %v9855_v58 = vsel %vm9200_vm3, %v8712_v54, -inf  ;;  %v7995_v59 = vpop.f32.mrf.mxu0  ;;  %v8355_v60 = vpop.f32.mrf.mxu1  ;;  %v9857_v1 = vsel %vm9200_vm3, %v9072_v55, -inf }
 0x4b5   : > { %v10593_v63 = vpack.c.bf16 %v10449_v52, %v10449_v52  ;;  %v9856_v0 = vmax.f32 %v9854_v53, %v9855_v58  ;;  %v9859_v2 = vsel %vm9200_vm3, %v7995_v59, -inf  ;;  %v9860_v3 = vsel %vm9200_vm3, %v8355_v60, -inf  ;;  %v12447_v58 = vld [vmem:[%s13318_s8 + $0x408] sm:$0xff] }
 0x4b6   : > { %v9861_v6 = vmax.f32 %v9859_v2, %v9860_v3 }
 0x4b7   : > { %10738 = vst.msk [vmem:[%s13411_s17 + $0x170] sm:$0xf] %vm10645_vm4, %v10593_v63  ;;  %v9858_v4 = vmax.f32 %v9856_v0, %v9857_v1  ;;  %12082 = vmatmul.msk.bf16.gmra.mxu0 %vm6879_vm2, %v12373_v56  ;;  %12154 = vmatmul.msk.bf16.gmra.mxu1 %vm6879_vm2, %v12445_v57  ;;  %v12375_v57 = vld [vmem:[%s13318_s8 + $0x1c8] sm:$0xff] }
 0x4b8   : > { %12226 = vmatmul.msk.bf16.gmra.mxu2 %vm6879_vm2, %v12517_v61  ;;  %12298 = vmatmul.msk.bf16.gmra.mxu3 %vm6879_vm2, %v12589_v62  ;;  %v12519_v62 = vld [vmem:[%s13318_s8 + $0x648] sm:$0xff] }
 0x4b9   : > { %v10306_v5 = vadd.f32 %v14340_v34, %v9858_v4  ;;  %v12591_v63 = vld [vmem:[%s13318_s8 + $0x888] sm:$0xff] }
 0x4bb   : > { %v10450_v7 = vmax.f32 %v10306_v5, 0.0  ;;  %v8715_v8 = vpop.f32.mrf.mxu2  ;;  %v9075_v9 = vpop.f32.mrf.mxu3 }
 0x4bc   : > { %v9862_v10 = vsel %vm9200_vm3, %v8715_v8, -inf  ;;  %v9864_v11 = vsel %vm9200_vm3, %v9075_v9, -inf  ;;  %v7997_v12 = vpop.f32.mrf.mxu0  ;;  %v8357_v13 = vpop.f32.mrf.mxu1 }
 0x4bd   : > { %v10594_v14 = vpack.c.bf16 %v10450_v7, %v10450_v7  ;;  %v9863_v15 = vmax.f32 %v9861_v6, %v9862_v10  ;;  %v9866_v17 = vsel %vm9200_vm3, %v7997_v12, -inf  ;;  %v9867_v24 = vsel %vm9200_vm3, %v8357_v13, -inf }
 0x4be   : > { %v9868_v21 = vmax.f32 %v9866_v17, %v9867_v24 }
 0x4bf   : > { %10739 = vst.msk [vmem:[%s13411_s17 + $0x174] sm:$0xf] %vm10645_vm4, %v10594_v14  ;;  %v9865_v16 = vmax.f32 %v9863_v15, %v9864_v11 }
 0x4c1   : > { %v10307_v18 = vadd.f32 %v14340_v34, %v9865_v16 }
 0x4c3   : > { %v10451_v20 = vmax.f32 %v10307_v18, 0.0  ;;  %v8717_v22 = vpop.f32.mrf.mxu2  ;;  %v9077_v23 = vpop.f32.mrf.mxu3 }
 0x4c4   : > { %v9869_v26 = vsel %vm9200_vm3, %v8717_v22, -inf  ;;  %v8000_v28 = vpop.f32.mrf.mxu0  ;;  %v8360_v29 = vpop.f32.mrf.mxu1  ;;  %v9871_v33 = vsel %vm9200_vm3, %v9077_v23, -inf }
 0x4c5   : > { %v10595_v32 = vpack.c.bf16 %v10451_v20, %v10451_v20  ;;  %v9870_v27 = vmax.f32 %v9868_v21, %v9869_v26  ;;  %v9873_v35 = vsel %vm9200_vm3, %v8000_v28, -inf  ;;  %v9874_v36 = vsel %vm9200_vm3, %v8360_v29, -inf  ;;  %v12448_v26 = vld [vmem:[%s13318_s8 + $0x410] sm:$0xff] }
 0x4c6   : > { %v9875_v39 = vmax.f32 %v9873_v35, %v9874_v36 }
 0x4c7   : > { %10740 = vst.msk [vmem:[%s13411_s17 + $0x178] sm:$0xf] %vm10645_vm4, %v10595_v32  ;;  %v9872_v37 = vmax.f32 %v9870_v27, %v9871_v33  ;;  %12083 = vmatmul.msk.bf16.gmra.mxu0 %vm6879_vm2, %v12374_v25  ;;  %12155 = vmatmul.msk.bf16.gmra.mxu1 %vm6879_vm2, %v12446_v19  ;;  %v12376_v19 = vld [vmem:[%s13318_s8 + $0x1d0] sm:$0xff] }
 0x4c8   : > { %12227 = vmatmul.msk.bf16.gmra.mxu2 %vm6879_vm2, %v12518_v30  ;;  %12299 = vmatmul.msk.bf16.gmra.mxu3 %vm6879_vm2, %v12590_v31  ;;  %v12520_v31 = vld [vmem:[%s13318_s8 + $0x650] sm:$0xff] }
 0x4c9   : > { %v10308_v38 = vadd.f32 %v14340_v34, %v9872_v37  ;;  %v12592_v32 = vld [vmem:[%s13318_s8 + $0x890] sm:$0xff] }
 0x4cb   : > { %v10452_v40 = vmax.f32 %v10308_v38, 0.0  ;;  %v8720_v41 = vpop.f32.mrf.mxu2  ;;  %v9080_v42 = vpop.f32.mrf.mxu3 }
 0x4cc   : > { %v9876_v43 = vsel %vm9200_vm3, %v8720_v41, -inf  ;;  %v9878_v44 = vsel %vm9200_vm3, %v9080_v42, -inf  ;;  %v8002_v45 = vpop.f32.mrf.mxu0  ;;  %v8362_v46 = vpop.f32.mrf.mxu1 }
 0x4cd   : > { %v10596_v47 = vpack.c.bf16 %v10452_v40, %v10452_v40  ;;  %v9877_v48 = vmax.f32 %v9875_v39, %v9876_v43  ;;  %v9880_v50 = vsel %vm9200_vm3, %v8002_v45, -inf  ;;  %v9881_v51 = vsel %vm9200_vm3, %v8362_v46, -inf }
 0x4ce   : > { %v9882_v54 = vmax.f32 %v9880_v50, %v9881_v51 }
 0x4cf   : > { %10741 = vst.msk [vmem:[%s13411_s17 + $0x17c] sm:$0xf] %vm10645_vm4, %v10596_v47  ;;  %v9879_v49 = vmax.f32 %v9877_v48, %v9878_v44 }
 0x4d1   : > { %v10309_v52 = vadd.f32 %v14340_v34, %v9879_v49 }
 0x4d3   : > { %v10453_v53 = vmax.f32 %v10309_v52, 0.0  ;;  %v8722_v55 = vpop.f32.mrf.mxu2  ;;  %v9082_v56 = vpop.f32.mrf.mxu3 }
 0x4d4   : > { %v9883_v59 = vsel %vm9200_vm3, %v8722_v55, -inf  ;;  %v8005_v60 = vpop.f32.mrf.mxu0  ;;  %v8365_v61 = vpop.f32.mrf.mxu1  ;;  %v9885_v2 = vsel %vm9200_vm3, %v9082_v56, -inf }
 0x4d5   : > { %v10597_v0 = vpack.c.bf16 %v10453_v53, %v10453_v53  ;;  %v9884_v1 = vmax.f32 %v9882_v54, %v9883_v59  ;;  %v9887_v3 = vsel %vm9200_vm3, %v8005_v60, -inf  ;;  %v9888_v4 = vsel %vm9200_vm3, %v8365_v61, -inf  ;;  %v12449_v59 = vld [vmem:[%s13318_s8 + $0x418] sm:$0xff] }
 0x4d6   : > { %v9889_v7 = vmax.f32 %v9887_v3, %v9888_v4 }
 0x4d7   : > { %10742 = vst.msk [vmem:[%s13411_s17 + $0x180] sm:$0xf] %vm10645_vm4, %v10597_v0  ;;  %v9886_v5 = vmax.f32 %v9884_v1, %v9885_v2  ;;  %12084 = vmatmul.msk.bf16.gmra.mxu0 %vm6879_vm2, %v12375_v57  ;;  %12156 = vmatmul.msk.bf16.gmra.mxu1 %vm6879_vm2, %v12447_v58  ;;  %v12377_v58 = vld [vmem:[%s13318_s8 + $0x1d8] sm:$0xff] }
 0x4d8   : > { %12228 = vmatmul.msk.bf16.gmra.mxu2 %vm6879_vm2, %v12519_v62  ;;  %12300 = vmatmul.msk.bf16.gmra.mxu3 %vm6879_vm2, %v12591_v63  ;;  %v12521_v63 = vld [vmem:[%s13318_s8 + $0x658] sm:$0xff] }
 0x4d9   : > { %v10310_v6 = vadd.f32 %v14340_v34, %v9886_v5  ;;  %v12593_v0 = vld [vmem:[%s13318_s8 + $0x898] sm:$0xff] }
 0x4db   : > { %v10454_v8 = vmax.f32 %v10310_v6, 0.0  ;;  %v8725_v9 = vpop.f32.mrf.mxu2  ;;  %v9085_v10 = vpop.f32.mrf.mxu3 }
 0x4dc   : > { %v9890_v11 = vsel %vm9200_vm3, %v8725_v9, -inf  ;;  %v9892_v12 = vsel %vm9200_vm3, %v9085_v10, -inf  ;;  %v8007_v13 = vpop.f32.mrf.mxu0  ;;  %v8367_v14 = vpop.f32.mrf.mxu1 }
 0x4dd   : > { %v10598_v15 = vpack.c.bf16 %v10454_v8, %v10454_v8  ;;  %v9891_v16 = vmax.f32 %v9889_v7, %v9890_v11  ;;  %v9894_v24 = vsel %vm9200_vm3, %v8007_v13, -inf  ;;  %v9895_v18 = vsel %vm9200_vm3, %v8367_v14, -inf }
 0x4de   : > { %v9896_v22 = vmax.f32 %v9894_v24, %v9895_v18 }
 0x4df   : > { %10743 = vst.msk [vmem:[%s13411_s17 + $0x184] sm:$0xf] %vm10645_vm4, %v10598_v15  ;;  %v9893_v17 = vmax.f32 %v9891_v16, %v9892_v12 }
 0x4e1   : > { %v10311_v20 = vadd.f32 %v14340_v34, %v9893_v17 }
 0x4e3   : > { %v10455_v21 = vmax.f32 %v10311_v20, 0.0  ;;  %v8727_v23 = vpop.f32.mrf.mxu2  ;;  %v9087_v25 = vpop.f32.mrf.mxu3 }
 0x4e4   : > { %v9897_v28 = vsel %vm9200_vm3, %v8727_v23, -inf  ;;  %v8010_v29 = vpop.f32.mrf.mxu0  ;;  %v8370_v30 = vpop.f32.mrf.mxu1  ;;  %v9899_v35 = vsel %vm9200_vm3, %v9087_v25, -inf }
 0x4e5   : > { %v10599_v27 = vpack.c.bf16 %v10455_v21, %v10455_v21  ;;  %v9898_v33 = vmax.f32 %v9896_v22, %v9897_v28  ;;  %v9901_v36 = vsel %vm9200_vm3, %v8010_v29, -inf  ;;  %v9902_v37 = vsel %vm9200_vm3, %v8370_v30, -inf  ;;  %v12450_v28 = vld [vmem:[%s13318_s8 + $0x420] sm:$0xff] }
 0x4e6   : > { %v9903_v40 = vmax.f32 %v9901_v36, %v9902_v37 }
 0x4e7   : > { %10744 = vst.msk [vmem:[%s13411_s17 + $0x188] sm:$0xf] %vm10645_vm4, %v10599_v27  ;;  %v9900_v38 = vmax.f32 %v9898_v33, %v9899_v35  ;;  %12085 = vmatmul.msk.bf16.gmra.mxu0 %vm6879_vm2, %v12376_v19  ;;  %12157 = vmatmul.msk.bf16.gmra.mxu1 %vm6879_vm2, %v12448_v26  ;;  %v12378_v26 = vld [vmem:[%s13318_s8 + $0x1e0] sm:$0xff] }
 0x4e8   : > { %12229 = vmatmul.msk.bf16.gmra.mxu2 %vm6879_vm2, %v12520_v31  ;;  %12301 = vmatmul.msk.bf16.gmra.mxu3 %vm6879_vm2, %v12592_v32  ;;  %v12522_v32 = vld [vmem:[%s13318_s8 + $0x660] sm:$0xff] }
 0x4e9   : > { %v10312_v39 = vadd.f32 %v14340_v34, %v9900_v38  ;;  %v12594_v27 = vld [vmem:[%s13318_s8 + $0x8a0] sm:$0xff] }
 0x4eb   : > { %v10456_v41 = vmax.f32 %v10312_v39, 0.0  ;;  %v8730_v42 = vpop.f32.mrf.mxu2  ;;  %v9090_v43 = vpop.f32.mrf.mxu3 }
 0x4ec   : > { %v9904_v44 = vsel %vm9200_vm3, %v8730_v42, -inf  ;;  %v9906_v45 = vsel %vm9200_vm3, %v9090_v43, -inf  ;;  %v8012_v46 = vpop.f32.mrf.mxu0  ;;  %v8372_v47 = vpop.f32.mrf.mxu1 }
 0x4ed   : > { %v10600_v48 = vpack.c.bf16 %v10456_v41, %v10456_v41  ;;  %v9905_v49 = vmax.f32 %v9903_v40, %v9904_v44  ;;  %v9908_v51 = vsel %vm9200_vm3, %v8012_v46, -inf  ;;  %v9909_v52 = vsel %vm9200_vm3, %v8372_v47, -inf }
 0x4ee   : > { %v9910_v55 = vmax.f32 %v9908_v51, %v9909_v52 }
 0x4ef   : > { %10745 = vst.msk [vmem:[%s13411_s17 + $0x18c] sm:$0xf] %vm10645_vm4, %v10600_v48  ;;  %v9907_v50 = vmax.f32 %v9905_v49, %v9906_v45 }
 0x4f1   : > { %v10313_v53 = vadd.f32 %v14340_v34, %v9907_v50 }
 0x4f3   : > { %v10457_v54 = vmax.f32 %v10313_v53, 0.0  ;;  %v8732_v56 = vpop.f32.mrf.mxu2  ;;  %v9092_v57 = vpop.f32.mrf.mxu3 }
 0x4f4   : > { %v9911_v60 = vsel %vm9200_vm3, %v8732_v56, -inf  ;;  %v8015_v61 = vpop.f32.mrf.mxu0  ;;  %v8375_v62 = vpop.f32.mrf.mxu1  ;;  %v9913_v3 = vsel %vm9200_vm3, %v9092_v57, -inf }
 0x4f5   : > { %v10601_v1 = vpack.c.bf16 %v10457_v54, %v10457_v54  ;;  %v9912_v2 = vmax.f32 %v9910_v55, %v9911_v60  ;;  %v9915_v4 = vsel %vm9200_vm3, %v8015_v61, -inf  ;;  %v9916_v5 = vsel %vm9200_vm3, %v8375_v62, -inf  ;;  %v12451_v60 = vld [vmem:[%s13318_s8 + $0x428] sm:$0xff] }
 0x4f6   : > { %v9917_v8 = vmax.f32 %v9915_v4, %v9916_v5 }
 0x4f7   : > { %10746 = vst.msk [vmem:[%s13411_s17 + $0x190] sm:$0xf] %vm10645_vm4, %v10601_v1  ;;  %v9914_v6 = vmax.f32 %v9912_v2, %v9913_v3  ;;  %12086 = vmatmul.msk.bf16.gmra.mxu0 %vm6879_vm2, %v12377_v58  ;;  %12158 = vmatmul.msk.bf16.gmra.mxu1 %vm6879_vm2, %v12449_v59  ;;  %v12379_v59 = vld [vmem:[%s13318_s8 + $0x1e8] sm:$0xff] }
 0x4f8   : > { %12230 = vmatmul.msk.bf16.gmra.mxu2 %vm6879_vm2, %v12521_v63  ;;  %12302 = vmatmul.msk.bf16.gmra.mxu3 %vm6879_vm2, %v12593_v0  ;;  %v12523_v0 = vld [vmem:[%s13318_s8 + $0x668] sm:$0xff] }
 0x4f9   : > { %v10314_v7 = vadd.f32 %v14340_v34, %v9914_v6  ;;  %v12595_v1 = vld [vmem:[%s13318_s8 + $0x8a8] sm:$0xff] }
 0x4fb   : > { %v10458_v9 = vmax.f32 %v10314_v7, 0.0  ;;  %v8735_v10 = vpop.f32.mrf.mxu2  ;;  %v9095_v11 = vpop.f32.mrf.mxu3 }
 0x4fc   : > { %v9918_v12 = vsel %vm9200_vm3, %v8735_v10, -inf  ;;  %v9920_v13 = vsel %vm9200_vm3, %v9095_v11, -inf  ;;  %v8017_v14 = vpop.f32.mrf.mxu0  ;;  %v8377_v15 = vpop.f32.mrf.mxu1 }
 0x4fd   : > { %v10602_v16 = vpack.c.bf16 %v10458_v9, %v10458_v9  ;;  %v9919_v17 = vmax.f32 %v9917_v8, %v9918_v12  ;;  %v9922_v18 = vsel %vm9200_vm3, %v8017_v14, -inf  ;;  %v9923_v20 = vsel %vm9200_vm3, %v8377_v15, -inf }
 0x4fe   : > { %v9924_v23 = vmax.f32 %v9922_v18, %v9923_v20 }
 0x4ff   : > { %10747 = vst.msk [vmem:[%s13411_s17 + $0x194] sm:$0xf] %vm10645_vm4, %v10602_v16  ;;  %v9921_v24 = vmax.f32 %v9919_v17, %v9920_v13 }
 0x501   : > { %v10315_v21 = vadd.f32 %v14340_v34, %v9921_v24 }
 0x503   : > { %v10459_v22 = vmax.f32 %v10315_v21, 0.0  ;;  %v8737_v25 = vpop.f32.mrf.mxu2  ;;  %v9097_v19 = vpop.f32.mrf.mxu3 }
 0x504   : > { %v9925_v29 = vsel %vm9200_vm3, %v8737_v25, -inf  ;;  %v8020_v30 = vpop.f32.mrf.mxu0  ;;  %v8380_v31 = vpop.f32.mrf.mxu1  ;;  %v9927_v36 = vsel %vm9200_vm3, %v9097_v19, -inf }
 0x505   : > { %v10603_v33 = vpack.c.bf16 %v10459_v22, %v10459_v22  ;;  %v9926_v35 = vmax.f32 %v9924_v23, %v9925_v29  ;;  %v9929_v37 = vsel %vm9200_vm3, %v8020_v30, -inf  ;;  %v9930_v38 = vsel %vm9200_vm3, %v8380_v31, -inf  ;;  %v12452_v29 = vld [vmem:[%s13318_s8 + $0x430] sm:$0xff] }
 0x506   : > { %v9931_v41 = vmax.f32 %v9929_v37, %v9930_v38 }
 0x507   : > { %10748 = vst.msk [vmem:[%s13411_s17 + $0x198] sm:$0xf] %vm10645_vm4, %v10603_v33  ;;  %v9928_v39 = vmax.f32 %v9926_v35, %v9927_v36  ;;  %12087 = vmatmul.msk.bf16.gmra.mxu0 %vm6879_vm2, %v12378_v26  ;;  %12159 = vmatmul.msk.bf16.gmra.mxu1 %vm6879_vm2, %v12450_v28  ;;  %v12380_v28 = vld [vmem:[%s13318_s8 + $0x1f0] sm:$0xff] }
 0x508   : > { %12231 = vmatmul.msk.bf16.gmra.mxu2 %vm6879_vm2, %v12522_v32  ;;  %12303 = vmatmul.msk.bf16.gmra.mxu3 %vm6879_vm2, %v12594_v27  ;;  %v12524_v27 = vld [vmem:[%s13318_s8 + $0x670] sm:$0xff] }
 0x509   : > { %v10316_v40 = vadd.f32 %v14340_v34, %v9928_v39  ;;  %v12596_v33 = vld [vmem:[%s13318_s8 + $0x8b0] sm:$0xff] }
 0x50b   : > { %v10460_v42 = vmax.f32 %v10316_v40, 0.0  ;;  %v8740_v43 = vpop.f32.mrf.mxu2  ;;  %v9100_v44 = vpop.f32.mrf.mxu3 }
 0x50c   : > { %v9932_v45 = vsel %vm9200_vm3, %v8740_v43, -inf  ;;  %v9934_v46 = vsel %vm9200_vm3, %v9100_v44, -inf  ;;  %v8022_v47 = vpop.f32.mrf.mxu0  ;;  %v8382_v48 = vpop.f32.mrf.mxu1 }
 0x50d   : > { %v10604_v49 = vpack.c.bf16 %v10460_v42, %v10460_v42  ;;  %v9933_v50 = vmax.f32 %v9931_v41, %v9932_v45  ;;  %v9936_v52 = vsel %vm9200_vm3, %v8022_v47, -inf  ;;  %v9937_v53 = vsel %vm9200_vm3, %v8382_v48, -inf }
 0x50e   : > { %v9938_v56 = vmax.f32 %v9936_v52, %v9937_v53 }
 0x50f   : > { %10749 = vst.msk [vmem:[%s13411_s17 + $0x19c] sm:$0xf] %vm10645_vm4, %v10604_v49  ;;  %v9935_v51 = vmax.f32 %v9933_v50, %v9934_v46 }
 0x511   : > { %v10317_v54 = vadd.f32 %v14340_v34, %v9935_v51 }
 0x513   : > { %v10461_v55 = vmax.f32 %v10317_v54, 0.0  ;;  %v8742_v57 = vpop.f32.mrf.mxu2  ;;  %v9102_v58 = vpop.f32.mrf.mxu3 }
 0x514   : > { %v9939_v61 = vsel %vm9200_vm3, %v8742_v57, -inf  ;;  %v8025_v62 = vpop.f32.mrf.mxu0  ;;  %v8385_v63 = vpop.f32.mrf.mxu1  ;;  %v9941_v4 = vsel %vm9200_vm3, %v9102_v58, -inf }
 0x515   : > { %v10605_v2 = vpack.c.bf16 %v10461_v55, %v10461_v55  ;;  %v9940_v3 = vmax.f32 %v9938_v56, %v9939_v61  ;;  %v9943_v5 = vsel %vm9200_vm3, %v8025_v62, -inf  ;;  %v9944_v6 = vsel %vm9200_vm3, %v8385_v63, -inf  ;;  %v12453_v61 = vld [vmem:[%s13318_s8 + $0x438] sm:$0xff] }
 0x516   : > { %v9945_v9 = vmax.f32 %v9943_v5, %v9944_v6 }
 0x517   : > { %10750 = vst.msk [vmem:[%s13411_s17 + $0x1a0] sm:$0xf] %vm10645_vm4, %v10605_v2  ;;  %v9942_v7 = vmax.f32 %v9940_v3, %v9941_v4  ;;  %12088 = vmatmul.msk.bf16.gmra.mxu0 %vm6879_vm2, %v12379_v59  ;;  %12160 = vmatmul.msk.bf16.gmra.mxu1 %vm6879_vm2, %v12451_v60  ;;  %v12381_v60 = vld [vmem:[%s13318_s8 + $0x1f8] sm:$0xff] }
 0x518   : > { %12232 = vmatmul.msk.bf16.gmra.mxu2 %vm6879_vm2, %v12523_v0  ;;  %12304 = vmatmul.msk.bf16.gmra.mxu3 %vm6879_vm2, %v12595_v1  ;;  %v12525_v1 = vld [vmem:[%s13318_s8 + $0x678] sm:$0xff] }
 0x519   : > { %v10318_v8 = vadd.f32 %v14340_v34, %v9942_v7  ;;  %v12597_v2 = vld [vmem:[%s13318_s8 + $0x8b8] sm:$0xff] }
 0x51b   : > { %v10462_v10 = vmax.f32 %v10318_v8, 0.0  ;;  %v8745_v11 = vpop.f32.mrf.mxu2  ;;  %v9105_v12 = vpop.f32.mrf.mxu3 }
 0x51c   : > { %v9946_v13 = vsel %vm9200_vm3, %v8745_v11, -inf  ;;  %v9948_v14 = vsel %vm9200_vm3, %v9105_v12, -inf  ;;  %v8027_v15 = vpop.f32.mrf.mxu0  ;;  %v8387_v16 = vpop.f32.mrf.mxu1 }
 0x51d   : > { %v10606_v17 = vpack.c.bf16 %v10462_v10, %v10462_v10  ;;  %v9947_v24 = vmax.f32 %v9945_v9, %v9946_v13  ;;  %v9950_v20 = vsel %vm9200_vm3, %v8027_v15, -inf  ;;  %v9951_v21 = vsel %vm9200_vm3, %v8387_v16, -inf }
 0x51e   : > { %v9952_v25 = vmax.f32 %v9950_v20, %v9951_v21 }
 0x51f   : > { %10751 = vst.msk [vmem:[%s13411_s17 + $0x1a4] sm:$0xf] %vm10645_vm4, %v10606_v17  ;;  %v9949_v18 = vmax.f32 %v9947_v24, %v9948_v14 }
 0x521   : > { %v10319_v22 = vadd.f32 %v14340_v34, %v9949_v18 }
 0x523   : > { %v10463_v23 = vmax.f32 %v10319_v22, 0.0  ;;  %v8747_v19 = vpop.f32.mrf.mxu2  ;;  %v9107_v26 = vpop.f32.mrf.mxu3 }
 0x524   : > { %v9953_v30 = vsel %vm9200_vm3, %v8747_v19, -inf  ;;  %v8030_v31 = vpop.f32.mrf.mxu0  ;;  %v8390_v32 = vpop.f32.mrf.mxu1  ;;  %v9955_v37 = vsel %vm9200_vm3, %v9107_v26, -inf }
 0x525   : > { %v10607_v35 = vpack.c.bf16 %v10463_v23, %v10463_v23  ;;  %v9954_v36 = vmax.f32 %v9952_v25, %v9953_v30  ;;  %v9957_v38 = vsel %vm9200_vm3, %v8030_v31, -inf  ;;  %v9958_v39 = vsel %vm9200_vm3, %v8390_v32, -inf  ;;  %v12454_v30 = vld [vmem:[%s13318_s8 + $0x440] sm:$0xff] }
 0x526   : > { %v9959_v42 = vmax.f32 %v9957_v38, %v9958_v39 }
 0x527   : > { %10752 = vst.msk [vmem:[%s13411_s17 + $0x1a8] sm:$0xf] %vm10645_vm4, %v10607_v35  ;;  %v9956_v40 = vmax.f32 %v9954_v36, %v9955_v37  ;;  %12089 = vmatmul.msk.bf16.gmra.mxu0 %vm6879_vm2, %v12380_v28  ;;  %12161 = vmatmul.msk.bf16.gmra.mxu1 %vm6879_vm2, %v12452_v29  ;;  %v12382_v29 = vld [vmem:[%s13318_s8 + $0x200] sm:$0xff] }
 0x528   : > { %12233 = vmatmul.msk.bf16.gmra.mxu2 %vm6879_vm2, %v12524_v27  ;;  %12305 = vmatmul.msk.bf16.gmra.mxu3 %vm6879_vm2, %v12596_v33  ;;  %v12526_v33 = vld [vmem:[%s13318_s8 + $0x680] sm:$0xff] }
 0x529   : > { %v10320_v41 = vadd.f32 %v14340_v34, %v9956_v40  ;;  %v12598_v35 = vld [vmem:[%s13318_s8 + $0x8c0] sm:$0xff] }
 0x52b   : > { %v10464_v43 = vmax.f32 %v10320_v41, 0.0  ;;  %v8750_v44 = vpop.f32.mrf.mxu2  ;;  %v9110_v45 = vpop.f32.mrf.mxu3  ;;  %v14653_v41 = vld [vmem:[%s14949_s2] ss:$0 sm:$0xff] }
 0x52c   : > { %v9960_v46 = vsel %vm9200_vm3, %v8750_v44, -inf  ;;  %v9962_v47 = vsel %vm9200_vm3, %v9110_v45, -inf  ;;  %v8032_v48 = vpop.f32.mrf.mxu0  ;;  %v8392_v49 = vpop.f32.mrf.mxu1 }
 0x52d   : > { %v10608_v50 = vpack.c.bf16 %v10464_v43, %v10464_v43  ;;  %v9961_v51 = vmax.f32 %v9959_v42, %v9960_v46  ;;  %v9964_v53 = vsel %vm9200_vm3, %v8032_v48, -inf  ;;  %v9965_v54 = vsel %vm9200_vm3, %v8392_v49, -inf }
 0x52e   : > { %v9966_v57 = vmax.f32 %v9964_v53, %v9965_v54 }
 0x52f   : > { %10753 = vst.msk [vmem:[%s13411_s17 + $0x1ac] sm:$0xf] %vm10645_vm4, %v10608_v50  ;;  %v9963_v52 = vmax.f32 %v9961_v51, %v9962_v47 }
 0x531   : > { %v10321_v55 = vadd.f32 %v14340_v34, %v9963_v52 }
 0x533   : > { %v10465_v56 = vmax.f32 %v10321_v55, 0.0  ;;  %v8752_v58 = vpop.f32.mrf.mxu2  ;;  %v9112_v59 = vpop.f32.mrf.mxu3 }
 0x534   : > { %v9967_v62 = vsel %vm9200_vm3, %v8752_v58, -inf  ;;  %v8035_v63 = vpop.f32.mrf.mxu0  ;;  %v8395_v0 = vpop.f32.mrf.mxu1  ;;  %v9969_v5 = vsel %vm9200_vm3, %v9112_v59, -inf }
 0x535   : > { %v10609_v3 = vpack.c.bf16 %v10465_v56, %v10465_v56  ;;  %v9968_v4 = vmax.f32 %v9966_v57, %v9967_v62  ;;  %v9971_v6 = vsel %vm9200_vm3, %v8035_v63, -inf  ;;  %v9972_v7 = vsel %vm9200_vm3, %v8395_v0, -inf  ;;  %v12455_v62 = vld [vmem:[%s13318_s8 + $0x448] sm:$0xff] }
 0x536   : > { %v9973_v10 = vmax.f32 %v9971_v6, %v9972_v7 }
 0x537   : > { %10754 = vst.msk [vmem:[%s13411_s17 + $0x1b0] sm:$0xf] %vm10645_vm4, %v10609_v3  ;;  %v9970_v8 = vmax.f32 %v9968_v4, %v9969_v5  ;;  %12090 = vmatmul.msk.bf16.gmra.mxu0 %vm6879_vm2, %v12381_v60  ;;  %12162 = vmatmul.msk.bf16.gmra.mxu1 %vm6879_vm2, %v12453_v61  ;;  %v12383_v61 = vld [vmem:[%s13318_s8 + $0x208] sm:$0xff] }
 0x538   : > { %12234 = vmatmul.msk.bf16.gmra.mxu2 %vm6879_vm2, %v12525_v1  ;;  %12306 = vmatmul.msk.bf16.gmra.mxu3 %vm6879_vm2, %v12597_v2  ;;  %v12527_v2 = vld [vmem:[%s13318_s8 + $0x688] sm:$0xff] }
 0x539   : > { %v10322_v9 = vadd.f32 %v14340_v34, %v9970_v8  ;;  %v12599_v3 = vld [vmem:[%s13318_s8 + $0x8c8] sm:$0xff] }
 0x53b   : > { %v10466_v11 = vmax.f32 %v10322_v9, 0.0  ;;  %v8755_v12 = vpop.f32.mrf.mxu2  ;;  %v9115_v13 = vpop.f32.mrf.mxu3 }
 0x53c   : > { %v9974_v14 = vsel %vm9200_vm3, %v8755_v12, -inf  ;;  %v9976_v15 = vsel %vm9200_vm3, %v9115_v13, -inf  ;;  %v8037_v16 = vpop.f32.mrf.mxu0  ;;  %v8397_v17 = vpop.f32.mrf.mxu1 }
 0x53d   : > { %v10610_v24 = vpack.c.bf16 %v10466_v11, %v10466_v11  ;;  %v9975_v18 = vmax.f32 %v9973_v10, %v9974_v14  ;;  %v9978_v21 = vsel %vm9200_vm3, %v8037_v16, -inf  ;;  %v9979_v22 = vsel %vm9200_vm3, %v8397_v17, -inf }
 0x53e   : > { %v9980_v19 = vmax.f32 %v9978_v21, %v9979_v22 }
 0x53f   : > { %10755 = vst.msk [vmem:[%s13411_s17 + $0x1b4] sm:$0xf] %vm10645_vm4, %v10610_v24  ;;  %v9977_v20 = vmax.f32 %v9975_v18, %v9976_v15 }
 0x541   : > { %v10323_v23 = vadd.f32 %v14340_v34, %v9977_v20 }
 0x543   : > { %v10467_v25 = vmax.f32 %v10323_v23, 0.0  ;;  %v8757_v26 = vpop.f32.mrf.mxu2  ;;  %v9117_v28 = vpop.f32.mrf.mxu3 }
 0x544   : > { %v9981_v31 = vsel %vm9200_vm3, %v8757_v26, -inf  ;;  %v8040_v32 = vpop.f32.mrf.mxu0  ;;  %v8400_v27 = vpop.f32.mrf.mxu1  ;;  %v9983_v38 = vsel %vm9200_vm3, %v9117_v28, -inf }
 0x545   : > { %v10611_v36 = vpack.c.bf16 %v10467_v25, %v10467_v25  ;;  %v9982_v37 = vmax.f32 %v9980_v19, %v9981_v31  ;;  %v9985_v39 = vsel %vm9200_vm3, %v8040_v32, -inf  ;;  %v9986_v34 = vsel %vm9200_vm3, %v8400_v27, -inf  ;;  %v12456_v31 = vld [vmem:[%s13318_s8 + $0x450] sm:$0xff] }
 0x546   : > { %v9987_v43 = vmax.f32 %v9985_v39, %v9986_v34 }
 0x547   : > { %10756 = vst.msk [vmem:[%s13411_s17 + $0x1b8] sm:$0xf] %vm10645_vm4, %v10611_v36  ;;  %v9984_v40 = vmax.f32 %v9982_v37, %v9983_v38  ;;  %12091 = vmatmul.msk.bf16.gmra.mxu0 %vm6879_vm2, %v12382_v29  ;;  %12163 = vmatmul.msk.bf16.gmra.mxu1 %vm6879_vm2, %v12454_v30  ;;  %v12384_v30 = vld [vmem:[%s13318_s8 + $0x210] sm:$0xff] }
 0x548   : > { %12235 = vmatmul.msk.bf16.gmra.mxu2 %vm6879_vm2, %v12526_v33  ;;  %12307 = vmatmul.msk.bf16.gmra.mxu3 %vm6879_vm2, %v12598_v35  ;;  %v12528_v35 = vld [vmem:[%s13318_s8 + $0x690] sm:$0xff] }
 0x549   : > { %v10324_v42 = vadd.f32 %v14653_v41, %v9984_v40  ;;  %v12600_v36 = vld [vmem:[%s13318_s8 + $0x8d0] sm:$0xff] }
 0x54b   : > { %v10468_v44 = vmax.f32 %v10324_v42, 0.0  ;;  %v8760_v45 = vpop.f32.mrf.mxu2  ;;  %v9120_v46 = vpop.f32.mrf.mxu3 }
 0x54c   : > { %v9988_v47 = vsel %vm9200_vm3, %v8760_v45, -inf  ;;  %v9990_v48 = vsel %vm9200_vm3, %v9120_v46, -inf  ;;  %v8042_v49 = vpop.f32.mrf.mxu0  ;;  %v8402_v50 = vpop.f32.mrf.mxu1 }
 0x54d   : > { %v10612_v51 = vpack.c.bf16 %v10468_v44, %v10468_v44  ;;  %v9989_v52 = vmax.f32 %v9987_v43, %v9988_v47  ;;  %v9992_v54 = vsel %vm9200_vm3, %v8042_v49, -inf  ;;  %v9993_v55 = vsel %vm9200_vm3, %v8402_v50, -inf }
 0x54e   : > { %v9994_v58 = vmax.f32 %v9992_v54, %v9993_v55 }
 0x54f   : > { %10757 = vst.msk [vmem:[%s13411_s17 + $0x1bc] sm:$0xf] %vm10645_vm4, %v10612_v51  ;;  %v9991_v53 = vmax.f32 %v9989_v52, %v9990_v48 }
 0x551   : > { %v10325_v56 = vadd.f32 %v14653_v41, %v9991_v53 }
 0x553   : > { %v10469_v57 = vmax.f32 %v10325_v56, 0.0  ;;  %v8762_v59 = vpop.f32.mrf.mxu2  ;;  %v9122_v60 = vpop.f32.mrf.mxu3 }
 0x554   : > { %v9995_v63 = vsel %vm9200_vm3, %v8762_v59, -inf  ;;  %v8045_v0 = vpop.f32.mrf.mxu0  ;;  %v8405_v1 = vpop.f32.mrf.mxu1  ;;  %v9997_v6 = vsel %vm9200_vm3, %v9122_v60, -inf }
 0x555   : > { %v10613_v4 = vpack.c.bf16 %v10469_v57, %v10469_v57  ;;  %v9996_v5 = vmax.f32 %v9994_v58, %v9995_v63  ;;  %v9999_v7 = vsel %vm9200_vm3, %v8045_v0, -inf  ;;  %v10000_v8 = vsel %vm9200_vm3, %v8405_v1, -inf  ;;  %v12457_v63 = vld [vmem:[%s13318_s8 + $0x458] sm:$0xff] }
 0x556   : > { %v10001_v11 = vmax.f32 %v9999_v7, %v10000_v8 }
 0x557   : > { %10758 = vst.msk [vmem:[%s13411_s17 + $0x1c0] sm:$0xf] %vm10645_vm4, %v10613_v4  ;;  %v9998_v9 = vmax.f32 %v9996_v5, %v9997_v6  ;;  %12092 = vmatmul.msk.bf16.gmra.mxu0 %vm6879_vm2, %v12383_v61  ;;  %12164 = vmatmul.msk.bf16.gmra.mxu1 %vm6879_vm2, %v12455_v62  ;;  %v12385_v62 = vld [vmem:[%s13318_s8 + $0x218] sm:$0xff] }
 0x558   : > { %12236 = vmatmul.msk.bf16.gmra.mxu2 %vm6879_vm2, %v12527_v2  ;;  %12308 = vmatmul.msk.bf16.gmra.mxu3 %vm6879_vm2, %v12599_v3  ;;  %v12529_v3 = vld [vmem:[%s13318_s8 + $0x698] sm:$0xff] }
 0x559   : > { %v10326_v10 = vadd.f32 %v14653_v41, %v9998_v9  ;;  %v12601_v4 = vld [vmem:[%s13318_s8 + $0x8d8] sm:$0xff] }
 0x55b   : > { %v10470_v12 = vmax.f32 %v10326_v10, 0.0  ;;  %v8765_v13 = vpop.f32.mrf.mxu2  ;;  %v9125_v14 = vpop.f32.mrf.mxu3 }
 0x55c   : > { %v10002_v15 = vsel %vm9200_vm3, %v8765_v13, -inf  ;;  %v10004_v16 = vsel %vm9200_vm3, %v9125_v14, -inf  ;;  %v8047_v17 = vpop.f32.mrf.mxu0  ;;  %v8407_v24 = vpop.f32.mrf.mxu1 }
 0x55d   : > { %v10614_v18 = vpack.c.bf16 %v10470_v12, %v10470_v12  ;;  %v10003_v20 = vmax.f32 %v10001_v11, %v10002_v15  ;;  %v10006_v22 = vsel %vm9200_vm3, %v8047_v17, -inf  ;;  %v10007_v23 = vsel %vm9200_vm3, %v8407_v24, -inf }
 0x55e   : > { %v10008_v26 = vmax.f32 %v10006_v22, %v10007_v23 }
 0x55f   : > { %10759 = vst.msk [vmem:[%s13411_s17 + $0x1c4] sm:$0xf] %vm10645_vm4, %v10614_v18  ;;  %v10005_v21 = vmax.f32 %v10003_v20, %v10004_v16 }
 0x561   : > { %v10327_v25 = vadd.f32 %v14653_v41, %v10005_v21 }
 0x563   : > { %v10471_v19 = vmax.f32 %v10327_v25, 0.0  ;;  %v8767_v28 = vpop.f32.mrf.mxu2  ;;  %v9127_v29 = vpop.f32.mrf.mxu3 }
 0x564   : > { %v10009_v32 = vsel %vm9200_vm3, %v8767_v28, -inf  ;;  %v8050_v27 = vpop.f32.mrf.mxu0  ;;  %v8410_v33 = vpop.f32.mrf.mxu1  ;;  %v10011_v39 = vsel %vm9200_vm3, %v9127_v29, -inf }
 0x565   : > { %v10615_v37 = vpack.c.bf16 %v10471_v19, %v10471_v19  ;;  %v10010_v38 = vmax.f32 %v10008_v26, %v10009_v32  ;;  %v10013_v34 = vsel %vm9200_vm3, %v8050_v27, -inf  ;;  %v10014_v40 = vsel %vm9200_vm3, %v8410_v33, -inf  ;;  %v12458_v32 = vld [vmem:[%s13318_s8 + $0x460] sm:$0xff] }
 0x566   : > { %v10015_v44 = vmax.f32 %v10013_v34, %v10014_v40 }
 0x567   : > { %10760 = vst.msk [vmem:[%s13411_s17 + $0x1c8] sm:$0xf] %vm10645_vm4, %v10615_v37  ;;  %v10012_v42 = vmax.f32 %v10010_v38, %v10011_v39  ;;  %12093 = vmatmul.msk.bf16.gmra.mxu0 %vm6879_vm2, %v12384_v30  ;;  %12165 = vmatmul.msk.bf16.gmra.mxu1 %vm6879_vm2, %v12456_v31  ;;  %v12386_v31 = vld [vmem:[%s13318_s8 + $0x220] sm:$0xff] }
 0x568   : > { %12237 = vmatmul.msk.bf16.gmra.mxu2 %vm6879_vm2, %v12528_v35  ;;  %12309 = vmatmul.msk.bf16.gmra.mxu3 %vm6879_vm2, %v12600_v36  ;;  %v12530_v36 = vld [vmem:[%s13318_s8 + $0x6a0] sm:$0xff] }
 0x569   : > { %v10328_v43 = vadd.f32 %v14653_v41, %v10012_v42  ;;  %v12602_v37 = vld [vmem:[%s13318_s8 + $0x8e0] sm:$0xff] }
 0x56b   : > { %v10472_v45 = vmax.f32 %v10328_v43, 0.0  ;;  %v8770_v46 = vpop.f32.mrf.mxu2  ;;  %v9130_v47 = vpop.f32.mrf.mxu3 }
 0x56c   : > { %v10016_v48 = vsel %vm9200_vm3, %v8770_v46, -inf  ;;  %v10018_v49 = vsel %vm9200_vm3, %v9130_v47, -inf  ;;  %v8052_v50 = vpop.f32.mrf.mxu0  ;;  %v8412_v51 = vpop.f32.mrf.mxu1 }
 0x56d   : > { %v10616_v52 = vpack.c.bf16 %v10472_v45, %v10472_v45  ;;  %v10017_v53 = vmax.f32 %v10015_v44, %v10016_v48  ;;  %v10020_v55 = vsel %vm9200_vm3, %v8052_v50, -inf  ;;  %v10021_v56 = vsel %vm9200_vm3, %v8412_v51, -inf }
 0x56e   : > { %v10022_v59 = vmax.f32 %v10020_v55, %v10021_v56 }
 0x56f   : > { %10761 = vst.msk [vmem:[%s13411_s17 + $0x1cc] sm:$0xf] %vm10645_vm4, %v10616_v52  ;;  %v10019_v54 = vmax.f32 %v10017_v53, %v10018_v49 }
 0x571   : > { %v10329_v57 = vadd.f32 %v14653_v41, %v10019_v54 }
 0x573   : > { %v10473_v58 = vmax.f32 %v10329_v57, 0.0  ;;  %v8772_v60 = vpop.f32.mrf.mxu2  ;;  %v9132_v61 = vpop.f32.mrf.mxu3 }
 0x574   : > { %v10023_v0 = vsel %vm9200_vm3, %v8772_v60, -inf  ;;  %v8055_v1 = vpop.f32.mrf.mxu0  ;;  %v8415_v2 = vpop.f32.mrf.mxu1  ;;  %v10025_v7 = vsel %vm9200_vm3, %v9132_v61, -inf }
 0x575   : > { %v10617_v5 = vpack.c.bf16 %v10473_v58, %v10473_v58  ;;  %v10024_v6 = vmax.f32 %v10022_v59, %v10023_v0  ;;  %v10027_v8 = vsel %vm9200_vm3, %v8055_v1, -inf  ;;  %v10028_v9 = vsel %vm9200_vm3, %v8415_v2, -inf  ;;  %v12459_v0 = vld [vmem:[%s13318_s8 + $0x468] sm:$0xff] }
 0x576   : > { %v10029_v12 = vmax.f32 %v10027_v8, %v10028_v9 }
 0x577   : > { %10762 = vst.msk [vmem:[%s13411_s17 + $0x1d0] sm:$0xf] %vm10645_vm4, %v10617_v5  ;;  %v10026_v10 = vmax.f32 %v10024_v6, %v10025_v7  ;;  %12094 = vmatmul.msk.bf16.gmra.mxu0 %vm6879_vm2, %v12385_v62  ;;  %12166 = vmatmul.msk.bf16.gmra.mxu1 %vm6879_vm2, %v12457_v63  ;;  %v12387_v63 = vld [vmem:[%s13318_s8 + $0x228] sm:$0xff] }
 0x578   : > { %12238 = vmatmul.msk.bf16.gmra.mxu2 %vm6879_vm2, %v12529_v3  ;;  %12310 = vmatmul.msk.bf16.gmra.mxu3 %vm6879_vm2, %v12601_v4  ;;  %v12531_v4 = vld [vmem:[%s13318_s8 + $0x6a8] sm:$0xff] }
 0x579   : > { %v10330_v11 = vadd.f32 %v14653_v41, %v10026_v10  ;;  %v12603_v5 = vld [vmem:[%s13318_s8 + $0x8e8] sm:$0xff] }
 0x57b   : > { %v10474_v13 = vmax.f32 %v10330_v11, 0.0  ;;  %v8775_v14 = vpop.f32.mrf.mxu2  ;;  %v9135_v15 = vpop.f32.mrf.mxu3 }
 0x57c   : > { %v10030_v16 = vsel %vm9200_vm3, %v8775_v14, -inf  ;;  %v10032_v17 = vsel %vm9200_vm3, %v9135_v15, -inf  ;;  %v8057_v24 = vpop.f32.mrf.mxu0  ;;  %v8417_v18 = vpop.f32.mrf.mxu1 }
 0x57d   : > { %v10618_v20 = vpack.c.bf16 %v10474_v13, %v10474_v13  ;;  %v10031_v21 = vmax.f32 %v10029_v12, %v10030_v16  ;;  %v10034_v23 = vsel %vm9200_vm3, %v8057_v24, -inf  ;;  %v10035_v25 = vsel %vm9200_vm3, %v8417_v18, -inf }
 0x57e   : > { %v10036_v28 = vmax.f32 %v10034_v23, %v10035_v25 }
 0x57f   : > { %10763 = vst.msk [vmem:[%s13411_s17 + $0x1d4] sm:$0xf] %vm10645_vm4, %v10618_v20  ;;  %v10033_v22 = vmax.f32 %v10031_v21, %v10032_v17 }
 0x581   : > { %v10331_v19 = vadd.f32 %v14653_v41, %v10033_v22 }
 0x583   : > { %v10475_v26 = vmax.f32 %v10331_v19, 0.0  ;;  %v8777_v29 = vpop.f32.mrf.mxu2  ;;  %v9137_v30 = vpop.f32.mrf.mxu3 }
 0x584   : > { %v10037_v27 = vsel %vm9200_vm3, %v8777_v29, -inf  ;;  %v8060_v33 = vpop.f32.mrf.mxu0  ;;  %v8420_v35 = vpop.f32.mrf.mxu1  ;;  %v10039_v34 = vsel %vm9200_vm3, %v9137_v30, -inf }
 0x585   : > { %v10619_v38 = vpack.c.bf16 %v10475_v26, %v10475_v26  ;;  %v10038_v39 = vmax.f32 %v10036_v28, %v10037_v27  ;;  %v10041_v40 = vsel %vm9200_vm3, %v8060_v33, -inf  ;;  %v10042_v42 = vsel %vm9200_vm3, %v8420_v35, -inf  ;;  %v12460_v27 = vld [vmem:[%s13318_s8 + $0x470] sm:$0xff] }
 0x586   : > { %v10043_v45 = vmax.f32 %v10041_v40, %v10042_v42 }
 0x587   : > { %10764 = vst.msk [vmem:[%s13411_s17 + $0x1d8] sm:$0xf] %vm10645_vm4, %v10619_v38  ;;  %v10040_v43 = vmax.f32 %v10038_v39, %v10039_v34  ;;  %12095 = vmatmul.msk.bf16.gmra.mxu0 %vm6879_vm2, %v12386_v31  ;;  %12167 = vmatmul.msk.bf16.gmra.mxu1 %vm6879_vm2, %v12458_v32  ;;  %v12388_v32 = vld [vmem:[%s13318_s8 + $0x230] sm:$0xff] }
 0x588   : > { %12239 = vmatmul.msk.bf16.gmra.mxu2 %vm6879_vm2, %v12530_v36  ;;  %12311 = vmatmul.msk.bf16.gmra.mxu3 %vm6879_vm2, %v12602_v37  ;;  %v12532_v37 = vld [vmem:[%s13318_s8 + $0x6b0] sm:$0xff] }
 0x589   : > { %v10332_v44 = vadd.f32 %v14653_v41, %v10040_v43  ;;  %v12604_v38 = vld [vmem:[%s13318_s8 + $0x8f0] sm:$0xff] }
 0x58b   : > { %v10476_v46 = vmax.f32 %v10332_v44, 0.0  ;;  %v8780_v47 = vpop.f32.mrf.mxu2  ;;  %v9140_v48 = vpop.f32.mrf.mxu3 }
 0x58c   : > { %v10044_v49 = vsel %vm9200_vm3, %v8780_v47, -inf  ;;  %v10046_v50 = vsel %vm9200_vm3, %v9140_v48, -inf  ;;  %v8062_v51 = vpop.f32.mrf.mxu0  ;;  %v8422_v52 = vpop.f32.mrf.mxu1 }
 0x58d   : > { %v10620_v53 = vpack.c.bf16 %v10476_v46, %v10476_v46  ;;  %v10045_v54 = vmax.f32 %v10043_v45, %v10044_v49  ;;  %v10048_v56 = vsel %vm9200_vm3, %v8062_v51, -inf  ;;  %v10049_v57 = vsel %vm9200_vm3, %v8422_v52, -inf }
 0x58e   : > { %v10050_v60 = vmax.f32 %v10048_v56, %v10049_v57 }
 0x58f   : > { %10765 = vst.msk [vmem:[%s13411_s17 + $0x1dc] sm:$0xf] %vm10645_vm4, %v10620_v53  ;;  %v10047_v55 = vmax.f32 %v10045_v54, %v10046_v50 }
 0x591   : > { %v10333_v58 = vadd.f32 %v14653_v41, %v10047_v55 }
 0x593   : > { %v10477_v59 = vmax.f32 %v10333_v58, 0.0  ;;  %v8782_v61 = vpop.f32.mrf.mxu2  ;;  %v9142_v62 = vpop.f32.mrf.mxu3 }
 0x594   : > { %v10051_v1 = vsel %vm9200_vm3, %v8782_v61, -inf  ;;  %v8065_v2 = vpop.f32.mrf.mxu0  ;;  %v8425_v3 = vpop.f32.mrf.mxu1  ;;  %v10053_v8 = vsel %vm9200_vm3, %v9142_v62, -inf }
 0x595   : > { %v10621_v6 = vpack.c.bf16 %v10477_v59, %v10477_v59  ;;  %v10052_v7 = vmax.f32 %v10050_v60, %v10051_v1  ;;  %v10055_v9 = vsel %vm9200_vm3, %v8065_v2, -inf  ;;  %v10056_v10 = vsel %vm9200_vm3, %v8425_v3, -inf  ;;  %v12461_v1 = vld [vmem:[%s13318_s8 + $0x478] sm:$0xff] }
 0x596   : > { %v10057_v13 = vmax.f32 %v10055_v9, %v10056_v10 }
 0x597   : > { %10766 = vst.msk [vmem:[%s13411_s17 + $0x1e0] sm:$0xf] %vm10645_vm4, %v10621_v6  ;;  %v10054_v11 = vmax.f32 %v10052_v7, %v10053_v8  ;;  %12096 = vmatmul.msk.bf16.gmra.mxu0 %vm6879_vm2, %v12387_v63  ;;  %12168 = vmatmul.msk.bf16.gmra.mxu1 %vm6879_vm2, %v12459_v0  ;;  %v12389_v0 = vld [vmem:[%s13318_s8 + $0x238] sm:$0xff] }
 0x598   : > { %12240 = vmatmul.msk.bf16.gmra.mxu2 %vm6879_vm2, %v12531_v4  ;;  %12312 = vmatmul.msk.bf16.gmra.mxu3 %vm6879_vm2, %v12603_v5  ;;  %v12533_v5 = vld [vmem:[%s13318_s8 + $0x6b8] sm:$0xff] }
 0x599   : > { %v10334_v12 = vadd.f32 %v14653_v41, %v10054_v11  ;;  %v12605_v6 = vld [vmem:[%s13318_s8 + $0x8f8] sm:$0xff] }
 0x59b   : > { %v10478_v14 = vmax.f32 %v10334_v12, 0.0  ;;  %v8785_v15 = vpop.f32.mrf.mxu2  ;;  %v9145_v16 = vpop.f32.mrf.mxu3 }
 0x59c   : > { %v10058_v17 = vsel %vm9200_vm3, %v8785_v15, -inf  ;;  %v10060_v24 = vsel %vm9200_vm3, %v9145_v16, -inf  ;;  %v8067_v18 = vpop.f32.mrf.mxu0  ;;  %v8427_v20 = vpop.f32.mrf.mxu1 }
 0x59d   : > { %v10622_v21 = vpack.c.bf16 %v10478_v14, %v10478_v14  ;;  %v10059_v22 = vmax.f32 %v10057_v13, %v10058_v17  ;;  %v10062_v25 = vsel %vm9200_vm3, %v8067_v18, -inf  ;;  %v10063_v19 = vsel %vm9200_vm3, %v8427_v20, -inf }
 0x59e   : > { %v10064_v29 = vmax.f32 %v10062_v25, %v10063_v19 }
 0x59f   : > { %10767 = vst.msk [vmem:[%s13411_s17 + $0x1e4] sm:$0xf] %vm10645_vm4, %v10622_v21  ;;  %v10061_v23 = vmax.f32 %v10059_v22, %v10060_v24 }
 0x5a1   : > { %v10335_v26 = vadd.f32 %v14653_v41, %v10061_v23 }
 0x5a3   : > { %v10479_v28 = vmax.f32 %v10335_v26, 0.0  ;;  %v8787_v30 = vpop.f32.mrf.mxu2  ;;  %v9147_v31 = vpop.f32.mrf.mxu3 }
 0x5a4   : > { %v10065_v33 = vsel %vm9200_vm3, %v8787_v30, -inf  ;;  %v8070_v35 = vpop.f32.mrf.mxu0  ;;  %v8430_v36 = vpop.f32.mrf.mxu1  ;;  %v10067_v40 = vsel %vm9200_vm3, %v9147_v31, -inf }
 0x5a5   : > { %v10623_v39 = vpack.c.bf16 %v10479_v28, %v10479_v28  ;;  %v10066_v34 = vmax.f32 %v10064_v29, %v10065_v33  ;;  %v10069_v42 = vsel %vm9200_vm3, %v8070_v35, -inf  ;;  %v10070_v43 = vsel %vm9200_vm3, %v8430_v36, -inf }
 0x5a6   : > { %v10071_v46 = vmax.f32 %v10069_v42, %v10070_v43 }
 0x5a7   : > { %10768 = vst.msk [vmem:[%s13411_s17 + $0x1e8] sm:$0xf] %vm10645_vm4, %v10623_v39  ;;  %v10068_v44 = vmax.f32 %v10066_v34, %v10067_v40  ;;  %12097 = vmatmul.msk.bf16.gmra.mxu0 %vm6879_vm2, %v12388_v32  ;;  %12169 = vmatmul.msk.bf16.gmra.mxu1 %vm6879_vm2, %v12460_v27 }
 0x5a8   : > { %12241 = vmatmul.msk.bf16.gmra.mxu2 %vm6879_vm2, %v12532_v37  ;;  %12313 = vmatmul.msk.bf16.gmra.mxu3 %vm6879_vm2, %v12604_v38 }
 0x5a9   : > { %v10336_v45 = vadd.f32 %v14653_v41, %v10068_v44 }
 0x5ab   : > { %v10480_v47 = vmax.f32 %v10336_v45, 0.0  ;;  %v8790_v48 = vpop.f32.mrf.mxu2  ;;  %v9150_v49 = vpop.f32.mrf.mxu3 }
 0x5ac   : > { %v10072_v50 = vsel %vm9200_vm3, %v8790_v48, -inf  ;;  %v10074_v51 = vsel %vm9200_vm3, %v9150_v49, -inf  ;;  %v8072_v52 = vpop.f32.mrf.mxu0  ;;  %v8432_v53 = vpop.f32.mrf.mxu1 }
 0x5ad   : > { %v10624_v54 = vpack.c.bf16 %v10480_v47, %v10480_v47  ;;  %v10073_v55 = vmax.f32 %v10071_v46, %v10072_v50  ;;  %v10076_v57 = vsel %vm9200_vm3, %v8072_v52, -inf  ;;  %v10077_v58 = vsel %vm9200_vm3, %v8432_v53, -inf }
 0x5ae   : > { %v10078_v61 = vmax.f32 %v10076_v57, %v10077_v58 }
 0x5af   : > { %10769 = vst.msk [vmem:[%s13411_s17 + $0x1ec] sm:$0xf] %vm10645_vm4, %v10624_v54  ;;  %v10075_v56 = vmax.f32 %v10073_v55, %v10074_v51 }
 0x5b1   : > { %v10337_v59 = vadd.f32 %v14653_v41, %v10075_v56 }
 0x5b3   : > { %v10481_v60 = vmax.f32 %v10337_v59, 0.0  ;;  %v8792_v62 = vpop.f32.mrf.mxu2  ;;  %v9152_v63 = vpop.f32.mrf.mxu3 }
 0x5b4   : > { %v10079_v2 = vsel %vm9200_vm3, %v8792_v62, -inf  ;;  %v8075_v3 = vpop.f32.mrf.mxu0  ;;  %v8435_v4 = vpop.f32.mrf.mxu1  ;;  %v10081_v9 = vsel %vm9200_vm3, %v9152_v63, -inf }
 0x5b5   : > { %v10625_v7 = vpack.c.bf16 %v10481_v60, %v10481_v60  ;;  %v10080_v8 = vmax.f32 %v10078_v61, %v10079_v2  ;;  %v10083_v10 = vsel %vm9200_vm3, %v8075_v3, -inf  ;;  %v10084_v11 = vsel %vm9200_vm3, %v8435_v4, -inf }
 0x5b6   : > { %v10085_v14 = vmax.f32 %v10083_v10, %v10084_v11 }
 0x5b7   : > { %10770 = vst.msk [vmem:[%s13411_s17 + $0x1f0] sm:$0xf] %vm10645_vm4, %v10625_v7  ;;  %v10082_v12 = vmax.f32 %v10080_v8, %v10081_v9  ;;  %12098 = vmatmul.msk.bf16.gmra.mxu0 %vm6879_vm2, %v12389_v0  ;;  %12170 = vmatmul.msk.bf16.gmra.mxu1 %vm6879_vm2, %v12461_v1 }
 0x5b8   : > { %12242 = vmatmul.msk.bf16.gmra.mxu2 %vm6879_vm2, %v12533_v5  ;;  %12314 = vmatmul.msk.bf16.gmra.mxu3 %vm6879_vm2, %v12605_v6 }
 0x5b9   : > { %v10338_v13 = vadd.f32 %v14653_v41, %v10082_v12 }
 0x5bb   : > { %v10482_v15 = vmax.f32 %v10338_v13, 0.0  ;;  %v8795_v16 = vpop.f32.mrf.mxu2  ;;  %v9155_v17 = vpop.f32.mrf.mxu3 }
 0x5bc   : > { %v10086_v24 = vsel %vm9200_vm3, %v8795_v16, -inf  ;;  %v10088_v18 = vsel %vm9200_vm3, %v9155_v17, -inf  ;;  %v8077_v20 = vpop.f32.mrf.mxu0  ;;  %v8437_v21 = vpop.f32.mrf.mxu1 }
 0x5bd   : > { %v10626_v22 = vpack.c.bf16 %v10482_v15, %v10482_v15  ;;  %v10087_v23 = vmax.f32 %v10085_v14, %v10086_v24  ;;  %v10090_v19 = vsel %vm9200_vm3, %v8077_v20, -inf  ;;  %v10091_v26 = vsel %vm9200_vm3, %v8437_v21, -inf }
 0x5be   : > { %v10092_v30 = vmax.f32 %v10090_v19, %v10091_v26 }
 0x5bf   : > { %10771 = vst.msk [vmem:[%s13411_s17 + $0x1f4] sm:$0xf] %vm10645_vm4, %v10626_v22  ;;  %v10089_v25 = vmax.f32 %v10087_v23, %v10088_v18 }
 0x5c1   : > { %v10339_v28 = vadd.f32 %v14653_v41, %v10089_v25 }
 0x5c3   : > { %v10483_v29 = vmax.f32 %v10339_v28, 0.0  ;;  %v8797_v31 = vpop.f32.mrf.mxu2  ;;  %v9157_v32 = vpop.f32.mrf.mxu3 }
 0x5c4   : > { %v10093_v27 = vsel %vm9200_vm3, %v8797_v31, -inf  ;;  %v8080_v33 = vpop.f32.mrf.mxu0  ;;  %v8440_v35 = vpop.f32.mrf.mxu1  ;;  %v10095_v38 = vsel %vm9200_vm3, %v9157_v32, -inf }
 0x5c5   : > { %v10627_v36 = vpack.c.bf16 %v10483_v29, %v10483_v29  ;;  %v10094_v37 = vmax.f32 %v10092_v30, %v10093_v27  ;;  %v10097_v39 = vsel %vm9200_vm3, %v8080_v33, -inf  ;;  %v10098_v34 = vsel %vm9200_vm3, %v8440_v35, -inf }
 0x5c6   : > { %v10099_v43 = vmax.f32 %v10097_v39, %v10098_v34 }
 0x5c7   : > { %10772 = vst.msk [vmem:[%s13411_s17 + $0x1f8] sm:$0xf] %vm10645_vm4, %v10627_v36  ;;  %v10096_v40 = vmax.f32 %v10094_v37, %v10095_v38 }
 0x5c9   : > { %v10340_v42 = vadd.f32 %v14653_v41, %v10096_v40 }
 0x5cb   : > { %v10484_v44 = vmax.f32 %v10340_v42, 0.0  ;;  %v8800_v45 = vpop.f32.mrf.mxu2  ;;  %v9160_v46 = vpop.f32.mrf.mxu3 }
 0x5cc   : > { %v10100_v47 = vsel %vm9200_vm3, %v8800_v45, -inf  ;;  %v10102_v48 = vsel %vm9200_vm3, %v9160_v46, -inf  ;;  %v8082_v49 = vpop.f32.mrf.mxu0  ;;  %v8442_v50 = vpop.f32.mrf.mxu1 }
 0x5cd   : > { %v10628_v51 = vpack.c.bf16 %v10484_v44, %v10484_v44  ;;  %v10101_v52 = vmax.f32 %v10099_v43, %v10100_v47  ;;  %v10104_v54 = vsel %vm9200_vm3, %v8082_v49, -inf  ;;  %v10105_v55 = vsel %vm9200_vm3, %v8442_v50, -inf }
 0x5ce   : > { %v10106_v58 = vmax.f32 %v10104_v54, %v10105_v55 }
 0x5cf   : > { %10773 = vst.msk [vmem:[%s13411_s17 + $0x1fc] sm:$0xf] %vm10645_vm4, %v10628_v51  ;;  %v10103_v53 = vmax.f32 %v10101_v52, %v10102_v48 }
 0x5d1   : > { %v10341_v56 = vadd.f32 %v14653_v41, %v10103_v53 }
 0x5d3   : > { %v10485_v57 = vmax.f32 %v10341_v56, 0.0  ;;  %v8802_v59 = vpop.f32.mrf.mxu2  ;;  %v9162_v60 = vpop.f32.mrf.mxu3 }
 0x5d4   : > { %v10107_v61 = vsel %vm9200_vm3, %v8802_v59, -inf  ;;  %v8085_v62 = vpop.f32.mrf.mxu0  ;;  %v8445_v63 = vpop.f32.mrf.mxu1  ;;  %v10109_v2 = vsel %vm9200_vm3, %v9162_v60, -inf }
 0x5d5   : > { %v10629_v0 = vpack.c.bf16 %v10485_v57, %v10485_v57  ;;  %v10108_v1 = vmax.f32 %v10106_v58, %v10107_v61  ;;  %v10111_v3 = vsel %vm9200_vm3, %v8085_v62, -inf  ;;  %v10112_v4 = vsel %vm9200_vm3, %v8445_v63, -inf }
 0x5d6   : > { %v10113_v7 = vmax.f32 %v10111_v3, %v10112_v4 }
 0x5d7   : > { %10774 = vst.msk [vmem:[%s13411_s17 + $0x200] sm:$0xf] %vm10645_vm4, %v10629_v0  ;;  %v10110_v5 = vmax.f32 %v10108_v1, %v10109_v2 }
 0x5d9   : > { %v10342_v6 = vadd.f32 %v14653_v41, %v10110_v5 }
 0x5db   : > { %v10486_v8 = vmax.f32 %v10342_v6, 0.0  ;;  %v8805_v9 = vpop.f32.mrf.mxu2  ;;  %v9165_v10 = vpop.f32.mrf.mxu3 }
 0x5dc   : > { %v10114_v11 = vsel %vm9200_vm3, %v8805_v9, -inf  ;;  %v10116_v12 = vsel %vm9200_vm3, %v9165_v10, -inf  ;;  %v8087_v13 = vpop.f32.mrf.mxu0  ;;  %v8447_v14 = vpop.f32.mrf.mxu1 }
 0x5dd   : > { %v10630_v15 = vpack.c.bf16 %v10486_v8, %v10486_v8  ;;  %v10115_v16 = vmax.f32 %v10113_v7, %v10114_v11  ;;  %v10118_v24 = vsel %vm9200_vm3, %v8087_v13, -inf  ;;  %v10119_v18 = vsel %vm9200_vm3, %v8447_v14, -inf }
 0x5de   : > { %v10120_v22 = vmax.f32 %v10118_v24, %v10119_v18 }
 0x5df   : > { %10775 = vst.msk [vmem:[%s13411_s17 + $0x204] sm:$0xf] %vm10645_vm4, %v10630_v15  ;;  %v10117_v17 = vmax.f32 %v10115_v16, %v10116_v12 }
 0x5e1   : > { %v10343_v20 = vadd.f32 %v14653_v41, %v10117_v17 }
 0x5e3   : > { %v10487_v21 = vmax.f32 %v10343_v20, 0.0  ;;  %v8807_v23 = vpop.f32.mrf.mxu2  ;;  %v9167_v25 = vpop.f32.mrf.mxu3 }
 0x5e4   : > { %v10121_v19 = vsel %vm9200_vm3, %v8807_v23, -inf  ;;  %v8090_v26 = vpop.f32.mrf.mxu0  ;;  %v8450_v28 = vpop.f32.mrf.mxu1  ;;  %v10123_v31 = vsel %vm9200_vm3, %v9167_v25, -inf }
 0x5e5   : > { %v10631_v29 = vpack.c.bf16 %v10487_v21, %v10487_v21  ;;  %v10122_v30 = vmax.f32 %v10120_v22, %v10121_v19  ;;  %v10125_v32 = vsel %vm9200_vm3, %v8090_v26, -inf  ;;  %v10126_v27 = vsel %vm9200_vm3, %v8450_v28, -inf }
 0x5e6   : > { %v10127_v36 = vmax.f32 %v10125_v32, %v10126_v27 }
 0x5e7   : > { %10776 = vst.msk [vmem:[%s13411_s17 + $0x208] sm:$0xf] %vm10645_vm4, %v10631_v29  ;;  %v10124_v33 = vmax.f32 %v10122_v30, %v10123_v31 }
 0x5e9   : > { %v10344_v35 = vadd.f32 %v14653_v41, %v10124_v33 }
 0x5eb   : > { %v10488_v37 = vmax.f32 %v10344_v35, 0.0  ;;  %v8810_v38 = vpop.f32.mrf.mxu2  ;;  %v9170_v39 = vpop.f32.mrf.mxu3 }
 0x5ec   : > { %v10128_v34 = vsel %vm9200_vm3, %v8810_v38, -inf  ;;  %v10130_v40 = vsel %vm9200_vm3, %v9170_v39, -inf  ;;  %v8092_v42 = vpop.f32.mrf.mxu0  ;;  %v8452_v43 = vpop.f32.mrf.mxu1 }
 0x5ed   : > { %v10632_v44 = vpack.c.bf16 %v10488_v37, %v10488_v37  ;;  %v10129_v45 = vmax.f32 %v10127_v36, %v10128_v34  ;;  %v10132_v47 = vsel %vm9200_vm3, %v8092_v42, -inf  ;;  %v10133_v48 = vsel %vm9200_vm3, %v8452_v43, -inf }
 0x5ee   : > { %v10134_v51 = vmax.f32 %v10132_v47, %v10133_v48 }
 0x5ef   : > { %10777 = vst.msk [vmem:[%s13411_s17 + $0x20c] sm:$0xf] %vm10645_vm4, %v10632_v44  ;;  %v10131_v46 = vmax.f32 %v10129_v45, %v10130_v40 }
 0x5f1   : > { %v10345_v49 = vadd.f32 %v14653_v41, %v10131_v46 }
 0x5f3   : > { %v10489_v50 = vmax.f32 %v10345_v49, 0.0  ;;  %v8812_v52 = vpop.f32.mrf.mxu2  ;;  %v9172_v53 = vpop.f32.mrf.mxu3 }
 0x5f4   : > { %v10135_v54 = vsel %vm9200_vm3, %v8812_v52, -inf  ;;  %v8095_v55 = vpop.f32.mrf.mxu0  ;;  %v8455_v56 = vpop.f32.mrf.mxu1  ;;  %v10137_v59 = vsel %vm9200_vm3, %v9172_v53, -inf }
 0x5f5   : > { %v10633_v57 = vpack.c.bf16 %v10489_v50, %v10489_v50  ;;  %v10136_v58 = vmax.f32 %v10134_v51, %v10135_v54  ;;  %v10139_v60 = vsel %vm9200_vm3, %v8095_v55, -inf  ;;  %v10140_v61 = vsel %vm9200_vm3, %v8455_v56, -inf }
 0x5f6   : > { %v10141_v0 = vmax.f32 %v10139_v60, %v10140_v61 }
 0x5f7   : > { %10778 = vst.msk [vmem:[%s13411_s17 + $0x210] sm:$0xf] %vm10645_vm4, %v10633_v57  ;;  %v10138_v62 = vmax.f32 %v10136_v58, %v10137_v59 }
 0x5f9   : > { %v10346_v63 = vadd.f32 %v14653_v41, %v10138_v62 }
 0x5fb   : > { %v10490_v1 = vmax.f32 %v10346_v63, 0.0  ;;  %v8815_v2 = vpop.f32.mrf.mxu2  ;;  %v9175_v3 = vpop.f32.mrf.mxu3 }
 0x5fc   : > { %v10142_v4 = vsel %vm9200_vm3, %v8815_v2, -inf  ;;  %v10144_v5 = vsel %vm9200_vm3, %v9175_v3, -inf  ;;  %v8097_v6 = vpop.f32.mrf.mxu0  ;;  %v8457_v7 = vpop.f32.mrf.mxu1 }
 0x5fd   : > { %v10634_v8 = vpack.c.bf16 %v10490_v1, %v10490_v1  ;;  %v10143_v9 = vmax.f32 %v10141_v0, %v10142_v4  ;;  %v10146_v11 = vsel %vm9200_vm3, %v8097_v6, -inf  ;;  %v10147_v12 = vsel %vm9200_vm3, %v8457_v7, -inf }
 0x5fe   : > { %v10148_v15 = vmax.f32 %v10146_v11, %v10147_v12 }
 0x5ff   : > { %10779 = vst.msk [vmem:[%s13411_s17 + $0x214] sm:$0xf] %vm10645_vm4, %v10634_v8  ;;  %v10145_v10 = vmax.f32 %v10143_v9, %v10144_v5 }
 0x601   : > { %v10347_v13 = vadd.f32 %v14653_v41, %v10145_v10 }
 0x603   : > { %v10491_v14 = vmax.f32 %v10347_v13, 0.0  ;;  %v8817_v16 = vpop.f32.mrf.mxu2  ;;  %v9177_v17 = vpop.f32.mrf.mxu3 }
 0x604   : > { %v10149_v24 = vsel %vm9200_vm3, %v8817_v16, -inf  ;;  %v8100_v18 = vpop.f32.mrf.mxu0  ;;  %v8460_v20 = vpop.f32.mrf.mxu1  ;;  %v10151_v23 = vsel %vm9200_vm3, %v9177_v17, -inf }
 0x605   : > { %v10635_v21 = vpack.c.bf16 %v10491_v14, %v10491_v14  ;;  %v10150_v22 = vmax.f32 %v10148_v15, %v10149_v24  ;;  %v10153_v25 = vsel %vm9200_vm3, %v8100_v18, -inf  ;;  %v10154_v19 = vsel %vm9200_vm3, %v8460_v20, -inf }
 0x606   : > { %v10155_v29 = vmax.f32 %v10153_v25, %v10154_v19 }
 0x607   : > { %10780 = vst.msk [vmem:[%s13411_s17 + $0x218] sm:$0xf] %vm10645_vm4, %v10635_v21  ;;  %v10152_v26 = vmax.f32 %v10150_v22, %v10151_v23 }
 0x609   : > { %v10348_v28 = vadd.f32 %v14653_v41, %v10152_v26 }
 0x60b   : > { %v10492_v30 = vmax.f32 %v10348_v28, 0.0  ;;  %v8820_v31 = vpop.f32.mrf.mxu2  ;;  %v9180_v32 = vpop.f32.mrf.mxu3 }
 0x60c   : > { %v10156_v27 = vsel %vm9200_vm3, %v8820_v31, -inf  ;;  %v10158_v33 = vsel %vm9200_vm3, %v9180_v32, -inf  ;;  %v8102_v35 = vpop.f32.mrf.mxu0  ;;  %v8462_v36 = vpop.f32.mrf.mxu1 }
 0x60d   : > { %v10636_v37 = vpack.c.bf16 %v10492_v30, %v10492_v30  ;;  %v10157_v38 = vmax.f32 %v10155_v29, %v10156_v27  ;;  %v10160_v34 = vsel %vm9200_vm3, %v8102_v35, -inf  ;;  %v10161_v40 = vsel %vm9200_vm3, %v8462_v36, -inf }
 0x60e   : > { %v10162_v44 = vmax.f32 %v10160_v34, %v10161_v40 }
 0x60f   : > { %10781 = vst.msk [vmem:[%s13411_s17 + $0x21c] sm:$0xf] %vm10645_vm4, %v10636_v37  ;;  %v10159_v39 = vmax.f32 %v10157_v38, %v10158_v33 }
 0x611   : > { %v10349_v42 = vadd.f32 %v14653_v41, %v10159_v39 }
 0x613   : > { %v10493_v43 = vmax.f32 %v10349_v42, 0.0  ;;  %v8822_v45 = vpop.f32.mrf.mxu2  ;;  %v9182_v46 = vpop.f32.mrf.mxu3 }
 0x614   : > { %v10163_v47 = vsel %vm9200_vm3, %v8822_v45, -inf  ;;  %v8105_v48 = vpop.f32.mrf.mxu0  ;;  %v8465_v49 = vpop.f32.mrf.mxu1  ;;  %v10165_v52 = vsel %vm9200_vm3, %v9182_v46, -inf }
 0x615   : > { %v10637_v50 = vpack.c.bf16 %v10493_v43, %v10493_v43  ;;  %v10164_v51 = vmax.f32 %v10162_v44, %v10163_v47  ;;  %v10167_v53 = vsel %vm9200_vm3, %v8105_v48, -inf  ;;  %v10168_v54 = vsel %vm9200_vm3, %v8465_v49, -inf }
 0x616   : > { %v10169_v57 = vmax.f32 %v10167_v53, %v10168_v54 }
 0x617   : > { %10782 = vst.msk [vmem:[%s13411_s17 + $0x220] sm:$0xf] %vm10645_vm4, %v10637_v50  ;;  %v10166_v55 = vmax.f32 %v10164_v51, %v10165_v52 }
 0x619   : > { %v10350_v56 = vadd.f32 %v14653_v41, %v10166_v55 }
 0x61b   : > { %v10494_v58 = vmax.f32 %v10350_v56, 0.0  ;;  %v8825_v59 = vpop.f32.mrf.mxu2  ;;  %v9185_v60 = vpop.f32.mrf.mxu3 }
 0x61c   : > { %v10170_v61 = vsel %vm9200_vm3, %v8825_v59, -inf  ;;  %v10172_v62 = vsel %vm9200_vm3, %v9185_v60, -inf  ;;  %v8107_v63 = vpop.f32.mrf.mxu0  ;;  %v8467_v0 = vpop.f32.mrf.mxu1 }
 0x61d   : > { %v10638_v1 = vpack.c.bf16 %v10494_v58, %v10494_v58  ;;  %v10171_v2 = vmax.f32 %v10169_v57, %v10170_v61  ;;  %v10174_v4 = vsel %vm9200_vm3, %v8107_v63, -inf  ;;  %v10175_v5 = vsel %vm9200_vm3, %v8467_v0, -inf }
 0x61e   : > { %v10176_v8 = vmax.f32 %v10174_v4, %v10175_v5 }
 0x61f   : > { %10783 = vst.msk [vmem:[%s13411_s17 + $0x224] sm:$0xf] %vm10645_vm4, %v10638_v1  ;;  %v10173_v3 = vmax.f32 %v10171_v2, %v10172_v62  ;;  %v12646_v62 = vld [vmem:[%s14949_s2] ss:$0 sm:$0xff] }
 0x621   : > { %v10351_v6 = vadd.f32 %v14653_v41, %v10173_v3 }
 0x623   : > { %v10495_v7 = vmax.f32 %v10351_v6, 0.0  ;;  %v8827_v9 = vpop.f32.mrf.mxu2  ;;  %v9187_v10 = vpop.f32.mrf.mxu3 }
 0x624   : > { %v10177_v11 = vsel %vm9200_vm3, %v8827_v9, -inf  ;;  %v8110_v12 = vpop.f32.mrf.mxu0  ;;  %v8470_v13 = vpop.f32.mrf.mxu1  ;;  %v10179_v16 = vsel %vm9200_vm3, %v9187_v10, -inf }
 0x625   : > { %v10639_v14 = vpack.c.bf16 %v10495_v7, %v10495_v7  ;;  %v10178_v15 = vmax.f32 %v10176_v8, %v10177_v11  ;;  %v10181_v17 = vsel %vm9200_vm3, %v8110_v12, -inf  ;;  %v10182_v24 = vsel %vm9200_vm3, %v8470_v13, -inf }
 0x626   : > { %v10183_v21 = vmax.f32 %v10181_v17, %v10182_v24 }
 0x627   : > { %10784 = vst.msk [vmem:[%s13411_s17 + $0x228] sm:$0xf] %vm10645_vm4, %v10639_v14  ;;  %v10180_v18 = vmax.f32 %v10178_v15, %v10179_v16 }
 0x629   : > { %v10352_v20 = vadd.f32 %v14653_v41, %v10180_v18 }
 0x62b   : > { %v10496_v22 = vmax.f32 %v10352_v20, 0.0  ;;  %v8830_v23 = vpop.f32.mrf.mxu2  ;;  %v9190_v25 = vpop.f32.mrf.mxu3 }
 0x62c   : > { %v10184_v19 = vsel %vm9200_vm3, %v8830_v23, -inf  ;;  %v10186_v26 = vsel %vm9200_vm3, %v9190_v25, -inf  ;;  %v8112_v28 = vpop.f32.mrf.mxu0  ;;  %v8472_v29 = vpop.f32.mrf.mxu1 }
 0x62d   : > { %v10640_v30 = vpack.c.bf16 %v10496_v22, %v10496_v22  ;;  %v10185_v31 = vmax.f32 %v10183_v21, %v10184_v19  ;;  %v10188_v27 = vsel %vm9200_vm3, %v8112_v28, -inf  ;;  %v10189_v33 = vsel %vm9200_vm3, %v8472_v29, -inf }
 0x62e   : > { %v10190_v37 = vmax.f32 %v10188_v27, %v10189_v33 }
 0x62f   : > { %10785 = vst.msk [vmem:[%s13411_s17 + $0x22c] sm:$0xf] %vm10645_vm4, %v10640_v30  ;;  %v10187_v32 = vmax.f32 %v10185_v31, %v10186_v26 }
 0x631   : > { %v10353_v35 = vadd.f32 %v14653_v41, %v10187_v32 }
 0x633   : > { %v10497_v36 = vmax.f32 %v10353_v35, 0.0  ;;  %v8832_v38 = vpop.f32.mrf.mxu2  ;;  %v9192_v39 = vpop.f32.mrf.mxu3 }
 0x634   : > { %v10191_v34 = vsel %vm9200_vm3, %v8832_v38, -inf  ;;  %v8115_v40 = vpop.f32.mrf.mxu0  ;;  %v8475_v42 = vpop.f32.mrf.mxu1  ;;  %v10193_v45 = vsel %vm9200_vm3, %v9192_v39, -inf }
 0x635   : > { %v10641_v43 = vpack.c.bf16 %v10497_v36, %v10497_v36  ;;  %v10192_v44 = vmax.f32 %v10190_v37, %v10191_v34  ;;  %v10195_v46 = vsel %vm9200_vm3, %v8115_v40, -inf  ;;  %v10196_v47 = vsel %vm9200_vm3, %v8475_v42, -inf }
 0x636   : > { %v10197_v50 = vmax.f32 %v10195_v46, %v10196_v47 }
 0x637   : > { %10786 = vst.msk [vmem:[%s13411_s17 + $0x230] sm:$0xf] %vm10645_vm4, %v10641_v43  ;;  %v10194_v48 = vmax.f32 %v10192_v44, %v10193_v45 }
 0x639   : > { %v10354_v49 = vadd.f32 %v14653_v41, %v10194_v48 }
 0x63b   : > { %v10498_v51 = vmax.f32 %v10354_v49, 0.0  ;;  %v8835_v52 = vpop.f32.mrf.mxu2  ;;  %v9195_v53 = vpop.f32.mrf.mxu3 }
 0x63c   : > { %v10198_v54 = vsel %vm9200_vm3, %v8835_v52, -inf  ;;  %v10200_v55 = vsel %vm9200_vm3, %v9195_v53, -inf  ;;  %v8117_v58 = vpop.f32.mrf.mxu0  ;;  %v8477_v59 = vpop.f32.mrf.mxu1 }
 0x63d   : > { %v10642_v56 = vpack.c.bf16 %v10498_v51, %v10498_v51  ;;  %v10199_v57 = vmax.f32 %v10197_v50, %v10198_v54  ;;  %v10202_v61 = vsel %vm9200_vm3, %v8117_v58, -inf  ;;  %v10203_v41 = vsel %vm9200_vm3, %v8477_v59, -inf }
 0x63e   : > { %v10204_v1 = vmax.f32 %v10202_v61, %v10203_v41 }
 0x63f   : > { %10787 = vst.msk [vmem:[%s13411_s17 + $0x234] sm:$0xf] %vm10645_vm4, %v10642_v56  ;;  %v10201_v60 = vmax.f32 %v10199_v57, %v10200_v55 }
 0x641   : > { %v10355_v63 = vadd.f32 %v12646_v62, %v10201_v60 }
 0x643   : > { %v10499_v0 = vmax.f32 %v10355_v63, 0.0  ;;  %v8837_v2 = vpop.f32.mrf.mxu2  ;;  %v9197_v3 = vpop.f32.mrf.mxu3 }
 0x644   : > { %v10205_v4 = vsel %vm9200_vm3, %v8837_v2, -inf  ;;  %v10207_v7 = vsel %vm9200_vm3, %v9197_v3, -inf }
 0x645   : > { %v10643_v5 = vpack.c.bf16 %v10499_v0, %v10499_v0  ;;  %v10206_v6 = vmax.f32 %v10204_v1, %v10205_v4 }
 0x647   : > { %10788 = vst.msk [vmem:[%s13411_s17 + $0x238] sm:$0xf] %vm10645_vm4, %v10643_v5  ;;  %v10208_v8 = vmax.f32 %v10206_v6, %v10207_v7 }
 0x649   : > { %v10356_v9 = vadd.f32 %v12646_v62, %v10208_v8 }
 0x64b   : > { %v10500_v10 = vmax.f32 %v10356_v9, 0.0 }
 0x64d   : > { %v10644_v11 = vpack.c.bf16 %v10500_v10, %v10500_v10 }
 0x64f   : > { %10789 = vst.msk [vmem:[%s13411_s17 + $0x23c] sm:$0xf] %vm10645_vm4, %v10644_v11 }
 0x650 PF: > { %p10_p9 = scmp.ge.s32.totalorder %s12709_s16, 4   ;;  %s14951_s12 = smov %s12665_s13 }
 0x651   : > { %s14952_s13 = smov %s12718_s19  ;;  %s14953_s14 = smov %s12709_s16 }
 0x652   :  { %12 = sbr.rel (!%p10_p9) target bundleno = 2 (0x2), region = 123 }

// kernel: net_forward.3
= control target key start
LH: loop header
LB: loop body
LE: loop exit
PB: predicated region body
PF: predicated region fallthrough
CT: control target
= control target key end

     0   :  { %s7849_s24 = smov 0   ;;  %s7851_s25 = smov 0   ;;  %s10741_s0 = inlined_call_operand.vmem [shape: bf16[4,16,16,500], index: 0, kind: input, shape index: {}]   ;;  %s10742_s1 = inlined_call_operand.vmem [shape: bf16[500,50], index: 1, kind: input, shape index: {}]   ;;  %s10743_s2 = inlined_call_operand.vmem [shape: f32[1,50], index: 2, kind: input, shape index: {}]   ;;  %s10744_s3 = inlined_call_operand.vmem [shape: bf16[16,50,500], index: 3, kind: input, shape index: {}]   ;;  %s10745_s4 = inlined_call_operand.vmem [shape: f32[1,500], index: 4, kind: input, shape index: {}]   ;;  %s10746_s5 = inlined_call_operand.vmem [shape: bf16[500,10], index: 5, kind: input, shape index: {}]   ;;  %s10747_s6 = inlined_call_operand.vmem [shape: f32[1,10], index: 6, kind: input, shape index: {}]   ;;  %s10748_s7 = inlined_call_operand.vmem [shape: f32[16,10], index: 7, kind: output, shape index: {}]  }
   0x1   :  { %s7853_s26 = smov 0  }
   0x2 LB: > { %s5427_s27 = sadd.s32 4294967295, %s7807_s26   ;;  %s7866_s28 = sadd.s32 1, %s7807_s26   ;;  %s7807_s26 = sphi %s7853_s26, %s10799_s26   ;;  %s7803_s25 = sphi %s7851_s25, %s10798_s25   ;;  %s7799_s24 = sphi %s7849_s24, %s10797_s24  }
   0x3   : > { %s21_s29 = ssub.s32 %s7807_s26, %s7866_s28  ;;  %s24_s30 = sadd.s32 1, %s7803_s25 }
   0x4   : > { %p22_p0 = scmp.eq.s32.totalorder %s21_s29, 0  ;;  %p31_p1 = scmp.ne.s32.totalorder %s7803_s25, %s7799_s24 }
   0x5   : > { %p32_p2 = scmp.eq.s32.totalorder %s7807_s26, 0  ;;  %p5430_p4 = scmp.ge.s32.totalorder %s7807_s26, 2 }
   0x6   : > { %s7875_s8 = scalar_select %p22_p0, %s7803_s25, %s24_s30  }
   0x7   : > { %p33_p3 = por %p32_p2, %p31_p1  ;;  %227 = sbr.rel (%p5430_p4) target bundleno = 144 (0x90), region = 40 }
   0xc   : > { %230 = sbr.rel (!%p33_p3) target bundleno = 144 (0x90), region = 44  ;;  %s232_s9 = sand.u32 (%p33_p3), 1, %s7803_s25  }
   0xd   : > { %s7370_s10 = sshll.u32 (%p33_p3), %s7807_s26, 4  ;;  %s5431_s11 = sshll.u32 (%p33_p3), %s232_s9, 10 }
   0xe   : > { %s7883_s14 = scalar_lea.vmem (%p33_p3), %s10741_s0, %s7370_s10  ;;  %s7888_s15 = scalar_lea.vmem (%p33_p3), [#allocation2], %s5431_s11 }
   0xf   : > { %v250_v0 = vld [vmem:[%s7883_s14] sm:$0xff] (%p33_p3)  ;;  %v252_v1 = vld [vmem:[%s7883_s14 + $0x8] sm:$0xff] (%p33_p3) }
  0x10   : > { %v254_v2 = vld [vmem:[%s7883_s14 + $0x20] sm:$0xff] (%p33_p3)  ;;  %251 = vst [vmem:[%s7888_s15] sm:$0xff] (%p33_p3), %v250_v0  ;;  %v256_v3 = vld [vmem:[%s7883_s14 + $0x28] sm:$0xff] (%p33_p3) }
  0x11   : > { %253 = vst [vmem:[%s7888_s15 + $0x8] sm:$0xff] %v252_v1  ;;  %v258_v4 = vld [vmem:[%s7883_s14 + $0x40] sm:$0xff]  ;;  %v260_v5 = vld [vmem:[%s7883_s14 + $0x48] sm:$0xff] }
  0x12   : > { %255 = vst [vmem:[%s7888_s15 + $0x10] sm:$0xff] %v254_v2  ;;  %v262_v6 = vld [vmem:[%s7883_s14 + $0x60] sm:$0xff]  ;;  %v264_v7 = vld [vmem:[%s7883_s14 + $0x68] sm:$0xff] }
  0x13   : > { %257 = vst [vmem:[%s7888_s15 + $0x18] sm:$0xff] %v256_v3  ;;  %v266_v8 = vld [vmem:[%s7883_s14 + $0x80] sm:$0xff]  ;;  %v268_v9 = vld [vmem:[%s7883_s14 + $0x88] sm:$0xff] }
  0x14   : > { %259 = vst [vmem:[%s7888_s15 + $0x20] sm:$0xff] %v258_v4  ;;  %v270_v10 = vld [vmem:[%s7883_s14 + $0xa0] sm:$0xff]  ;;  %v272_v11 = vld [vmem:[%s7883_s14 + $0xa8] sm:$0xff] }
  0x15   : > { %261 = vst [vmem:[%s7888_s15 + $0x28] sm:$0xff] %v260_v5  ;;  %v274_v12 = vld [vmem:[%s7883_s14 + $0xc0] sm:$0xff]  ;;  %v276_v13 = vld [vmem:[%s7883_s14 + $0xc8] sm:$0xff] }
  0x16   : > { %263 = vst [vmem:[%s7888_s15 + $0x30] sm:$0xff] %v262_v6  ;;  %v278_v14 = vld [vmem:[%s7883_s14 + $0xe0] sm:$0xff]  ;;  %v280_v15 = vld [vmem:[%s7883_s14 + $0xe8] sm:$0xff] }
  0x17   : > { %265 = vst [vmem:[%s7888_s15 + $0x38] sm:$0xff] %v264_v7  ;;  %v282_v16 = vld [vmem:[%s7883_s14 + $0x100] sm:$0xff]  ;;  %v284_v17 = vld [vmem:[%s7883_s14 + $0x108] sm:$0xff] }
  0x18   : > { %267 = vst [vmem:[%s7888_s15 + $0x40] sm:$0xff] %v266_v8  ;;  %v286_v18 = vld [vmem:[%s7883_s14 + $0x120] sm:$0xff]  ;;  %v288_v19 = vld [vmem:[%s7883_s14 + $0x128] sm:$0xff] }
  0x19   : > { %269 = vst [vmem:[%s7888_s15 + $0x48] sm:$0xff] %v268_v9  ;;  %v290_v20 = vld [vmem:[%s7883_s14 + $0x140] sm:$0xff]  ;;  %v292_v21 = vld [vmem:[%s7883_s14 + $0x148] sm:$0xff] }
  0x1a   : > { %271 = vst [vmem:[%s7888_s15 + $0x50] sm:$0xff] %v270_v10  ;;  %v294_v22 = vld [vmem:[%s7883_s14 + $0x160] sm:$0xff]  ;;  %v296_v23 = vld [vmem:[%s7883_s14 + $0x168] sm:$0xff] }
  0x1b   : > { %273 = vst [vmem:[%s7888_s15 + $0x58] sm:$0xff] %v272_v11  ;;  %v298_v24 = vld [vmem:[%s7883_s14 + $0x180] sm:$0xff]  ;;  %v300_v25 = vld [vmem:[%s7883_s14 + $0x188] sm:$0xff] }
  0x1c   : > { %275 = vst [vmem:[%s7888_s15 + $0x60] sm:$0xff] %v274_v12  ;;  %v302_v26 = vld [vmem:[%s7883_s14 + $0x1a0] sm:$0xff]  ;;  %v304_v27 = vld [vmem:[%s7883_s14 + $0x1a8] sm:$0xff] }
  0x1d   : > { %277 = vst [vmem:[%s7888_s15 + $0x68] sm:$0xff] %v276_v13  ;;  %v306_v28 = vld [vmem:[%s7883_s14 + $0x1c0] sm:$0xff]  ;;  %v308_v29 = vld [vmem:[%s7883_s14 + $0x1c8] sm:$0xff] }
  0x1e   : > { %279 = vst [vmem:[%s7888_s15 + $0x70] sm:$0xff] %v278_v14  ;;  %v310_v30 = vld [vmem:[%s7883_s14 + $0x1e0] sm:$0xff]  ;;  %v312_v31 = vld [vmem:[%s7883_s14 + $0x1e8] sm:$0xff] }
  0x1f   : > { %281 = vst [vmem:[%s7888_s15 + $0x78] sm:$0xff] %v280_v15  ;;  %v314_v32 = vld [vmem:[%s7883_s14 + $0x200] sm:$0xff]  ;;  %v316_v33 = vld [vmem:[%s7883_s14 + $0x208] sm:$0xff] }
  0x20   : > { %283 = vst [vmem:[%s7888_s15 + $0x80] sm:$0xff] %v282_v16  ;;  %v318_v34 = vld [vmem:[%s7883_s14 + $0x220] sm:$0xff]  ;;  %v320_v35 = vld [vmem:[%s7883_s14 + $0x228] sm:$0xff] }
  0x21   : > { %285 = vst [vmem:[%s7888_s15 + $0x88] sm:$0xff] %v284_v17  ;;  %v322_v36 = vld [vmem:[%s7883_s14 + $0x240] sm:$0xff]  ;;  %v324_v37 = vld [vmem:[%s7883_s14 + $0x248] sm:$0xff] }
  0x22   : > { %287 = vst [vmem:[%s7888_s15 + $0x90] sm:$0xff] %v286_v18  ;;  %v326_v38 = vld [vmem:[%s7883_s14 + $0x260] sm:$0xff]  ;;  %v328_v39 = vld [vmem:[%s7883_s14 + $0x268] sm:$0xff] }
  0x23   : > { %289 = vst [vmem:[%s7888_s15 + $0x98] sm:$0xff] %v288_v19  ;;  %v330_v40 = vld [vmem:[%s7883_s14 + $0x280] sm:$0xff]  ;;  %v332_v41 = vld [vmem:[%s7883_s14 + $0x288] sm:$0xff] }
  0x24   : > { %291 = vst [vmem:[%s7888_s15 + $0xa0] sm:$0xff] %v290_v20  ;;  %v334_v42 = vld [vmem:[%s7883_s14 + $0x2a0] sm:$0xff]  ;;  %v336_v43 = vld [vmem:[%s7883_s14 + $0x2a8] sm:$0xff] }
  0x25   : > { %293 = vst [vmem:[%s7888_s15 + $0xa8] sm:$0xff] %v292_v21  ;;  %v338_v44 = vld [vmem:[%s7883_s14 + $0x2c0] sm:$0xff]  ;;  %v340_v45 = vld [vmem:[%s7883_s14 + $0x2c8] sm:$0xff] }
  0x26   : > { %295 = vst [vmem:[%s7888_s15 + $0xb0] sm:$0xff] %v294_v22  ;;  %v342_v46 = vld [vmem:[%s7883_s14 + $0x2e0] sm:$0xff]  ;;  %v344_v47 = vld [vmem:[%s7883_s14 + $0x2e8] sm:$0xff] }
  0x27   : > { %297 = vst [vmem:[%s7888_s15 + $0xb8] sm:$0xff] %v296_v23  ;;  %v346_v48 = vld [vmem:[%s7883_s14 + $0x300] sm:$0xff]  ;;  %v348_v49 = vld [vmem:[%s7883_s14 + $0x308] sm:$0xff] }
  0x28   : > { %299 = vst [vmem:[%s7888_s15 + $0xc0] sm:$0xff] %v298_v24  ;;  %v350_v50 = vld [vmem:[%s7883_s14 + $0x320] sm:$0xff]  ;;  %v352_v51 = vld [vmem:[%s7883_s14 + $0x328] sm:$0xff] }
  0x29   : > { %301 = vst [vmem:[%s7888_s15 + $0xc8] sm:$0xff] %v300_v25  ;;  %v354_v52 = vld [vmem:[%s7883_s14 + $0x340] sm:$0xff]  ;;  %v356_v53 = vld [vmem:[%s7883_s14 + $0x348] sm:$0xff] }
  0x2a   : > { %303 = vst [vmem:[%s7888_s15 + $0xd0] sm:$0xff] %v302_v26  ;;  %v358_v54 = vld [vmem:[%s7883_s14 + $0x360] sm:$0xff]  ;;  %v360_v55 = vld [vmem:[%s7883_s14 + $0x368] sm:$0xff] }
  0x2b   : > { %305 = vst [vmem:[%s7888_s15 + $0xd8] sm:$0xff] %v304_v27  ;;  %v362_v56 = vld [vmem:[%s7883_s14 + $0x380] sm:$0xff]  ;;  %v364_v57 = vld [vmem:[%s7883_s14 + $0x388] sm:$0xff] }
  0x2c   : > { %307 = vst [vmem:[%s7888_s15 + $0xe0] sm:$0xff] %v306_v28  ;;  %v366_v58 = vld [vmem:[%s7883_s14 + $0x3a0] sm:$0xff]  ;;  %v368_v59 = vld [vmem:[%s7883_s14 + $0x3a8] sm:$0xff] }
  0x2d   : > { %309 = vst [vmem:[%s7888_s15 + $0xe8] sm:$0xff] %v308_v29  ;;  %v370_v60 = vld [vmem:[%s7883_s14 + $0x3c0] sm:$0xff]  ;;  %v372_v61 = vld [vmem:[%s7883_s14 + $0x3c8] sm:$0xff] }
  0x2e   : > { %311 = vst [vmem:[%s7888_s15 + $0xf0] sm:$0xff] %v310_v30  ;;  %v374_v62 = vld [vmem:[%s7883_s14 + $0x3e0] sm:$0xff]  ;;  %v376_v63 = vld [vmem:[%s7883_s14 + $0x3e8] sm:$0xff] }
  0x2f   : > { %313 = vst [vmem:[%s7888_s15 + $0xf8] sm:$0xff] %v312_v31  ;;  %v378_v0 = vld [vmem:[%s7883_s14 + $0x400] sm:$0xff]  ;;  %v380_v1 = vld [vmem:[%s7883_s14 + $0x408] sm:$0xff] }
  0x30   : > { %315 = vst [vmem:[%s7888_s15 + $0x100] sm:$0xff] %v314_v32  ;;  %v382_v2 = vld [vmem:[%s7883_s14 + $0x420] sm:$0xff]  ;;  %v384_v3 = vld [vmem:[%s7883_s14 + $0x428] sm:$0xff] }
  0x31   : > { %317 = vst [vmem:[%s7888_s15 + $0x108] sm:$0xff] %v316_v33  ;;  %v386_v4 = vld [vmem:[%s7883_s14 + $0x440] sm:$0xff]  ;;  %v388_v5 = vld [vmem:[%s7883_s14 + $0x448] sm:$0xff] }
  0x32   : > { %319 = vst [vmem:[%s7888_s15 + $0x110] sm:$0xff] %v318_v34  ;;  %v390_v6 = vld [vmem:[%s7883_s14 + $0x460] sm:$0xff]  ;;  %v392_v7 = vld [vmem:[%s7883_s14 + $0x468] sm:$0xff] }
  0x33   : > { %321 = vst [vmem:[%s7888_s15 + $0x118] sm:$0xff] %v320_v35  ;;  %v394_v8 = vld [vmem:[%s7883_s14 + $0x480] sm:$0xff]  ;;  %v396_v9 = vld [vmem:[%s7883_s14 + $0x488] sm:$0xff] }
  0x34   : > { %323 = vst [vmem:[%s7888_s15 + $0x120] sm:$0xff] %v322_v36  ;;  %v398_v10 = vld [vmem:[%s7883_s14 + $0x4a0] sm:$0xff]  ;;  %v400_v11 = vld [vmem:[%s7883_s14 + $0x4a8] sm:$0xff] }
  0x35   : > { %325 = vst [vmem:[%s7888_s15 + $0x128] sm:$0xff] %v324_v37  ;;  %v402_v12 = vld [vmem:[%s7883_s14 + $0x4c0] sm:$0xff]  ;;  %v404_v13 = vld [vmem:[%s7883_s14 + $0x4c8] sm:$0xff] }
  0x36   : > { %327 = vst [vmem:[%s7888_s15 + $0x130] sm:$0xff] %v326_v38  ;;  %v406_v14 = vld [vmem:[%s7883_s14 + $0x4e0] sm:$0xff]  ;;  %v408_v15 = vld [vmem:[%s7883_s14 + $0x4e8] sm:$0xff] }
  0x37   : > { %329 = vst [vmem:[%s7888_s15 + $0x138] sm:$0xff] %v328_v39  ;;  %v410_v16 = vld [vmem:[%s7883_s14 + $0x500] sm:$0xff]  ;;  %v412_v17 = vld [vmem:[%s7883_s14 + $0x508] sm:$0xff] }
  0x38   : > { %331 = vst [vmem:[%s7888_s15 + $0x140] sm:$0xff] %v330_v40  ;;  %v414_v18 = vld [vmem:[%s7883_s14 + $0x520] sm:$0xff]  ;;  %v416_v19 = vld [vmem:[%s7883_s14 + $0x528] sm:$0xff] }
  0x39   : > { %333 = vst [vmem:[%s7888_s15 + $0x148] sm:$0xff] %v332_v41  ;;  %v418_v20 = vld [vmem:[%s7883_s14 + $0x540] sm:$0xff]  ;;  %v420_v21 = vld [vmem:[%s7883_s14 + $0x548] sm:$0xff] }
  0x3a   : > { %335 = vst [vmem:[%s7888_s15 + $0x150] sm:$0xff] %v334_v42  ;;  %v422_v22 = vld [vmem:[%s7883_s14 + $0x560] sm:$0xff]  ;;  %v424_v23 = vld [vmem:[%s7883_s14 + $0x568] sm:$0xff] }
  0x3b   : > { %337 = vst [vmem:[%s7888_s15 + $0x158] sm:$0xff] %v336_v43  ;;  %v426_v24 = vld [vmem:[%s7883_s14 + $0x580] sm:$0xff]  ;;  %v428_v25 = vld [vmem:[%s7883_s14 + $0x588] sm:$0xff] }
  0x3c   : > { %339 = vst [vmem:[%s7888_s15 + $0x160] sm:$0xff] %v338_v44  ;;  %v430_v26 = vld [vmem:[%s7883_s14 + $0x5a0] sm:$0xff]  ;;  %v432_v27 = vld [vmem:[%s7883_s14 + $0x5a8] sm:$0xff] }
  0x3d   : > { %341 = vst [vmem:[%s7888_s15 + $0x168] sm:$0xff] %v340_v45  ;;  %v434_v28 = vld [vmem:[%s7883_s14 + $0x5c0] sm:$0xff]  ;;  %v436_v29 = vld [vmem:[%s7883_s14 + $0x5c8] sm:$0xff] }
  0x3e   : > { %343 = vst [vmem:[%s7888_s15 + $0x170] sm:$0xff] %v342_v46  ;;  %v438_v30 = vld [vmem:[%s7883_s14 + $0x5e0] sm:$0xff]  ;;  %v440_v31 = vld [vmem:[%s7883_s14 + $0x5e8] sm:$0xff] }
  0x3f   : > { %345 = vst [vmem:[%s7888_s15 + $0x178] sm:$0xff] %v344_v47  ;;  %v442_v32 = vld [vmem:[%s7883_s14 + $0x600] sm:$0xff]  ;;  %v444_v33 = vld [vmem:[%s7883_s14 + $0x608] sm:$0xff] }
  0x40   : > { %347 = vst [vmem:[%s7888_s15 + $0x180] sm:$0xff] %v346_v48  ;;  %v446_v34 = vld [vmem:[%s7883_s14 + $0x620] sm:$0xff]  ;;  %v448_v35 = vld [vmem:[%s7883_s14 + $0x628] sm:$0xff] }
  0x41   : > { %349 = vst [vmem:[%s7888_s15 + $0x188] sm:$0xff] %v348_v49  ;;  %v450_v36 = vld [vmem:[%s7883_s14 + $0x640] sm:$0xff]  ;;  %v452_v37 = vld [vmem:[%s7883_s14 + $0x648] sm:$0xff] }
  0x42   : > { %351 = vst [vmem:[%s7888_s15 + $0x190] sm:$0xff] %v350_v50  ;;  %v454_v38 = vld [vmem:[%s7883_s14 + $0x660] sm:$0xff]  ;;  %v456_v39 = vld [vmem:[%s7883_s14 + $0x668] sm:$0xff] }
  0x43   : > { %353 = vst [vmem:[%s7888_s15 + $0x198] sm:$0xff] %v352_v51  ;;  %v458_v40 = vld [vmem:[%s7883_s14 + $0x680] sm:$0xff]  ;;  %v460_v41 = vld [vmem:[%s7883_s14 + $0x688] sm:$0xff] }
  0x44   : > { %355 = vst [vmem:[%s7888_s15 + $0x1a0] sm:$0xff] %v354_v52  ;;  %v462_v42 = vld [vmem:[%s7883_s14 + $0x6a0] sm:$0xff]  ;;  %v464_v43 = vld [vmem:[%s7883_s14 + $0x6a8] sm:$0xff] }
  0x45   : > { %357 = vst [vmem:[%s7888_s15 + $0x1a8] sm:$0xff] %v356_v53  ;;  %v466_v44 = vld [vmem:[%s7883_s14 + $0x6c0] sm:$0xff]  ;;  %v468_v45 = vld [vmem:[%s7883_s14 + $0x6c8] sm:$0xff] }
  0x46   : > { %359 = vst [vmem:[%s7888_s15 + $0x1b0] sm:$0xff] %v358_v54  ;;  %v470_v46 = vld [vmem:[%s7883_s14 + $0x6e0] sm:$0xff]  ;;  %v472_v47 = vld [vmem:[%s7883_s14 + $0x6e8] sm:$0xff] }
  0x47   : > { %361 = vst [vmem:[%s7888_s15 + $0x1b8] sm:$0xff] %v360_v55  ;;  %v474_v48 = vld [vmem:[%s7883_s14 + $0x700] sm:$0xff]  ;;  %v476_v49 = vld [vmem:[%s7883_s14 + $0x708] sm:$0xff] }
  0x48   : > { %363 = vst [vmem:[%s7888_s15 + $0x1c0] sm:$0xff] %v362_v56  ;;  %v478_v50 = vld [vmem:[%s7883_s14 + $0x720] sm:$0xff]  ;;  %v480_v51 = vld [vmem:[%s7883_s14 + $0x728] sm:$0xff] }
  0x49   : > { %365 = vst [vmem:[%s7888_s15 + $0x1c8] sm:$0xff] %v364_v57  ;;  %v482_v52 = vld [vmem:[%s7883_s14 + $0x740] sm:$0xff]  ;;  %v484_v53 = vld [vmem:[%s7883_s14 + $0x748] sm:$0xff] }
  0x4a   : > { %367 = vst [vmem:[%s7888_s15 + $0x1d0] sm:$0xff] %v366_v58  ;;  %v486_v54 = vld [vmem:[%s7883_s14 + $0x760] sm:$0xff]  ;;  %v488_v55 = vld [vmem:[%s7883_s14 + $0x768] sm:$0xff] }
  0x4b   : > { %369 = vst [vmem:[%s7888_s15 + $0x1d8] sm:$0xff] %v368_v59  ;;  %v490_v56 = vld [vmem:[%s7883_s14 + $0x780] sm:$0xff]  ;;  %v492_v57 = vld [vmem:[%s7883_s14 + $0x788] sm:$0xff] }
  0x4c   : > { %371 = vst [vmem:[%s7888_s15 + $0x1e0] sm:$0xff] %v370_v60  ;;  %v494_v58 = vld [vmem:[%s7883_s14 + $0x7a0] sm:$0xff]  ;;  %v496_v59 = vld [vmem:[%s7883_s14 + $0x7a8] sm:$0xff] }
  0x4d   : > { %373 = vst [vmem:[%s7888_s15 + $0x1e8] sm:$0xff] %v372_v61  ;;  %v498_v60 = vld [vmem:[%s7883_s14 + $0x7c0] sm:$0xff]  ;;  %v500_v61 = vld [vmem:[%s7883_s14 + $0x7c8] sm:$0xff] }
  0x4e   : > { %375 = vst [vmem:[%s7888_s15 + $0x1f0] sm:$0xff] %v374_v62  ;;  %v502_v62 = vld [vmem:[%s7883_s14 + $0x7e0] sm:$0xff] }
  0x4f   : > { %377 = vst [vmem:[%s7888_s15 + $0x1f8] sm:$0xff] %v376_v63  ;;  %v504_v63 = vld [vmem:[%s7883_s14 + $0x7e8] sm:$0xff] }
  0x50   : > { %379 = vst [vmem:[%s7888_s15 + $0x200] sm:$0xff] %v378_v0 }
  0x51   : > { %381 = vst [vmem:[%s7888_s15 + $0x208] sm:$0xff] %v380_v1 }
  0x52   : > { %383 = vst [vmem:[%s7888_s15 + $0x210] sm:$0xff] %v382_v2 }
  0x53   : > { %385 = vst [vmem:[%s7888_s15 + $0x218] sm:$0xff] %v384_v3 }
  0x54   : > { %387 = vst [vmem:[%s7888_s15 + $0x220] sm:$0xff] %v386_v4 }
  0x55   : > { %389 = vst [vmem:[%s7888_s15 + $0x228] sm:$0xff] %v388_v5 }
  0x56   : > { %391 = vst [vmem:[%s7888_s15 + $0x230] sm:$0xff] %v390_v6 }
  0x57   : > { %393 = vst [vmem:[%s7888_s15 + $0x238] sm:$0xff] %v392_v7 }
  0x58   : > { %395 = vst [vmem:[%s7888_s15 + $0x240] sm:$0xff] %v394_v8 }
  0x59   : > { %397 = vst [vmem:[%s7888_s15 + $0x248] sm:$0xff] %v396_v9 }
  0x5a   : > { %399 = vst [vmem:[%s7888_s15 + $0x250] sm:$0xff] %v398_v10 }
  0x5b   : > { %401 = vst [vmem:[%s7888_s15 + $0x258] sm:$0xff] %v400_v11 }
  0x5c   : > { %403 = vst [vmem:[%s7888_s15 + $0x260] sm:$0xff] %v402_v12 }
  0x5d   : > { %405 = vst [vmem:[%s7888_s15 + $0x268] sm:$0xff] %v404_v13 }
  0x5e   : > { %407 = vst [vmem:[%s7888_s15 + $0x270] sm:$0xff] %v406_v14 }
  0x5f   : > { %409 = vst [vmem:[%s7888_s15 + $0x278] sm:$0xff] %v408_v15 }
  0x60   : > { %411 = vst [vmem:[%s7888_s15 + $0x280] sm:$0xff] %v410_v16 }
  0x61   : > { %413 = vst [vmem:[%s7888_s15 + $0x288] sm:$0xff] %v412_v17 }
  0x62   : > { %415 = vst [vmem:[%s7888_s15 + $0x290] sm:$0xff] %v414_v18 }
  0x63   : > { %417 = vst [vmem:[%s7888_s15 + $0x298] sm:$0xff] %v416_v19 }
  0x64   : > { %419 = vst [vmem:[%s7888_s15 + $0x2a0] sm:$0xff] %v418_v20 }
  0x65   : > { %421 = vst [vmem:[%s7888_s15 + $0x2a8] sm:$0xff] %v420_v21 }
  0x66   : > { %423 = vst [vmem:[%s7888_s15 + $0x2b0] sm:$0xff] %v422_v22 }
  0x67   : > { %425 = vst [vmem:[%s7888_s15 + $0x2b8] sm:$0xff] %v424_v23 }
  0x68   : > { %427 = vst [vmem:[%s7888_s15 + $0x2c0] sm:$0xff] %v426_v24 }
  0x69   : > { %429 = vst [vmem:[%s7888_s15 + $0x2c8] sm:$0xff] %v428_v25 }
  0x6a   : > { %431 = vst [vmem:[%s7888_s15 + $0x2d0] sm:$0xff] %v430_v26 }
  0x6b   : > { %433 = vst [vmem:[%s7888_s15 + $0x2d8] sm:$0xff] %v432_v27 }
  0x6c   : > { %435 = vst [vmem:[%s7888_s15 + $0x2e0] sm:$0xff] %v434_v28 }
  0x6d   : > { %437 = vst [vmem:[%s7888_s15 + $0x2e8] sm:$0xff] %v436_v29 }
  0x6e   : > { %439 = vst [vmem:[%s7888_s15 + $0x2f0] sm:$0xff] %v438_v30 }
  0x6f   : > { %441 = vst [vmem:[%s7888_s15 + $0x2f8] sm:$0xff] %v440_v31 }
  0x70   : > { %443 = vst [vmem:[%s7888_s15 + $0x300] sm:$0xff] %v442_v32 }
  0x71   : > { %445 = vst [vmem:[%s7888_s15 + $0x308] sm:$0xff] %v444_v33 }
  0x72   : > { %447 = vst [vmem:[%s7888_s15 + $0x310] sm:$0xff] %v446_v34 }
  0x73   : > { %449 = vst [vmem:[%s7888_s15 + $0x318] sm:$0xff] %v448_v35 }
  0x74   : > { %451 = vst [vmem:[%s7888_s15 + $0x320] sm:$0xff] %v450_v36 }
  0x75   : > { %453 = vst [vmem:[%s7888_s15 + $0x328] sm:$0xff] %v452_v37 }
  0x76   : > { %455 = vst [vmem:[%s7888_s15 + $0x330] sm:$0xff] %v454_v38 }
  0x77   : > { %457 = vst [vmem:[%s7888_s15 + $0x338] sm:$0xff] %v456_v39 }
  0x78   : > { %459 = vst [vmem:[%s7888_s15 + $0x340] sm:$0xff] %v458_v40 }
  0x79   : > { %461 = vst [vmem:[%s7888_s15 + $0x348] sm:$0xff] %v460_v41 }
  0x7a   : > { %463 = vst [vmem:[%s7888_s15 + $0x350] sm:$0xff] %v462_v42 }
  0x7b   : > { %465 = vst [vmem:[%s7888_s15 + $0x358] sm:$0xff] %v464_v43 }
  0x7c   : > { %467 = vst [vmem:[%s7888_s15 + $0x360] sm:$0xff] %v466_v44 }
  0x7d   : > { %469 = vst [vmem:[%s7888_s15 + $0x368] sm:$0xff] %v468_v45 }
  0x7e   : > { %471 = vst [vmem:[%s7888_s15 + $0x370] sm:$0xff] %v470_v46 }
  0x7f   : > { %473 = vst [vmem:[%s7888_s15 + $0x378] sm:$0xff] %v472_v47 }
  0x80   : > { %475 = vst [vmem:[%s7888_s15 + $0x380] sm:$0xff] %v474_v48 }
  0x81   : > { %477 = vst [vmem:[%s7888_s15 + $0x388] sm:$0xff] %v476_v49 }
  0x82   : > { %479 = vst [vmem:[%s7888_s15 + $0x390] sm:$0xff] %v478_v50 }
  0x83   : > { %481 = vst [vmem:[%s7888_s15 + $0x398] sm:$0xff] %v480_v51 }
  0x84   : > { %483 = vst [vmem:[%s7888_s15 + $0x3a0] sm:$0xff] %v482_v52 }
  0x85   : > { %485 = vst [vmem:[%s7888_s15 + $0x3a8] sm:$0xff] %v484_v53 }
  0x86   : > { %487 = vst [vmem:[%s7888_s15 + $0x3b0] sm:$0xff] %v486_v54 }
  0x87   : > { %489 = vst [vmem:[%s7888_s15 + $0x3b8] sm:$0xff] %v488_v55 }
  0x88   : > { %491 = vst [vmem:[%s7888_s15 + $0x3c0] sm:$0xff] %v490_v56 }
  0x89   : > { %493 = vst [vmem:[%s7888_s15 + $0x3c8] sm:$0xff] %v492_v57 }
  0x8a   : > { %495 = vst [vmem:[%s7888_s15 + $0x3d0] sm:$0xff] %v494_v58 }
  0x8b   : > { %497 = vst [vmem:[%s7888_s15 + $0x3d8] sm:$0xff] %v496_v59 }
  0x8c   : > { %499 = vst [vmem:[%s7888_s15 + $0x3e0] sm:$0xff] %v498_v60 }
  0x8d   : > { %501 = vst [vmem:[%s7888_s15 + $0x3e8] sm:$0xff] %v500_v61 }
  0x8e   : > { %503 = vst [vmem:[%s7888_s15 + $0x3f0] sm:$0xff] %v502_v62 }
  0x8f   : > { %505 = vst [vmem:[%s7888_s15 + $0x3f8] sm:$0xff] %v504_v63 }
  0x90 PF: > { %p5434_p5 = scmp.ge.s32.totalorder %s7807_s26, 1  ;;  %p510_p6 = scmp.lt.s32.totalorder %s7807_s26, 3 }
  0x92   : > { %p511_p7 = pnand %p5434_p5, %p510_p6 }
  0x94   : > { %514 = sbr.rel (%p511_p7) target bundleno = 1503 (0x5df), region = 67 }
  0x99   : > { %v8148_v0 = vld [vmem:[%s10742_s1 + $0x38] sm:$0xff]  ;;  %v8168_v5 = vld [vmem:[%s10742_s1 + $0x30] sm:$0xff]  ;;  %vm1013_vm0 = vcmask 1041408   ;;  %v8189_v10 = vld [vmem:[%s10742_s1 + $0x28] sm:$0xff]  ;;  %s517_s20 = sand.u32 1, %s7799_s24   ;;  %vm988_vm1 = vcmask 949248  }
  0x9a   : > { %v8153_v1 = vld [vmem:[%s10742_s1 + $0x78] sm:$0xff]  ;;  %1017 = vmatpush.bf16.msra.mxu0 %v8148_v0  ;;  %v8173_v6 = vld [vmem:[%s10742_s1 + $0x70] sm:$0xff]  ;;  %v8194_v11 = vld [vmem:[%s10742_s1 + $0x68] sm:$0xff]  ;;  %s5435_s11 = sshll.u32 %s517_s20, 10  ;;  %vm2631_vm2 = vcmask 1040384   ;;  %vm2627_vm3 = vcmask 408576  }
  0x9b   : > { %v8158_v2 = vld [vmem:[%s10742_s1 + $0xb8] sm:$0xff]  ;;  %1066 = vmatpush.bf16.msra.mxu1 %v8153_v1  ;;  %v8179_v7 = vld [vmem:[%s10742_s1 + $0xb0] sm:$0xff]  ;;  %v8206_v13 = vld [vmem:[%s10742_s1 + $0xa8] sm:$0xff]  ;;  %s8320_s24 = scalar_lea.vmem [#allocation2], %s5435_s11  ;;  %vm5353_vm4 = vcmask 80896   ;;  %p547_p8 = scmp.lt.s32.totalorder %s5427_s27, 1 }
  0x9c   : > { %v614_v3 = vld [vmem:[%s10742_s1 + $0xf8] sm:$0x3]  ;;  %1115 = vmatpush.bf16.msra.mxu2 %v8158_v2  ;;  %v8201_v12 = vld [vmem:[%s10742_s1 + $0xf0] sm:$0xff]  ;;  %v8213_v14 = vld [vmem:[%s10742_s1 + $0x20] sm:$0xff] }
  0x9d   : > { %v924_v4 = vunpack.c.l.b16 %v614_v3  ;;  %v8218_v15 = vld [vmem:[%s10742_s1 + $0x60] sm:$0xff]  ;;  %v8225_v16 = vld [vmem:[%s10742_s1 + $0xe8] sm:$0xff]  ;;  %v8235_v18 = vld [vmem:[%s10742_s1 + $0x18] sm:$0xff]  ;;  %s10801_s27 = smov (!%p547_p8, %s5427_s27), 1 }
  0x9e   : > { %1018 = vmatpush.bf16.msra.mxu0 %v8168_v5  ;;  %v8230_v17 = vld [vmem:[%s10742_s1 + $0xa0] sm:$0xff]  ;;  %v8242_v19 = vld [vmem:[%s10742_s1 + $0x58] sm:$0xff]  ;;  %v8262_v22 = vld [vmem:[%s10742_s1 + $0x10] sm:$0xff]  ;;  %s5436_s21 = sshll.u32 %s10801_s27, 3 }
  0x9f   : > { %v956_v8 = vpack.c.b16 %v924_v4, %v924_v4  ;;  %1067 = vmatpush.bf16.msra.mxu1 %v8173_v6  ;;  %v8249_v20 = vld [vmem:[%s10742_s1 + $0xe0] sm:$0xff]  ;;  %v8254_v21 = vld [vmem:[%s10742_s1 + $0x98] sm:$0xff]  ;;  %v8267_v23 = vld [vmem:[%s10742_s1 + $0x50] sm:$0xff]  ;;  %s550_s29 = scalar_lea.vmem %s10748_s7, %s5436_s21 }
  0xa0   : > { %1116 = vmatpush.bf16.msra.mxu2 %v8179_v7  ;;  %v8274_v24 = vld [vmem:[%s10742_s1 + $0xd8] sm:$0xff]  ;;  %v8279_v25 = vld [vmem:[%s10742_s1 + $0x90] sm:$0xff]  ;;  %v8286_v26 = vld [vmem:[%s10742_s1 + $0x8] sm:$0xff] }
  0xa1   : > { %v8182_v9 = vsel %vm1013_vm0, %v956_v8, 0  ;;  %v8291_v27 = vld [vmem:[%s10742_s1 + $0x48] sm:$0xff]  ;;  %v8298_v28 = vld [vmem:[%s10742_s1 + $0xd0] sm:$0xff]  ;;  %v8313_v31 = vld [vmem:[%s10742_s1] sm:$0xff] }
  0xa2   : > { %1164 = vmatpush.bf16.msra.mxu3 %v8182_v9  ;;  %1019 = vmatpush.bf16.msra.mxu0 %v8189_v10  ;;  %v8303_v29 = vld [vmem:[%s10742_s1 + $0x88] sm:$0xff]  ;;  %v8318_v32 = vld [vmem:[%s10742_s1 + $0x40] sm:$0xff]  ;;  %v7404_v34 = vld [vmem:[%s8320_s24 + $0xc] sm:$0xf0] }
  0xa3   : > { %1068 = vmatpush.bf16.msra.mxu1 %v8194_v11  ;;  %v8308_v30 = vld [vmem:[%s10742_s1 + $0xc8] sm:$0xff]  ;;  %v5439_v33 = vld [vmem:[%s8320_s24] sm:$0xf]  ;;  %v7402_v35 = vld [vmem:[%s8320_s24 + $0x4] sm:$0xf] }
  0xa4   : > { %1117 = vmatpush.bf16.msra.mxu2 %v8206_v13  ;;  %v5441_v36 = vld [vmem:[%s8320_s24 + $0x10] sm:$0xf0]  ;;  %v8333_v37 = vld [vmem:[%s10742_s1 + $0x80] sm:$0xff]  ;;  %v5447_v38 = vld [vmem:[%s8320_s24 + $0x8] sm:$0xf]  ;;  %v5440_v40 = vor.u32 %v7404_v34, %v5439_v33 }
  0xa5   : > { %v7405_v39 = vld [vmem:[%s8320_s24 + $0x14] sm:$0xf0]  ;;  %v5444_v41 = vor.u32 %v7402_v35, %v5441_v36  ;;  %v8344_v43 = vld [vmem:[%s10742_s1 + $0xc0] sm:$0xff]  ;;  %v7403_v44 = vld [vmem:[%s8320_s24 + $0xc] sm:$0xf] }
  0xa6   : > { %1165 = vmatpush.bf16.msra.mxu3 %v8201_v12  ;;  %1020 = vmatpush.bf16.msra.mxu0 %v8213_v14  ;;  %v5448_v42 = vor.u32 %v7405_v39, %v5447_v38  ;;  %v5449_v45 = vld [vmem:[%s8320_s24 + $0x18] sm:$0xf0]  ;;  %v5455_v47 = vld [vmem:[%s8320_s24 + $0x20] sm:$0xf]  ;;  %v7408_v48 = vld [vmem:[%s8320_s24 + $0x2c] sm:$0xf0] }
  0xa7   : > { %1069 = vmatpush.bf16.msra.mxu1 %v8218_v15  ;;  %v5452_v46 = vor.u32 %v7403_v44, %v5449_v45  ;;  %v7406_v49 = vld [vmem:[%s8320_s24 + $0x24] sm:$0xf]  ;;  %v5457_v50 = vld [vmem:[%s8320_s24 + $0x30] sm:$0xf0]  ;;  %v5463_v51 = vld [vmem:[%s8320_s24 + $0x28] sm:$0xf]  ;;  %v5456_v53 = vor.u32 %v7408_v48, %v5455_v47 }
  0xa8   : > { %1118 = vmatpush.bf16.msra.mxu2 %v8230_v17  ;;  %v7409_v52 = vld [vmem:[%s8320_s24 + $0x34] sm:$0xf0]  ;;  %v5460_v54 = vor.u32 %v7406_v49, %v5457_v50  ;;  %v7407_v56 = vld [vmem:[%s8320_s24 + $0x2c] sm:$0xf]  ;;  %v5465_v57 = vld [vmem:[%s8320_s24 + $0x38] sm:$0xf0] }
  0xa9   : > { %v5464_v55 = vor.u32 %v7409_v52, %v5463_v51  ;;  %v5468_v58 = vor.u32 %v7407_v56, %v5465_v57  ;;  %v5471_v59 = vld [vmem:[%s8320_s24 + $0x40] sm:$0xf]  ;;  %v7412_v60 = vld [vmem:[%s8320_s24 + $0x4c] sm:$0xf0]  ;;  %v7410_v61 = vld [vmem:[%s8320_s24 + $0x44] sm:$0xf] }
  0xaa   : > { %1166 = vmatpush.bf16.msra.mxu3 %v8225_v16  ;;  %1021 = vmatpush.bf16.msra.mxu0 %v8235_v18  ;;  %v5473_v62 = vld [vmem:[%s8320_s24 + $0x50] sm:$0xf0]  ;;  %v5479_v63 = vld [vmem:[%s8320_s24 + $0x48] sm:$0xf]  ;;  %v7413_v3 = vld [vmem:[%s8320_s24 + $0x54] sm:$0xf0]  ;;  %v5472_v4 = vor.u32 %v7412_v60, %v5471_v59 }
  0xab   : > { %1070 = vmatpush.bf16.msra.mxu1 %v8242_v19  ;;  %v5476_v8 = vor.u32 %v7410_v61, %v5473_v62  ;;  %v5480_v33 = vor.u32 %v7413_v3, %v5479_v63  ;;  %v7411_v34 = vld [vmem:[%s8320_s24 + $0x4c] sm:$0xf]  ;;  %v5481_v35 = vld [vmem:[%s8320_s24 + $0x58] sm:$0xf0]  ;;  %v5487_v38 = vld [vmem:[%s8320_s24 + $0x60] sm:$0xf] }
  0xac   : > { %1119 = vmatpush.bf16.msra.mxu2 %v8254_v21  ;;  %v5484_v36 = vor.u32 %v7411_v34, %v5481_v35  ;;  %v7416_v39 = vld [vmem:[%s8320_s24 + $0x6c] sm:$0xf0]  ;;  %v7417_v44 = vld [vmem:[%s8320_s24 + $0x74] sm:$0xf0]  ;;  %v7415_v48 = vld [vmem:[%s8320_s24 + $0x6c] sm:$0xf] }
  0xad   : > { %v5488_v45 = vor.u32 %v7416_v39, %v5487_v38  ;;  %v5497_v49 = vld [vmem:[%s8320_s24 + $0x78] sm:$0xf0]  ;;  %v5503_v51 = vld [vmem:[%s8320_s24 + $0x80] sm:$0xf]  ;;  %v7420_v52 = vld [vmem:[%s8320_s24 + $0x8c] sm:$0xf0] }
  0xae   : > { %1167 = vmatpush.bf16.msra.mxu3 %v8249_v20  ;;  %1022 = vmatpush.bf16.msra.mxu0 %v8262_v22  ;;  %v5500_v50 = vor.u32 %v7415_v48, %v5497_v49  ;;  %v7421_v56 = vld [vmem:[%s8320_s24 + $0x94] sm:$0xf0]  ;;  %v5504_v57 = vor.u32 %v7420_v52, %v5503_v51  ;;  %v7419_v60 = vld [vmem:[%s8320_s24 + $0x8c] sm:$0xf]  ;;  %v5513_v61 = vld [vmem:[%s8320_s24 + $0x98] sm:$0xf0] }
  0xaf   : > { %1071 = vmatpush.bf16.msra.mxu1 %v8267_v23  ;;  %v5516_v62 = vor.u32 %v7419_v60, %v5513_v61  ;;  %v5519_v63 = vld [vmem:[%s8320_s24 + $0xa0] sm:$0xf]  ;;  %v7424_v3 = vld [vmem:[%s8320_s24 + $0xac] sm:$0xf0]  ;;  %v7425_v34 = vld [vmem:[%s8320_s24 + $0xb4] sm:$0xf0] }
  0xb0   : > { %1120 = vmatpush.bf16.msra.mxu2 %v8279_v25  ;;  %v5520_v35 = vor.u32 %v7424_v3, %v5519_v63  ;;  %v7423_v39 = vld [vmem:[%s8320_s24 + $0xac] sm:$0xf]  ;;  %v7429_v48 = vld [vmem:[%s8320_s24 + $0xd4] sm:$0xf0] }
  0xb1   : > { %v7427_v52 = vld [vmem:[%s8320_s24 + $0xcc] sm:$0xf]  ;;  %v7433_v60 = vld [vmem:[%s8320_s24 + $0xf4] sm:$0xf0] }
  0xb2   : > { %1168 = vmatpush.bf16.msra.mxu3 %v8274_v24  ;;  %1023 = vmatpush.bf16.msra.mxu0 %v8286_v26  ;;  %v7431_v3 = vld [vmem:[%s8320_s24 + $0xec] sm:$0xf] }
  0xb3   : > { %1072 = vmatpush.bf16.msra.mxu1 %v8291_v27 }
  0xb4   : > { %1121 = vmatpush.bf16.msra.mxu2 %v8303_v29 }
  0xb6   : > { %1169 = vmatpush.bf16.msra.mxu3 %v8298_v28  ;;  %1024 = vmatpush.bf16.msra.mxu0 %v8313_v31 }
  0xb7   : > { %1073 = vmatpush.bf16.msra.mxu1 %v8318_v32 }
  0xb8   : > { %1122 = vmatpush.bf16.msra.mxu2 %v8333_v37 }
  0xb9   : > { %1025 = vmatmul.bf16.vlgmr.msra.gmra.mxu0 %v5440_v40  ;;  %v7414_v40 = vld [vmem:[%s8320_s24 + $0x64] sm:$0xf] }
  0xba   : > { %1170 = vmatpush.bf16.msra.mxu3 %v8308_v30  ;;  %1422 = vmatpush.bf16.msrb.mxu0 %v8148_v0 }
  0xbb   : > { %1074 = vmatmul.bf16.vlgmr.msra.gmra.mxu1 %v5444_v41  ;;  %1123 = vmatmul.bf16.vlgmr.msra.gmra.mxu2 %v5448_v42  ;;  %v5489_v41 = vld [vmem:[%s8320_s24 + $0x70] sm:$0xf0]  ;;  %v5495_v42 = vld [vmem:[%s8320_s24 + $0x68] sm:$0xf] }
  0xbc   : > { %1520 = vmatpush.bf16.msrb.mxu2 %v8158_v2  ;;  %1471 = vmatpush.bf16.msrb.mxu1 %v8153_v1  ;;  %v5496_v47 = vor.u32 %v7417_v44, %v5495_v42  ;;  %v5535_v42 = vld [vmem:[%s8320_s24 + $0xc0] sm:$0xf]  ;;  %v7428_v44 = vld [vmem:[%s8320_s24 + $0xcc] sm:$0xf0] }
  0xbd   : > { %v5536_v49 = vor.u32 %v7428_v44, %v5535_v42 }
  0xbe   : > { %1171 = vmatpush.bf16.msra.mxu3 %v8344_v43  ;;  %1423 = vmatpush.bf16.msrb.mxu0 %v8168_v5 }
  0xc0   : > { %1521 = vmatpush.bf16.msrb.mxu2 %v8179_v7  ;;  %1472 = vmatpush.bf16.msrb.mxu1 %v8173_v6 }
  0xc1   : > { %5689 = vmatmul.msk.bf16.vlgmr.msra.gmra.mxu3 %vm988_vm1, %v5452_v46  ;;  %v5492_v46 = vor.u32 %v7414_v40, %v5489_v41  ;;  %v5529_v40 = vld [vmem:[%s8320_s24 + $0xb8] sm:$0xf0] }
  0xc2   : > { %1569 = vmatpush.bf16.msrb.mxu3 %v8182_v9  ;;  %1424 = vmatpush.bf16.msrb.mxu0 %v8189_v10  ;;  %v5532_v41 = vor.u32 %v7423_v39, %v5529_v40  ;;  %v7437_v39 = vld [vmem:[%s8320_s24 + $0x114] sm:$0xf0] }
  0xc4   : > { %1522 = vmatpush.bf16.msrb.mxu2 %v8206_v13  ;;  %1473 = vmatpush.bf16.msrb.mxu1 %v8194_v11 }
  0xc6   : > { %1570 = vmatpush.bf16.msrb.mxu3 %v8201_v12  ;;  %1425 = vmatpush.bf16.msrb.mxu0 %v8213_v14 }
  0xc8   : > { %1523 = vmatpush.bf16.msrb.mxu2 %v8230_v17  ;;  %1474 = vmatpush.bf16.msrb.mxu1 %v8218_v15 }
  0xc9   : > { %1030 = vmatmul.bf16.gmra.mxu0 %v5456_v53  ;;  %v7418_v53 = vld [vmem:[%s8320_s24 + $0x84] sm:$0xf] }
  0xca   : > { %1571 = vmatpush.bf16.msrb.mxu3 %v8225_v16  ;;  %1426 = vmatpush.bf16.msrb.mxu0 %v8235_v18 }
  0xcb   : > { %1079 = vmatmul.bf16.gmra.mxu1 %v5460_v54  ;;  %1128 = vmatmul.bf16.gmra.mxu2 %v5464_v55  ;;  %v5505_v54 = vld [vmem:[%s8320_s24 + $0x90] sm:$0xf0]  ;;  %v5511_v55 = vld [vmem:[%s8320_s24 + $0x88] sm:$0xf] }
  0xcc   : > { %1524 = vmatpush.bf16.msrb.mxu2 %v8254_v21  ;;  %1475 = vmatpush.bf16.msrb.mxu1 %v8242_v19  ;;  %v5512_v59 = vor.u32 %v7421_v56, %v5511_v55  ;;  %v5551_v55 = vld [vmem:[%s8320_s24 + $0xe0] sm:$0xf]  ;;  %v7432_v56 = vld [vmem:[%s8320_s24 + $0xec] sm:$0xf0] }
  0xcd   : > { %v5552_v61 = vor.u32 %v7432_v56, %v5551_v55  ;;  %v7440_v55 = vld [vmem:[%s8320_s24 + $0x12c] sm:$0xf0]  ;;  %v7438_v56 = vld [vmem:[%s8320_s24 + $0x124] sm:$0xf] }
  0xce   : > { %1572 = vmatpush.bf16.msrb.mxu3 %v8249_v20  ;;  %1427 = vmatpush.bf16.msrb.mxu0 %v8262_v22 }
  0xd0   : > { %1525 = vmatpush.bf16.msrb.mxu2 %v8279_v25  ;;  %1476 = vmatpush.bf16.msrb.mxu1 %v8267_v23 }
  0xd1   : > { %5690 = vmatmul.msk.bf16.gmra.mxu3 %vm988_vm1, %v5468_v58  ;;  %v5508_v58 = vor.u32 %v7418_v53, %v5505_v54  ;;  %v5545_v53 = vld [vmem:[%s8320_s24 + $0xd8] sm:$0xf0] }
  0xd2   : > { %1573 = vmatpush.bf16.msrb.mxu3 %v8274_v24  ;;  %1428 = vmatpush.bf16.msrb.mxu0 %v8286_v26  ;;  %v5548_v54 = vor.u32 %v7427_v52, %v5545_v53 }
  0xd4   : > { %1526 = vmatpush.bf16.msrb.mxu2 %v8303_v29  ;;  %1477 = vmatpush.bf16.msrb.mxu1 %v8291_v27 }
  0xd6   : > { %1574 = vmatpush.bf16.msrb.mxu3 %v8298_v28  ;;  %1429 = vmatpush.bf16.msrb.mxu0 %v8313_v31 }
  0xd8   : > { %1527 = vmatpush.bf16.msrb.mxu2 %v8333_v37  ;;  %1478 = vmatpush.bf16.msrb.mxu1 %v8318_v32 }
  0xd9   : > { %1035 = vmatmul.bf16.gmra.mxu0 %v5472_v4  ;;  %v7422_v4 = vld [vmem:[%s8320_s24 + $0xa4] sm:$0xf] }
  0xda   : > { %1575 = vmatpush.bf16.msrb.mxu3 %v8308_v30  ;;  %1843 = vmatpush.bf16.msra.mxu0 %v8148_v0 }
  0xdb   : > { %1084 = vmatmul.bf16.gmra.mxu1 %v5476_v8  ;;  %1133 = vmatmul.bf16.gmra.mxu2 %v5480_v33  ;;  %v5521_v8 = vld [vmem:[%s8320_s24 + $0xb0] sm:$0xf0]  ;;  %v5527_v33 = vld [vmem:[%s8320_s24 + $0xa8] sm:$0xf] }
  0xdc   : > { %1941 = vmatpush.bf16.msra.mxu2 %v8158_v2  ;;  %1892 = vmatpush.bf16.msra.mxu1 %v8153_v1  ;;  %v5528_v38 = vor.u32 %v7425_v34, %v5527_v33  ;;  %v5731_v33 = vld [vmem:[%s8320_s24 + $0x100] sm:$0xf]  ;;  %v7436_v34 = vld [vmem:[%s8320_s24 + $0x10c] sm:$0xf0] }
  0xdd   : > { %v5732_v40 = vor.u32 %v7436_v34, %v5731_v33  ;;  %v5765_v33 = vld [vmem:[%s8320_s24 + $0x150] sm:$0xf0]  ;;  %v5771_v34 = vld [vmem:[%s8320_s24 + $0x148] sm:$0xf] }
  0xde   : > { %1576 = vmatpush.bf16.msrb.mxu3 %v8344_v43  ;;  %1844 = vmatpush.bf16.msra.mxu0 %v8168_v5 }
  0xe0   : > { %1942 = vmatpush.bf16.msra.mxu2 %v8179_v7  ;;  %1893 = vmatpush.bf16.msra.mxu1 %v8173_v6 }
  0xe1   : > { %5691 = vmatmul.msk.bf16.gmra.mxu3 %vm988_vm1, %v5484_v36  ;;  %v5524_v36 = vor.u32 %v7422_v4, %v5521_v8  ;;  %v5561_v4 = vld [vmem:[%s8320_s24 + $0xf8] sm:$0xf0] }
  0xe2   : > { %1990 = vmatpush.bf16.msra.mxu3 %v8182_v9  ;;  %1845 = vmatpush.bf16.msra.mxu0 %v8189_v10  ;;  %v5564_v8 = vor.u32 %v7431_v3, %v5561_v4  ;;  %v5757_v3 = vld [vmem:[%s8320_s24 + $0x138] sm:$0xf0]  ;;  %v7444_v4 = vld [vmem:[%s8320_s24 + $0x14c] sm:$0xf0] }
  0xe4   : > { %1943 = vmatpush.bf16.msra.mxu2 %v8206_v13  ;;  %1894 = vmatpush.bf16.msra.mxu1 %v8194_v11 }
  0xe6   : > { %1991 = vmatpush.bf16.msra.mxu3 %v8201_v12  ;;  %1846 = vmatpush.bf16.msra.mxu0 %v8213_v14 }
  0xe8   : > { %1944 = vmatpush.bf16.msra.mxu2 %v8230_v17  ;;  %1895 = vmatpush.bf16.msra.mxu1 %v8218_v15 }
  0xe9   : > { %1040 = vmatmul.bf16.gmra.mxu0 %v5488_v45  ;;  %v7426_v45 = vld [vmem:[%s8320_s24 + $0xc4] sm:$0xf] }
  0xea   : > { %1992 = vmatpush.bf16.msra.mxu3 %v8225_v16  ;;  %1847 = vmatpush.bf16.msra.mxu0 %v8235_v18 }
  0xeb   : > { %1089 = vmatmul.bf16.gmra.mxu1 %v5492_v46  ;;  %1138 = vmatmul.bf16.gmra.mxu2 %v5496_v47  ;;  %v5537_v46 = vld [vmem:[%s8320_s24 + $0xd0] sm:$0xf0]  ;;  %v5543_v47 = vld [vmem:[%s8320_s24 + $0xc8] sm:$0xf] }
  0xec   : > { %1945 = vmatpush.bf16.msra.mxu2 %v8254_v21  ;;  %1896 = vmatpush.bf16.msra.mxu1 %v8242_v19  ;;  %v5544_v51 = vor.u32 %v7429_v48, %v5543_v47  ;;  %v7435_v47 = vld [vmem:[%s8320_s24 + $0x10c] sm:$0xf]  ;;  %v5741_v48 = vld [vmem:[%s8320_s24 + $0x118] sm:$0xf0] }
  0xee   : > { %1993 = vmatpush.bf16.msra.mxu3 %v8249_v20  ;;  %1848 = vmatpush.bf16.msra.mxu0 %v8262_v22 }
  0xf0   : > { %1946 = vmatpush.bf16.msra.mxu2 %v8279_v25  ;;  %1897 = vmatpush.bf16.msra.mxu1 %v8267_v23 }
  0xf1   : > { %5692 = vmatmul.msk.bf16.gmra.mxu3 %vm988_vm1, %v5500_v50  ;;  %v5540_v50 = vor.u32 %v7426_v45, %v5537_v46 }
  0xf2   : > { %1994 = vmatpush.bf16.msra.mxu3 %v8274_v24  ;;  %1849 = vmatpush.bf16.msra.mxu0 %v8286_v26 }
  0xf4   : > { %1947 = vmatpush.bf16.msra.mxu2 %v8303_v29  ;;  %1898 = vmatpush.bf16.msra.mxu1 %v8291_v27 }
  0xf6   : > { %1995 = vmatpush.bf16.msra.mxu3 %v8298_v28  ;;  %1850 = vmatpush.bf16.msra.mxu0 %v8313_v31 }
  0xf8   : > { %1948 = vmatpush.bf16.msra.mxu2 %v8333_v37  ;;  %1899 = vmatpush.bf16.msra.mxu1 %v8318_v32 }
  0xf9   : > { %1045 = vmatmul.bf16.gmra.mxu0 %v5504_v57  ;;  %v7430_v57 = vld [vmem:[%s8320_s24 + $0xe4] sm:$0xf] }
  0xfa   : > { %1996 = vmatpush.bf16.msra.mxu3 %v8308_v30 }
  0xfb   : > { %1094 = vmatmul.bf16.gmra.mxu1 %v5508_v58  ;;  %1143 = vmatmul.bf16.gmra.mxu2 %v5512_v59  ;;  %v5553_v58 = vld [vmem:[%s8320_s24 + $0xf0] sm:$0xf0]  ;;  %v5559_v59 = vld [vmem:[%s8320_s24 + $0xe8] sm:$0xf] }
  0xfc   : > { %v5560_v63 = vor.u32 %v7433_v60, %v5559_v59 }
  0xfe   : > { %1997 = vmatpush.bf16.msra.mxu3 %v8344_v43 }
 0x101   : > { %5693 = vmatmul.msk.bf16.gmra.mxu3 %vm988_vm1, %v5516_v62  ;;  %v5556_v62 = vor.u32 %v7430_v57, %v5553_v58  ;;  %v5749_v57 = vld [vmem:[%s8320_s24 + $0x130] sm:$0xf0]  ;;  %v5755_v58 = vld [vmem:[%s8320_s24 + $0x128] sm:$0xf] }
 0x109   : > { %1050 = vmatmul.bf16.gmra.mxu0 %v5520_v35  ;;  %v7434_v35 = vld [vmem:[%s8320_s24 + $0x104] sm:$0xf] }
 0x10b   : > { %1099 = vmatmul.bf16.gmra.mxu1 %v5524_v36  ;;  %1148 = vmatmul.bf16.gmra.mxu2 %v5528_v38  ;;  %v5733_v36 = vld [vmem:[%s8320_s24 + $0x110] sm:$0xf0]  ;;  %v5739_v38 = vld [vmem:[%s8320_s24 + $0x108] sm:$0xf] }
 0x10c   : > { %v5740_v45 = vor.u32 %v7437_v39, %v5739_v38 }
 0x111   : > { %5694 = vmatmul.msk.bf16.gmra.mxu3 %vm988_vm1, %v5532_v41  ;;  %v5736_v41 = vor.u32 %v7434_v35, %v5733_v36 }
 0x119   : > { %1055 = vmatmul.bf16.gmra.mxu0 %v5536_v49  ;;  %v5744_v49 = vor.u32 %v7435_v47, %v5741_v48  ;;  %v7448_v47 = vld [vmem:[%s8320_s24 + $0x16c] sm:$0xf0]  ;;  %v7446_v48 = vld [vmem:[%s8320_s24 + $0x164] sm:$0xf] }
 0x11b   : > { %1104 = vmatmul.bf16.gmra.mxu1 %v5540_v50  ;;  %1153 = vmatmul.bf16.gmra.mxu2 %v5544_v51 }
 0x121   : > { %5695 = vmatmul.msk.bf16.gmra.mxu3 %vm988_vm1, %v5548_v54 }
 0x129   : > { %1060 = vmatmul.bf16.gmra.mxu0 %v5552_v61 }
 0x12b   : > { %1109 = vmatmul.bf16.gmra.mxu1 %v5556_v62  ;;  %1158 = vmatmul.bf16.gmra.mxu2 %v5560_v63 }
 0x131   : > { %5696 = vmatmul.msk.bf16.gmra.mxu3 %vm988_vm1, %v5564_v8  ;;  %v7442_v8 = vld [vmem:[%s8320_s24 + $0x144] sm:$0xf] }
 0x136   : > { %v1026_v42 = vpop.f32.mrf.mxu0 }
 0x138   : > { %v1075_v44 = vpop.f32.mrf.mxu1 }
 0x139   : > { %v1076_v46 = vadd.f32 %v1075_v44, %v1026_v42  ;;  %1430 = vmatmul.bf16.vlgmr.msrb.gmra.mxu0 %v5732_v40 }
 0x13a   : > { %2264 = vmatpush.bf16.msrb.mxu0 %v8148_v0 }
 0x13b   : > { %1479 = vmatmul.bf16.vlgmr.msrb.gmra.mxu1 %v5736_v41  ;;  %1528 = vmatmul.bf16.vlgmr.msrb.gmra.mxu2 %v5740_v45  ;;  %v5773_v41 = vld [vmem:[%s8320_s24 + $0x158] sm:$0xf0]  ;;  %v5779_v45 = vld [vmem:[%s8320_s24 + $0x160] sm:$0xf] }
 0x13c   : > { %2362 = vmatpush.bf16.msrb.mxu2 %v8158_v2  ;;  %2313 = vmatpush.bf16.msrb.mxu1 %v8153_v1  ;;  %v5747_v1 = vld [vmem:[%s8320_s24 + $0x120] sm:$0xf] }
 0x13e   : > { %v1124_v50 = vpop.f32.mrf.mxu2  ;;  %v1028_v52 = vpop.f32.mrf.mxu0  ;;  %2265 = vmatpush.bf16.msrb.mxu0 %v8168_v5  ;;  %v7441_v5 = vld [vmem:[%s8320_s24 + $0x134] sm:$0xf0] }
 0x13f   : > { %v1125_v51 = vadd.f32 %v1124_v50, %v1076_v46  ;;  %v5756_v62 = vor.u32 %v7441_v5, %v5755_v58  ;;  %v5787_v50 = vld [vmem:[%s8320_s24 + $0x168] sm:$0xf]  ;;  %v5789_v58 = vld [vmem:[%s8320_s24 + $0x178] sm:$0xf0] }
 0x140   : > { %v1077_v53 = vpop.f32.mrf.mxu1  ;;  %2363 = vmatpush.bf16.msrb.mxu2 %v8179_v7  ;;  %2314 = vmatpush.bf16.msrb.mxu1 %v8173_v6  ;;  %v5748_v7 = vor.u32 %v7440_v55, %v5747_v1 }
 0x141   : > { %5857 = vmatmul.msk.bf16.vlgmr.msrb.gmra.mxu3 %vm988_vm1, %v5744_v49  ;;  %v1078_v54 = vadd.f32 %v1077_v53, %v1028_v52  ;;  %v5781_v49 = vld [vmem:[%s8320_s24 + $0x170] sm:$0xf0] }
 0x142   : > { %2411 = vmatpush.bf16.msrb.mxu3 %v8182_v9  ;;  %2266 = vmatpush.bf16.msrb.mxu0 %v8189_v10  ;;  %v5752_v9 = vor.u32 %v7438_v56, %v5749_v57  ;;  %v7439_v10 = vld [vmem:[%s8320_s24 + $0x12c] sm:$0xf]  ;;  %v5784_v53 = vor.u32 %v7446_v48, %v5781_v49 }
 0x143   : > { %v7447_v57 = vld [vmem:[%s8320_s24 + $0x16c] sm:$0xf] }
 0x144   : > { %v1173_v0 = vpop.f32.mrf.mxu3  ;;  %2364 = vmatpush.bf16.msrb.mxu2 %v8206_v13  ;;  %2315 = vmatpush.bf16.msrb.mxu1 %v8194_v11  ;;  %v5760_v13 = vor.u32 %v7439_v10, %v5757_v3  ;;  %v5795_v10 = vld [vmem:[%s8320_s24 + $0x180] sm:$0xf] }
 0x145   : > { %v8494_v2 = vadd.f32 %v1173_v0, %v1125_v51  ;;  %v7449_v51 = vld [vmem:[%s8320_s24 + $0x174] sm:$0xf0] }
 0x146   : > { %2412 = vmatpush.bf16.msrb.mxu3 %v8201_v12  ;;  %v1126_v6 = vpop.f32.mrf.mxu2  ;;  %v1031_v60 = vpop.f32.mrf.mxu0  ;;  %2267 = vmatpush.bf16.msrb.mxu0 %v8213_v14  ;;  %v5788_v55 = vor.u32 %v7449_v51, %v5787_v50 }
 0x147   : > { %v1127_v59 = vadd.f32 %v1126_v6, %v1078_v54 }
 0x148   : > { %v1080_v61 = vpop.f32.mrf.mxu1  ;;  %2365 = vmatpush.bf16.msrb.mxu2 %v8230_v17  ;;  %2316 = vmatpush.bf16.msrb.mxu1 %v8218_v15 }
 0x149   : > { %v1081_v63 = vadd.f32 %v1080_v61, %v1031_v60  ;;  %1435 = vmatmul.bf16.gmra.mxu0 %v5748_v7  ;;  %v5792_v7 = vor.u32 %v7447_v57, %v5789_v58 }
 0x14a   : > { %2413 = vmatpush.bf16.msrb.mxu3 %v8225_v16  ;;  %2268 = vmatpush.bf16.msrb.mxu0 %v8235_v18 }
 0x14b   : > { %1484 = vmatmul.bf16.gmra.mxu1 %v5752_v9  ;;  %1533 = vmatmul.bf16.gmra.mxu2 %v5756_v62 }
 0x14c   : > { %v1175_v12 = vpop.f32.mrf.mxu3  ;;  %2366 = vmatpush.bf16.msrb.mxu2 %v8254_v21  ;;  %2317 = vmatpush.bf16.msrb.mxu1 %v8242_v19  ;;  %v5763_v19 = vld [vmem:[%s8320_s24 + $0x140] sm:$0xf] }
 0x14d   : > { %v8511_v11 = vadd.f32 %v1175_v12, %v1127_v59  ;;  %v7452_v12 = vld [vmem:[%s8320_s24 + $0x18c] sm:$0xf0] }
 0x14e   : > { %2414 = vmatpush.bf16.msrb.mxu3 %v8249_v20  ;;  %v1129_v14 = vpop.f32.mrf.mxu2  ;;  %v1033_v16 = vpop.f32.mrf.mxu0  ;;  %2269 = vmatpush.bf16.msrb.mxu0 %v8262_v22  ;;  %v7445_v22 = vld [vmem:[%s8320_s24 + $0x154] sm:$0xf0] }
 0x14f   : > { %v1130_v15 = vadd.f32 %v1129_v14, %v1081_v63  ;;  %v5772_v39 = vor.u32 %v7445_v22, %v5771_v34  ;;  %v5797_v14 = vld [vmem:[%s8320_s24 + $0x190] sm:$0xf0]  ;;  %v7451_v22 = vld [vmem:[%s8320_s24 + $0x18c] sm:$0xf] }
 0x150   : > { %v1082_v17 = vpop.f32.mrf.mxu1  ;;  %2367 = vmatpush.bf16.msrb.mxu2 %v8279_v25  ;;  %2318 = vmatpush.bf16.msrb.mxu1 %v8267_v23  ;;  %v5768_v25 = vor.u32 %v7442_v8, %v5765_v33 }
 0x151   : > { %5858 = vmatmul.msk.bf16.gmra.mxu3 %vm988_vm1, %v5760_v13  ;;  %v1083_v18 = vadd.f32 %v1082_v17, %v1033_v16  ;;  %v7450_v13 = vld [vmem:[%s8320_s24 + $0x184] sm:$0xf]  ;;  %v7453_v16 = vld [vmem:[%s8320_s24 + $0x194] sm:$0xf0] }
 0x152   : > { %2415 = vmatpush.bf16.msrb.mxu3 %v8274_v24  ;;  %2270 = vmatpush.bf16.msrb.mxu0 %v8286_v26  ;;  %v5764_v24 = vor.u32 %v7444_v4, %v5763_v19  ;;  %v7443_v26 = vld [vmem:[%s8320_s24 + $0x14c] sm:$0xf] }
 0x154   : > { %v1178_v20 = vpop.f32.mrf.mxu3  ;;  %2368 = vmatpush.bf16.msrb.mxu2 %v8303_v29  ;;  %2319 = vmatpush.bf16.msrb.mxu1 %v8291_v27  ;;  %v5776_v29 = vor.u32 %v7443_v26, %v5773_v41 }
 0x155   : > { %v8523_v21 = vadd.f32 %v1178_v20, %v1130_v15  ;;  %v5803_v15 = vld [vmem:[%s8320_s24 + $0x188] sm:$0xf]  ;;  %v5800_v20 = vor.u32 %v7450_v13, %v5797_v14 }
 0x156   : > { %2416 = vmatpush.bf16.msrb.mxu3 %v8298_v28  ;;  %v1131_v23 = vpop.f32.mrf.mxu2  ;;  %v1036_v36 = vpop.f32.mrf.mxu0  ;;  %2271 = vmatpush.bf16.msrb.mxu0 %v8313_v31  ;;  %v5804_v33 = vor.u32 %v7453_v16, %v5803_v15 }
 0x157   : > { %v1132_v35 = vadd.f32 %v1131_v23, %v1083_v18  ;;  %v5796_v18 = vor.u32 %v7452_v12, %v5795_v10  ;;  %v5805_v23 = vld [vmem:[%s8320_s24 + $0x198] sm:$0xf0]  ;;  %v7461_v10 = vld [vmem:[%s8320_s24 + $0x1d4] sm:$0xf0] }
 0x158   : > { %v1085_v38 = vpop.f32.mrf.mxu1  ;;  %2369 = vmatpush.bf16.msrb.mxu2 %v8333_v37  ;;  %2320 = vmatpush.bf16.msrb.mxu1 %v8318_v32 }
 0x159   : > { %v1086_v40 = vadd.f32 %v1085_v38, %v1036_v36  ;;  %1440 = vmatmul.bf16.gmra.mxu0 %v5764_v24 }
 0x15a   : > { %2417 = vmatpush.bf16.msrb.mxu3 %v8308_v30 }
 0x15b   : > { %1489 = vmatmul.bf16.gmra.mxu1 %v5768_v25  ;;  %1538 = vmatmul.bf16.gmra.mxu2 %v5772_v39 }
 0x15c   : > { %v1180_v27 = vpop.f32.mrf.mxu3 }
 0x15d   : > { %v8540_v28 = vadd.f32 %v1180_v27, %v1132_v35  ;;  %v5808_v35 = vor.u32 %v7451_v22, %v5805_v23  ;;  %v5811_v27 = vld [vmem:[%s8320_s24 + $0x1a0] sm:$0xf] }
 0x15e   : > { %2418 = vmatpush.bf16.msrb.mxu3 %v8344_v43  ;;  %v1134_v30 = vpop.f32.mrf.mxu2  ;;  %v1038_v37 = vpop.f32.mrf.mxu0  ;;  %v5780_v43 = vor.u32 %v7448_v47, %v5779_v45 }
 0x15f   : > { %v1135_v31 = vadd.f32 %v1134_v30, %v1086_v40  ;;  %v7456_v30 = vld [vmem:[%s8320_s24 + $0x1ac] sm:$0xf0] }
 0x160   : > { %v1087_v32 = vpop.f32.mrf.mxu1  ;;  %v5812_v45 = vor.u32 %v7456_v30, %v5811_v27  ;;  %v5845_v27 = vld [vmem:[%s8320_s24 + $0x1f0] sm:$0xf0]  ;;  %v5851_v30 = vld [vmem:[%s8320_s24 + $0x1e8] sm:$0xf] }
 0x161   : > { %5859 = vmatmul.msk.bf16.gmra.mxu3 %vm988_vm1, %v5776_v29  ;;  %v1088_v42 = vadd.f32 %v1087_v32, %v1038_v37  ;;  %v5813_v37 = vld [vmem:[%s8320_s24 + $0x1b0] sm:$0xf0]  ;;  %v5819_v32 = vld [vmem:[%s8320_s24 + $0x1a8] sm:$0xf] }
 0x164   : > { %v1183_v44 = vpop.f32.mrf.mxu3 }
 0x165   : > { %v8545_v46 = vadd.f32 %v1183_v44, %v1135_v31  ;;  %v7454_v31 = vld [vmem:[%s8320_s24 + $0x1a4] sm:$0xf] }
 0x166   : > { %v1136_v52 = vpop.f32.mrf.mxu2  ;;  %v1041_v0 = vpop.f32.mrf.mxu0  ;;  %v5816_v47 = vor.u32 %v7454_v31, %v5813_v37  ;;  %v7465_v31 = vld [vmem:[%s8320_s24 + $0x1f4] sm:$0xf0] }
 0x167   : > { %v1137_v54 = vadd.f32 %v1136_v52, %v1088_v42  ;;  %v7457_v42 = vld [vmem:[%s8320_s24 + $0x1b4] sm:$0xf0] }
 0x168   : > { %v1090_v1 = vpop.f32.mrf.mxu1  ;;  %v5820_v51 = vor.u32 %v7457_v42, %v5819_v32 }
 0x169   : > { %v1091_v56 = vadd.f32 %v1090_v1, %v1041_v0  ;;  %1445 = vmatmul.bf16.gmra.mxu0 %v5780_v43  ;;  %v7455_v43 = vld [vmem:[%s8320_s24 + $0x1ac] sm:$0xf] }
 0x16b   : > { %1494 = vmatmul.bf16.gmra.mxu1 %v5784_v53  ;;  %1543 = vmatmul.bf16.gmra.mxu2 %v5788_v55  ;;  %v5821_v53 = vld [vmem:[%s8320_s24 + $0x1b8] sm:$0xf0] }
 0x16c   : > { %v1185_v5 = vpop.f32.mrf.mxu3  ;;  %v5824_v1 = vor.u32 %v7455_v43, %v5821_v53 }
 0x16d   : > { %v8554_v6 = vadd.f32 %v1185_v5, %v1137_v54 }
 0x16e   : > { %v1139_v9 = vpop.f32.mrf.mxu2  ;;  %v1043_v60 = vpop.f32.mrf.mxu0 }
 0x16f   : > { %v1140_v59 = vadd.f32 %v1139_v9, %v1091_v56  ;;  %v5827_v9 = vld [vmem:[%s8320_s24 + $0x1c0] sm:$0xf] }
 0x170   : > { %v1092_v61 = vpop.f32.mrf.mxu1 }
 0x171   : > { %5860 = vmatmul.msk.bf16.gmra.mxu3 %vm988_vm1, %v5792_v7  ;;  %v1093_v62 = vadd.f32 %v1092_v61, %v1043_v60  ;;  %v7460_v60 = vld [vmem:[%s8320_s24 + $0x1cc] sm:$0xf0]  ;;  %v7458_v61 = vld [vmem:[%s8320_s24 + $0x1c4] sm:$0xf] }
 0x172   : > { %v5828_v13 = vor.u32 %v7460_v60, %v5827_v9  ;;  %v7468_v9 = vld [vmem:[%s8320_s24 + $0x20c] sm:$0xf0]  ;;  %v7466_v60 = vld [vmem:[%s8320_s24 + $0x204] sm:$0xf] }
 0x174   : > { %v1188_v63 = vpop.f32.mrf.mxu3 }
 0x175   : > { %v8558_v3 = vadd.f32 %v1188_v63, %v1140_v59  ;;  %v5835_v63 = vld [vmem:[%s8320_s24 + $0x1c8] sm:$0xf] }
 0x176   : > { %v1141_v17 = vpop.f32.mrf.mxu2  ;;  %v1046_v4 = vpop.f32.mrf.mxu0 }
 0x177   : > { %v1142_v19 = vadd.f32 %v1141_v17, %v1093_v62  ;;  %v5829_v62 = vld [vmem:[%s8320_s24 + $0x1d0] sm:$0xf0] }
 0x178   : > { %v1095_v8 = vpop.f32.mrf.mxu1  ;;  %v5832_v14 = vor.u32 %v7458_v61, %v5829_v62  ;;  %v5901_v61 = vld [vmem:[%s8320_s24 + $0x210] sm:$0xf0]  ;;  %v5907_v62 = vld [vmem:[%s8320_s24 + $0x208] sm:$0xf] }
 0x179   : > { %v1096_v34 = vadd.f32 %v1095_v8, %v1046_v4  ;;  %1450 = vmatmul.bf16.gmra.mxu0 %v5796_v18  ;;  %v5836_v18 = vor.u32 %v7461_v10, %v5835_v63  ;;  %v5837_v4 = vld [vmem:[%s8320_s24 + $0x1d8] sm:$0xf0]  ;;  %v7469_v63 = vld [vmem:[%s8320_s24 + $0x214] sm:$0xf0] }
 0x17b   : > { %1499 = vmatmul.bf16.gmra.mxu1 %v5800_v20  ;;  %1548 = vmatmul.bf16.gmra.mxu2 %v5804_v33 }
 0x17c   : > { %v1190_v24 = vpop.f32.mrf.mxu3 }
 0x17d   : > { %v8567_v25 = vadd.f32 %v1190_v24, %v1142_v19  ;;  %v7459_v19 = vld [vmem:[%s8320_s24 + $0x1cc] sm:$0xf] }
 0x17e   : > { %v1144_v36 = vpop.f32.mrf.mxu2  ;;  %v1048_v39 = vpop.f32.mrf.mxu0 }
 0x17f   : > { %v1145_v38 = vadd.f32 %v1144_v36, %v1096_v34  ;;  %v5840_v34 = vor.u32 %v7459_v19, %v5837_v4  ;;  %v5909_v19 = vld [vmem:[%s8320_s24 + $0x218] sm:$0xf0] }
 0x180   : > { %v1097_v40 = vpop.f32.mrf.mxu1 }
 0x181   : > { %5861 = vmatmul.msk.bf16.gmra.mxu3 %vm988_vm1, %v5808_v35  ;;  %v1098_v26 = vadd.f32 %v1097_v40, %v1048_v39  ;;  %v5843_v39 = vld [vmem:[%s8320_s24 + $0x1e0] sm:$0xf] }
 0x184   : > { %v1193_v41 = vpop.f32.mrf.mxu3 }
 0x185   : > { %v8571_v29 = vadd.f32 %v1193_v41, %v1145_v38  ;;  %v7462_v41 = vld [vmem:[%s8320_s24 + $0x1e4] sm:$0xf] }
 0x186   : > { %v1146_v44 = vpop.f32.mrf.mxu2  ;;  %v1051_v49 = vpop.f32.mrf.mxu0  ;;  %v5848_v42 = vor.u32 %v7462_v41, %v5845_v27  ;;  %v7472_v41 = vld [vmem:[%s8320_s24 + $0x22c] sm:$0xf0]  ;;  %v7470_v27 = vld [vmem:[%s8320_s24 + $0x224] sm:$0xf] }
 0x187   : > { %v1147_v48 = vadd.f32 %v1146_v44, %v1098_v26  ;;  %v7464_v26 = vld [vmem:[%s8320_s24 + $0x1ec] sm:$0xf0] }
 0x188   : > { %v1100_v50 = vpop.f32.mrf.mxu1  ;;  %v5844_v32 = vor.u32 %v7464_v26, %v5843_v39  ;;  %v5915_v39 = vld [vmem:[%s8320_s24 + $0x220] sm:$0xf] }
 0x189   : > { %v1101_v52 = vadd.f32 %v1100_v50, %v1051_v49  ;;  %1455 = vmatmul.bf16.gmra.mxu0 %v5812_v45  ;;  %v7463_v50 = vld [vmem:[%s8320_s24 + $0x1ec] sm:$0xf] }
 0x18b   : > { %1504 = vmatmul.bf16.gmra.mxu1 %v5816_v47  ;;  %1553 = vmatmul.bf16.gmra.mxu2 %v5820_v51  ;;  %v5853_v51 = vld [vmem:[%s8320_s24 + $0x1f8] sm:$0xf0] }
 0x18c   : > { %v1195_v54 = vpop.f32.mrf.mxu3  ;;  %v5856_v53 = vor.u32 %v7463_v50, %v5853_v51 }
 0x18d   : > { %v8580_v0 = vadd.f32 %v1195_v54, %v1147_v48  ;;  %v5852_v48 = vor.u32 %v7465_v31, %v5851_v30  ;;  %v5917_v30 = vld [vmem:[%s8320_s24 + $0x230] sm:$0xf0]  ;;  %v5923_v31 = vld [vmem:[%s8320_s24 + $0x228] sm:$0xf] }
 0x18e   : > { %v1149_v55 = vpop.f32.mrf.mxu2  ;;  %v1053_v57 = vpop.f32.mrf.mxu0 }
 0x18f   : > { %10755 = vst [vmem:[#allocation3_spill] sm:$0xff] %v8580_v0  ;;  %v1150_v56 = vadd.f32 %v1149_v55, %v1101_v52 }
 0x190   : > { %v1102_v58 = vpop.f32.mrf.mxu1 }
 0x191   : > { %5862 = vmatmul.msk.bf16.gmra.mxu3 %vm988_vm1, %v5824_v1  ;;  %v1103_v5 = vadd.f32 %v1102_v58, %v1053_v57 }
 0x194   : > { %v1198_v7 = vpop.f32.mrf.mxu3 }
 0x195   : > { %v8584_v59 = vadd.f32 %v1198_v7, %v1150_v56 }
 0x196   : > { %v1151_v12 = vpop.f32.mrf.mxu2  ;;  %v1056_v16 = vpop.f32.mrf.mxu0 }
 0x197   : > { %v1152_v15 = vadd.f32 %v1151_v12, %v1103_v5  ;;  %v5899_v5 = vld [vmem:[%s8320_s24 + $0x200] sm:$0xf] }
 0x198   : > { %v1105_v17 = vpop.f32.mrf.mxu1  ;;  %v5900_v12 = vor.u32 %v7468_v9, %v5899_v5 }
 0x199   : > { %v1106_v20 = vadd.f32 %v1105_v17, %v1056_v16  ;;  %1460 = vmatmul.bf16.gmra.mxu0 %v5828_v13  ;;  %v5904_v13 = vor.u32 %v7466_v60, %v5901_v61  ;;  %v5908_v17 = vor.u32 %v7469_v63, %v5907_v62  ;;  %v5931_v62 = vld [vmem:[%s8320_s24 + $0x240] sm:$0xf] }
 0x19b   : > { %1509 = vmatmul.bf16.gmra.mxu1 %v5832_v14  ;;  %1558 = vmatmul.bf16.gmra.mxu2 %v5836_v18 }
 0x19c   : > { %v1200_v8 = vpop.f32.mrf.mxu3 }
 0x19d   : > { %v8593_v33 = vadd.f32 %v1200_v8, %v1152_v15 }
 0x19e   : > { %v1154_v22 = vpop.f32.mrf.mxu2  ;;  %v1058_v24 = vpop.f32.mrf.mxu0 }
 0x19f   : > { %v1155_v23 = vadd.f32 %v1154_v22, %v1106_v20  ;;  %v7467_v20 = vld [vmem:[%s8320_s24 + $0x20c] sm:$0xf] }
 0x1a0   : > { %v1107_v35 = vpop.f32.mrf.mxu1 }
 0x1a1   : > { %5863 = vmatmul.msk.bf16.gmra.mxu3 %vm988_vm1, %v5840_v34  ;;  %v1108_v36 = vadd.f32 %v1107_v35, %v1058_v24  ;;  %v5912_v34 = vor.u32 %v7467_v20, %v5909_v19 }
 0x1a4   : > { %v1203_v38 = vpop.f32.mrf.mxu3 }
 0x1a5   : > { %v8597_v40 = vadd.f32 %v1203_v38, %v1155_v23 }
 0x1a6   : > { %v1156_v37 = vpop.f32.mrf.mxu2  ;;  %v1061_v45 = vpop.f32.mrf.mxu0 }
 0x1a7   : > { %v1157_v44 = vadd.f32 %v1156_v37, %v1108_v36  ;;  %v7473_v37 = vld [vmem:[%s8320_s24 + $0x234] sm:$0xf0] }
 0x1a8   : > { %v1110_v47 = vpop.f32.mrf.mxu1  ;;  %v5924_v50 = vor.u32 %v7473_v37, %v5923_v31 }
 0x1a9   : > { %v1111_v49 = vadd.f32 %v1110_v47, %v1061_v45  ;;  %1465 = vmatmul.bf16.gmra.mxu0 %v5844_v32  ;;  %v5920_v45 = vor.u32 %v7470_v27, %v5917_v30 }
 0x1ab   : > { %1514 = vmatmul.bf16.gmra.mxu1 %v5848_v42  ;;  %1563 = vmatmul.bf16.gmra.mxu2 %v5852_v48 }
 0x1ac   : > { %v1205_v52 = vpop.f32.mrf.mxu3 }
 0x1ad   : > { %v8606_v43 = vadd.f32 %v1205_v52, %v1157_v44  ;;  %v5916_v44 = vor.u32 %v7472_v41, %v5915_v39  ;;  %v7471_v52 = vld [vmem:[%s8320_s24 + $0x22c] sm:$0xf] }
 0x1ae   : > { %v1159_v54 = vpop.f32.mrf.mxu2  ;;  %v1063_v55 = vpop.f32.mrf.mxu0 }
 0x1af   : > { %10756 = vst [vmem:[#allocation4_spill] sm:$0xff] %v8606_v43  ;;  %v1160_v1 = vadd.f32 %v1159_v54, %v1111_v49 }
 0x1b0   : > { %v1112_v56 = vpop.f32.mrf.mxu1 }
 0x1b1   : > { %5864 = vmatmul.msk.bf16.gmra.mxu3 %vm988_vm1, %v5856_v53  ;;  %v1113_v57 = vadd.f32 %v1112_v56, %v1063_v55  ;;  %v5925_v53 = vld [vmem:[%s8320_s24 + $0x238] sm:$0xf0] }
 0x1b2   : > { %v5928_v55 = vor.u32 %v7471_v52, %v5925_v53  ;;  %v7481_v52 = vld [vmem:[%s8320_s24 + $0x274] sm:$0xf0] }
 0x1b4   : > { %v1208_v58 = vpop.f32.mrf.mxu3 }
 0x1b5   : > { %v8610_v7 = vadd.f32 %v1208_v58, %v1160_v1 }
 0x1b6   : > { %v1161_v10 = vpop.f32.mrf.mxu2  ;;  %v1431_v15 = vpop.f32.mrf.mxu0 }
 0x1b7   : > { %v1162_v14 = vadd.f32 %v1161_v10, %v1113_v57  ;;  %v7476_v10 = vld [vmem:[%s8320_s24 + $0x24c] sm:$0xf0] }
 0x1b8   : > { %v1480_v16 = vpop.f32.mrf.mxu1 }
 0x1b9   : > { %v1481_v18 = vadd.f32 %v1480_v16, %v1431_v15  ;;  %1851 = vmatmul.bf16.vlgmr.msra.gmra.mxu0 %v5900_v12  ;;  %v7474_v12 = vld [vmem:[%s8320_s24 + $0x244] sm:$0xf]  ;;  %v7477_v15 = vld [vmem:[%s8320_s24 + $0x254] sm:$0xf0] }
 0x1bb   : > { %1900 = vmatmul.bf16.vlgmr.msra.gmra.mxu1 %v5904_v13  ;;  %1949 = vmatmul.bf16.vlgmr.msra.gmra.mxu2 %v5908_v17  ;;  %v5933_v13 = vld [vmem:[%s8320_s24 + $0x250] sm:$0xf0] }
 0x1bc   : > { %v1210_v4 = vpop.f32.mrf.mxu3  ;;  %v5936_v20 = vor.u32 %v7474_v12, %v5933_v13 }
 0x1bd   : > { %v8619_v8 = vadd.f32 %v1210_v4, %v1162_v14  ;;  %v5939_v14 = vld [vmem:[%s8320_s24 + $0x248] sm:$0xf] }
 0x1be   : > { %v1529_v22 = vpop.f32.mrf.mxu2  ;;  %v1433_v24 = vpop.f32.mrf.mxu0 }
 0x1bf   : > { %10757 = vst [vmem:[#allocation5_spill] sm:$0xff] %v8619_v8  ;;  %v1530_v23 = vadd.f32 %v1529_v22, %v1481_v18  ;;  %v5932_v18 = vor.u32 %v7476_v10, %v5931_v62  ;;  %v5940_v22 = vor.u32 %v7477_v15, %v5939_v14  ;;  %v7479_v62 = vld [vmem:[%s8320_s24 + $0x26c] sm:$0xf]  ;;  %v5957_v10 = vld [vmem:[%s8320_s24 + $0x278] sm:$0xf0] }
 0x1c0   : > { %v1482_v35 = vpop.f32.mrf.mxu1  ;;  %v5960_v14 = vor.u32 %v7479_v62, %v5957_v10 }
 0x1c1   : > { %6025 = vmatmul.msk.bf16.vlgmr.msra.gmra.mxu3 %vm988_vm1, %v5912_v34  ;;  %v1483_v36 = vadd.f32 %v1482_v35, %v1433_v24  ;;  %v7475_v24 = vld [vmem:[%s8320_s24 + $0x24c] sm:$0xf]  ;;  %v5941_v35 = vld [vmem:[%s8320_s24 + $0x258] sm:$0xf0] }
 0x1c2   : > { %v5944_v39 = vor.u32 %v7475_v24, %v5941_v35  ;;  %v7484_v24 = vld [vmem:[%s8320_s24 + $0x28c] sm:$0xf0]  ;;  %v7482_v35 = vld [vmem:[%s8320_s24 + $0x284] sm:$0xf] }
 0x1c4   : > { %v1578_v38 = vpop.f32.mrf.mxu3 }
 0x1c5   : > { %v8623_v26 = vadd.f32 %v1578_v38, %v1530_v23 }
 0x1c6   : > { %v1531_v42 = vpop.f32.mrf.mxu2  ;;  %v1436_v48 = vpop.f32.mrf.mxu0 }
 0x1c7   : > { %v1618_v32 = vmax.f32 %v8494_v2, %v8623_v26  ;;  %v1532_v47 = vadd.f32 %v1531_v42, %v1483_v36 }
 0x1c8   : > { %v1485_v49 = vpop.f32.mrf.mxu1 }
 0x1c9   : > { %v1486_v51 = vadd.f32 %v1485_v49, %v1436_v48  ;;  %1856 = vmatmul.bf16.gmra.mxu0 %v5916_v44  ;;  %v7480_v48 = vld [vmem:[%s8320_s24 + $0x26c] sm:$0xf0]  ;;  %v7478_v49 = vld [vmem:[%s8320_s24 + $0x264] sm:$0xf] }
 0x1cb   : > { %1905 = vmatmul.bf16.gmra.mxu1 %v5920_v45  ;;  %1954 = vmatmul.bf16.gmra.mxu2 %v5924_v50  ;;  %v5947_v45 = vld [vmem:[%s8320_s24 + $0x260] sm:$0xf]  ;;  %v5949_v50 = vld [vmem:[%s8320_s24 + $0x270] sm:$0xf0] }
 0x1cc   : > { %v1580_v54 = vpop.f32.mrf.mxu3 }
 0x1cd   : > { %v8634_v1 = vadd.f32 %v1580_v54, %v1532_v47 }
 0x1ce   : > { %v1534_v57 = vpop.f32.mrf.mxu2  ;;  %v1438_v5 = vpop.f32.mrf.mxu0 }
 0x1cf   : > { %v1619_v56 = vmax.f32 %v8511_v11, %v8634_v1  ;;  %v1535_v58 = vadd.f32 %v1534_v57, %v1486_v51  ;;  %v5955_v51 = vld [vmem:[%s8320_s24 + $0x268] sm:$0xf]  ;;  %v5952_v57 = vor.u32 %v7478_v49, %v5949_v50  ;;  %v6257_v1 = vld [vmem:[%s10744_s3 + $0xb8] sm:$0xf] }
 0x1d0   : > { %v1487_v9 = vpop.f32.mrf.mxu1 }
 0x1d1   : > { %6026 = vmatmul.msk.bf16.gmra.mxu3 %vm988_vm1, %v5928_v55  ;;  %v1488_v60 = vadd.f32 %v1487_v9, %v1438_v5  ;;  %v5948_v55 = vor.u32 %v7480_v48, %v5947_v45 }
 0x1d4   : > { %v1583_v61 = vpop.f32.mrf.mxu3 }
 0x1d5   : > { %v8640_v63 = vadd.f32 %v1583_v61, %v1535_v58 }
 0x1d6   : > { %v1536_v17 = vpop.f32.mrf.mxu2  ;;  %v1441_v4 = vpop.f32.mrf.mxu0 }
 0x1d7   : > { %v1620_v16 = vmax.f32 %v8523_v21, %v8640_v63  ;;  %v1537_v19 = vadd.f32 %v1536_v17, %v1488_v60  ;;  %v5956_v60 = vor.u32 %v7481_v52, %v5955_v51  ;;  %v7483_v51 = vld [vmem:[%s8320_s24 + $0x28c] sm:$0xf]  ;;  %v5973_v52 = vld [vmem:[%s8320_s24 + $0x298] sm:$0xf0] }
 0x1d8   : > { %v1490_v34 = vpop.f32.mrf.mxu1  ;;  %v7551_v21 = vld [vmem:[%s10744_s3 + $0xbc] sm:$0xf]  ;;  %v6259_v63 = vld [vmem:[%s10744_s3 + $0xc8] sm:$0xf0] }
 0x1d9   : > { %v1491_v23 = vadd.f32 %v1490_v34, %v1441_v4  ;;  %1861 = vmatmul.bf16.gmra.mxu0 %v5932_v18 }
 0x1db   : > { %1910 = vmatmul.bf16.gmra.mxu1 %v5936_v20  ;;  %1959 = vmatmul.bf16.gmra.mxu2 %v5940_v22  ;;  %v5963_v22 = vld [vmem:[%s8320_s24 + $0x280] sm:$0xf] }
 0x1dc   : > { %v1585_v36 = vpop.f32.mrf.mxu3 }
 0x1dd   : > { %v8651_v38 = vadd.f32 %v1585_v36, %v1537_v19  ;;  %v5965_v36 = vld [vmem:[%s8320_s24 + $0x290] sm:$0xf0] }
 0x1de   : > { %v1539_v27 = vpop.f32.mrf.mxu2  ;;  %v1443_v31 = vpop.f32.mrf.mxu0 }
 0x1df   : > { %v1621_v41 = vmax.f32 %v8540_v28, %v8651_v38  ;;  %v1540_v30 = vadd.f32 %v1539_v27, %v1491_v23  ;;  %v7485_v27 = vld [vmem:[%s8320_s24 + $0x294] sm:$0xf0] }
 0x1e0   : > { %v1492_v37 = vpop.f32.mrf.mxu1 }
 0x1e1   : > { %6027 = vmatmul.msk.bf16.gmra.mxu3 %vm988_vm1, %v5944_v39  ;;  %v1493_v42 = vadd.f32 %v1492_v37, %v1443_v31  ;;  %v5971_v39 = vld [vmem:[%s8320_s24 + $0x288] sm:$0xf]  ;;  %v5964_v37 = vor.u32 %v7484_v24, %v5963_v22 }
 0x1e2   : > { %v5972_v49 = vor.u32 %v7485_v27, %v5971_v39 }
 0x1e4   : > { %v1588_v44 = vpop.f32.mrf.mxu3 }
 0x1e5   : > { %v8657_v47 = vadd.f32 %v1588_v44, %v1540_v30 }
 0x1e6   : > { %v1541_v54 = vpop.f32.mrf.mxu2  ;;  %v1446_v5 = vpop.f32.mrf.mxu0 }
 0x1e7   : > { %v1622_v53 = vmax.f32 %v8545_v46, %v8657_v47  ;;  %v1542_v58 = vadd.f32 %v1541_v54, %v1493_v42  ;;  %v5968_v42 = vor.u32 %v7482_v35, %v5965_v36 }
 0x1e8   : > { %v1495_v9 = vpop.f32.mrf.mxu1 }
 0x1e9   : > { %v1496_v61 = vadd.f32 %v1495_v9, %v1446_v5  ;;  %1866 = vmatmul.bf16.gmra.mxu0 %v5948_v55 }
 0x1eb   : > { %1915 = vmatmul.bf16.gmra.mxu1 %v5952_v57  ;;  %1964 = vmatmul.bf16.gmra.mxu2 %v5956_v60  ;;  %v5976_v57 = vor.u32 %v7483_v51, %v5973_v52 }
 0x1ec   : > { %v1590_v12 = vpop.f32.mrf.mxu3 }
 0x1ed   : > { %v8668_v13 = vadd.f32 %v1590_v12, %v1542_v58  ;;  %v5979_v12 = vld [vmem:[%s8320_s24 + $0x2a0] sm:$0xf] }
 0x1ee   : > { %v1544_v17 = vpop.f32.mrf.mxu2  ;;  %v1448_v20 = vpop.f32.mrf.mxu0 }
 0x1ef   : > { %v1623_v15 = vmax.f32 %v8554_v6, %v8668_v13  ;;  %v1545_v18 = vadd.f32 %v1544_v17, %v1496_v61  ;;  %v7488_v17 = vld [vmem:[%s8320_s24 + $0x2ac] sm:$0xf0]  ;;  %v6241_v13 = vld [vmem:[%s10744_s3 + $0x98] sm:$0xf] }
 0x1f0   : > { %v1497_v19 = vpop.f32.mrf.mxu1  ;;  %v5980_v24 = vor.u32 %v7488_v17, %v5979_v12  ;;  %v5997_v12 = vld [vmem:[%s8320_s24 + $0x2d0] sm:$0xf0]  ;;  %v6003_v17 = vld [vmem:[%s8320_s24 + $0x2c8] sm:$0xf] }
 0x1f1   : > { %6028 = vmatmul.msk.bf16.gmra.mxu3 %vm988_vm1, %v5960_v14  ;;  %v1498_v4 = vadd.f32 %v1497_v19, %v1448_v20  ;;  %v5981_v20 = vld [vmem:[%s8320_s24 + $0x2b0] sm:$0xf0]  ;;  %v5987_v19 = vld [vmem:[%s8320_s24 + $0x2a8] sm:$0xf] }
 0x1f4   : > { %v1593_v34 = vpop.f32.mrf.mxu3 }
 0x1f5   : > { %v8674_v23 = vadd.f32 %v1593_v34, %v1545_v18  ;;  %v7486_v18 = vld [vmem:[%s8320_s24 + $0x2a4] sm:$0xf] }
 0x1f6   : > { %v1546_v31 = vpop.f32.mrf.mxu2  ;;  %v1451_v45 = vpop.f32.mrf.mxu0  ;;  %v5984_v35 = vor.u32 %v7486_v18, %v5981_v20  ;;  %v7493_v18 = vld [vmem:[%s8320_s24 + $0x2d4] sm:$0xf0] }
 0x1f7   : > { %v1624_v30 = vmax.f32 %v8558_v3, %v8674_v23  ;;  %v1547_v44 = vadd.f32 %v1546_v31, %v1498_v4  ;;  %v7489_v4 = vld [vmem:[%s8320_s24 + $0x2b4] sm:$0xf0]  ;;  %v7547_v3 = vld [vmem:[%s10744_s3 + $0x9c] sm:$0xf]  ;;  %v6243_v23 = vld [vmem:[%s10744_s3 + $0xa8] sm:$0xf0] }
 0x1f8   : > { %v1500_v48 = vpop.f32.mrf.mxu1  ;;  %v5988_v31 = vor.u32 %v7489_v4, %v5987_v19 }
 0x1f9   : > { %v1501_v50 = vadd.f32 %v1500_v48, %v1451_v45  ;;  %1871 = vmatmul.bf16.gmra.mxu0 %v5964_v37 }
 0x1fb   : > { %1920 = vmatmul.bf16.gmra.mxu1 %v5968_v42  ;;  %1969 = vmatmul.bf16.gmra.mxu2 %v5972_v49  ;;  %v7487_v42 = vld [vmem:[%s8320_s24 + $0x2ac] sm:$0xf] }
 0x1fc   : > { %v1595_v54 = vpop.f32.mrf.mxu3 }
 0x1fd   : > { %v8685_v55 = vadd.f32 %v1595_v54, %v1547_v44  ;;  %v5989_v44 = vld [vmem:[%s8320_s24 + $0x2b8] sm:$0xf0] }
 0x1fe   : > { %v1549_v5 = vpop.f32.mrf.mxu2  ;;  %v1453_v60 = vpop.f32.mrf.mxu0  ;;  %v5992_v49 = vor.u32 %v7487_v42, %v5989_v44 }
 0x1ff   : > { %v1625_v58 = vmax.f32 %v8567_v25, %v8685_v55  ;;  %v1550_v9 = vadd.f32 %v1549_v5, %v1501_v50  ;;  %v6077_v50 = vld [vmem:[%s8320_s24 + $0x318] sm:$0xf0] }
 0x200   : > { %v1502_v61 = vpop.f32.mrf.mxu1 }
 0x201   : > { %6029 = vmatmul.msk.bf16.gmra.mxu3 %vm988_vm1, %v5976_v57  ;;  %v1503_v62 = vadd.f32 %v1502_v61, %v1453_v60  ;;  %v5995_v60 = vld [vmem:[%s8320_s24 + $0x2c0] sm:$0xf] }
 0x204   : > { %v1598_v10 = vpop.f32.mrf.mxu3 }
 0x205   : > { %v8691_v14 = vadd.f32 %v1598_v10, %v1550_v9  ;;  %v7490_v10 = vld [vmem:[%s8320_s24 + $0x2c4] sm:$0xf] }
 0x206   : > { %v1551_v22 = vpop.f32.mrf.mxu2  ;;  %v1456_v39 = vpop.f32.mrf.mxu0 }
 0x207   : > { %v1552_v36 = vadd.f32 %v1551_v22, %v1503_v62  ;;  %v7492_v62 = vld [vmem:[%s8320_s24 + $0x2cc] sm:$0xf0]  ;;  %v6000_v22 = vor.u32 %v7490_v10, %v5997_v12  ;;  %v7494_v12 = vld [vmem:[%s8320_s24 + $0x2e4] sm:$0xf] }
 0x208   : > { %v1505_v27 = vpop.f32.mrf.mxu1  ;;  %v5996_v4 = vor.u32 %v7492_v62, %v5995_v60  ;;  %v6011_v60 = vld [vmem:[%s8320_s24 + $0x2e0] sm:$0xf]  ;;  %v7496_v10 = vld [vmem:[%s8320_s24 + $0x2ec] sm:$0xf0] }
 0x209   : > { %v1506_v37 = vadd.f32 %v1505_v27, %v1456_v39  ;;  %1876 = vmatmul.bf16.gmra.mxu0 %v5980_v24  ;;  %v6004_v39 = vor.u32 %v7493_v18, %v6003_v17  ;;  %v6013_v17 = vld [vmem:[%s8320_s24 + $0x2f0] sm:$0xf0]  ;;  %v6019_v18 = vld [vmem:[%s8320_s24 + $0x2e8] sm:$0xf] }
 0x20b   : > { %1925 = vmatmul.bf16.gmra.mxu1 %v5984_v35  ;;  %1974 = vmatmul.bf16.gmra.mxu2 %v5988_v31  ;;  %v7491_v31 = vld [vmem:[%s8320_s24 + $0x2cc] sm:$0xf] }
 0x20c   : > { %v1600_v45 = vpop.f32.mrf.mxu3 }
 0x20d   : > { %v8702_v48 = vadd.f32 %v1600_v45, %v1552_v36 }
 0x20e   : > { %v1554_v51 = vpop.f32.mrf.mxu2  ;;  %v1458_v54 = vpop.f32.mrf.mxu0 }
 0x20f   : > { %10758 = vst [vmem:[#allocation6_spill] sm:$0xff] %v8702_v48  ;;  %v1555_v52 = vadd.f32 %v1554_v51, %v1506_v37  ;;  %v6005_v37 = vld [vmem:[%s8320_s24 + $0x2d8] sm:$0xf0] }
 0x210   : > { %v1507_v57 = vpop.f32.mrf.mxu1  ;;  %v6008_v45 = vor.u32 %v7491_v31, %v6005_v37 }
 0x211   : > { %6030 = vmatmul.msk.bf16.gmra.mxu3 %vm988_vm1, %v5992_v49  ;;  %v1508_v5 = vadd.f32 %v1507_v57, %v1458_v54 }
 0x214   : > { %v1603_v9 = vpop.f32.mrf.mxu3 }
 0x215   : > { %v8708_v61 = vadd.f32 %v1603_v9, %v1555_v52 }
 0x216   : > { %v1556_v19 = vpop.f32.mrf.mxu2  ;;  %v1461_v35 = vpop.f32.mrf.mxu0 }
 0x217   : > { %v1557_v24 = vadd.f32 %v1556_v19, %v1508_v5  ;;  %v7497_v19 = vld [vmem:[%s8320_s24 + $0x2f4] sm:$0xf0] }
 0x218   : > { %v1510_v36 = vpop.f32.mrf.mxu1  ;;  %v6020_v31 = vor.u32 %v7497_v19, %v6019_v18  ;;  %v6067_v18 = vld [vmem:[%s8320_s24 + $0x300] sm:$0xf] }
 0x219   : > { %v1511_v27 = vadd.f32 %v1510_v36, %v1461_v35  ;;  %1881 = vmatmul.bf16.gmra.mxu0 %v5996_v4  ;;  %v6016_v35 = vor.u32 %v7494_v12, %v6013_v17 }
 0x21b   : > { %1930 = vmatmul.bf16.gmra.mxu1 %v6000_v22  ;;  %1979 = vmatmul.bf16.gmra.mxu2 %v6004_v39 }
 0x21c   : > { %v1605_v42 = vpop.f32.mrf.mxu3 }
 0x21d   : > { %v8719_v44 = vadd.f32 %v1605_v42, %v1557_v24  ;;  %v6012_v24 = vor.u32 %v7496_v10, %v6011_v60  ;;  %v7495_v42 = vld [vmem:[%s8320_s24 + $0x2ec] sm:$0xf] }
 0x21e   : > { %v1559_v51 = vpop.f32.mrf.mxu2  ;;  %v1463_v54 = vpop.f32.mrf.mxu0 }
 0x21f   : > { %v1560_v52 = vadd.f32 %v1559_v51, %v1511_v27 }
 0x220   : > { %v1512_v57 = vpop.f32.mrf.mxu1 }
 0x221   : > { %6031 = vmatmul.msk.bf16.gmra.mxu3 %vm988_vm1, %v6008_v45  ;;  %v1513_v5 = vadd.f32 %v1512_v57, %v1463_v54  ;;  %v6021_v45 = vld [vmem:[%s8320_s24 + $0x2f8] sm:$0xf0]  ;;  %v7499_v57 = vld [vmem:[%s8320_s24 + $0x30c] sm:$0xf] }
 0x222   : > { %v6024_v54 = vor.u32 %v7495_v42, %v6021_v45 }
 0x224   : > { %v1608_v9 = vpop.f32.mrf.mxu3 }
 0x225   : > { %v8725_v62 = vadd.f32 %v1608_v9, %v1560_v52 }
 0x226   : > { %v1561_v22 = vpop.f32.mrf.mxu2  ;;  %v1466_v39 = vpop.f32.mrf.mxu0 }
 0x227   : > { %v1562_v36 = vadd.f32 %v1561_v22, %v1513_v5  ;;  %v7500_v22 = vld [vmem:[%s8320_s24 + $0x30c] sm:$0xf0] }
 0x228   : > { %v1515_v27 = vpop.f32.mrf.mxu1  ;;  %v6068_v42 = vor.u32 %v7500_v22, %v6067_v18  ;;  %v6080_v18 = vor.u32 %v7499_v57, %v6077_v50 }
 0x229   : > { %v1516_v37 = vadd.f32 %v1515_v27, %v1466_v39  ;;  %1886 = vmatmul.bf16.gmra.mxu0 %v6012_v24  ;;  %v7498_v24 = vld [vmem:[%s8320_s24 + $0x304] sm:$0xf]  ;;  %v7501_v39 = vld [vmem:[%s8320_s24 + $0x314] sm:$0xf0] }
 0x22b   : > { %1935 = vmatmul.bf16.gmra.mxu1 %v6016_v35  ;;  %1984 = vmatmul.bf16.gmra.mxu2 %v6020_v31  ;;  %v6069_v35 = vld [vmem:[%s8320_s24 + $0x310] sm:$0xf0]  ;;  %v6214_v31 = vld [vmem:[%s10744_s3 + $0xd8] sm:$0x11] }
 0x22c   : > { %v1610_v51 = vpop.f32.mrf.mxu3  ;;  %v6072_v45 = vor.u32 %v7498_v24, %v6069_v35  ;;  %v6213_v24 = vld [vmem:[%s10744_s3 + $0xd0] sm:$0x11] }
 0x22d   : > { %v8736_v52 = vadd.f32 %v1610_v51, %v1562_v36  ;;  %v6075_v36 = vld [vmem:[%s8320_s24 + $0x308] sm:$0xf]  ;;  %v2597_v51 = vunpack.c.l.b16 %v6214_v31 }
 0x22e   : > { %v1564_v5 = vpop.f32.mrf.mxu2  ;;  %v1468_v60 = vpop.f32.mrf.mxu0 }
 0x22f   : > { %10759 = vst [vmem:[#allocation7_spill] sm:$0xff] %v8736_v52  ;;  %v1565_v9 = vadd.f32 %v1564_v5, %v1516_v37  ;;  %v2613_v49 = vpack.c.b16 %v2597_v51, %v2597_v51 }
 0x230   : > { %v1517_v10 = vpop.f32.mrf.mxu1 }
 0x231   : > { %6032 = vmatmul.msk.bf16.gmra.mxu3 %vm988_vm1, %v6024_v54  ;;  %v1518_v12 = vadd.f32 %v1517_v10, %v1468_v60  ;;  %v6076_v60 = vor.u32 %v7501_v39, %v6075_v36  ;;  %v2598_v10 = vunpack.c.h.b16 %v6214_v31  ;;  %v2639_v20 = vsel %vm2631_vm2, %v2613_v49, 0 }
 0x232   : > { %2674 = vmatpush.bf16.msra.mxu2 %v2639_v20  ;;  %v2595_v49 = vunpack.c.l.b16 %v6213_v24 }
 0x233   : > { %v2614_v4 = vpack.c.b16 %v2598_v10, %v2598_v10  ;;  %v7505_v10 = vld [vmem:[%s8320_s24 + $0x334] sm:$0xf0] }
 0x234   : > { %v1613_v17 = vpop.f32.mrf.mxu3  ;;  %v2611_v39 = vpack.c.b16 %v2595_v49, %v2595_v49 }
 0x235   : > { %v8742_v19 = vadd.f32 %v1613_v17, %v1565_v9 }
 0x236   : > { %v1566_v37 = vpop.f32.mrf.mxu2  ;;  %v1852_v5 = vpop.f32.mrf.mxu0 }
 0x237   : > { %v1567_v54 = vadd.f32 %v1566_v37, %v1518_v12  ;;  %v2642_v12 = vsel %vm2631_vm2, %v2614_v4, 0  ;;  %v2596_v4 = vunpack.c.h.b16 %v6213_v24  ;;  %v6083_v37 = vld [vmem:[%s8320_s24 + $0x320] sm:$0xf] }
 0x238   : > { %v1901_v9 = vpop.f32.mrf.mxu1  ;;  %2687 = vmatpush.bf16.msra.mxu3 %v2642_v12 }
 0x239   : > { %v1902_v17 = vadd.f32 %v1901_v9, %v1852_v5  ;;  %2272 = vmatmul.bf16.vlgmr.msrb.gmra.mxu0 %v6068_v42  ;;  %v7504_v42 = vld [vmem:[%s8320_s24 + $0x32c] sm:$0xf0]  ;;  %v6085_v5 = vld [vmem:[%s8320_s24 + $0x330] sm:$0xf0] }
 0x23a   : > { %v6084_v12 = vor.u32 %v7504_v42, %v6083_v37 }
 0x23b   : > { %2321 = vmatmul.bf16.vlgmr.msrb.gmra.mxu1 %v6072_v45  ;;  %2370 = vmatmul.bf16.vlgmr.msrb.gmra.mxu2 %v6076_v60  ;;  %v2633_v45 = vsel %vm2631_vm2, %v2611_v39, 0  ;;  %v6091_v60 = vld [vmem:[%s8320_s24 + $0x328] sm:$0xf]  ;;  %v6093_v39 = vld [vmem:[%s8320_s24 + $0x338] sm:$0xf0] }
 0x23c   : > { %v1615_v27 = vpop.f32.mrf.mxu3  ;;  %2648 = vmatpush.bf16.msra.mxu0 %v2633_v45 }
 0x23d   : > { %v8757_v34 = vadd.f32 %v1615_v27, %v1567_v54  ;;  %v2612_v27 = vpack.c.b16 %v2596_v4, %v2596_v4  ;;  %v7502_v54 = vld [vmem:[%s8320_s24 + $0x324] sm:$0xf]  ;;  %v7503_v4 = vld [vmem:[%s8320_s24 + $0x32c] sm:$0xf] }
 0x23e   : > { %v1950_v35 = vpop.f32.mrf.mxu2  ;;  %v1854_v50 = vpop.f32.mrf.mxu0  ;;  %v6088_v24 = vor.u32 %v7502_v54, %v6085_v5  ;;  %v6096_v26 = vor.u32 %v7503_v4, %v6093_v39  ;;  %v6099_v54 = vld [vmem:[%s8320_s24 + $0x340] sm:$0xf] }
 0x23f   : > { %10760 = vst [vmem:[#allocation8_spill] sm:$0xff] %v8757_v34  ;;  %v1951_v36 = vadd.f32 %v1950_v35, %v1902_v17  ;;  %v2636_v9 = vsel %vm2631_vm2, %v2612_v27, 0 }
 0x240   : > { %v1903_v20 = vpop.f32.mrf.mxu1  ;;  %2661 = vmatpush.bf16.msra.mxu1 %v2636_v9  ;;  %v7508_v9 = vld [vmem:[%s8320_s24 + $0x34c] sm:$0xf0] }
 0x241   : > { %6193 = vmatmul.msk.bf16.vlgmr.msrb.gmra.mxu3 %vm988_vm1, %v6080_v18  ;;  %v1904_v57 = vadd.f32 %v1903_v20, %v1854_v50  ;;  %v6092_v50 = vor.u32 %v7505_v10, %v6091_v60  ;;  %v7506_v60 = vld [vmem:[%s8320_s24 + $0x344] sm:$0xf]  ;;  %v6101_v10 = vld [vmem:[%s8320_s24 + $0x350] sm:$0xf0] }
 0x244   : > { %v1999_v31 = vpop.f32.mrf.mxu3 }
 0x245   : > { %v2000_v51 = vadd.f32 %v1999_v31, %v1951_v36 }
 0x246   : > { %v1952_v18 = vpop.f32.mrf.mxu2  ;;  %v1857_v49 = vpop.f32.mrf.mxu0 }
 0x247   : > { %v8777_v17 = vmax.f32 %v1618_v32, %v2000_v51  ;;  %v1953_v35 = vadd.f32 %v1952_v18, %v1904_v57  ;;  %v6107_v18 = vld [vmem:[%s8320_s24 + $0x348] sm:$0xf] }
 0x248   : > { %v1906_v36 = vpop.f32.mrf.mxu1 }
 0x249   : > { %v1907_v20 = vadd.f32 %v1906_v36, %v1857_v49  ;;  %2277 = vmatmul.bf16.gmra.mxu0 %v6084_v12  ;;  %v7509_v12 = vld [vmem:[%s8320_s24 + $0x354] sm:$0xf0]  ;;  %v6104_v49 = vor.u32 %v7506_v60, %v6101_v10  ;;  %v6251_v60 = vld [vmem:[%s10744_s3 + $0xc0] sm:$0xf0] }
 0x24a   : > { %v6108_v39 = vor.u32 %v7509_v12, %v6107_v18 }
 0x24b   : > { %2326 = vmatmul.bf16.gmra.mxu1 %v6088_v24  ;;  %2375 = vmatmul.bf16.gmra.mxu2 %v6092_v50 }
 0x24c   : > { %v2001_v27 = vpop.f32.mrf.mxu3 }
 0x24d   : > { %v2002_v2 = vadd.f32 %v2001_v27, %v1953_v35  ;;  %v6100_v35 = vor.u32 %v7508_v9, %v6099_v54  ;;  %v7507_v27 = vld [vmem:[%s8320_s24 + $0x34c] sm:$0xf] }
 0x24e   : > { %v1955_v57 = vpop.f32.mrf.mxu2  ;;  %v1859_v37 = vpop.f32.mrf.mxu0 }
 0x24f   : > { %v8784_v32 = vmax.f32 %v1619_v56, %v2002_v2  ;;  %v1956_v31 = vadd.f32 %v1955_v57, %v1907_v20  ;;  %v7553_v56 = vld [vmem:[%s10744_s3 + $0xc4] sm:$0xf0]  ;;  %v6109_v2 = vld [vmem:[%s8320_s24 + $0x358] sm:$0xf0] }
 0x250   : > { %v1908_v42 = vpop.f32.mrf.mxu1  ;;  %v6258_v36 = vor.u32 %v7553_v56, %v6257_v1  ;;  %v6115_v1 = vld [vmem:[%s8320_s24 + $0x360] sm:$0xf] }
 0x251   : > { %6194 = vmatmul.msk.bf16.gmra.mxu3 %vm988_vm1, %v6096_v26  ;;  %v1909_v45 = vadd.f32 %v1908_v42, %v1859_v37  ;;  %v6262_v26 = vor.u32 %v7551_v21, %v6259_v63  ;;  %v6112_v37 = vor.u32 %v7507_v27, %v6109_v2 }
 0x252   : > { %2675 = vmatpush.bf16.msra.mxu2 %v6258_v36  ;;  %v6123_v36 = vld [vmem:[%s8320_s24 + $0x368] sm:$0xf] }
 0x253   : > { %2688 = vmatpush.bf16.msra.mxu3 %v6262_v26 }
 0x254   : > { %v2004_v51 = vpop.f32.mrf.mxu3 }
 0x255   : > { %v2005_v5 = vadd.f32 %v2004_v51, %v1956_v31  ;;  %v7552_v51 = vld [vmem:[%s10744_s3 + $0xbc] sm:$0xf0] }
 0x256   : > { %v1957_v24 = vpop.f32.mrf.mxu2  ;;  %v1862_v20 = vpop.f32.mrf.mxu0 }
 0x257   : > { %v8796_v11 = vmax.f32 %v1620_v16, %v2005_v5  ;;  %v1958_v50 = vadd.f32 %v1957_v24, %v1909_v45  ;;  %v6249_v45 = vld [vmem:[%s10744_s3 + $0xb0] sm:$0xf] }
 0x258   : > { %v1911_v4 = vpop.f32.mrf.mxu1  ;;  %v6250_v5 = vor.u32 %v7552_v51, %v6249_v45  ;;  %v7512_v24 = vld [vmem:[%s8320_s24 + $0x36c] sm:$0xf0] }
 0x259   : > { %v1912_v16 = vadd.f32 %v1911_v4, %v1862_v20  ;;  %2282 = vmatmul.bf16.gmra.mxu0 %v6100_v35  ;;  %v7510_v35 = vld [vmem:[%s8320_s24 + $0x364] sm:$0xf] }
 0x25a   : > { %2649 = vmatpush.bf16.msra.mxu0 %v6250_v5 }
 0x25b   : > { %2331 = vmatmul.bf16.gmra.mxu1 %v6104_v49  ;;  %2380 = vmatmul.bf16.gmra.mxu2 %v6108_v39  ;;  %v6117_v49 = vld [vmem:[%s8320_s24 + $0x370] sm:$0xf0]  ;;  %v6116_v39 = vor.u32 %v7512_v24, %v6115_v1  ;;  %v7517_v1 = vld [vmem:[%s8320_s24 + $0x394] sm:$0xf0] }
 0x25c   : > { %v2006_v57 = vpop.f32.mrf.mxu3  ;;  %v6120_v21 = vor.u32 %v7510_v35, %v6117_v49 }
 0x25d   : > { %v2007_v31 = vadd.f32 %v2006_v57, %v1958_v50  ;;  %v7513_v50 = vld [vmem:[%s8320_s24 + $0x374] sm:$0xf0]  ;;  %v7511_v57 = vld [vmem:[%s8320_s24 + $0x36c] sm:$0xf] }
 0x25e   : > { %v1960_v54 = vpop.f32.mrf.mxu2  ;;  %v1864_v28 = vpop.f32.mrf.mxu0  ;;  %v6124_v2 = vor.u32 %v7513_v50, %v6123_v36 }
 0x25f   : > { %v8815_v42 = vmax.f32 %v1621_v41, %v2007_v31  ;;  %v1961_v9 = vadd.f32 %v1960_v54, %v1912_v16  ;;  %v7550_v41 = vld [vmem:[%s10744_s3 + $0xb4] sm:$0xf]  ;;  %v6125_v31 = vld [vmem:[%s8320_s24 + $0x378] sm:$0xf0] }
 0x260   : > { %v1913_v38 = vpop.f32.mrf.mxu1  ;;  %v6254_v18 = vor.u32 %v7550_v41, %v6251_v60  ;;  %v6128_v47 = vor.u32 %v7511_v57, %v6125_v31  ;;  %v7516_v60 = vld [vmem:[%s8320_s24 + $0x38c] sm:$0xf0] }
 0x261   : > { %6195 = vmatmul.msk.bf16.gmra.mxu3 %vm988_vm1, %v6112_v37  ;;  %v1914_v10 = vadd.f32 %v1913_v38, %v1864_v28  ;;  %v6131_v38 = vld [vmem:[%s8320_s24 + $0x380] sm:$0xf]  ;;  %v6233_v31 = vld [vmem:[%s10744_s3 + $0x90] sm:$0xf] }
 0x262   : > { %2662 = vmatpush.bf16.msra.mxu1 %v6254_v18  ;;  %v6133_v18 = vld [vmem:[%s8320_s24 + $0x390] sm:$0xf0]  ;;  %v6132_v24 = vor.u32 %v7516_v60, %v6131_v38  ;;  %v7520_v38 = vld [vmem:[%s8320_s24 + $0x3ac] sm:$0xf0] }
 0x263   : > { %v6149_v60 = vld [vmem:[%s8320_s24 + $0x3b0] sm:$0xf0] }
 0x264   : > { %v2009_v12 = vpop.f32.mrf.mxu3 }
 0x265   : > { %v2010_v56 = vadd.f32 %v2009_v12, %v1961_v9  ;;  %v6139_v12 = vld [vmem:[%s8320_s24 + $0x388] sm:$0xf] }
 0x266   : > { %v1962_v4 = vpop.f32.mrf.mxu2  ;;  %v1867_v16 = vpop.f32.mrf.mxu0 }
 0x267   : > { %v8839_v20 = vmax.f32 %v1622_v53, %v2010_v56  ;;  %v1963_v63 = vadd.f32 %v1962_v4, %v1914_v10  ;;  %v7514_v10 = vld [vmem:[%s8320_s24 + $0x384] sm:$0xf] }
 0x268   : > { %v1916_v27 = vpop.f32.mrf.mxu1  ;;  %v6136_v35 = vor.u32 %v7514_v10, %v6133_v18  ;;  %v6155_v10 = vld [vmem:[%s8320_s24 + $0x3a8] sm:$0xf]  ;;  %v7521_v18 = vld [vmem:[%s8320_s24 + $0x3b4] sm:$0xf0] }
 0x269   : > { %v1917_v26 = vadd.f32 %v1916_v27, %v1867_v16  ;;  %2287 = vmatmul.bf16.gmra.mxu0 %v6116_v39  ;;  %v6140_v39 = vor.u32 %v7517_v1, %v6139_v12  ;;  %v6246_v16 = vor.u32 %v7547_v3, %v6243_v23  ;;  %v10761_v12 = vmax.f32 %v8571_v29, %v8691_v14 }
 0x26b   : > { %2336 = vmatmul.bf16.gmra.mxu1 %v6120_v21  ;;  %2385 = vmatmul.bf16.gmra.mxu2 %v6124_v2  ;;  %v7515_v21 = vld [vmem:[%s8320_s24 + $0x38c] sm:$0xf] }
 0x26c   : > { %v2011_v37 = vpop.f32.mrf.mxu3  ;;  %2689 = vmatpush.bf16.msra.mxu3 %v6246_v16 }
 0x26d   : > { %v2012_v46 = vadd.f32 %v2011_v37, %v1963_v63  ;;  %v6141_v63 = vld [vmem:[%s8320_s24 + $0x398] sm:$0xf0]  ;;  %v7548_v37 = vld [vmem:[%s10744_s3 + $0x9c] sm:$0xf0] }
 0x26e   : > { %v1965_v45 = vpop.f32.mrf.mxu2  ;;  %v1869_v54 = vpop.f32.mrf.mxu0 }
 0x26f   : > { %v8846_v53 = vmax.f32 %v1623_v15, %v2012_v46  ;;  %v1966_v51 = vadd.f32 %v1965_v45, %v1917_v26  ;;  %v7549_v15 = vld [vmem:[%s10744_s3 + $0xa4] sm:$0xf0]  ;;  %v6144_v26 = vor.u32 %v7515_v21, %v6141_v63  ;;  %v6163_v63 = vld [vmem:[%s8320_s24 + $0x3c0] sm:$0xf] }
 0x270   : > { %v1918_v5 = vpop.f32.mrf.mxu1  ;;  %v6242_v49 = vor.u32 %v7549_v15, %v6241_v13 }
 0x271   : > { %6196 = vmatmul.msk.bf16.gmra.mxu3 %vm988_vm1, %v6128_v47  ;;  %v1919_v9 = vadd.f32 %v1918_v5, %v1869_v54  ;;  %v6234_v47 = vor.u32 %v7548_v37, %v6233_v31  ;;  %v6171_v31 = vld [vmem:[%s8320_s24 + $0x3c8] sm:$0xf]  ;;  %v7525_v37 = vld [vmem:[%s8320_s24 + $0x3d4] sm:$0xf0] }
 0x272   : > { %2676 = vmatpush.bf16.msra.mxu2 %v6242_v49  ;;  %v6156_v49 = vor.u32 %v7521_v18, %v6155_v10  ;;  %v7523_v10 = vld [vmem:[%s8320_s24 + $0x3cc] sm:$0xf]  ;;  %v6173_v18 = vld [vmem:[%s8320_s24 + $0x3d8] sm:$0xf0] }
 0x273   : > { %2650 = vmatpush.bf16.msra.mxu0 %v6234_v47 }
 0x274   : > { %v2014_v28 = vpop.f32.mrf.mxu3 }
 0x275   : > { %v2015_v41 = vadd.f32 %v2014_v28, %v1966_v51  ;;  %v6235_v51 = vld [vmem:[%s10744_s3 + $0xa0] sm:$0xf0] }
 0x276   : > { %v1967_v56 = vpop.f32.mrf.mxu2  ;;  %v1872_v50 = vpop.f32.mrf.mxu0 }
 0x277   : > { %v8858_v6 = vmax.f32 %v1624_v30, %v2015_v41  ;;  %v1968_v36 = vadd.f32 %v1967_v56, %v1919_v9  ;;  %v6147_v9 = vld [vmem:[%s8320_s24 + $0x3a0] sm:$0xf]  ;;  %v7518_v41 = vld [vmem:[%s8320_s24 + $0x3a4] sm:$0xf] }
 0x278   : > { %v1921_v4 = vpop.f32.mrf.mxu1  ;;  %v6148_v15 = vor.u32 %v7520_v38, %v6147_v9  ;;  %v6152_v56 = vor.u32 %v7518_v41, %v6149_v60  ;;  %v6172_v41 = vor.u32 %v7525_v37, %v6171_v31  ;;  %v6181_v31 = vld [vmem:[%s8320_s24 + $0x3f0] sm:$0xf0]  ;;  %v6187_v37 = vld [vmem:[%s8320_s24 + $0x3e8] sm:$0xf] }
 0x279   : > { %v1922_v30 = vadd.f32 %v1921_v4, %v1872_v50  ;;  %2292 = vmatmul.bf16.gmra.mxu0 %v6132_v24  ;;  %v7519_v50 = vld [vmem:[%s8320_s24 + $0x3ac] sm:$0xf]  ;;  %v6157_v4 = vld [vmem:[%s8320_s24 + $0x3b8] sm:$0xf0] }
 0x27a   : > { %v6160_v29 = vor.u32 %v7519_v50, %v6157_v4 }
 0x27b   : > { %2341 = vmatmul.bf16.gmra.mxu1 %v6136_v35  ;;  %2390 = vmatmul.bf16.gmra.mxu2 %v6140_v39 }
 0x27c   : > { %v2016_v27 = vpop.f32.mrf.mxu3 }
 0x27d   : > { %v2017_v2 = vadd.f32 %v2016_v27, %v1968_v36  ;;  %v7524_v27 = vld [vmem:[%s8320_s24 + $0x3cc] sm:$0xf0] }
 0x27e   : > { %v1970_v46 = vpop.f32.mrf.mxu2  ;;  %v8886_v25 = vpop.f32.mrf.mxu0 }
 0x27f   : > { %v8877_v57 = vmax.f32 %v1625_v58, %v2017_v2  ;;  %v1971_v45 = vadd.f32 %v1970_v46, %v1922_v30  ;;  %v7546_v58 = vld [vmem:[%s10744_s3 + $0x94] sm:$0xf]  ;;  %v7522_v2 = vld [vmem:[%s8320_s24 + $0x3c4] sm:$0xf]  ;;  %v10763_v46 = vmax.f32 %v8584_v59, %v8708_v61  ;;  %v7543_v59 = vld [vmem:[%s10744_s3 + $0x7c] sm:$0xf] }
 0x280   : > { %v8888_v55 = vpop.f32.mrf.mxu1  ;;  %v6238_v54 = vor.u32 %v7546_v58, %v6235_v51  ;;  %v7545_v58 = vld [vmem:[%s10744_s3 + $0x84] sm:$0xf0]  ;;  %v6227_v61 = vld [vmem:[%s10744_s3 + $0x88] sm:$0xf0] }
 0x281   : > { %6197 = vmatmul.msk.bf16.gmra.mxu3 %vm988_vm1, %v6144_v26  ;;  %v6165_v26 = vld [vmem:[%s8320_s24 + $0x3d0] sm:$0xf0] }
 0x282   : > { %2663 = vmatpush.bf16.msra.mxu1 %v6238_v54  ;;  %v6164_v54 = vor.u32 %v7524_v27, %v6163_v63 }
 0x284   : > { %v2019_v5 = vpop.f32.mrf.mxu3 }
 0x285   : > { %v2020_v28 = vadd.f32 %v2019_v5, %v1971_v45  ;;  %v6225_v45 = vld [vmem:[%s10744_s3 + $0x78] sm:$0xf]  ;;  %v6168_v5 = vor.u32 %v7522_v2, %v6165_v26  ;;  %v7528_v2 = vld [vmem:[%s8320_s24 + $0x3ec] sm:$0xf0]  ;;  %v7526_v26 = vld [vmem:[%s8320_s24 + $0x3e4] sm:$0xf] }
 0x286   : > { %v8907_v13 = vpop.f32.mrf.mxu2  ;;  %v1877_v24 = vpop.f32.mrf.mxu0  ;;  %v6226_v9 = vor.u32 %v7545_v58, %v6225_v45  ;;  %v10766_v45 = vmax.f32 %v8597_v40, %v8725_v62 }
 0x287   : > { %v8905_v1 = vmax.f32 %v10761_v12, %v2020_v28  ;;  %v6230_v12 = vor.u32 %v7543_v59, %v6227_v61  ;;  %v7527_v61 = vld [vmem:[%s8320_s24 + $0x3ec] sm:$0xf] }
 0x288   : > { %v1926_v35 = vpop.f32.mrf.mxu1  ;;  %2677 = vmatpush.bf16.msra.mxu2 %v6226_v9  ;;  %v6184_v9 = vor.u32 %v7526_v26, %v6181_v31 }
 0x289   : > { %v1927_v36 = vadd.f32 %v1926_v35, %v1877_v24  ;;  %2297 = vmatmul.bf16.gmra.mxu0 %v6148_v15  ;;  %2690 = vmatpush.bf16.msra.mxu3 %v6230_v12  ;;  %v6217_v24 = vld [vmem:[%s10744_s3 + $0x70] sm:$0xf]  ;;  %v7544_v35 = vld [vmem:[%s10744_s3 + $0x7c] sm:$0xf0] }
 0x28b   : > { %2346 = vmatmul.bf16.gmra.mxu1 %v6152_v56  ;;  %2395 = vmatmul.bf16.gmra.mxu2 %v6156_v49  ;;  %v6176_v56 = vor.u32 %v7523_v10, %v6173_v18 }
 0x28c   : > { %v8911_v39 = vpop.f32.mrf.mxu3 }
 0x28d   : > { %10762 = vst [vmem:[#allocation9_spill] sm:$0xff] %v8911_v39 }
 0x28e   : > { %v1975_v14 = vpop.f32.mrf.mxu2  ;;  %v8914_v23 = vpop.f32.mrf.mxu0 }
 0x28f   : > { %v1976_v3 = vadd.f32 %v1975_v14, %v1927_v36  ;;  %v6218_v36 = vor.u32 %v7544_v35, %v6217_v24  ;;  %v7542_v14 = vld [vmem:[%s10744_s3 + $0x74] sm:$0xf]  ;;  %v2541_v24 = vld [vmem:[%s10744_s3 + $0x68] sm:$0x11]  ;;  %v2540_v35 = vld [vmem:[%s10744_s3 + $0x60] sm:$0x11] }
 0x290   : > { %v8916_v30 = vpop.f32.mrf.mxu1 }
 0x291   : > { %6198 = vmatmul.msk.bf16.gmra.mxu3 %vm988_vm1, %v6160_v29  ;;  %2651 = vmatpush.bf16.msra.mxu0 %v6218_v36  ;;  %v2736_v36 = vunpack.c.l.b16 %v2541_v24 }
 0x294   : > { %v2024_v21 = vpop.f32.mrf.mxu3 }
 0x295   : > { %v2025_v16 = vadd.f32 %v2024_v21, %v1976_v3  ;;  %v6219_v3 = vld [vmem:[%s10744_s3 + $0x80] sm:$0xf0] }
 0x296   : > { %v8935_v51 = vpop.f32.mrf.mxu2  ;;  %v1882_v28 = vpop.f32.mrf.mxu0  ;;  %v6222_v21 = vor.u32 %v7542_v14, %v6219_v3  ;;  %v2735_v14 = vunpack.c.h.b16 %v2540_v35  ;;  %v2737_v3 = vunpack.c.h.b16 %v2541_v24 }
 0x297   : > { %v8927_v47 = vmax.f32 %v10763_v46, %v2025_v16  ;;  %v6179_v16 = vld [vmem:[%s8320_s24 + $0x3e0] sm:$0xf]  ;;  %v7529_v46 = vld [vmem:[%s8320_s24 + $0x3f4] sm:$0xf0] }
 0x298   : > { %v1931_v38 = vpop.f32.mrf.mxu1  ;;  %2664 = vmatpush.bf16.msra.mxu1 %v6222_v21  ;;  %v2753_v31 = vpack.c.b16 %v2737_v3, %v2737_v3  ;;  %v6285_v3 = vld [vmem:[%s10744_s3 + $0x20] sm:$0xf] }
 0x299   : > { %v1932_v60 = vadd.f32 %v1931_v38, %v1882_v28  ;;  %2302 = vmatmul.bf16.gmra.mxu0 %v6164_v54 }
 0x29b   : > { %2351 = vmatmul.bf16.gmra.mxu1 %v6168_v5  ;;  %2400 = vmatmul.bf16.gmra.mxu2 %v6172_v41  ;;  %v6180_v5 = vor.u32 %v7528_v2, %v6179_v16  ;;  %v6188_v41 = vor.u32 %v7529_v46, %v6187_v37  ;;  %v10771_v2 = vmax.f32 %v8610_v7, %v8742_v19  ;;  %v6309_v7 = vld [vmem:[%s10744_s3 + $0x48] sm:$0xf]  ;;  %v7541_v19 = vld [vmem:[%s10744_s3 + $0x54] sm:$0xf0] }
 0x29c   : > { %v8945_v15 = vpop.f32.mrf.mxu3 }
 0x29e   : > { %v1980_v49 = vpop.f32.mrf.mxu2  ;;  %v8954_v4 = vpop.f32.mrf.mxu0 }
 0x29f   : > { %v1981_v50 = vadd.f32 %v1980_v49, %v1932_v60  ;;  %10764 = vst [vmem:[#allocation10_spill] sm:$0xff] %v8954_v4  ;;  %v6189_v60 = vld [vmem:[%s8320_s24 + $0x3f8] sm:$0xf0] }
 0x2a0   : > { %v8956_v29 = vpop.f32.mrf.mxu1  ;;  %v6192_v18 = vor.u32 %v7527_v61, %v6189_v60  ;;  %v7540_v61 = vld [vmem:[%s10744_s3 + $0x4c] sm:$0xf0]  ;;  %v7538_v60 = vld [vmem:[%s10744_s3 + $0x44] sm:$0xf] }
 0x2a1   : > { %6199 = vmatmul.msk.bf16.gmra.mxu3 %vm988_vm1, %v6176_v56  ;;  %10765 = vst [vmem:[#allocation11_spill] sm:$0xff] %v8956_v29 }
 0x2a4   : > { %v2029_v63 = vpop.f32.mrf.mxu3 }
 0x2a5   : > { %v2030_v27 = vadd.f32 %v2029_v63, %v1981_v50  ;;  %v2734_v50 = vunpack.c.l.b16 %v2540_v35  ;;  %v2752_v63 = vpack.c.b16 %v2736_v36, %v2736_v36  ;;  %v7539_v35 = vld [vmem:[%s10744_s3 + $0x4c] sm:$0xf] }
 0x2a6   : > { %v8975_v54 = vpop.f32.mrf.mxu2  ;;  %v1887_v28 = vpop.f32.mrf.mxu0 }
 0x2a7   : > { %v8973_v58 = vmax.f32 %v10766_v45, %v2030_v27  ;;  %10767 = vst [vmem:[#allocation12_spill] sm:$0xff] %v8975_v54  ;;  %v2750_v16 = vpack.c.b16 %v2734_v50, %v2734_v50  ;;  %v2751_v27 = vpack.c.b16 %v2735_v14, %v2735_v14  ;;  %v2776_v46 = vsel %vm2631_vm2, %v2752_v63, 0  ;;  %v6293_v50 = vld [vmem:[%s10744_s3 + $0x28] sm:$0xf]  ;;  %v7537_v14 = vld [vmem:[%s10744_s3 + $0x34] sm:$0xf0] }
 0x2a8   : > { %v1936_v38 = vpop.f32.mrf.mxu1  ;;  %2811 = vmatpush.bf16.msrb.mxu2 %v2776_v46  ;;  %v7536_v63 = vld [vmem:[%s10744_s3 + $0x2c] sm:$0xf0] }
 0x2a9   : > { %v1937_v59 = vadd.f32 %v1936_v38, %v1887_v28  ;;  %2307 = vmatmul.bf16.gmra.mxu0 %v6180_v5  ;;  %v2770_v45 = vsel %vm2631_vm2, %v2750_v16, 0  ;;  %v2773_v5 = vsel %vm2631_vm2, %v2751_v27, 0  ;;  %v2779_v38 = vsel %vm2631_vm2, %v2753_v31, 0  ;;  %v7534_v16 = vld [vmem:[%s10744_s3 + $0x24] sm:$0xf] }
 0x2aa   : > { %2785 = vmatpush.bf16.msrb.mxu0 %v2770_v45  ;;  %2798 = vmatpush.bf16.msrb.mxu1 %v2773_v5  ;;  %v6287_v27 = vld [vmem:[%s10744_s3 + $0x30] sm:$0xf0]  ;;  %v6286_v31 = vor.u32 %v7536_v63, %v6285_v3  ;;  %v7535_v45 = vld [vmem:[%s10744_s3 + $0x2c] sm:$0xf]  ;;  %v6295_v5 = vld [vmem:[%s10744_s3 + $0x38] sm:$0xf0] }
 0x2ab   : > { %2356 = vmatmul.bf16.gmra.mxu1 %v6184_v9  ;;  %2405 = vmatmul.bf16.gmra.mxu2 %v6188_v41  ;;  %v6301_v41 = vld [vmem:[%s10744_s3 + $0x40] sm:$0xf]  ;;  %v6290_v46 = vor.u32 %v7534_v16, %v6287_v27 }
 0x2ac   : > { %v8979_v10 = vpop.f32.mrf.mxu3  ;;  %2824 = vmatpush.bf16.msrb.mxu3 %v2779_v38 }
 0x2ad   : > { %10768 = vst [vmem:[#allocation13_spill] sm:$0xff] %v8979_v10 }
 0x2ae   : > { %v1985_v12 = vpop.f32.mrf.mxu2  ;;  %v8982_v62 = vpop.f32.mrf.mxu0 }
 0x2af   : > { %v1986_v40 = vadd.f32 %v1985_v12, %v1937_v59  ;;  %10769 = vst [vmem:[#allocation14_spill] sm:$0xff] %v8982_v62  ;;  %v6310_v59 = vor.u32 %v7541_v19, %v6309_v7  ;;  %v6298_v19 = vor.u32 %v7535_v45, %v6295_v5 }
 0x2b0   : > { %v8984_v56 = vpop.f32.mrf.mxu1 }
 0x2b1   : > { %6200 = vmatmul.msk.bf16.gmra.mxu3 %vm988_vm1, %v6192_v18  ;;  %10770 = vst [vmem:[#allocation15_spill] sm:$0xff] %v8984_v56  ;;  %v6303_v18 = vld [vmem:[%s10744_s3 + $0x50] sm:$0xf0]  ;;  %2812 = vmatpush.bf16.msrb.mxu2 %v6310_v59  ;;  %v7533_v59 = vld [vmem:[%s10744_s3 + $0x14] sm:$0xf0] }
 0x2b2   : > { %v6306_v24 = vor.u32 %v7538_v60, %v6303_v18  ;;  %v7532_v18 = vld [vmem:[%s10744_s3 + $0xc] sm:$0xf0] }
 0x2b4   : > { %v2034_v49 = vpop.f32.mrf.mxu3  ;;  %2799 = vmatpush.bf16.msrb.mxu1 %v6306_v24  ;;  %v6271_v24 = vld [vmem:[%s10744_s3 + $0x10] sm:$0xf0] }
 0x2b5   : > { %v2035_v21 = vadd.f32 %v2034_v49, %v1986_v40  ;;  %v6302_v40 = vor.u32 %v7540_v61, %v6301_v41  ;;  %v6311_v49 = vld [vmem:[%s10744_s3 + $0x58] sm:$0xf0]  ;;  %v6277_v41 = vld [vmem:[%s10744_s3 + $0x8] sm:$0xf]  ;;  %v6269_v61 = vld [vmem:[%s10744_s3] sm:$0xf] }
 0x2b6   : > { %v8997_v37 = vpop.f32.mrf.mxu2  ;;  %v9002_v9 = vpop.f32.mrf.mxu0  ;;  %v6314_v36 = vor.u32 %v7539_v35, %v6311_v49  ;;  %v6278_v60 = vor.u32 %v7533_v59, %v6277_v41  ;;  %v6270_v49 = vor.u32 %v7532_v18, %v6269_v61 }
 0x2b7   : > { %v8995_v26 = vmax.f32 %v10771_v2, %v2035_v21  ;;  %10772 = vst [vmem:[#allocation16_spill] sm:$0xff] %v8997_v37  ;;  %2786 = vmatpush.bf16.msrb.mxu0 %v6302_v40  ;;  %v6294_v21 = vor.u32 %v7537_v14, %v6293_v50  ;;  %v7530_v40 = vld [vmem:[%s10744_s3 + $0x4] sm:$0xf]  ;;  %v7531_v50 = vld [vmem:[%s10744_s3 + $0xc] sm:$0xf] }
 0x2b8   : > { %v9004_v28 = vpop.f32.mrf.mxu1  ;;  %2825 = vmatpush.bf16.msrb.mxu3 %v6314_v36  ;;  %2800 = vmatpush.bf16.msrb.mxu1 %v6290_v46  ;;  %v6274_v36 = vor.u32 %v7530_v40, %v6271_v24  ;;  %v6279_v14 = vld [vmem:[%s10744_s3 + $0x18] sm:$0xf0]  ;;  %v6331_v46 = vld [vmem:[%s10744_s3 + $0x140] sm:$0x11]  ;;  %v7557_v37 = vld [vmem:[%s10744_s3 + $0xf4] sm:$0xf0] }
 0x2b9   : > { %2813 = vmatpush.bf16.msrb.mxu2 %v6294_v21  ;;  %v6282_v3 = vor.u32 %v7531_v50, %v6279_v14  ;;  %v2323_v5 = vadd.f32 %v9004_v28, %v9002_v9  ;;  %v2887_v61 = vunpack.c.h.b16 %v6331_v46 }
 0x2bb   : > { %2787 = vmatpush.bf16.msrb.mxu0 %v6286_v31  ;;  %v6332_v31 = vld [vmem:[%s10744_s3 + $0x148] sm:$0x11] }
 0x2bc   : > { %v9025_v12 = vpop.f32.mrf.mxu3  ;;  %2826 = vmatpush.bf16.msrb.mxu3 %v6298_v19  ;;  %2801 = vmatpush.bf16.msrb.mxu1 %v6274_v36  ;;  %v2888_v41 = vunpack.c.l.b16 %v6332_v31  ;;  %v2889_v59 = vunpack.c.h.b16 %v6332_v31 }
 0x2bd   : > { %10773 = vst [vmem:[#allocation17_spill] sm:$0xff] %v9025_v12  ;;  %2814 = vmatpush.bf16.msrb.mxu2 %v6278_v60  ;;  %v9096_v60 = vld [vmem:[%s10743_s2] ss:$0 sm:$0xff]  ;;  %v6343_v12 = vld [vmem:[%s10744_s3 + $0xe8] sm:$0xf] }
 0x2be   : > { %v2371_v2 = vpop.f32.mrf.mxu2  ;;  %v2275_v38 = vpop.f32.mrf.mxu0  ;;  %v2905_v36 = vpack.c.b16 %v2889_v59, %v2889_v59  ;;  %v7564_v59 = vld [vmem:[%s10744_s3 + $0x12c] sm:$0xf0] }
 0x2bf   : > { %2788 = vmatpush.bf16.msrb.mxu0 %v6270_v49  ;;  %v2372_v40 = vadd.f32 %v2371_v2, %v2323_v5  ;;  %v2904_v49 = vpack.c.b16 %v2888_v41, %v2888_v41  ;;  %v6367_v41 = vld [vmem:[%s10744_s3 + $0x120] sm:$0xf] }
 0x2c0   : > { %v2324_v7 = vpop.f32.mrf.mxu1  ;;  %2827 = vmatpush.bf16.msrb.mxu3 %v6282_v3  ;;  %v2903_v3 = vpack.c.b16 %v2887_v61, %v2887_v61  ;;  %v2931_v2 = vsel %vm2631_vm2, %v2905_v36, 0  ;;  %v7563_v61 = vld [vmem:[%s10744_s3 + $0x12c] sm:$0xf]  ;;  %v6359_v36 = vld [vmem:[%s10744_s3 + $0x108] sm:$0xf] }
 0x2c1   : > { %v2325_v63 = vadd.f32 %v2324_v7, %v2275_v38  ;;  %v2886_v7 = vunpack.c.l.b16 %v6331_v46 }
 0x2c2   : > { %v2925_v5 = vsel %vm2631_vm2, %v2903_v3, 0 }
 0x2c3   : > { %v2902_v14 = vpack.c.b16 %v2886_v7, %v2886_v7  ;;  %v6369_v7 = vld [vmem:[%s10744_s3 + $0x130] sm:$0xf0] }
 0x2c4   : > { %v2420_v35 = vpop.f32.mrf.mxu3 }
 0x2c6   : > { %v2373_v21 = vpop.f32.mrf.mxu2  ;;  %v9081_v16 = vpop.f32.mrf.mxu0 }
 0x2c7   : > { %v2374_v45 = vadd.f32 %v2373_v21, %v2325_v63  ;;  %v2421_v63 = vadd.f32 %v2420_v35, %v2372_v40  ;;  %v7565_v35 = vld [vmem:[%s10744_s3 + $0x134] sm:$0xf0] }
 0x2c8   : > { %v9083_v27 = vpop.f32.mrf.mxu1 }
 0x2c9   : > { %v2460_v40 = vmax.f32 %v8777_v17, %v2421_v63  ;;  %v7561_v17 = vld [vmem:[%s10744_s3 + $0x114] sm:$0xf0] }
 0x2ca   : > { %v6398_v63 = vld [vmem:[%s10744_s3 + $0x1b8] sm:$0x11] }
 0x2cb   : > { %v3045_v56 = vunpack.c.h.b16 %v6398_v63 }
 0x2cc   : > { %v2422_v19 = vpop.f32.mrf.mxu3 }
 0x2cd   : > { %v2423_v38 = vadd.f32 %v2422_v19, %v2374_v45  ;;  %v2922_v45 = vsel %vm2631_vm2, %v2902_v14, 0  ;;  %v6375_v19 = vld [vmem:[%s10744_s3 + $0x128] sm:$0xf]  ;;  %v3061_v43 = vpack.c.b16 %v3045_v56, %v3045_v56  ;;  %v6441_v56 = vld [vmem:[%s10744_s3 + $0x198] sm:$0xf] }
 0x2ce   : > { %v9099_v24 = vpop.f32.mrf.mxu2  ;;  %v9102_v28 = vpop.f32.mrf.mxu0  ;;  %v6376_v3 = vor.u32 %v7565_v35, %v6375_v19  ;;  %v7558_v19 = vld [vmem:[%s10744_s3 + $0x104] sm:$0xf]  ;;  %v6353_v35 = vld [vmem:[%s10744_s3 + $0x110] sm:$0xf0] }
 0x2cf   : > { %v2461_v18 = vmax.f32 %v8784_v32, %v2423_v38  ;;  %v2928_v32 = vsel %vm2631_vm2, %v2904_v49, 0  ;;  %v7562_v38 = vld [vmem:[%s10744_s3 + $0x124] sm:$0xf] }
 0x2d0   : > { %v9104_v50 = vpop.f32.mrf.mxu1  ;;  %v6372_v22 = vor.u32 %v7562_v38, %v6369_v7  ;;  %v3044_v7 = vunpack.c.l.b16 %v6398_v63 }
 0x2d1   : > { %v2481_v9 = vadd.f32 %v9096_v60, %v2461_v18  ;;  %v6377_v18 = vld [vmem:[%s10744_s3 + $0x138] sm:$0xf0] }
 0x2d2   : > { %v6380_v34 = vor.u32 %v7563_v61, %v6377_v18  ;;  %v6360_v18 = vor.u32 %v7561_v17, %v6359_v36  ;;  %v7556_v36 = vld [vmem:[%s10744_s3 + $0xec] sm:$0xf0]  ;;  %v6337_v17 = vld [vmem:[%s10744_s3 + $0xf0] sm:$0xf0] }
 0x2d3   : > { %v2497_v21 = vmax.f32 %v2481_v9, 0.0 }
 0x2d4   : > { %v9106_v31 = vpop.f32.mrf.mxu3 }
 0x2d5   : > { %v2513_v46 = vpack.c.bf16 %v2497_v21, %v2497_v21  ;;  %v6368_v21 = vor.u32 %v7564_v59, %v6367_v41  ;;  %v2480_v41 = vadd.f32 %v9096_v60, %v2460_v40  ;;  %v2328_v59 = vadd.f32 %v9083_v27, %v9081_v16 }
 0x2d6   : > { %v9141_v49 = vpop.f32.mrf.mxu2  ;;  %v9146_v9 = vpop.f32.mrf.mxu0  ;;  %v6356_v16 = vor.u32 %v7558_v19, %v6353_v35 }
 0x2d7   : > { %6263 = vmatmul.msk.bf16.vlgmr.msra.gmra.mxu0 %vm2627_vm3, %v2513_v46  ;;  %6264 = vmatmul.msk.bf16.vlgmr.msra.gmra.mxu1 %vm2627_vm3, %v2513_v46  ;;  %v2377_v63 = vadd.f32 %v9099_v24, %v2328_v59  ;;  %v2496_v35 = vmax.f32 %v2480_v41, 0.0 }
 0x2d8   : > { %6265 = vmatmul.msk.bf16.vlgmr.msra.gmra.mxu2 %vm2627_vm3, %v2513_v46  ;;  %6266 = vmatmul.msk.bf16.vlgmr.msra.gmra.mxu3 %vm2627_vm3, %v2513_v46  ;;  %v9148_v14 = vpop.f32.mrf.mxu1  ;;  %v6397_v46 = vld [vmem:[%s10744_s3 + $0x1b0] sm:$0x11] }
 0x2d9   : > { %2963 = vmatpush.bf16.msra.mxu2 %v2928_v32  ;;  %2937 = vmatpush.bf16.msra.mxu0 %v2922_v45  ;;  %v6351_v32 = vld [vmem:[%s10744_s3 + $0x100] sm:$0xf]  ;;  %v7560_v45 = vld [vmem:[%s10744_s3 + $0x10c] sm:$0xf0]  ;;  %v3042_v61 = vunpack.c.l.b16 %v6397_v46  ;;  %v3043_v40 = vunpack.c.h.b16 %v6397_v46  ;;  %v2426_v24 = vadd.f32 %v9106_v31, %v2377_v63  ;;  %v2512_v41 = vpack.c.bf16 %v2496_v35, %v2496_v35  ;;  %v7577_v31 = vld [vmem:[%s10744_s3 + $0x1a4] sm:$0xf0] }
 0x2da   : > { %2950 = vmatpush.bf16.msra.mxu1 %v2925_v5  ;;  %2976 = vmatpush.bf16.msra.mxu3 %v2931_v2  ;;  %v7559_v2 = vld [vmem:[%s10744_s3 + $0x10c] sm:$0xf]  ;;  %v6361_v5 = vld [vmem:[%s10744_s3 + $0x118] sm:$0xf0]  ;;  %v6352_v8 = vor.u32 %v7560_v45, %v6351_v32  ;;  %v6344_v32 = vor.u32 %v7557_v37, %v6343_v12  ;;  %v3060_v45 = vpack.c.b16 %v3044_v7, %v3044_v7  ;;  %v3087_v7 = vsel %vm2631_vm2, %v3061_v43, 0 }
 0x2db   : > { %v6364_v27 = vor.u32 %v7559_v2, %v6361_v5  ;;  %v3058_v19 = vpack.c.b16 %v3042_v61, %v3042_v61  ;;  %v3059_v52 = vpack.c.b16 %v3043_v40, %v3043_v40  ;;  %v6433_v61 = vld [vmem:[%s10744_s3 + $0x190] sm:$0xf]  ;;  %v7574_v43 = vld [vmem:[%s10744_s3 + $0x194] sm:$0xf]  ;;  %v6419_v35 = vld [vmem:[%s10744_s3 + $0x180] sm:$0xf0] }
 0x2dc   : > { %v9180_v38 = vpop.f32.mrf.mxu3  ;;  %v3084_v37 = vsel %vm2631_vm2, %v3060_v45, 0  ;;  %v7572_v45 = vld [vmem:[%s10744_s3 + $0x17c] sm:$0xf0] }
 0x2dd   : > { %2964 = vmatpush.bf16.msra.mxu2 %v6376_v3  ;;  %2938 = vmatpush.bf16.msra.mxu0 %v6368_v21  ;;  %v6335_v3 = vld [vmem:[%s10744_s3 + $0xe0] sm:$0xf]  ;;  %v7554_v21 = vld [vmem:[%s10744_s3 + $0xe4] sm:$0xf]  ;;  %v3078_v12 = vsel %vm2631_vm2, %v3058_v19, 0 }
 0x2de   : > { %2951 = vmatpush.bf16.msra.mxu1 %v6372_v22  ;;  %2977 = vmatpush.bf16.msra.mxu3 %v6380_v34  ;;  %v7555_v34 = vld [vmem:[%s10744_s3 + $0xec] sm:$0xf]  ;;  %v6345_v22 = vld [vmem:[%s10744_s3 + $0xf8] sm:$0xf0]  ;;  %v9207_v46 = vpop.f32.mrf.mxu2  ;;  %v9209_v2 = vpop.f32.mrf.mxu0  ;;  %v6336_v62 = vor.u32 %v7556_v36, %v6335_v3  ;;  %v6340_v10 = vor.u32 %v7554_v21, %v6337_v17  ;;  %v6442_v36 = vor.u32 %v7577_v31, %v6441_v56  ;;  %v7570_v19 = vld [vmem:[%s10744_s3 + $0x174] sm:$0xf] }
 0x2df   : > { %v6348_v54 = vor.u32 %v7555_v34, %v6345_v22  ;;  %v6464_v17 = vld [vmem:[%s10744_s3 + $0x228] sm:$0x11]  ;;  %v6463_v34 = vld [vmem:[%s10744_s3 + $0x220] sm:$0x11] }
 0x2e0   : > { %v9211_v5 = vpop.f32.mrf.mxu1  ;;  %v3198_v56 = vunpack.c.l.b16 %v6463_v34 }
 0x2e1   : > { %2965 = vmatpush.bf16.msra.mxu2 %v6360_v18  ;;  %2939 = vmatpush.bf16.msra.mxu0 %v6352_v8  ;;  %v3081_v8 = vsel %vm2631_vm2, %v3059_v52, 0  ;;  %v7576_v52 = vld [vmem:[%s10744_s3 + $0x19c] sm:$0xf0]  ;;  %v2462_v18 = vmax.f32 %v8796_v11, %v2426_v24  ;;  %v7573_v11 = vld [vmem:[%s10744_s3 + $0x184] sm:$0xf0] }
 0x2e2   : > { %2952 = vmatpush.bf16.msra.mxu1 %v6356_v16  ;;  %2978 = vmatpush.bf16.msra.mxu3 %v6364_v27  ;;  %v6425_v16 = vld [vmem:[%s10744_s3 + $0x178] sm:$0xf]  ;;  %v6434_v21 = vor.u32 %v7576_v52, %v6433_v61  ;;  %v7571_v24 = vld [vmem:[%s10744_s3 + $0x17c] sm:$0xf] }
 0x2e3   : > { %v6426_v31 = vor.u32 %v7573_v11, %v6425_v16  ;;  %v6409_v52 = vld [vmem:[%s10744_s3 + $0x158] sm:$0xf]  ;;  %v7566_v16 = vld [vmem:[%s10744_s3 + $0x154] sm:$0xf]  ;;  %v6411_v11 = vld [vmem:[%s10744_s3 + $0x168] sm:$0xf0] }
 0x2e4   : > { %v9214_v59 = vpop.f32.mrf.mxu3 }
 0x2e5   : > { %2966 = vmatpush.bf16.msra.mxu2 %v6344_v32  ;;  %2940 = vmatpush.bf16.msra.mxu0 %v6336_v62  ;;  %v6443_v62 = vld [vmem:[%s10744_s3 + $0x1a8] sm:$0xf0]  ;;  %v6417_v32 = vld [vmem:[%s10744_s3 + $0x170] sm:$0xf] }
 0x2e6   : > { %2953 = vmatpush.bf16.msra.mxu1 %v6340_v10  ;;  %2979 = vmatpush.bf16.msra.mxu3 %v6348_v54  ;;  %v6435_v54 = vld [vmem:[%s10744_s3 + $0x1a0] sm:$0xf0]  ;;  %v7575_v10 = vld [vmem:[%s10744_s3 + $0x19c] sm:$0xf]  ;;  %v9249_v40 = vpop.f32.mrf.mxu2  ;;  %v9254_v27 = vpop.f32.mrf.mxu0  ;;  %v6418_v61 = vor.u32 %v7572_v45, %v6417_v32  ;;  %v3214_v32 = vpack.c.b16 %v3198_v56, %v3198_v56 }
 0x2e7   : > { %6315 = vmatmul.msk.bf16.vlgmr.msrb.gmra.mxu0 %vm2627_vm3, %v2512_v41  ;;  %6316 = vmatmul.msk.bf16.vlgmr.msrb.gmra.mxu1 %vm2627_vm3, %v2512_v41  ;;  %v6438_v22 = vor.u32 %v7574_v43, %v6435_v54  ;;  %v6446_v63 = vor.u32 %v7575_v10, %v6443_v62  ;;  %v7569_v43 = vld [vmem:[%s10744_s3 + $0x164] sm:$0xf0]  ;;  %v3199_v54 = vunpack.c.h.b16 %v6463_v34  ;;  %v3201_v10 = vunpack.c.h.b16 %v6464_v17  ;;  %v6401_v62 = vld [vmem:[%s10744_s3 + $0x150] sm:$0xf] }
 0x2e8   : > { %6317 = vmatmul.msk.bf16.vlgmr.msrb.gmra.mxu2 %vm2627_vm3, %v2512_v41  ;;  %6318 = vmatmul.msk.bf16.vlgmr.msrb.gmra.mxu3 %vm2627_vm3, %v2512_v41  ;;  %v9256_v3 = vpop.f32.mrf.mxu1  ;;  %v2330_v41 = vadd.f32 %v9104_v50, %v9102_v28  ;;  %v6422_v28 = vor.u32 %v7570_v19, %v6419_v35 }
 0x2e9   : > { %3119 = vmatpush.bf16.msrb.mxu2 %v3084_v37  ;;  %3093 = vmatpush.bf16.msrb.mxu0 %v3078_v12  ;;  %v6427_v37 = vld [vmem:[%s10744_s3 + $0x188] sm:$0xf0]  ;;  %v2482_v12 = vadd.f32 %v9096_v60, %v2462_v18  ;;  %v7568_v18 = vld [vmem:[%s10744_s3 + $0x15c] sm:$0xf0]  ;;  %v3217_v29 = vpack.c.b16 %v3201_v10, %v3201_v10  ;;  %v6509_v10 = vld [vmem:[%s10744_s3 + $0x218] sm:$0xf0] }
 0x2ea   : > { %3106 = vmatpush.bf16.msrb.mxu1 %v3081_v8  ;;  %3132 = vmatpush.bf16.msrb.mxu3 %v3087_v7  ;;  %v3200_v7 = vunpack.c.l.b16 %v6464_v17  ;;  %v6430_v50 = vor.u32 %v7571_v24, %v6427_v37  ;;  %v2379_v17 = vadd.f32 %v9141_v49, %v2330_v41  ;;  %v6402_v24 = vor.u32 %v7568_v18, %v6401_v62  ;;  %v6491_v18 = vld [vmem:[%s10744_s3 + $0x1e8] sm:$0xf] }
 0x2eb   : > { %v2498_v45 = vmax.f32 %v2482_v12, 0.0  ;;  %v3215_v37 = vpack.c.b16 %v3199_v54, %v3199_v54  ;;  %v3234_v12 = vsel %vm2631_vm2, %v3214_v32, 0  ;;  %v7588_v54 = vld [vmem:[%s10744_s3 + $0x20c] sm:$0xf0] }
 0x2ec   : > { %v9288_v8 = vpop.f32.mrf.mxu3  ;;  %v2428_v49 = vadd.f32 %v9180_v38, %v2379_v17  ;;  %v7589_v38 = vld [vmem:[%s10744_s3 + $0x214] sm:$0xf0]  ;;  %v7584_v32 = vld [vmem:[%s10744_s3 + $0x1ec] sm:$0xf0] }
 0x2ed   : > { %3120 = vmatpush.bf16.msrb.mxu2 %v6442_v36  ;;  %3094 = vmatpush.bf16.msrb.mxu0 %v6434_v21  ;;  %v6403_v36 = vld [vmem:[%s10744_s3 + $0x160] sm:$0xf0]  ;;  %v7567_v21 = vld [vmem:[%s10744_s3 + $0x15c] sm:$0xf]  ;;  %v2514_v56 = vpack.c.bf16 %v2498_v45, %v2498_v45 }
 0x2ee   : > { %3107 = vmatpush.bf16.msrb.mxu1 %v6438_v22  ;;  %3133 = vmatpush.bf16.msrb.mxu3 %v6446_v63  ;;  %v9315_v34 = vpop.f32.mrf.mxu2  ;;  %v6410_v22 = vor.u32 %v7569_v43, %v6409_v52  ;;  %v3216_v63 = vpack.c.b16 %v3200_v7, %v3200_v7  ;;  %v9317_v19 = vpop.f32.mrf.mxu0  ;;  %v6406_v4 = vor.u32 %v7566_v16, %v6403_v36  ;;  %v6507_v52 = vld [vmem:[%s10744_s3 + $0x208] sm:$0xf]  ;;  %v6499_v43 = vld [vmem:[%s10744_s3 + $0x200] sm:$0xf]  ;;  %v7582_v45 = vld [vmem:[%s10744_s3 + $0x1e4] sm:$0xf] }
 0x2ef   : > { %v6414_v48 = vor.u32 %v7567_v21, %v6411_v11  ;;  %v6500_v21 = vor.u32 %v7588_v54, %v6499_v43  ;;  %v6529_v11 = vld [vmem:[%s10744_s3 + $0x290] sm:$0x11]  ;;  %v6475_v43 = vld [vmem:[%s10744_s3 + $0x1c8] sm:$0xf]  ;;  %v7581_v54 = vld [vmem:[%s10744_s3 + $0x1d4] sm:$0xf0] }
 0x2f0   : > { %v9319_v35 = vpop.f32.mrf.mxu1  ;;  %v3240_v7 = vsel %vm2631_vm2, %v3216_v63, 0  ;;  %v6483_v63 = vld [vmem:[%s10744_s3 + $0x1e0] sm:$0xf] }
 0x2f1   : > { %3121 = vmatpush.bf16.msrb.mxu2 %v6426_v31  ;;  %3095 = vmatpush.bf16.msrb.mxu0 %v6418_v61  ;;  %v3237_v31 = vsel %vm2631_vm2, %v3215_v37, 0  ;;  %v3243_v61 = vsel %vm2631_vm2, %v3217_v29, 0  ;;  %v7586_v29 = vld [vmem:[%s10744_s3 + $0x204] sm:$0xf]  ;;  %v7583_v37 = vld [vmem:[%s10744_s3 + $0x1ec] sm:$0xf] }
 0x2f2   : > { %3108 = vmatpush.bf16.msrb.mxu1 %v6422_v28  ;;  %3134 = vmatpush.bf16.msrb.mxu3 %v6430_v50  ;;  %v2463_v28 = vmax.f32 %v8815_v42, %v2428_v49  ;;  %v2333_v50 = vadd.f32 %v9148_v14, %v9146_v9  ;;  %v6508_v42 = vor.u32 %v7589_v38, %v6507_v52  ;;  %v7585_v9 = vld [vmem:[%s10744_s3 + $0x1f4] sm:$0xf0]  ;;  %v6493_v49 = vld [vmem:[%s10744_s3 + $0x1f8] sm:$0xf0] }
 0x2f3   : > { %v6530_v14 = vld [vmem:[%s10744_s3 + $0x298] sm:$0x11]  ;;  %v6492_v52 = vor.u32 %v7585_v9, %v6491_v18  ;;  %v6484_v38 = vor.u32 %v7584_v32, %v6483_v63  ;;  %v6469_v18 = vld [vmem:[%s10744_s3 + $0x1d0] sm:$0xf0] }
 0x2f4   : > { %v9322_v41 = vpop.f32.mrf.mxu3 }
 0x2f5   : > { %3122 = vmatpush.bf16.msrb.mxu2 %v6410_v22  ;;  %3096 = vmatpush.bf16.msrb.mxu0 %v6402_v24  ;;  %v6485_v24 = vld [vmem:[%s10744_s3 + $0x1f0] sm:$0xf0] }
 0x2f6   : > { %3109 = vmatpush.bf16.msrb.mxu1 %v6406_v4  ;;  %3135 = vmatpush.bf16.msrb.mxu3 %v6414_v48  ;;  %v6501_v48 = vld [vmem:[%s10744_s3 + $0x210] sm:$0xf0]  ;;  %v7587_v4 = vld [vmem:[%s10744_s3 + $0x20c] sm:$0xf]  ;;  %v9359_v62 = vpop.f32.mrf.mxu2  ;;  %v9364_v16 = vpop.f32.mrf.mxu0 }
 0x2f7   : > { %6381 = vmatmul.msk.bf16.vlgmr.msra.gmra.mxu0 %vm2627_vm3, %v2514_v56  ;;  %6382 = vmatmul.msk.bf16.vlgmr.msra.gmra.mxu1 %vm2627_vm3, %v2514_v56  ;;  %v6504_v17 = vor.u32 %v7586_v29, %v6501_v48  ;;  %v6512_v22 = vor.u32 %v7587_v4, %v6509_v10  ;;  %v3355_v29 = vunpack.c.h.b16 %v6529_v11  ;;  %v3357_v48 = vunpack.c.h.b16 %v6530_v14  ;;  %v6467_v10 = vld [vmem:[%s10744_s3 + $0x1c0] sm:$0xf] }
 0x2f8   : > { %6383 = vmatmul.msk.bf16.vlgmr.msra.gmra.mxu2 %vm2627_vm3, %v2514_v56  ;;  %6384 = vmatmul.msk.bf16.vlgmr.msra.gmra.mxu3 %vm2627_vm3, %v2514_v56  ;;  %v9366_v36 = vpop.f32.mrf.mxu1  ;;  %v6496_v4 = vor.u32 %v7583_v37, %v6493_v49 }
 0x2f9   : > { %3275 = vmatpush.bf16.msra.mxu2 %v3240_v7  ;;  %3249 = vmatpush.bf16.msra.mxu0 %v3234_v12  ;;  %v2483_v7 = vadd.f32 %v9096_v60, %v2463_v28  ;;  %v2382_v12 = vadd.f32 %v9207_v46, %v2333_v50  ;;  %v6488_v46 = vor.u32 %v7582_v45, %v6485_v24  ;;  %v7580_v28 = vld [vmem:[%s10744_s3 + $0x1cc] sm:$0xf0]  ;;  %v7578_v50 = vld [vmem:[%s10744_s3 + $0x1c4] sm:$0xf] }
 0x2fa   : > { %3262 = vmatpush.bf16.msra.mxu1 %v3237_v31  ;;  %3288 = vmatpush.bf16.msra.mxu3 %v3243_v61  ;;  %v3356_v31 = vunpack.c.l.b16 %v6530_v14  ;;  %v3354_v61 = vunpack.c.l.b16 %v6529_v11  ;;  %v6476_v11 = vor.u32 %v7581_v54, %v6475_v43  ;;  %v6468_v24 = vor.u32 %v7580_v28, %v6467_v10  ;;  %v6573_v43 = vld [vmem:[%s10744_s3 + $0x278] sm:$0xf]  ;;  %v7601_v54 = vld [vmem:[%s10744_s3 + $0x284] sm:$0xf0] }
 0x2fb   : > { %v2431_v9 = vadd.f32 %v9214_v59, %v2382_v12  ;;  %v2499_v63 = vmax.f32 %v2483_v7, 0.0  ;;  %v3371_v37 = vpack.c.b16 %v3355_v29, %v3355_v29  ;;  %v3373_v49 = vpack.c.b16 %v3357_v48, %v3357_v48  ;;  %v7600_v29 = vld [vmem:[%s10744_s3 + $0x27c] sm:$0xf0]  ;;  %v7598_v48 = vld [vmem:[%s10744_s3 + $0x274] sm:$0xf] }
 0x2fc   : > { %v9397_v56 = vpop.f32.mrf.mxu3  ;;  %v6472_v0 = vor.u32 %v7578_v50, %v6469_v18  ;;  %v6574_v18 = vor.u32 %v7601_v54, %v6573_v43 }
 0x2fd   : > { %3276 = vmatpush.bf16.msra.mxu2 %v6508_v42  ;;  %3250 = vmatpush.bf16.msra.mxu0 %v6500_v21  ;;  %v7579_v42 = vld [vmem:[%s10744_s3 + $0x1cc] sm:$0xf]  ;;  %v6477_v21 = vld [vmem:[%s10744_s3 + $0x1d8] sm:$0xf0]  ;;  %v2515_v7 = vpack.c.bf16 %v2499_v63, %v2499_v63 }
 0x2fe   : > { %3263 = vmatpush.bf16.msra.mxu1 %v6504_v17  ;;  %3289 = vmatpush.bf16.msra.mxu3 %v6512_v22  ;;  %v9424_v14 = vpop.f32.mrf.mxu2  ;;  %v3372_v17 = vpack.c.b16 %v3356_v31, %v3356_v31  ;;  %v3370_v22 = vpack.c.b16 %v3354_v61, %v3354_v61  ;;  %v9426_v32 = vpop.f32.mrf.mxu0  ;;  %v6480_v39 = vor.u32 %v7579_v42, %v6477_v21  ;;  %v7597_v21 = vld [vmem:[%s10744_s3 + $0x264] sm:$0xf0] }
 0x2ff   : > { %v2464_v61 = vmax.f32 %v8839_v20, %v2431_v9  ;;  %v6565_v20 = vld [vmem:[%s10744_s3 + $0x270] sm:$0xf]  ;;  %v6596_v9 = vld [vmem:[%s10744_s3 + $0x308] sm:$0x11] }
 0x300   : > { %v9428_v45 = vpop.f32.mrf.mxu1  ;;  %v3396_v12 = vsel %vm2631_vm2, %v3372_v17, 0  ;;  %v3390_v31 = vsel %vm2631_vm2, %v3370_v22, 0  ;;  %v6566_v42 = vor.u32 %v7600_v29, %v6565_v20  ;;  %v3512_v43 = vunpack.c.l.b16 %v6596_v9  ;;  %v7593_v29 = vld [vmem:[%s10744_s3 + $0x244] sm:$0xf0] }
 0x301   : > { %3277 = vmatpush.bf16.msra.mxu2 %v6492_v52  ;;  %3251 = vmatpush.bf16.msra.mxu0 %v6484_v38  ;;  %v3393_v52 = vsel %vm2631_vm2, %v3371_v37, 0  ;;  %v3399_v38 = vsel %vm2631_vm2, %v3373_v49, 0  ;;  %v9473_v10 = vadd.f32 %v9096_v60, %v2464_v61  ;;  %v7596_v37 = vld [vmem:[%s10744_s3 + $0x25c] sm:$0xf0]  ;;  %v7594_v49 = vld [vmem:[%s10744_s3 + $0x254] sm:$0xf] }
 0x302   : > { %3264 = vmatpush.bf16.msra.mxu1 %v6488_v46  ;;  %3290 = vmatpush.bf16.msra.mxu3 %v6496_v4  ;;  %v2335_v46 = vadd.f32 %v9211_v5, %v9209_v2  ;;  %v6575_v4 = vld [vmem:[%s10744_s3 + $0x288] sm:$0xf0]  ;;  %v6557_v5 = vld [vmem:[%s10744_s3 + $0x258] sm:$0xf] }
 0x303   : > { %v6559_v61 = vld [vmem:[%s10744_s3 + $0x268] sm:$0xf0]  ;;  %v6558_v54 = vor.u32 %v7597_v21, %v6557_v5  ;;  %v7591_v21 = vld [vmem:[%s10744_s3 + $0x23c] sm:$0xf] }
 0x304   : > { %v9430_v59 = vpop.f32.mrf.mxu3 }
 0x305   : > { %3278 = vmatpush.bf16.msra.mxu2 %v6476_v11  ;;  %3252 = vmatpush.bf16.msra.mxu0 %v6468_v24  ;;  %v6595_v11 = vld [vmem:[%s10744_s3 + $0x300] sm:$0x11]  ;;  %v6549_v24 = vld [vmem:[%s10744_s3 + $0x250] sm:$0xf] }
 0x306   : > { %3265 = vmatpush.bf16.msra.mxu1 %v6472_v0  ;;  %3291 = vmatpush.bf16.msra.mxu3 %v6480_v39  ;;  %v6567_v0 = vld [vmem:[%s10744_s3 + $0x280] sm:$0xf0]  ;;  %v7599_v39 = vld [vmem:[%s10744_s3 + $0x27c] sm:$0xf]  ;;  %v9467_v2 = vpop.f32.mrf.mxu2  ;;  %v2298_v28 = vpop.f32.mrf.mxu0  ;;  %v6550_v20 = vor.u32 %v7596_v37, %v6549_v24 }
 0x307   : > { %6447 = vmatmul.msk.bf16.vlgmr.msrb.gmra.mxu0 %vm2627_vm3, %v2515_v7  ;;  %6448 = vmatmul.msk.bf16.vlgmr.msrb.gmra.mxu1 %vm2627_vm3, %v2515_v7  ;;  %10774 = vst [vmem:[#allocation18_spill] sm:$0xff] %v9467_v2  ;;  %v6570_v22 = vor.u32 %v7598_v48, %v6567_v0  ;;  %v6578_v63 = vor.u32 %v7599_v39, %v6575_v4  ;;  %v6533_v48 = vld [vmem:[%s10744_s3 + $0x230] sm:$0xf]  ;;  %v3511_v0 = vunpack.c.h.b16 %v6595_v11  ;;  %v3513_v39 = vunpack.c.h.b16 %v6596_v9 }
 0x308   : > { %6449 = vmatmul.msk.bf16.vlgmr.msrb.gmra.mxu2 %vm2627_vm3, %v2515_v7  ;;  %6450 = vmatmul.msk.bf16.vlgmr.msrb.gmra.mxu3 %vm2627_vm3, %v2515_v7  ;;  %v2347_v50 = vpop.f32.mrf.mxu1  ;;  %v7595_v7 = vld [vmem:[%s10744_s3 + $0x25c] sm:$0xf]  ;;  %v2500_v4 = vmax.f32 %v9473_v10, 0.0  ;;  %v6543_v10 = vld [vmem:[%s10744_s3 + $0x248] sm:$0xf0] }
 0x309   : > { %3431 = vmatpush.bf16.msrb.mxu2 %v3396_v12  ;;  %3405 = vmatpush.bf16.msrb.mxu0 %v3390_v31  ;;  %v2348_v17 = vadd.f32 %v2347_v50, %v2298_v28  ;;  %v2384_v12 = vadd.f32 %v9249_v40, %v2335_v46  ;;  %v6551_v31 = vld [vmem:[%s10744_s3 + $0x260] sm:$0xf0]  ;;  %v3510_v40 = vunpack.c.l.b16 %v6595_v11  ;;  %v7592_v46 = vld [vmem:[%s10744_s3 + $0x23c] sm:$0xf0]  ;;  %v6562_v28 = vor.u32 %v7595_v7, %v6559_v61  ;;  %v7590_v50 = vld [vmem:[%s10744_s3 + $0x234] sm:$0xf] }
 0x30a   : > { %3418 = vmatpush.bf16.msrb.mxu1 %v3393_v52  ;;  %3444 = vmatpush.bf16.msrb.mxu3 %v3399_v38  ;;  %v6541_v38 = vld [vmem:[%s10744_s3 + $0x238] sm:$0xf]  ;;  %v6554_v5 = vor.u32 %v7594_v49, %v6551_v31  ;;  %v3529_v31 = vpack.c.b16 %v3513_v39, %v3513_v39  ;;  %v6546_v61 = vor.u32 %v7591_v21, %v6543_v10  ;;  %v7610_v39 = vld [vmem:[%s10744_s3 + $0x2e4] sm:$0xf] }
 0x30b   : > { %v6542_v11 = vor.u32 %v7593_v29, %v6541_v38  ;;  %v3526_v24 = vpack.c.b16 %v3510_v40, %v3510_v40  ;;  %v2516_v2 = vpack.c.bf16 %v2500_v4, %v2500_v4 }
 0x30c   : > { %v9503_v52 = vpop.f32.mrf.mxu3 }
 0x30d   : > { %10775 = vst [vmem:[#allocation19_spill] sm:$0xff] %v9503_v52  ;;  %3432 = vmatpush.bf16.msrb.mxu2 %v6574_v18  ;;  %3406 = vmatpush.bf16.msrb.mxu0 %v6566_v42  ;;  %v2433_v18 = vadd.f32 %v9288_v8, %v2384_v12  ;;  %v6535_v42 = vld [vmem:[%s10744_s3 + $0x240] sm:$0xf0]  ;;  %v3527_v12 = vpack.c.b16 %v3511_v0, %v3511_v0  ;;  %v7612_v0 = vld [vmem:[%s10744_s3 + $0x2ec] sm:$0xf0] }
 0x30e   : > { %3419 = vmatpush.bf16.msrb.mxu1 %v6570_v22  ;;  %3445 = vmatpush.bf16.msrb.mxu3 %v6578_v63  ;;  %v2396_v9 = vpop.f32.mrf.mxu2  ;;  %v6534_v22 = vor.u32 %v7592_v46, %v6533_v48  ;;  %v3528_v63 = vpack.c.b16 %v3512_v43, %v3512_v43  ;;  %v2300_v49 = vpop.f32.mrf.mxu0  ;;  %v6538_v7 = vor.u32 %v7590_v50, %v6535_v42  ;;  %v3555_v48 = vsel %vm2631_vm2, %v3529_v31, 0  ;;  %v6631_v46 = vld [vmem:[%s10744_s3 + $0x2e0] sm:$0xf]  ;;  %v6623_v42 = vld [vmem:[%s10744_s3 + $0x2c8] sm:$0xf] }
 0x30f   : > { %v2397_v37 = vadd.f32 %v2396_v9, %v2348_v17  ;;  %v1929_v52 = vadd.f32 %v8916_v30, %v8914_v23  ;;  %v2465_v38 = vmax.f32 %v8846_v53, %v2433_v18  ;;  %v3546_v17 = vsel %vm2631_vm2, %v3526_v24, 0  ;;  %v6639_v23 = vld [vmem:[%s10744_s3 + $0x2e8] sm:$0xf]  ;;  %v7613_v53 = vld [vmem:[%s10744_s3 + $0x2f4] sm:$0xf0] }
 0x310   : > { %v2349_v8 = vpop.f32.mrf.mxu1  ;;  %v3552_v43 = vsel %vm2631_vm2, %v3528_v63, 0  ;;  %v6661_v63 = vld [vmem:[%s10744_s3 + $0x370] sm:$0x11]  ;;  %v7606_v31 = vld [vmem:[%s10744_s3 + $0x2c4] sm:$0xf] }
 0x311   : > { %3433 = vmatpush.bf16.msrb.mxu2 %v6558_v54  ;;  %3407 = vmatpush.bf16.msrb.mxu0 %v6550_v20  ;;  %v2350_v54 = vadd.f32 %v2349_v8, %v2300_v49  ;;  %v3549_v20 = vsel %vm2631_vm2, %v3527_v12, 0  ;;  %v1978_v30 = vadd.f32 %v8935_v51, %v1929_v52  ;;  %v6633_v51 = vld [vmem:[%s10744_s3 + $0x2f0] sm:$0xf0]  ;;  %v7611_v52 = vld [vmem:[%s10744_s3 + $0x2ec] sm:$0xf]  ;;  %v9571_v50 = vadd.f32 %v9096_v60, %v2465_v38 }
 0x312   : > { %3420 = vmatpush.bf16.msrb.mxu1 %v6554_v5  ;;  %3446 = vmatpush.bf16.msrb.mxu3 %v6562_v28  ;;  %v6641_v5 = vld [vmem:[%s10744_s3 + $0x2f8] sm:$0xf0]  ;;  %v6615_v8 = vld [vmem:[%s10744_s3 + $0x2c0] sm:$0xf]  ;;  %v7608_v12 = vld [vmem:[%s10744_s3 + $0x2cc] sm:$0xf0] }
 0x313   : > { %v2027_v28 = vadd.f32 %v8945_v15, %v1978_v30  ;;  %v7609_v15 = vld [vmem:[%s10744_s3 + $0x2d4] sm:$0xf0]  ;;  %v6644_v49 = vor.u32 %v7611_v52, %v6641_v5  ;;  %v7607_v38 = vld [vmem:[%s10744_s3 + $0x2cc] sm:$0xf]  ;;  %v7602_v5 = vld [vmem:[%s10744_s3 + $0x2a4] sm:$0xf] }
 0x314   : > { %v2445_v29 = vpop.f32.mrf.mxu3  ;;  %v7605_v30 = vld [vmem:[%s10744_s3 + $0x2b4] sm:$0xf0] }
 0x315   : > { %v9536_v40 = vadd.f32 %v2445_v29, %v2397_v37  ;;  %3434 = vmatpush.bf16.msrb.mxu2 %v6542_v11  ;;  %3408 = vmatpush.bf16.msrb.mxu0 %v6534_v22  ;;  %v6640_v11 = vor.u32 %v7613_v53, %v6639_v23  ;;  %v6632_v22 = vor.u32 %v7612_v0, %v6631_v46  ;;  %v6625_v29 = vld [vmem:[%s10744_s3 + $0x2d8] sm:$0xf0]  ;;  %v3667_v46 = vunpack.c.h.b16 %v6661_v63 }
 0x316   : > { %3421 = vmatpush.bf16.msrb.mxu1 %v6538_v7  ;;  %3447 = vmatpush.bf16.msrb.mxu3 %v6546_v61  ;;  %v2398_v18 = vpop.f32.mrf.mxu2  ;;  %v2303_v10 = vpop.f32.mrf.mxu0  ;;  %v6636_v37 = vor.u32 %v7610_v39, %v6633_v51  ;;  %v2338_v7 = vadd.f32 %v9256_v3, %v9254_v27  ;;  %v6617_v61 = vld [vmem:[%s10744_s3 + $0x2d0] sm:$0xf0]  ;;  %v6607_v27 = vld [vmem:[%s10744_s3 + $0x2a8] sm:$0xf]  ;;  %v6616_v53 = vor.u32 %v7608_v12, %v6615_v8  ;;  %v2501_v39 = vmax.f32 %v9571_v50, 0.0 }
 0x317   : > { %v2470_v4 = vmax.f32 %v8927_v47, %v9536_v40  ;;  %6513 = vmatmul.msk.bf16.vlgmr.msra.gmra.mxu0 %vm2627_vm3, %v2516_v2  ;;  %6514 = vmatmul.msk.bf16.vlgmr.msra.gmra.mxu1 %vm2627_vm3, %v2516_v2  ;;  %v2399_v21 = vadd.f32 %v2398_v18, %v2350_v54  ;;  %v6620_v51 = vor.u32 %v7606_v31, %v6617_v61  ;;  %v7603_v50 = vld [vmem:[%s10744_s3 + $0x2ac] sm:$0xf] }
 0x318   : > { %6515 = vmatmul.msk.bf16.vlgmr.msra.gmra.mxu2 %vm2627_vm3, %v2516_v2  ;;  %6516 = vmatmul.msk.bf16.vlgmr.msra.gmra.mxu3 %vm2627_vm3, %v2516_v2  ;;  %v2352_v9 = vpop.f32.mrf.mxu1  ;;  %v6662_v2 = vld [vmem:[%s10744_s3 + $0x378] sm:$0x11]  ;;  %v6628_v52 = vor.u32 %v7607_v38, %v6625_v29  ;;  %v2517_v31 = vpack.c.bf16 %v2501_v39, %v2501_v39 }
 0x319   : > { %3587 = vmatpush.bf16.msra.mxu2 %v3552_v43  ;;  %3561 = vmatpush.bf16.msra.mxu0 %v3546_v17  ;;  %v2353_v24 = vadd.f32 %v2352_v9, %v2303_v10  ;;  %v10776_v43 = vmax.f32 %v8593_v33, %v8719_v44  ;;  %v3668_v3 = vunpack.c.l.b16 %v6662_v2  ;;  %v6599_v33 = vld [vmem:[%s10744_s3 + $0x2a0] sm:$0xf]  ;;  %v7604_v44 = vld [vmem:[%s10744_s3 + $0x2ac] sm:$0xf0]  ;;  %v3669_v0 = vunpack.c.h.b16 %v6662_v2 }
 0x31a   : > { %3574 = vmatpush.bf16.msra.mxu1 %v3549_v20  ;;  %3600 = vmatpush.bf16.msra.mxu3 %v3555_v48  ;;  %v6624_v20 = vor.u32 %v7609_v15, %v6623_v42  ;;  %v3666_v48 = vunpack.c.l.b16 %v6661_v63  ;;  %v6601_v42 = vld [vmem:[%s10744_s3 + $0x2b0] sm:$0xf0]  ;;  %v6608_v9 = vor.u32 %v7605_v30, %v6607_v27  ;;  %v7625_v27 = vld [vmem:[%s10744_s3 + $0x364] sm:$0xf0]  ;;  %v6699_v30 = vld [vmem:[%s10744_s3 + $0x360] sm:$0xf0] }
 0x31b   : > { %v9610_v17 = vmax.f32 %v10776_v43, %v2027_v28  ;;  %v2387_v28 = vadd.f32 %v9315_v34, %v2338_v7  ;;  %v6604_v8 = vor.u32 %v7602_v5, %v6601_v42  ;;  %v7621_v42 = vld [vmem:[%s10744_s3 + $0x344] sm:$0xf0] }
 0x31c   : > { %v2447_v54 = vpop.f32.mrf.mxu3  ;;  %v3682_v34 = vpack.c.b16 %v3666_v48, %v3666_v48  ;;  %v7622_v48 = vld [vmem:[%s10744_s3 + $0x354] sm:$0xf] }
 0x31d   : > { %v9615_v23 = vadd.f32 %v2447_v54, %v2399_v21  ;;  %3588 = vmatpush.bf16.msra.mxu2 %v6640_v11  ;;  %3562 = vmatpush.bf16.msra.mxu0 %v6632_v22  ;;  %v6609_v21 = vld [vmem:[%s10744_s3 + $0x2b8] sm:$0xf0]  ;;  %v6600_v11 = vor.u32 %v7604_v44, %v6599_v33  ;;  %v3684_v22 = vpack.c.b16 %v3668_v3, %v3668_v3  ;;  %v7624_v3 = vld [vmem:[%s10744_s3 + $0x35c] sm:$0xf0]  ;;  %v6707_v44 = vld [vmem:[%s10744_s3 + $0x368] sm:$0xf0] }
 0x31e   : > { %3575 = vmatpush.bf16.msra.mxu1 %v6636_v37  ;;  %3601 = vmatpush.bf16.msra.mxu3 %v6644_v49  ;;  %v2401_v10 = vpop.f32.mrf.mxu2  ;;  %v9642_v2 = vpop.f32.mrf.mxu0  ;;  %v3683_v37 = vpack.c.b16 %v3667_v46, %v3667_v46  ;;  %v3685_v49 = vpack.c.b16 %v3669_v0, %v3669_v0  ;;  %v6612_v12 = vor.u32 %v7603_v50, %v6609_v21  ;;  %v3702_v38 = vsel %vm2631_vm2, %v3682_v34, 0  ;;  %v7623_v33 = vld [vmem:[%s10744_s3 + $0x35c] sm:$0xf]  ;;  %v6689_v0 = vld [vmem:[%s10744_s3 + $0x338] sm:$0xf] }
 0x31f   : > { %v2471_v18 = vmax.f32 %v9610_v17, %v9615_v23  ;;  %v2402_v15 = vadd.f32 %v2401_v10, %v2353_v24  ;;  %v3708_v61 = vsel %vm2631_vm2, %v3684_v22, 0  ;;  %v2436_v24 = vadd.f32 %v9322_v41, %v2387_v28  ;;  %v6697_v41 = vld [vmem:[%s10744_s3 + $0x350] sm:$0xf]  ;;  %v7620_v21 = vld [vmem:[%s10744_s3 + $0x33c] sm:$0xf0] }
 0x320   : > { %v9644_v63 = vpop.f32.mrf.mxu1  ;;  %v3705_v43 = vsel %vm2631_vm2, %v3683_v37, 0  ;;  %v3711_v54 = vsel %vm2631_vm2, %v3685_v49, 0  ;;  %v6698_v28 = vor.u32 %v7624_v3, %v6697_v41  ;;  %v6681_v50 = vld [vmem:[%s10744_s3 + $0x330] sm:$0xf]  ;;  %v6683_v22 = vld [vmem:[%s10744_s3 + $0x340] sm:$0xf0] }
 0x321   : > { %3589 = vmatpush.bf16.msra.mxu2 %v6624_v20  ;;  %3563 = vmatpush.bf16.msra.mxu0 %v6616_v53  ;;  %v6705_v20 = vld [vmem:[%s10744_s3 + $0x358] sm:$0xf]  ;;  %v2466_v39 = vmax.f32 %v8858_v6, %v2436_v24  ;;  %v6702_v6 = vor.u32 %v7622_v48, %v6699_v30  ;;  %v7619_v34 = vld [vmem:[%s10744_s3 + $0x33c] sm:$0xf]  ;;  %v6728_v37 = vld [vmem:[%s10744_s3 + $0x3e8] sm:$0x11] }
 0x322   : > { %3576 = vmatpush.bf16.msra.mxu1 %v6620_v51  ;;  %3602 = vmatpush.bf16.msra.mxu3 %v6628_v52  ;;  %v6706_v5 = vor.u32 %v7625_v27, %v6705_v20  ;;  %v6727_v49 = vld [vmem:[%s10744_s3 + $0x3e0] sm:$0x11]  ;;  %v7617_v24 = vld [vmem:[%s10744_s3 + $0x324] sm:$0xf0]  ;;  %v3824_v27 = vunpack.c.l.b16 %v6728_v37  ;;  %v7615_v3 = vld [vmem:[%s10744_s3 + $0x31c] sm:$0xf] }
 0x323   : > { %v6667_v20 = vld [vmem:[%s10744_s3 + $0x320] sm:$0xf0]  ;;  %v3822_v41 = vunpack.c.l.b16 %v6727_v49  ;;  %v6675_v48 = vld [vmem:[%s10744_s3 + $0x328] sm:$0xf0]  ;;  %v3823_v30 = vunpack.c.h.b16 %v6727_v49 }
 0x324   : > { %v2450_v7 = vpop.f32.mrf.mxu3 }
 0x325   : > { %v9649_v29 = vadd.f32 %v2450_v7, %v2402_v15  ;;  %3590 = vmatpush.bf16.msra.mxu2 %v6608_v9  ;;  %3564 = vmatpush.bf16.msra.mxu0 %v6600_v11  ;;  %v6710_v9 = vor.u32 %v7623_v33, %v6707_v44  ;;  %v7618_v11 = vld [vmem:[%s10744_s3 + $0x334] sm:$0xf]  ;;  %v6691_v15 = vld [vmem:[%s10744_s3 + $0x348] sm:$0xf0]  ;;  %v6690_v7 = vor.u32 %v7621_v42, %v6689_v0  ;;  %v3825_v33 = vunpack.c.h.b16 %v6728_v37  ;;  %v6763_v37 = vld [vmem:[%s10744_s3 + $0x3c0] sm:$0xf] }
 0x326   : > { %3577 = vmatpush.bf16.msra.mxu1 %v6604_v8  ;;  %3603 = vmatpush.bf16.msra.mxu3 %v6612_v12  ;;  %v9683_v46 = vpop.f32.mrf.mxu2  ;;  %v2308_v51 = vpop.f32.mrf.mxu0  ;;  %v2340_v8 = vadd.f32 %v9319_v35, %v9317_v19  ;;  %v6665_v19 = vld [vmem:[%s10744_s3 + $0x310] sm:$0xf]  ;;  %v6686_v35 = vor.u32 %v7618_v11, %v6683_v22  ;;  %v6678_v42 = vor.u32 %v7615_v3, %v6675_v48 }
 0x327   : > { %v2472_v53 = vmax.f32 %v8973_v58, %v9649_v29  ;;  %6579 = vmatmul.msk.bf16.vlgmr.msrb.gmra.mxu0 %vm2627_vm3, %v2517_v31  ;;  %6580 = vmatmul.msk.bf16.vlgmr.msrb.gmra.mxu1 %vm2627_vm3, %v2517_v31 }
 0x328   : > { %6581 = vmatmul.msk.bf16.vlgmr.msrb.gmra.mxu2 %vm2627_vm3, %v2517_v31  ;;  %6582 = vmatmul.msk.bf16.vlgmr.msrb.gmra.mxu3 %vm2627_vm3, %v2517_v31  ;;  %v2357_v52 = vpop.f32.mrf.mxu1  ;;  %v2486_v31 = vadd.f32 %v9096_v60, %v2466_v39  ;;  %v6694_v60 = vor.u32 %v7619_v34, %v6691_v15  ;;  %v2389_v44 = vadd.f32 %v9359_v62, %v2340_v8  ;;  %v6771_v62 = vld [vmem:[%s10744_s3 + $0x3c8] sm:$0xf]  ;;  %v7637_v15 = vld [vmem:[%s10744_s3 + $0x3d4] sm:$0xf0] }
 0x329   : > { %3743 = vmatpush.bf16.msrb.mxu2 %v3708_v61  ;;  %3717 = vmatpush.bf16.msrb.mxu0 %v3702_v38  ;;  %v2358_v10 = vadd.f32 %v2357_v52, %v2308_v51  ;;  %v6682_v61 = vor.u32 %v7620_v21, %v6681_v50  ;;  %v6673_v38 = vld [vmem:[%s10744_s3 + $0x318] sm:$0xf]  ;;  %v3840_v50 = vpack.c.b16 %v3824_v27, %v3824_v27 }
 0x32a   : > { %3730 = vmatpush.bf16.msrb.mxu1 %v3705_v43  ;;  %3756 = vmatpush.bf16.msrb.mxu3 %v3711_v54  ;;  %v7616_v43 = vld [vmem:[%s10744_s3 + $0x31c] sm:$0xf0]  ;;  %v7614_v54 = vld [vmem:[%s10744_s3 + $0x314] sm:$0xf]  ;;  %v6674_v39 = vor.u32 %v7617_v24, %v6673_v38  ;;  %v2502_v51 = vmax.f32 %v2486_v31, 0.0  ;;  %v3838_v21 = vpack.c.b16 %v3822_v41, %v3822_v41  ;;  %v2438_v11 = vadd.f32 %v9397_v56, %v2389_v44 }
 0x32b   : > { %v7636_v56 = vld [vmem:[%s10744_s3 + $0x3cc] sm:$0xf0]  ;;  %v3864_v49 = vsel %vm2631_vm2, %v3840_v50, 0  ;;  %v7634_v31 = vld [vmem:[%s10744_s3 + $0x3c4] sm:$0xf] }
 0x32c   : > { %v9718_v12 = vpop.f32.mrf.mxu3  ;;  %v2518_v34 = vpack.c.bf16 %v2502_v51, %v2502_v51  ;;  %v3858_v8 = vsel %vm2631_vm2, %v3838_v21, 0  ;;  %v7633_v27 = vld [vmem:[%s10744_s3 + $0x3b4] sm:$0xf0]  ;;  %v6793_v41 = vld [vmem:[%s10744_s3 + $0x450] sm:$0x11] }
 0x32d   : > { %3744 = vmatpush.bf16.msrb.mxu2 %v6706_v5  ;;  %3718 = vmatpush.bf16.msrb.mxu0 %v6698_v28  ;;  %v6666_v5 = vor.u32 %v7616_v43, %v6665_v19  ;;  %v6670_v28 = vor.u32 %v7614_v54, %v6667_v20  ;;  %v7635_v19 = vld [vmem:[%s10744_s3 + $0x3cc] sm:$0xf]  ;;  %v6755_v43 = vld [vmem:[%s10744_s3 + $0x3a8] sm:$0xf]  ;;  %v6772_v54 = vor.u32 %v7637_v15, %v6771_v62  ;;  %v7630_v44 = vld [vmem:[%s10744_s3 + $0x3a4] sm:$0xf]  ;;  %v3978_v50 = vunpack.c.l.b16 %v6793_v41 }
 0x32e   : > { %3731 = vmatpush.bf16.msrb.mxu1 %v6702_v6  ;;  %3757 = vmatpush.bf16.msrb.mxu3 %v6710_v9  ;;  %v2406_v0 = vpop.f32.mrf.mxu2  ;;  %v3839_v6 = vpack.c.b16 %v3823_v30, %v3823_v30  ;;  %v3841_v9 = vpack.c.b16 %v3825_v33, %v3825_v33  ;;  %v6764_v20 = vor.u32 %v7636_v56, %v6763_v37  ;;  %v6747_v30 = vld [vmem:[%s10744_s3 + $0x3a0] sm:$0xf]  ;;  %v7632_v33 = vld [vmem:[%s10744_s3 + $0x3ac] sm:$0xf0]  ;;  %v6757_v51 = vld [vmem:[%s10744_s3 + $0x3b8] sm:$0xf0] }
 0x32f   : > { %v2407_v52 = vadd.f32 %v2406_v0, %v2358_v10  ;;  %v6749_v0 = vld [vmem:[%s10744_s3 + $0x3b0] sm:$0xf0]  ;;  %v6756_v21 = vor.u32 %v7633_v27, %v6755_v43  ;;  %v7628_v15 = vld [vmem:[%s10744_s3 + $0x38c] sm:$0xf0]  ;;  %v7626_v37 = vld [vmem:[%s10744_s3 + $0x384] sm:$0xf] }
 0x330   : > { %v3861_v38 = vsel %vm2631_vm2, %v3839_v6, 0  ;;  %v3867_v24 = vsel %vm2631_vm2, %v3841_v9, 0  ;;  %v6748_v6 = vor.u32 %v7632_v33, %v6747_v30  ;;  %v6739_v9 = vld [vmem:[%s10744_s3 + $0x388] sm:$0xf]  ;;  %v6733_v56 = vld [vmem:[%s10744_s3 + $0x390] sm:$0xf0] }
 0x331   : > { %3745 = vmatpush.bf16.msrb.mxu2 %v6690_v7  ;;  %3719 = vmatpush.bf16.msrb.mxu0 %v6682_v61  ;;  %v6765_v7 = vld [vmem:[%s10744_s3 + $0x3d0] sm:$0xf0]  ;;  %v6837_v30 = vld [vmem:[%s10744_s3 + $0x438] sm:$0xf]  ;;  %v7649_v33 = vld [vmem:[%s10744_s3 + $0x444] sm:$0xf0] }
 0x332   : > { %3732 = vmatpush.bf16.msrb.mxu1 %v6686_v35  ;;  %3758 = vmatpush.bf16.msrb.mxu3 %v6694_v60  ;;  %v6773_v35 = vld [vmem:[%s10744_s3 + $0x3d8] sm:$0xf0]  ;;  %v2467_v60 = vmax.f32 %v8877_v57, %v2438_v11  ;;  %v6768_v3 = vor.u32 %v7634_v31, %v6765_v7  ;;  %v7629_v11 = vld [vmem:[%s10744_s3 + $0x394] sm:$0xf0] }
 0x333   : > { %v6794_v57 = vld [vmem:[%s10744_s3 + $0x458] sm:$0x11]  ;;  %v6776_v48 = vor.u32 %v7635_v19, %v6773_v35  ;;  %v6740_v7 = vor.u32 %v7629_v11, %v6739_v9  ;;  %v6859_v9 = vld [vmem:[%s10744_s3 + $0x4c0] sm:$0x11] }
 0x334   : > { %v2455_v22 = vpop.f32.mrf.mxu3  ;;  %v3981_v62 = vunpack.c.h.b16 %v6794_v57 }
 0x335   : > { %v9750_v10 = vadd.f32 %v2455_v22, %v2407_v52  ;;  %3746 = vmatpush.bf16.msrb.mxu2 %v6674_v39  ;;  %3720 = vmatpush.bf16.msrb.mxu0 %v6666_v5  ;;  %v7631_v39 = vld [vmem:[%s10744_s3 + $0x3ac] sm:$0xf]  ;;  %v9817_v52 = vld [vmem:[%s10743_s2] ss:$0 sm:$0xff]  ;;  %v3979_v22 = vunpack.c.h.b16 %v6793_v41 }
 0x336   : > { %3733 = vmatpush.bf16.msrb.mxu1 %v6670_v28  ;;  %3759 = vmatpush.bf16.msrb.mxu3 %v6678_v42  ;;  %v2487_v5 = vadd.f32 %v9817_v52, %v2467_v60  ;;  %v2343_v28 = vadd.f32 %v9366_v36, %v9364_v16  ;;  %v3980_v42 = vunpack.c.l.b16 %v6794_v57  ;;  %v6760_v16 = vor.u32 %v7631_v39, %v6757_v51  ;;  %v6731_v36 = vld [vmem:[%s10744_s3 + $0x380] sm:$0xf]  ;;  %v6831_v39 = vld [vmem:[%s10744_s3 + $0x440] sm:$0xf0]  ;;  %v7647_v51 = vld [vmem:[%s10744_s3 + $0x43c] sm:$0xf] }
 0x337   : > { %v2474_v61 = vmax.f32 %v8995_v26, %v9750_v10  ;;  %6645 = vmatmul.msk.bf16.vlgmr.msra.gmra.mxu0 %vm2627_vm3, %v2518_v34  ;;  %6646 = vmatmul.msk.bf16.vlgmr.msra.gmra.mxu1 %vm2627_vm3, %v2518_v34  ;;  %v6732_v35 = vor.u32 %v7628_v15, %v6731_v36  ;;  %v3995_v60 = vpack.c.b16 %v3979_v22, %v3979_v22  ;;  %v6815_v15 = vld [vmem:[%s10744_s3 + $0x420] sm:$0xf0]  ;;  %v7713_v26 = vld [vmem:[%s10744_s3 + $0x6a4] sm:$0xf0]  ;;  %v10790_v10 = vld [vmem:[#allocation14_spill] sm:$0xff] }
 0x338   : > { %6647 = vmatmul.msk.bf16.vlgmr.msra.gmra.mxu2 %vm2627_vm3, %v2518_v34  ;;  %6648 = vmatmul.msk.bf16.vlgmr.msra.gmra.mxu3 %vm2627_vm3, %v2518_v34  ;;  %v6752_v34 = vor.u32 %v7630_v44, %v6749_v0  ;;  %v2392_v31 = vadd.f32 %v9424_v14, %v2343_v28  ;;  %v2503_v19 = vmax.f32 %v2487_v5, 0.0  ;;  %v3997_v43 = vpack.c.b16 %v3981_v62, %v3981_v62  ;;  %v7648_v44 = vld [vmem:[%s10744_s3 + $0x43c] sm:$0xf0]  ;;  %v7646_v0 = vld [vmem:[%s10744_s3 + $0x434] sm:$0xf] }
 0x339   : > { %3899 = vmatpush.bf16.msra.mxu2 %v3864_v49  ;;  %3873 = vmatpush.bf16.msra.mxu0 %v3858_v8  ;;  %v7627_v49 = vld [vmem:[%s10744_s3 + $0x38c] sm:$0xf]  ;;  %v6741_v8 = vld [vmem:[%s10744_s3 + $0x398] sm:$0xf0]  ;;  %v6834_v11 = vor.u32 %v7646_v0, %v6831_v39  ;;  %v6813_v62 = vld [vmem:[%s10744_s3 + $0x410] sm:$0xf]  ;;  %v1924_v36 = vadd.f32 %v8888_v55, %v8886_v25  ;;  %v9918_v25 = vpop.f32.mrf.mxu1 }
 0x33a   : > { %3886 = vmatpush.bf16.msra.mxu1 %v3861_v38  ;;  %3912 = vmatpush.bf16.msra.mxu3 %v3867_v24  ;;  %v3996_v38 = vpack.c.b16 %v3980_v42, %v3980_v42  ;;  %v3994_v24 = vpack.c.b16 %v3978_v50, %v3978_v50  ;;  %v2441_v27 = vadd.f32 %v9430_v59, %v2392_v31  ;;  %v6829_v59 = vld [vmem:[%s10744_s3 + $0x430] sm:$0xf]  ;;  %v6839_v5 = vld [vmem:[%s10744_s3 + $0x448] sm:$0xf0]  ;;  %v6821_v42 = vld [vmem:[%s10744_s3 + $0x418] sm:$0xf]  ;;  %v9916_v31 = vpop.f32.mrf.mxu0 }
 0x33b   : > { %v2519_v14 = vpack.c.bf16 %v2503_v19, %v2503_v19  ;;  %v6838_v50 = vor.u32 %v7649_v33, %v6837_v30  ;;  %v6842_v22 = vor.u32 %v7647_v51, %v6839_v5  ;;  %v6805_v19 = vld [vmem:[%s10744_s3 + $0x3f8] sm:$0xf]  ;;  %v10778_v5 = vld [vmem:[#allocation9_spill] sm:$0xff] }
 0x33c   : > { %v4020_v57 = vsel %vm2631_vm2, %v3996_v38, 0  ;;  %v4014_v41 = vsel %vm2631_vm2, %v3994_v24, 0  ;;  %v2468_v28 = vmax.f32 %v8905_v1, %v2441_v27  ;;  %v6860_v1 = vld [vmem:[%s10744_s3 + $0x4c8] sm:$0x11]  ;;  %v7638_v27 = vld [vmem:[%s10744_s3 + $0x3f4] sm:$0xf] }
 0x33d   : > { %3900 = vmatpush.bf16.msra.mxu2 %v6772_v54  ;;  %3874 = vmatpush.bf16.msra.mxu0 %v6764_v20  ;;  %v6736_v54 = vor.u32 %v7626_v37, %v6733_v56  ;;  %v6744_v20 = vor.u32 %v7627_v49, %v6741_v8  ;;  %v7643_v37 = vld [vmem:[%s10744_s3 + $0x41c] sm:$0xf]  ;;  %v6823_v56 = vld [vmem:[%s10744_s3 + $0x428] sm:$0xf0]  ;;  %v2345_v8 = vadd.f32 %v9428_v45, %v9426_v32  ;;  %v4136_v55 = vunpack.c.l.b16 %v6860_v1 }
 0x33e   : > { %3887 = vmatpush.bf16.msra.mxu1 %v6768_v3  ;;  %3913 = vmatpush.bf16.msra.mxu3 %v6776_v48  ;;  %v4017_v3 = vsel %vm2631_vm2, %v3995_v60, 0  ;;  %v4023_v48 = vsel %vm2631_vm2, %v3997_v43, 0  ;;  %v2488_v49 = vadd.f32 %v9817_v52, %v2468_v28  ;;  %v4135_v60 = vunpack.c.h.b16 %v6859_v9 }
 0x33f   : > { %v4137_v32 = vunpack.c.h.b16 %v6860_v1  ;;  %v6826_v43 = vor.u32 %v7643_v37, %v6823_v56  ;;  %v10779_v1 = vld [vmem:[#allocation19_spill] sm:$0xff]  ;;  %v6903_v37 = vld [vmem:[%s10744_s3 + $0x4a8] sm:$0xf]  ;;  %v7661_v56 = vld [vmem:[%s10744_s3 + $0x4b4] sm:$0xf0] }
 0x340   : > { %v2504_v0 = vmax.f32 %v2488_v49, 0.0  ;;  %v4151_v39 = vpack.c.b16 %v4135_v60, %v4135_v60  ;;  %v10780_v49 = vld [vmem:[#allocation3_spill] sm:$0xff]  ;;  %v7659_v60 = vld [vmem:[%s10744_s3 + $0x4ac] sm:$0xf] }
 0x341   : > { %3901 = vmatpush.bf16.msra.mxu2 %v6756_v21  ;;  %3875 = vmatpush.bf16.msra.mxu0 %v6748_v6  ;;  %v6830_v21 = vor.u32 %v7648_v44, %v6829_v59  ;;  %v7645_v6 = vld [vmem:[%s10744_s3 + $0x424] sm:$0xf0]  ;;  %v4152_v59 = vpack.c.b16 %v4136_v55, %v4136_v55  ;;  %v4153_v51 = vpack.c.b16 %v4137_v32, %v4137_v32  ;;  %v6905_v32 = vld [vmem:[%s10744_s3 + $0x4b8] sm:$0xf0] }
 0x342   : > { %3888 = vmatpush.bf16.msra.mxu1 %v6752_v34  ;;  %3914 = vmatpush.bf16.msra.mxu3 %v6760_v16  ;;  %v7644_v34 = vld [vmem:[%s10744_s3 + $0x41c] sm:$0xf0]  ;;  %v7642_v16 = vld [vmem:[%s10744_s3 + $0x414] sm:$0xf]  ;;  %v6822_v38 = vor.u32 %v7645_v6, %v6821_v42  ;;  %v9949_v6 = vpop.f32.mrf.mxu3 }
 0x343   : > { %v6814_v24 = vor.u32 %v7644_v34, %v6813_v62  ;;  %v6818_v45 = vor.u32 %v7642_v16, %v6815_v15  ;;  %v4176_v62 = vsel %vm2631_vm2, %v4152_v59, 0  ;;  %v2520_v16 = vpack.c.bf16 %v2504_v0, %v2504_v0  ;;  %v6881_v0 = vld [vmem:[%s10744_s3 + $0x490] sm:$0xf0] }
 0x344   : > { %v4179_v15 = vsel %vm2631_vm2, %v4153_v51, 0 }
 0x345   : > { %3902 = vmatpush.bf16.msra.mxu2 %v6740_v7  ;;  %3876 = vmatpush.bf16.msra.mxu0 %v6732_v35  ;;  %v4134_v7 = vunpack.c.l.b16 %v6859_v9  ;;  %v7641_v35 = vld [vmem:[%s10744_s3 + $0x404] sm:$0xf0] }
 0x346   : > { %3889 = vmatpush.bf16.msra.mxu1 %v6736_v54  ;;  %3915 = vmatpush.bf16.msra.mxu3 %v6744_v20  ;;  %v6797_v54 = vld [vmem:[%s10744_s3 + $0x3f0] sm:$0xf]  ;;  %v7640_v20 = vld [vmem:[%s10744_s3 + $0x3fc] sm:$0xf0]  ;;  %v6806_v33 = vor.u32 %v7641_v35, %v6805_v19  ;;  %v7658_v19 = vld [vmem:[%s10744_s3 + $0x4a4] sm:$0xf] }
 0x347   : > { %6711 = vmatmul.msk.bf16.vlgmr.msrb.gmra.mxu0 %vm2627_vm3, %v2519_v14  ;;  %6712 = vmatmul.msk.bf16.vlgmr.msrb.gmra.mxu1 %vm2627_vm3, %v2519_v14  ;;  %v4150_v44 = vpack.c.b16 %v4134_v7, %v4134_v7  ;;  %v6897_v35 = vld [vmem:[%s10744_s3 + $0x4b0] sm:$0xf0] }
 0x348   : > { %6713 = vmatmul.msk.bf16.vlgmr.msrb.gmra.mxu2 %vm2627_vm3, %v2519_v14  ;;  %6714 = vmatmul.msk.bf16.vlgmr.msrb.gmra.mxu3 %vm2627_vm3, %v2519_v14  ;;  %v7639_v14 = vld [vmem:[%s10744_s3 + $0x3fc] sm:$0xf] }
 0x349   : > { %4055 = vmatpush.bf16.msrb.mxu2 %v4020_v57  ;;  %4029 = vmatpush.bf16.msrb.mxu0 %v4014_v41  ;;  %v1973_v57 = vadd.f32 %v8907_v13, %v1924_v36  ;;  %v6799_v41 = vld [vmem:[%s10744_s3 + $0x400] sm:$0xf0]  ;;  %v6798_v13 = vor.u32 %v7640_v20, %v6797_v54  ;;  %v4170_v34 = vsel %vm2631_vm2, %v4150_v44, 0  ;;  %v4173_v36 = vsel %vm2631_vm2, %v4151_v39, 0  ;;  %v6889_v39 = vld [vmem:[%s10744_s3 + $0x498] sm:$0xf0] }
 0x34a   : > { %4042 = vmatpush.bf16.msrb.mxu1 %v4017_v3  ;;  %4068 = vmatpush.bf16.msrb.mxu3 %v4023_v48  ;;  %v6807_v3 = vld [vmem:[%s10744_s3 + $0x408] sm:$0xf0]  ;;  %v10777_v48 = vld [vmem:[#allocation18_spill] sm:$0xff]  ;;  %v6802_v42 = vor.u32 %v7638_v27, %v6799_v41  ;;  %v6904_v54 = vor.u32 %v7661_v56, %v6903_v37  ;;  %v6863_v56 = vld [vmem:[%s10744_s3 + $0x460] sm:$0xf] }
 0x34b   : > { %v2394_v30 = vadd.f32 %v10777_v48, %v2345_v8  ;;  %v2022_v28 = vadd.f32 %v10778_v5, %v1973_v57  ;;  %v10781_v8 = vld [vmem:[#allocation6_spill] sm:$0xff]  ;;  %v6879_v57 = vld [vmem:[%s10744_s3 + $0x480] sm:$0xf]  ;;  %v7656_v48 = vld [vmem:[%s10744_s3 + $0x48c] sm:$0xf0] }
 0x34c   : > { %v10782_v55 = vmax.f32 %v10780_v49, %v10781_v8  ;;  %v7657_v27 = vld [vmem:[%s10744_s3 + $0x494] sm:$0xf0]  ;;  %v7652_v49 = vld [vmem:[%s10744_s3 + $0x46c] sm:$0xf0]  ;;  %v7650_v8 = vld [vmem:[%s10744_s3 + $0x464] sm:$0xf] }
 0x34d   : > { %4056 = vmatpush.bf16.msrb.mxu2 %v6838_v50  ;;  %4030 = vmatpush.bf16.msrb.mxu0 %v6830_v21  ;;  %v6810_v50 = vor.u32 %v7639_v14, %v6807_v3  ;;  %v9947_v21 = vpop.f32.mrf.mxu2  ;;  %v2443_v9 = vadd.f32 %v10779_v1, %v2394_v30  ;;  %v6926_v41 = vld [vmem:[%s10744_s3 + $0x538] sm:$0x11]  ;;  %v6900_v14 = vor.u32 %v7658_v19, %v6897_v35  ;;  %v7654_v30 = vld [vmem:[%s10744_s3 + $0x484] sm:$0xf] }
 0x34e   : > { %4043 = vmatpush.bf16.msrb.mxu1 %v6834_v11  ;;  %4069 = vmatpush.bf16.msrb.mxu3 %v6842_v22  ;;  %v2048_v7 = vmax.f32 %v10782_v55, %v2022_v28  ;;  %v6908_v3 = vor.u32 %v7659_v60, %v6905_v32  ;;  %v6865_v55 = vld [vmem:[%s10744_s3 + $0x470] sm:$0xf0]  ;;  %v6864_v32 = vor.u32 %v7652_v49, %v6863_v56  ;;  %v6945_v49 = vld [vmem:[%s10744_s3 + $0x4f0] sm:$0xf] }
 0x351   : > { %4057 = vmatpush.bf16.msrb.mxu2 %v6822_v38  ;;  %4031 = vmatpush.bf16.msrb.mxu0 %v6814_v24  ;;  %v6895_v38 = vld [vmem:[%s10744_s3 + $0x4a0] sm:$0xf]  ;;  %v7660_v24 = vld [vmem:[%s10744_s3 + $0x4ac] sm:$0xf0] }
 0x352   : > { %4044 = vmatpush.bf16.msrb.mxu1 %v6818_v45  ;;  %4070 = vmatpush.bf16.msrb.mxu3 %v6826_v43  ;;  %v2469_v45 = vmax.f32 %v2048_v7, %v2443_v9  ;;  %v6887_v43 = vld [vmem:[%s10744_s3 + $0x488] sm:$0xf]  ;;  %v6896_v20 = vor.u32 %v7660_v24, %v6895_v38  ;;  %v6880_v9 = vor.u32 %v7656_v48, %v6879_v57  ;;  %v7651_v7 = vld [vmem:[%s10744_s3 + $0x46c] sm:$0xf]  ;;  %v6873_v38 = vld [vmem:[%s10744_s3 + $0x478] sm:$0xf0] }
 0x353   : > { %v6888_v1 = vor.u32 %v7657_v27, %v6887_v43 }
 0x354   : > { %v9952_v11 = vpop.f32.mrf.mxu0  ;;  %v9954_v22 = vpop.f32.mrf.mxu1  ;;  %v2489_v51 = vadd.f32 %v9817_v52, %v2469_v45 }
 0x355   : > { %4058 = vmatpush.bf16.msrb.mxu2 %v6806_v33  ;;  %4032 = vmatpush.bf16.msrb.mxu0 %v6798_v13  ;;  %v6925_v33 = vld [vmem:[%s10744_s3 + $0x530] sm:$0x11]  ;;  %v7655_v13 = vld [vmem:[%s10744_s3 + $0x48c] sm:$0xf] }
 0x356   : > { %4045 = vmatpush.bf16.msrb.mxu1 %v6802_v42  ;;  %4071 = vmatpush.bf16.msrb.mxu3 %v6810_v50  ;;  %v4292_v42 = vunpack.c.l.b16 %v6926_v41  ;;  %v4293_v50 = vunpack.c.h.b16 %v6926_v41  ;;  %v6892_v37 = vor.u32 %v7655_v13, %v6889_v39  ;;  %v2505_v24 = vmax.f32 %v2489_v51, 0.0  ;;  %v6969_v51 = vld [vmem:[%s10744_s3 + $0x518] sm:$0xf] }
 0x357   : > { %6777 = vmatmul.msk.bf16.vlgmr.msra.gmra.mxu0 %vm2627_vm3, %v2520_v16  ;;  %6778 = vmatmul.msk.bf16.vlgmr.msra.gmra.mxu1 %vm2627_vm3, %v2520_v16 }
 0x358   : > { %6779 = vmatmul.msk.bf16.vlgmr.msra.gmra.mxu2 %vm2627_vm3, %v2520_v16  ;;  %6780 = vmatmul.msk.bf16.vlgmr.msra.gmra.mxu3 %vm2627_vm3, %v2520_v16  ;;  %v4290_v16 = vunpack.c.l.b16 %v6925_v33  ;;  %v4308_v35 = vpack.c.b16 %v4292_v42, %v4292_v42  ;;  %v4309_v60 = vpack.c.b16 %v4293_v50, %v4293_v50  ;;  %v2521_v41 = vpack.c.bf16 %v2505_v24, %v2505_v24  ;;  %v6963_v42 = vld [vmem:[%s10744_s3 + $0x520] sm:$0xf0]  ;;  %v7671_v50 = vld [vmem:[%s10744_s3 + $0x51c] sm:$0xf] }
 0x359   : > { %4211 = vmatpush.bf16.msra.mxu2 %v4176_v62  ;;  %4185 = vmatpush.bf16.msra.mxu0 %v4170_v34  ;;  %v6871_v62 = vld [vmem:[%s10744_s3 + $0x468] sm:$0xf]  ;;  %v7653_v34 = vld [vmem:[%s10744_s3 + $0x474] sm:$0xf0] }
 0x35a   : > { %4198 = vmatpush.bf16.msra.mxu1 %v4173_v36  ;;  %4224 = vmatpush.bf16.msra.mxu3 %v4179_v15  ;;  %v4291_v36 = vunpack.c.h.b16 %v6925_v33  ;;  %v6884_v15 = vor.u32 %v7654_v30, %v6881_v0  ;;  %v6872_v19 = vor.u32 %v7653_v34, %v6871_v62  ;;  %v4306_v45 = vpack.c.b16 %v4290_v16, %v4290_v16  ;;  %v7669_v16 = vld [vmem:[%s10744_s3 + $0x504] sm:$0xf0] }
 0x35b   : > { %v10012_v59 = vpop.f32.mrf.mxu2  ;;  %v10014_v44 = vpop.f32.mrf.mxu3  ;;  %v4332_v48 = vsel %vm2631_vm2, %v4308_v35, 0  ;;  %v4335_v30 = vsel %vm2631_vm2, %v4309_v60, 0  ;;  %v7667_v35 = vld [vmem:[%s10744_s3 + $0x4fc] sm:$0xf]  ;;  %v6955_v60 = vld [vmem:[%s10744_s3 + $0x508] sm:$0xf0] }
 0x35c   : > { %v2655_v5 = vpop.f32.mrf.mxu0  ;;  %v2668_v28 = vpop.f32.mrf.mxu1  ;;  %v4307_v43 = vpack.c.b16 %v4291_v36, %v4291_v36  ;;  %v4326_v13 = vsel %vm2631_vm2, %v4306_v45, 0  ;;  %v6992_v36 = vld [vmem:[%s10744_s3 + $0x5a8] sm:$0x11] }
 0x35d   : > { %4212 = vmatpush.bf16.msra.mxu2 %v6904_v54  ;;  %4186 = vmatpush.bf16.msra.mxu0 %v6896_v20  ;;  %v6868_v54 = vor.u32 %v7650_v8, %v6865_v55  ;;  %v6876_v20 = vor.u32 %v7651_v7, %v6873_v38  ;;  %v7673_v5 = vld [vmem:[%s10744_s3 + $0x524] sm:$0xf0]  ;;  %v7670_v28 = vld [vmem:[%s10744_s3 + $0x514] sm:$0xf]  ;;  %v7668_v8 = vld [vmem:[%s10744_s3 + $0x4fc] sm:$0xf0]  ;;  %v2490_v7 = vadd.f32 %v9817_v52, %v2470_v4  ;;  %v4448_v45 = vunpack.c.l.b16 %v6992_v36 }
 0x35e   : > { %4199 = vmatpush.bf16.msra.mxu1 %v6900_v14  ;;  %4225 = vmatpush.bf16.msra.mxu3 %v6908_v3  ;;  %v4329_v39 = vsel %vm2631_vm2, %v4307_v43, 0  ;;  %v6970_v62 = vor.u32 %v7673_v5, %v6969_v51  ;;  %v7666_v55 = vld [vmem:[%s10744_s3 + $0x4f4] sm:$0xf]  ;;  %v6939_v51 = vld [vmem:[%s10744_s3 + $0x4e8] sm:$0xf0] }
 0x35f   : > { %v2506_v5 = vmax.f32 %v2490_v7, 0.0 }
 0x361   : > { %4213 = vmatpush.bf16.msra.mxu2 %v6888_v1  ;;  %4187 = vmatpush.bf16.msra.mxu0 %v6880_v9  ;;  %v6971_v1 = vld [vmem:[%s10744_s3 + $0x528] sm:$0xf0]  ;;  %v6953_v9 = vld [vmem:[%s10744_s3 + $0x4f8] sm:$0xf] }
 0x362   : > { %4200 = vmatpush.bf16.msra.mxu1 %v6884_v15  ;;  %4226 = vmatpush.bf16.msra.mxu3 %v6892_v37  ;;  %v6991_v15 = vld [vmem:[%s10744_s3 + $0x5a0] sm:$0x11]  ;;  %v6966_v37 = vor.u32 %v7670_v28, %v6963_v42  ;;  %v6974_v56 = vor.u32 %v7671_v50, %v6971_v1 }
 0x363   : > { %v2681_v27 = vpop.f32.mrf.mxu2  ;;  %v2694_v57 = vpop.f32.mrf.mxu3  ;;  %v4446_v43 = vunpack.c.l.b16 %v6991_v15 }
 0x364   : > { %v2790_v14 = vpop.f32.mrf.mxu0  ;;  %v2803_v3 = vpop.f32.mrf.mxu1  ;;  %v6937_v27 = vld [vmem:[%s10744_s3 + $0x4d8] sm:$0xf]  ;;  %v4447_v57 = vunpack.c.h.b16 %v6991_v15 }
 0x365   : > { %v10053_v33 = vadd.f32 %v2790_v14, %v9952_v11  ;;  %v10056_v0 = vadd.f32 %v2803_v3, %v9954_v22  ;;  %4214 = vmatpush.bf16.msra.mxu2 %v6872_v19  ;;  %4188 = vmatpush.bf16.msra.mxu0 %v6864_v32  ;;  %v6961_v11 = vld [vmem:[%s10744_s3 + $0x510] sm:$0xf]  ;;  %v7672_v22 = vld [vmem:[%s10744_s3 + $0x51c] sm:$0xf0]  ;;  %v6947_v19 = vld [vmem:[%s10744_s3 + $0x500] sm:$0xf0]  ;;  %v6958_v14 = vor.u32 %v7667_v35, %v6955_v60 }
 0x366   : > { %4201 = vmatpush.bf16.msra.mxu1 %v6868_v54  ;;  %4227 = vmatpush.bf16.msra.mxu3 %v6876_v20  ;;  %v6962_v34 = vor.u32 %v7672_v22, %v6961_v11  ;;  %v6954_v54 = vor.u32 %v7669_v16, %v6953_v9  ;;  %v6946_v20 = vor.u32 %v7668_v8, %v6945_v49  ;;  %v6929_v3 = vld [vmem:[%s10744_s3 + $0x4d0] sm:$0xf]  ;;  %v7682_v35 = vld [vmem:[%s10744_s3 + $0x584] sm:$0xf]  ;;  %v7029_v60 = vld [vmem:[%s10744_s3 + $0x590] sm:$0xf0] }
 0x367   : > { %6843 = vmatmul.msk.bf16.vlgmr.msrb.gmra.mxu0 %vm2627_vm3, %v2521_v41  ;;  %6844 = vmatmul.msk.bf16.vlgmr.msrb.gmra.mxu1 %vm2627_vm3, %v2521_v41  ;;  %v4464_v22 = vpack.c.b16 %v4448_v45, %v4448_v45  ;;  %v4462_v28 = vpack.c.b16 %v4446_v43, %v4446_v43  ;;  %v4463_v50 = vpack.c.b16 %v4447_v57, %v4447_v57  ;;  %v7019_v45 = vld [vmem:[%s10744_s3 + $0x568] sm:$0xf] }
 0x368   : > { %6845 = vmatmul.msk.bf16.vlgmr.msrb.gmra.mxu2 %vm2627_vm3, %v2521_v41  ;;  %6846 = vmatmul.msk.bf16.vlgmr.msrb.gmra.mxu3 %vm2627_vm3, %v2521_v41  ;;  %v4449_v41 = vunpack.c.h.b16 %v6992_v36  ;;  %v2522_v36 = vpack.c.bf16 %v2506_v5, %v2506_v5  ;;  %v7032_v57 = vor.u32 %v7682_v35, %v7029_v60  ;;  %v7021_v5 = vld [vmem:[%s10744_s3 + $0x578] sm:$0xf0] }
 0x369   : > { %4367 = vmatpush.bf16.msrb.mxu2 %v4332_v48  ;;  %4341 = vmatpush.bf16.msrb.mxu0 %v4326_v13  ;;  %v7664_v48 = vld [vmem:[%s10744_s3 + $0x4dc] sm:$0xf0]  ;;  %v6931_v13 = vld [vmem:[%s10744_s3 + $0x4e0] sm:$0xf0]  ;;  %v4482_v49 = vsel %vm2631_vm2, %v4462_v28, 0  ;;  %v4485_v7 = vsel %vm2631_vm2, %v4463_v50, 0 }
 0x36a   : > { %4354 = vmatpush.bf16.msrb.mxu1 %v4329_v39  ;;  %4380 = vmatpush.bf16.msrb.mxu3 %v4335_v30  ;;  %v7662_v30 = vld [vmem:[%s10744_s3 + $0x4d4] sm:$0xf]  ;;  %v7663_v39 = vld [vmem:[%s10744_s3 + $0x4dc] sm:$0xf]  ;;  %v6930_v42 = vor.u32 %v7664_v48, %v6929_v3  ;;  %v4465_v1 = vpack.c.b16 %v4449_v41, %v4449_v41  ;;  %v7678_v3 = vld [vmem:[%s10744_s3 + $0x564] sm:$0xf]  ;;  %v2491_v48 = vadd.f32 %v9817_v52, %v2471_v18 }
 0x36b   : > { %v2816_v38 = vpop.f32.mrf.mxu2  ;;  %v2829_v24 = vpop.f32.mrf.mxu3  ;;  %v6934_v9 = vor.u32 %v7662_v30, %v6931_v13 }
 0x36c   : > { %v10123_v32 = vadd.f32 %v2816_v38, %v10012_v59  ;;  %v10126_v47 = vadd.f32 %v2829_v24, %v10014_v44  ;;  %v2792_v40 = vpop.f32.mrf.mxu0  ;;  %v2805_v4 = vpop.f32.mrf.mxu1  ;;  %v7665_v59 = vld [vmem:[%s10744_s3 + $0x4e4] sm:$0xf0]  ;;  %v6950_v44 = vor.u32 %v7666_v55, %v6947_v19  ;;  %v4491_v38 = vsel %vm2631_vm2, %v4465_v1, 0  ;;  %v7685_v19 = vld [vmem:[%s10744_s3 + $0x594] sm:$0xf0] }
 0x36d   : > { %4368 = vmatpush.bf16.msrb.mxu2 %v6970_v62  ;;  %4342 = vmatpush.bf16.msrb.mxu0 %v6962_v34  ;;  %v6938_v11 = vor.u32 %v7665_v59, %v6937_v27  ;;  %v6942_v62 = vor.u32 %v7663_v39, %v6939_v51  ;;  %v7035_v24 = vld [vmem:[%s10744_s3 + $0x588] sm:$0xf]  ;;  %v7683_v40 = vld [vmem:[%s10744_s3 + $0x58c] sm:$0xf]  ;;  %v7037_v4 = vld [vmem:[%s10744_s3 + $0x598] sm:$0xf0] }
 0x36e   : > { %4355 = vmatpush.bf16.msrb.mxu1 %v6966_v37  ;;  %4381 = vmatpush.bf16.msrb.mxu3 %v6974_v56  ;;  %v4488_v56 = vsel %vm2631_vm2, %v4464_v22, 0  ;;  %v7036_v43 = vor.u32 %v7685_v19, %v7035_v24  ;;  %v7058_v27 = vld [vmem:[%s10744_s3 + $0x618] sm:$0x11]  ;;  %v7057_v59 = vld [vmem:[%s10744_s3 + $0x610] sm:$0x11]  ;;  %v7040_v41 = vor.u32 %v7683_v40, %v7037_v4 }
 0x36f   : > { %v7013_v39 = vld [vmem:[%s10744_s3 + $0x570] sm:$0xf0]  ;;  %v7679_v51 = vld [vmem:[%s10744_s3 + $0x56c] sm:$0xf]  ;;  %v4604_v22 = vunpack.c.l.b16 %v7058_v27  ;;  %v4602_v28 = vunpack.c.l.b16 %v7057_v59  ;;  %v7003_v1 = vld [vmem:[%s10744_s3 + $0x548] sm:$0xf] }
 0x371   : > { %4369 = vmatpush.bf16.msrb.mxu2 %v6954_v54  ;;  %4343 = vmatpush.bf16.msrb.mxu0 %v6946_v20  ;;  %v7681_v20 = vld [vmem:[%s10744_s3 + $0x574] sm:$0xf0]  ;;  %v4620_v24 = vpack.c.b16 %v4604_v22, %v4604_v22  ;;  %v4618_v19 = vpack.c.b16 %v4602_v28, %v4602_v28 }
 0x372   : > { %4356 = vmatpush.bf16.msrb.mxu1 %v6950_v44  ;;  %4382 = vmatpush.bf16.msrb.mxu3 %v6958_v14  ;;  %v7011_v44 = vld [vmem:[%s10744_s3 + $0x560] sm:$0xf]  ;;  %v7680_v14 = vld [vmem:[%s10744_s3 + $0x56c] sm:$0xf0] }
 0x373   : > { %v2818_v34 = vpop.f32.mrf.mxu2  ;;  %v2831_v16 = vpop.f32.mrf.mxu3  ;;  %v7012_v50 = vor.u32 %v7680_v14, %v7011_v44 }
 0x374   : > { %v2942_v15 = vpop.f32.mrf.mxu0  ;;  %v2955_v37 = vpop.f32.mrf.mxu1  ;;  %v7024_v34 = vor.u32 %v7679_v51, %v7021_v5  ;;  %v6995_v16 = vld [vmem:[%s10744_s3 + $0x540] sm:$0xf]  ;;  %v7103_v51 = vld [vmem:[%s10744_s3 + $0x608] sm:$0xf0]  ;;  %v7085_v5 = vld [vmem:[%s10744_s3 + $0x5d8] sm:$0xf] }
 0x375   : > { %v10155_v8 = vadd.f32 %v2942_v15, %v10053_v33  ;;  %v10158_v55 = vadd.f32 %v2955_v37, %v10056_v0  ;;  %4370 = vmatpush.bf16.msrb.mxu2 %v6938_v11  ;;  %4344 = vmatpush.bf16.msrb.mxu0 %v6930_v42  ;;  %v7027_v33 = vld [vmem:[%s10744_s3 + $0x580] sm:$0xf]  ;;  %v7684_v0 = vld [vmem:[%s10744_s3 + $0x58c] sm:$0xf0]  ;;  %v7020_v42 = vor.u32 %v7681_v20, %v7019_v45  ;;  %v7674_v15 = vld [vmem:[%s10744_s3 + $0x544] sm:$0xf] }
 0x376   : > { %4357 = vmatpush.bf16.msrb.mxu1 %v6934_v9  ;;  %4383 = vmatpush.bf16.msrb.mxu3 %v6942_v62  ;;  %v7028_v54 = vor.u32 %v7684_v0, %v7027_v33  ;;  %v4603_v9 = vunpack.c.h.b16 %v7057_v59  ;;  %v4605_v62 = vunpack.c.h.b16 %v7058_v27  ;;  %v6997_v37 = vld [vmem:[%s10744_s3 + $0x550] sm:$0xf0]  ;;  %v4644_v27 = vsel %vm2631_vm2, %v4620_v24, 0  ;;  %v7691_v24 = vld [vmem:[%s10744_s3 + $0x5dc] sm:$0xf] }
 0x377   : > { %6909 = vmatmul.msk.bf16.vlgmr.msra.gmra.mxu0 %vm2627_vm3, %v2522_v36  ;;  %6910 = vmatmul.msk.bf16.vlgmr.msra.gmra.mxu1 %vm2627_vm3, %v2522_v36  ;;  %v7000_v60 = vor.u32 %v7674_v15, %v6997_v37  ;;  %v4638_v59 = vsel %vm2631_vm2, %v4618_v19, 0  ;;  %v2492_v37 = vadd.f32 %v9817_v52, %v2472_v53  ;;  %v7087_v19 = vld [vmem:[%s10744_s3 + $0x5e8] sm:$0xf0] }
 0x378   : > { %6911 = vmatmul.msk.bf16.vlgmr.msra.gmra.mxu2 %vm2627_vm3, %v2522_v36  ;;  %6912 = vmatmul.msk.bf16.vlgmr.msra.gmra.mxu3 %vm2627_vm3, %v2522_v36  ;;  %v7676_v36 = vld [vmem:[%s10744_s3 + $0x54c] sm:$0xf0]  ;;  %v4619_v0 = vpack.c.b16 %v4603_v9, %v4603_v9  ;;  %v4621_v35 = vpack.c.b16 %v4605_v62, %v4605_v62 }
 0x379   : > { %4523 = vmatpush.bf16.msra.mxu2 %v4488_v56  ;;  %4497 = vmatpush.bf16.msra.mxu0 %v4482_v49  ;;  %v7675_v56 = vld [vmem:[%s10744_s3 + $0x54c] sm:$0xf]  ;;  %v7005_v49 = vld [vmem:[%s10744_s3 + $0x558] sm:$0xf0]  ;;  %v6996_v33 = vor.u32 %v7676_v36, %v6995_v16  ;;  %v7690_v16 = vld [vmem:[%s10744_s3 + $0x5d4] sm:$0xf] }
 0x37a   : > { %4510 = vmatpush.bf16.msra.mxu1 %v4485_v7  ;;  %4536 = vmatpush.bf16.msra.mxu3 %v4491_v38  ;;  %v2507_v7 = vmax.f32 %v2491_v48, 0.0  ;;  %v7008_v40 = vor.u32 %v7675_v56, %v7005_v49  ;;  %v4641_v44 = vsel %vm2631_vm2, %v4619_v0, 0  ;;  %v4647_v14 = vsel %vm2631_vm2, %v4621_v35, 0  ;;  %v7697_v48 = vld [vmem:[%s10744_s3 + $0x604] sm:$0xf0] }
 0x37b   : > { %v2968_v30 = vpop.f32.mrf.mxu2  ;;  %v2981_v13 = vpop.f32.mrf.mxu3  ;;  %v10785_v36 = vld [vmem:[#allocation12_spill] sm:$0xff]  ;;  %v2355_v56 = vadd.f32 %v9644_v63, %v9642_v2 }
 0x37c   : > { %v10225_v11 = vadd.f32 %v2968_v30, %v10123_v32  ;;  %v10228_v17 = vadd.f32 %v2981_v13, %v10126_v47  ;;  %v2944_v23 = vpop.f32.mrf.mxu0  ;;  %v2957_v18 = vpop.f32.mrf.mxu1  ;;  %v7677_v32 = vld [vmem:[%s10744_s3 + $0x554] sm:$0xf0]  ;;  %v7016_v47 = vor.u32 %v7678_v3, %v7013_v39  ;;  %v7694_v30 = vld [vmem:[%s10744_s3 + $0x5f4] sm:$0xf]  ;;  %v7095_v13 = vld [vmem:[%s10744_s3 + $0x600] sm:$0xf0] }
 0x37d   : > { %4524 = vmatpush.bf16.msra.mxu2 %v7036_v43  ;;  %4498 = vmatpush.bf16.msra.mxu0 %v7028_v54  ;;  %v7004_v38 = vor.u32 %v7677_v32, %v7003_v1  ;;  %v2523_v43 = vpack.c.bf16 %v2507_v7, %v2507_v7  ;;  %v7101_v3 = vld [vmem:[%s10744_s3 + $0x5f8] sm:$0xf]  ;;  %v7695_v39 = vld [vmem:[%s10744_s3 + $0x5fc] sm:$0xf]  ;;  %v10784_v18 = vld [vmem:[#allocation11_spill] sm:$0xff]  ;;  %v7098_v9 = vor.u32 %v7694_v30, %v7095_v13 }
 0x37e   : > { %4511 = vmatpush.bf16.msra.mxu1 %v7032_v57  ;;  %4537 = vmatpush.bf16.msra.mxu3 %v7040_v41  ;;  %v10783_v23 = vld [vmem:[#allocation10_spill] sm:$0xff]  ;;  %v7102_v28 = vor.u32 %v7697_v48, %v7101_v3  ;;  %v7124_v1 = vld [vmem:[%s10744_s3 + $0x688] sm:$0x11]  ;;  %v7123_v32 = vld [vmem:[%s10744_s3 + $0x680] sm:$0x11]  ;;  %v7106_v62 = vor.u32 %v7695_v39, %v7103_v51 }
 0x37f   : > { %v1934_v22 = vadd.f32 %v10784_v18, %v10783_v23  ;;  %v4760_v53 = vunpack.c.l.b16 %v7124_v1  ;;  %v7687_v3 = vld [vmem:[%s10744_s3 + $0x5bc] sm:$0xf]  ;;  %v7071_v48 = vld [vmem:[%s10744_s3 + $0x5c8] sm:$0xf0] }
 0x380   : > { %v7074_v23 = vor.u32 %v7687_v3, %v7071_v48 }
 0x381   : > { %4525 = vmatpush.bf16.msra.mxu2 %v7020_v42  ;;  %4499 = vmatpush.bf16.msra.mxu0 %v7012_v50  ;;  %v7693_v50 = vld [vmem:[%s10744_s3 + $0x5e4] sm:$0xf0]  ;;  %v1983_v15 = vadd.f32 %v10785_v36, %v1934_v22  ;;  %v4776_v30 = vpack.c.b16 %v4760_v53, %v4760_v53 }
 0x382   : > { %4512 = vmatpush.bf16.msra.mxu1 %v7016_v47  ;;  %4538 = vmatpush.bf16.msra.mxu3 %v7024_v34  ;;  %v7077_v47 = vld [vmem:[%s10744_s3 + $0x5d0] sm:$0xf]  ;;  %v7692_v34 = vld [vmem:[%s10744_s3 + $0x5dc] sm:$0xf0]  ;;  %v7086_v0 = vor.u32 %v7693_v50, %v7085_v5 }
 0x383   : > { %v2970_v4 = vpop.f32.mrf.mxu2  ;;  %v2983_v45 = vpop.f32.mrf.mxu3  ;;  %v7078_v35 = vor.u32 %v7692_v34, %v7077_v47  ;;  %v10788_v50 = vld [vmem:[#allocation7_spill] sm:$0xff]  ;;  %v4800_v34 = vsel %vm2631_vm2, %v4776_v30, 0 }
 0x384   : > { %v3098_v54 = vpop.f32.mrf.mxu0  ;;  %v3111_v20 = vpop.f32.mrf.mxu1  ;;  %v4761_v4 = vunpack.c.h.b16 %v7124_v1  ;;  %v7090_v45 = vor.u32 %v7691_v24, %v7087_v19  ;;  %v7161_v24 = vld [vmem:[%s10744_s3 + $0x670] sm:$0xf0]  ;;  %v7707_v19 = vld [vmem:[%s10744_s3 + $0x66c] sm:$0xf] }
 0x385   : > { %v10257_v57 = vadd.f32 %v3098_v54, %v10155_v8  ;;  %v10260_v41 = vadd.f32 %v3111_v20, %v10158_v55  ;;  %4526 = vmatpush.bf16.msra.mxu2 %v7004_v38  ;;  %4500 = vmatpush.bf16.msra.mxu0 %v6996_v33  ;;  %v7093_v8 = vld [vmem:[%s10744_s3 + $0x5f0] sm:$0xf]  ;;  %v7696_v55 = vld [vmem:[%s10744_s3 + $0x5fc] sm:$0xf0]  ;;  %v7079_v38 = vld [vmem:[%s10744_s3 + $0x5e0] sm:$0xf0]  ;;  %v4758_v33 = vunpack.c.l.b16 %v7123_v32 }
 0x386   : > { %4513 = vmatpush.bf16.msra.mxu1 %v7000_v60  ;;  %4539 = vmatpush.bf16.msra.mxu3 %v7008_v40  ;;  %v7094_v42 = vor.u32 %v7696_v55, %v7093_v8  ;;  %v7069_v60 = vld [vmem:[%s10744_s3 + $0x5b8] sm:$0xf]  ;;  %v4759_v40 = vunpack.c.h.b16 %v7123_v32  ;;  %v7688_v54 = vld [vmem:[%s10744_s3 + $0x5bc] sm:$0xf0]  ;;  %v7686_v20 = vld [vmem:[%s10744_s3 + $0x5b4] sm:$0xf]  ;;  %v4777_v51 = vpack.c.b16 %v4761_v4, %v4761_v4 }
 0x387   : > { %6975 = vmatmul.msk.bf16.vlgmr.msrb.gmra.mxu0 %vm2627_vm3, %v2523_v43  ;;  %6976 = vmatmul.msk.bf16.vlgmr.msrb.gmra.mxu1 %vm2627_vm3, %v2523_v43  ;;  %v2508_v8 = vmax.f32 %v2492_v37, 0.0  ;;  %v4774_v13 = vpack.c.b16 %v4758_v33, %v4758_v33  ;;  %v7143_v4 = vld [vmem:[%s10744_s3 + $0x640] sm:$0xf] }
 0x388   : > { %6977 = vmatmul.msk.bf16.vlgmr.msrb.gmra.mxu2 %vm2627_vm3, %v2523_v43  ;;  %6978 = vmatmul.msk.bf16.vlgmr.msrb.gmra.mxu3 %vm2627_vm3, %v2523_v43  ;;  %v7061_v43 = vld [vmem:[%s10744_s3 + $0x5b0] sm:$0xf]  ;;  %v4803_v37 = vsel %vm2631_vm2, %v4777_v51, 0 }
 0x389   : > { %4679 = vmatpush.bf16.msrb.mxu2 %v4644_v27  ;;  %4653 = vmatpush.bf16.msrb.mxu0 %v4638_v59  ;;  %v10786_v27 = vld [vmem:[#allocation13_spill] sm:$0xff]  ;;  %v7062_v39 = vor.u32 %v7688_v54, %v7061_v43 }
 0x38a   : > { %4666 = vmatpush.bf16.msrb.mxu1 %v4641_v44  ;;  %4692 = vmatpush.bf16.msrb.mxu3 %v4647_v14  ;;  %v2032_v59 = vadd.f32 %v10786_v27, %v1983_v15  ;;  %v2404_v44 = vadd.f32 %v9683_v46, %v2355_v56  ;;  %v7063_v14 = vld [vmem:[%s10744_s3 + $0x5c0] sm:$0xf0]  ;;  %v4775_v46 = vpack.c.b16 %v4759_v40, %v4759_v40  ;;  %v7167_v56 = vld [vmem:[%s10744_s3 + $0x668] sm:$0xf]  ;;  %v7145_v27 = vld [vmem:[%s10744_s3 + $0x650] sm:$0xf0] }
 0x38b   : > { %v3124_v49 = vpop.f32.mrf.mxu2  ;;  %v3137_v7 = vpop.f32.mrf.mxu3  ;;  %v7066_v5 = vor.u32 %v7686_v20, %v7063_v14 }
 0x38c   : > { %v10332_v58 = vadd.f32 %v3124_v49, %v10225_v11  ;;  %v10335_v29 = vadd.f32 %v3137_v7, %v10228_v17  ;;  %v3100_v2 = vpop.f32.mrf.mxu0  ;;  %v3113_v63 = vpop.f32.mrf.mxu1  ;;  %v7689_v11 = vld [vmem:[%s10744_s3 + $0x5c4] sm:$0xf0]  ;;  %v7082_v17 = vor.u32 %v7690_v16, %v7079_v38  ;;  %v2453_v18 = vadd.f32 %v9718_v12, %v2404_v44  ;;  %v7709_v49 = vld [vmem:[%s10744_s3 + $0x674] sm:$0xf0]  ;;  %v7706_v7 = vld [vmem:[%s10744_s3 + $0x664] sm:$0xf] }
 0x38d   : > { %4680 = vmatpush.bf16.msrb.mxu2 %v7102_v28  ;;  %4654 = vmatpush.bf16.msrb.mxu0 %v7094_v42  ;;  %v7070_v55 = vor.u32 %v7689_v11, %v7069_v60  ;;  %v10787_v42 = vld [vmem:[#allocation4_spill] sm:$0xff]  ;;  %v4794_v16 = vsel %vm2631_vm2, %v4774_v13, 0  ;;  %v4797_v12 = vsel %vm2631_vm2, %v4775_v46, 0  ;;  %v7169_v2 = vld [vmem:[%s10744_s3 + $0x678] sm:$0xf0]  ;;  %v7168_v53 = vor.u32 %v7709_v49, %v7167_v56 }
 0x38e   : > { %4667 = vmatpush.bf16.msrb.mxu1 %v7098_v9  ;;  %4693 = vmatpush.bf16.msrb.mxu3 %v7106_v62  ;;  %v10789_v1 = vmax.f32 %v10787_v42, %v10788_v50  ;;  %v2524_v9 = vpack.c.bf16 %v2508_v8, %v2508_v8  ;;  %v7151_v63 = vld [vmem:[%s10744_s3 + $0x648] sm:$0xf]  ;;  %v7189_v60 = vld [vmem:[%s10744_s3 + $0x6f0] sm:$0x11]  ;;  %v7164_v11 = vor.u32 %v7706_v7, %v7161_v24  ;;  %v7153_v44 = vld [vmem:[%s10744_s3 + $0x658] sm:$0xf0] }
 0x38f   : > { %v7172_v40 = vor.u32 %v7707_v19, %v7169_v2  ;;  %v4915_v46 = vunpack.c.h.b16 %v7189_v60  ;;  %v7699_v42 = vld [vmem:[%s10744_s3 + $0x62c] sm:$0xf]  ;;  %v7137_v50 = vld [vmem:[%s10744_s3 + $0x638] sm:$0xf0] }
 0x390   : > { %v2052_v32 = vmax.f32 %v10789_v1, %v2032_v59  ;;  %v7703_v59 = vld [vmem:[%s10744_s3 + $0x64c] sm:$0xf] }
 0x391   : > { %4681 = vmatpush.bf16.msrb.mxu2 %v7086_v0  ;;  %4655 = vmatpush.bf16.msrb.mxu0 %v7078_v35  ;;  %v7705_v0 = vld [vmem:[%s10744_s3 + $0x654] sm:$0xf0] }
 0x392   : > { %4668 = vmatpush.bf16.msrb.mxu1 %v7082_v17  ;;  %4694 = vmatpush.bf16.msrb.mxu3 %v7090_v45  ;;  %v2473_v38 = vmax.f32 %v2052_v32, %v2453_v18  ;;  %v7190_v35 = vld [vmem:[%s10744_s3 + $0x6f8] sm:$0x11]  ;;  %v7704_v17 = vld [vmem:[%s10744_s3 + $0x64c] sm:$0xf0]  ;;  %v7702_v45 = vld [vmem:[%s10744_s3 + $0x644] sm:$0xf]  ;;  %v7152_v30 = vor.u32 %v7705_v0, %v7151_v63 }
 0x393   : > { %v3126_v22 = vpop.f32.mrf.mxu2  ;;  %v3139_v28 = vpop.f32.mrf.mxu3  ;;  %v4916_v8 = vunpack.c.l.b16 %v7190_v35  ;;  %v7144_v13 = vor.u32 %v7704_v17, %v7143_v4  ;;  %v4917_v51 = vunpack.c.h.b16 %v7190_v35  ;;  %v7700_v18 = vld [vmem:[%s10744_s3 + $0x62c] sm:$0xf0]  ;;  %v7721_v0 = vld [vmem:[%s10744_s3 + $0x6e4] sm:$0xf0]  ;;  %v7718_v35 = vld [vmem:[%s10744_s3 + $0x6d4] sm:$0xf] }
 0x394   : > { %v3254_v62 = vpop.f32.mrf.mxu0  ;;  %v3267_v47 = vpop.f32.mrf.mxu1  ;;  %v2493_v43 = vadd.f32 %v9817_v52, %v2473_v38  ;;  %v7698_v22 = vld [vmem:[%s10744_s3 + $0x624] sm:$0xf]  ;;  %v7129_v28 = vld [vmem:[%s10744_s3 + $0x630] sm:$0xf0] }
 0x395   : > { %v10370_v36 = vadd.f32 %v3254_v62, %v10257_v57  ;;  %v10373_v15 = vadd.f32 %v3267_v47, %v10260_v41  ;;  %4682 = vmatpush.bf16.msrb.mxu2 %v7070_v55  ;;  %4656 = vmatpush.bf16.msrb.mxu0 %v7062_v39  ;;  %v7159_v57 = vld [vmem:[%s10744_s3 + $0x660] sm:$0xf]  ;;  %v7708_v41 = vld [vmem:[%s10744_s3 + $0x66c] sm:$0xf0]  ;;  %v4914_v55 = vunpack.c.l.b16 %v7189_v60  ;;  %v7135_v39 = vld [vmem:[%s10744_s3 + $0x628] sm:$0xf] }
 0x396   : > { %4669 = vmatpush.bf16.msrb.mxu1 %v7066_v5  ;;  %4695 = vmatpush.bf16.msrb.mxu3 %v7074_v23  ;;  %v7160_v33 = vor.u32 %v7708_v41, %v7159_v57  ;;  %v7156_v5 = vor.u32 %v7703_v59, %v7153_v44  ;;  %v7127_v23 = vld [vmem:[%s10744_s3 + $0x620] sm:$0xf]  ;;  %v2509_v1 = vmax.f32 %v2493_v43, 0.0  ;;  %v7227_v60 = vld [vmem:[%s10744_s3 + $0x6e0] sm:$0xf0] }
 0x397   : > { %7041 = vmatmul.msk.bf16.vlgmr.msra.gmra.mxu0 %vm2627_vm3, %v2524_v9  ;;  %7042 = vmatmul.msk.bf16.vlgmr.msra.gmra.mxu1 %vm2627_vm3, %v2524_v9  ;;  %v4930_v62 = vpack.c.b16 %v4914_v55, %v4914_v55  ;;  %v7128_v47 = vor.u32 %v7700_v18, %v7127_v23  ;;  %v7717_v43 = vld [vmem:[%s10744_s3 + $0x6c4] sm:$0xf0]  ;;  %v7716_v59 = vld [vmem:[%s10744_s3 + $0x6bc] sm:$0xf0]  ;;  %v7714_v44 = vld [vmem:[%s10744_s3 + $0x6b4] sm:$0xf] }
 0x398   : > { %7043 = vmatmul.msk.bf16.vlgmr.msra.gmra.mxu2 %vm2627_vm3, %v2524_v9  ;;  %7044 = vmatmul.msk.bf16.vlgmr.msra.gmra.mxu3 %vm2627_vm3, %v2524_v9  ;;  %v4932_v9 = vpack.c.b16 %v4916_v8, %v4916_v8  ;;  %v2525_v57 = vpack.c.bf16 %v2509_v1, %v2509_v1  ;;  %v7211_v8 = vld [vmem:[%s10744_s3 + $0x6c0] sm:$0xf0]  ;;  %v7715_v55 = vld [vmem:[%s10744_s3 + $0x6bc] sm:$0xf] }
 0x399   : > { %4835 = vmatpush.bf16.msra.mxu2 %v4800_v34  ;;  %4809 = vmatpush.bf16.msra.mxu0 %v4794_v16  ;;  %v4931_v34 = vpack.c.b16 %v4915_v46, %v4915_v46  ;;  %v4933_v16 = vpack.c.b16 %v4917_v51, %v4917_v51  ;;  %v4950_v24 = vsel %vm2631_vm2, %v4930_v62, 0  ;;  %v7711_v1 = vld [vmem:[%s10744_s3 + $0x69c] sm:$0xf] }
 0x39a   : > { %4822 = vmatpush.bf16.msra.mxu1 %v4797_v12  ;;  %4848 = vmatpush.bf16.msra.mxu3 %v4803_v37  ;;  %v7132_v12 = vor.u32 %v7698_v22, %v7129_v28  ;;  %v7140_v37 = vor.u32 %v7699_v42, %v7137_v50  ;;  %v4956_v38 = vsel %vm2631_vm2, %v4932_v9, 0  ;;  %v7201_v22 = vld [vmem:[%s10744_s3 + $0x698] sm:$0xf]  ;;  %v7710_v42 = vld [vmem:[%s10744_s3 + $0x694] sm:$0xf]  ;;  %v10792_v9 = vld [vmem:[#allocation16_spill] sm:$0xff] }
 0x39b   : > { %v3280_v54 = vpop.f32.mrf.mxu2  ;;  %v3293_v20 = vpop.f32.mrf.mxu3  ;;  %v4953_v63 = vsel %vm2631_vm2, %v4931_v34, 0  ;;  %v7195_v50 = vld [vmem:[%s10744_s3 + $0x6a0] sm:$0xf0] }
 0x39c   : > { %v10437_v14 = vadd.f32 %v3280_v54, %v10332_v58  ;;  %v10440_v3 = vadd.f32 %v3293_v20, %v10335_v29  ;;  %v3256_v52 = vpop.f32.mrf.mxu0  ;;  %v3269_v48 = vpop.f32.mrf.mxu1  ;;  %v7701_v58 = vld [vmem:[%s10744_s3 + $0x634] sm:$0xf0]  ;;  %v7148_v29 = vor.u32 %v7702_v45, %v7145_v27  ;;  %v7230_v54 = vor.u32 %v7718_v35, %v7227_v60  ;;  %v7209_v27 = vld [vmem:[%s10744_s3 + $0x6b0] sm:$0xf] }
 0x39d   : > { %4836 = vmatpush.bf16.msra.mxu2 %v7168_v53  ;;  %4810 = vmatpush.bf16.msra.mxu0 %v7160_v33  ;;  %v7136_v32 = vor.u32 %v7701_v58, %v7135_v39  ;;  %v4959_v53 = vsel %vm2631_vm2, %v4933_v16, 0  ;;  %v7233_v33 = vld [vmem:[%s10744_s3 + $0x6d8] sm:$0xf]  ;;  %v7210_v18 = vor.u32 %v7716_v59, %v7209_v27  ;;  %v7202_v16 = vor.u32 %v7713_v26, %v7201_v22 }
 0x39e   : > { %4823 = vmatpush.bf16.msra.mxu1 %v7164_v11  ;;  %4849 = vmatpush.bf16.msra.mxu3 %v7172_v40  ;;  %v7719_v11 = vld [vmem:[%s10744_s3 + $0x6dc] sm:$0xf]  ;;  %v7235_v40 = vld [vmem:[%s10744_s3 + $0x6e8] sm:$0xf0]  ;;  %v7234_v4 = vor.u32 %v7721_v0, %v7233_v33  ;;  %v7217_v45 = vld [vmem:[%s10744_s3 + $0x6b8] sm:$0xf] }
 0x39f   : > { %v7238_v20 = vor.u32 %v7719_v11, %v7235_v40  ;;  %v7218_v23 = vor.u32 %v7717_v43, %v7217_v45  ;;  %v10794_v0 = vld [vmem:[#allocation5_spill] sm:$0xff] }
 0x3a1   : > { %4837 = vmatpush.bf16.msra.mxu2 %v7152_v30  ;;  %4811 = vmatpush.bf16.msra.mxu0 %v7144_v13  ;;  %v7219_v30 = vld [vmem:[%s10744_s3 + $0x6c8] sm:$0xf0]  ;;  %v7784_v13 = vld [vmem:[%s10743_s2] ss:$0 sm:$0xff] }
 0x3a2   : > { %4824 = vmatpush.bf16.msra.mxu1 %v7148_v29  ;;  %4850 = vmatpush.bf16.msra.mxu3 %v7156_v5  ;;  %v2494_v39 = vadd.f32 %v7784_v13, %v2474_v61  ;;  %v2360_v5 = vadd.f32 %v9918_v25, %v9916_v31  ;;  %v10791_v61 = vld [vmem:[#allocation15_spill] sm:$0xff]  ;;  %v7222_v28 = vor.u32 %v7715_v55, %v7219_v30  ;;  %v7193_v31 = vld [vmem:[%s10744_s3 + $0x690] sm:$0xf] }
 0x3a3   : > { %v3282_v56 = vpop.f32.mrf.mxu2  ;;  %v3295_v49 = vpop.f32.mrf.mxu3  ;;  %v7712_v25 = vld [vmem:[%s10744_s3 + $0x69c] sm:$0xf0] }
 0x3a4   : > { %v3410_v41 = vpop.f32.mrf.mxu0  ;;  %v3423_v7 = vpop.f32.mrf.mxu1  ;;  %v2409_v34 = vadd.f32 %v9947_v21, %v2360_v5  ;;  %v10793_v49 = vld [vmem:[#allocation17_spill] sm:$0xff] }
 0x3a5   : > { %v10469_v19 = vadd.f32 %v3410_v41, %v10370_v36  ;;  %v10472_v2 = vadd.f32 %v3423_v7, %v10373_v15  ;;  %4838 = vmatpush.bf16.msra.mxu2 %v7136_v32  ;;  %4812 = vmatpush.bf16.msra.mxu0 %v7128_v47  ;;  %v7225_v36 = vld [vmem:[%s10744_s3 + $0x6d0] sm:$0xf]  ;;  %v7720_v15 = vld [vmem:[%s10744_s3 + $0x6dc] sm:$0xf0]  ;;  %v7203_v32 = vld [vmem:[%s10744_s3 + $0x6a8] sm:$0xf0] }
 0x3a6   : > { %4825 = vmatpush.bf16.msra.mxu1 %v7132_v12  ;;  %4851 = vmatpush.bf16.msra.mxu3 %v7140_v37  ;;  %v7226_v17 = vor.u32 %v7720_v15, %v7225_v36  ;;  %v2510_v47 = vmax.f32 %v2494_v39, 0.0  ;;  %v7194_v12 = vor.u32 %v7712_v25, %v7193_v31  ;;  %v7198_v37 = vor.u32 %v7710_v42, %v7195_v50  ;;  %v10795_v36 = vld [vmem:[#allocation8_spill] sm:$0xff] }
 0x3a7   : > { %7107 = vmatmul.msk.bf16.vlgmr.msrb.gmra.mxu0 %vm2627_vm3, %v2525_v57  ;;  %7108 = vmatmul.msk.bf16.vlgmr.msrb.gmra.mxu1 %vm2627_vm3, %v2525_v57  ;;  %v7206_v56 = vor.u32 %v7711_v1, %v7203_v32  ;;  %v10796_v15 = vmax.f32 %v10794_v0, %v10795_v36 }
 0x3a8   : > { %7109 = vmatmul.msk.bf16.vlgmr.msrb.gmra.mxu2 %vm2627_vm3, %v2525_v57  ;;  %7110 = vmatmul.msk.bf16.vlgmr.msrb.gmra.mxu3 %vm2627_vm3, %v2525_v57 }
 0x3a9   : > { %4991 = vmatpush.bf16.msrb.mxu2 %v4956_v38  ;;  %4965 = vmatpush.bf16.msrb.mxu0 %v4950_v24  ;;  %v2526_v38 = vpack.c.bf16 %v2510_v47, %v2510_v47 }
 0x3aa   : > { %4978 = vmatpush.bf16.msrb.mxu1 %v4953_v63  ;;  %5004 = vmatpush.bf16.msrb.mxu3 %v4959_v53  ;;  %v2458_v53 = vadd.f32 %v9949_v6, %v2409_v34 }
 0x3ab   : > { %v3436_v52 = vpop.f32.mrf.mxu2  ;;  %v3449_v48 = vpop.f32.mrf.mxu3 }
 0x3ac   : > { %v3455_v58 = vadd.f32 %v3436_v52, %v10437_v14  ;;  %v3456_v46 = vadd.f32 %v3449_v48, %v10440_v3  ;;  %v3412_v51 = vpop.f32.mrf.mxu0  ;;  %v3425_v29 = vpop.f32.mrf.mxu1  ;;  %v1939_v14 = vadd.f32 %v10791_v61, %v10790_v10  ;;  %v7214_v3 = vor.u32 %v7714_v44, %v7211_v8 }
 0x3ad   : > { %4992 = vmatpush.bf16.msrb.mxu2 %v7234_v4  ;;  %4966 = vmatpush.bf16.msrb.mxu0 %v7226_v17 }
 0x3ae   : > { %4979 = vmatpush.bf16.msrb.mxu1 %v7230_v54  ;;  %5005 = vmatpush.bf16.msrb.mxu3 %v7238_v20  ;;  %v1988_v62 = vadd.f32 %v10792_v9, %v1939_v14 }
 0x3b0   : > { %v2037_v57 = vadd.f32 %v10793_v49, %v1988_v62 }
 0x3b1   : > { %4993 = vmatpush.bf16.msrb.mxu2 %v7218_v23  ;;  %4967 = vmatpush.bf16.msrb.mxu0 %v7210_v18 }
 0x3b2   : > { %4980 = vmatpush.bf16.msrb.mxu1 %v7214_v3  ;;  %5006 = vmatpush.bf16.msrb.mxu3 %v7222_v28  ;;  %v2054_v35 = vmax.f32 %v10796_v15, %v2037_v57 }
 0x3b3   : > { %v3438_v41 = vpop.f32.mrf.mxu2  ;;  %v3451_v7 = vpop.f32.mrf.mxu3 }
 0x3b4   : > { %v3566_v24 = vpop.f32.mrf.mxu0  ;;  %v3579_v63 = vpop.f32.mrf.mxu1  ;;  %v2475_v6 = vmax.f32 %v2054_v35, %v2458_v53 }
 0x3b5   : > { %v3609_v33 = vadd.f32 %v3566_v24, %v10469_v19  ;;  %v3610_v21 = vadd.f32 %v3579_v63, %v10472_v2  ;;  %4994 = vmatpush.bf16.msrb.mxu2 %v7202_v16  ;;  %4968 = vmatpush.bf16.msrb.mxu0 %v7194_v12 }
 0x3b6   : > { %4981 = vmatpush.bf16.msrb.mxu1 %v7198_v37  ;;  %5007 = vmatpush.bf16.msrb.mxu3 %v7206_v56  ;;  %v2495_v17 = vadd.f32 %v7784_v13, %v2475_v6 }
 0x3b7   : > { %7173 = vmatmul.msk.bf16.vlgmr.msra.gmra.mxu0 %vm2627_vm3, %v2526_v38  ;;  %7174 = vmatmul.msk.bf16.vlgmr.msra.gmra.mxu1 %vm2627_vm3, %v2526_v38 }
 0x3b8   : > { %7175 = vmatmul.msk.bf16.vlgmr.msra.gmra.mxu2 %vm2627_vm3, %v2526_v38  ;;  %7176 = vmatmul.msk.bf16.vlgmr.msra.gmra.mxu3 %vm2627_vm3, %v2526_v38  ;;  %v2511_v45 = vmax.f32 %v2495_v17, 0.0  ;;  %v7736_v17 = vld [vmem:[%s10746_s5 + $0x70] sm:$0xff] }
 0x3ba   : > { %v2527_v59 = vpack.c.bf16 %v2511_v45, %v2511_v45 }
 0x3bb   : > { %v3592_v19 = vpop.f32.mrf.mxu2  ;;  %v3605_v60 = vpop.f32.mrf.mxu3 }
 0x3bc   : > { %v3611_v2 = vadd.f32 %v3592_v19, %v3455_v58  ;;  %v3612_v11 = vadd.f32 %v3605_v60, %v3456_v46  ;;  %v3568_v40 = vpop.f32.mrf.mxu0  ;;  %v3581_v4 = vpop.f32.mrf.mxu1  ;;  %v7729_v60 = vld [vmem:[%s10746_s5 + $0x38] sm:$0xff] }
 0x3bd   : > { %5301 = vmatpush.bf16.msra.mxu0 %v7729_v60  ;;  %v7728_v4 = vld [vmem:[%s10746_s5 + $0x30] sm:$0xff] }
 0x3c1   : > { %5302 = vmatpush.bf16.msra.mxu0 %v7728_v4 }
 0x3c3   : > { %v3594_v43 = vpop.f32.mrf.mxu2  ;;  %v3607_v54 = vpop.f32.mrf.mxu3 }
 0x3c4   : > { %v3722_v20 = vpop.f32.mrf.mxu0  ;;  %v3735_v27 = vpop.f32.mrf.mxu1 }
 0x3c5   : > { %v3765_v44 = vadd.f32 %v3722_v20, %v3609_v33  ;;  %v3766_v52 = vadd.f32 %v3735_v27, %v3610_v21  ;;  %v7745_v20 = vld [vmem:[%s10746_s5 + $0xb8] sm:$0xff] }
 0x3c6   : > { %5327 = vmatpush.bf16.msra.mxu2 %v7745_v20 }
 0x3c7   : > { %7239 = vmatmul.msk.bf16.vlgmr.msrb.gmra.mxu0 %vm2627_vm3, %v2527_v59  ;;  %7240 = vmatmul.msk.bf16.vlgmr.msrb.gmra.mxu1 %vm2627_vm3, %v2527_v59 }
 0x3c8   : > { %7241 = vmatmul.msk.bf16.vlgmr.msrb.gmra.mxu2 %vm2627_vm3, %v2527_v59  ;;  %7242 = vmatmul.msk.bf16.vlgmr.msrb.gmra.mxu3 %vm2627_vm3, %v2527_v59 }
 0x3cb   : > { %v3748_v48 = vpop.f32.mrf.mxu2  ;;  %v3761_v8 = vpop.f32.mrf.mxu3 }
 0x3cc   : > { %v3767_v55 = vadd.f32 %v3748_v48, %v3611_v2  ;;  %v3768_v30 = vadd.f32 %v3761_v8, %v3612_v11  ;;  %v3724_v13 = vpop.f32.mrf.mxu0  ;;  %v3737_v39 = vpop.f32.mrf.mxu1  ;;  %v7737_v2 = vld [vmem:[%s10746_s5 + $0x78] sm:$0xff]  ;;  %v7735_v48 = vld [vmem:[%s10746_s5 + $0x68] sm:$0xff]  ;;  %v7744_v8 = vld [vmem:[%s10746_s5 + $0xb0] sm:$0xff] }
 0x3cd   : > { %5314 = vmatpush.bf16.msra.mxu1 %v7737_v2  ;;  %v5101_v11 = vld [vmem:[%s10746_s5 + $0xf8] sm:$0x3]  ;;  %5328 = vmatpush.bf16.msra.mxu2 %v7744_v8  ;;  %v7734_v13 = vld [vmem:[%s10746_s5 + $0x60] sm:$0xff] }
 0x3ce   : > { %v5231_v40 = vunpack.c.l.b16 %v5101_v11 }
 0x3d0   : > { %v5263_v45 = vpack.c.b16 %v5231_v40, %v5231_v40 }
 0x3d1   : > { %5315 = vmatpush.bf16.msra.mxu1 %v7736_v17 }
 0x3d3   : > { %v3750_v58 = vpop.f32.mrf.mxu2  ;;  %v3763_v46 = vpop.f32.mrf.mxu3 }
 0x3d4   : > { %v3878_v51 = vpop.f32.mrf.mxu0  ;;  %v3891_v29 = vpop.f32.mrf.mxu1  ;;  %v7743_v46 = vld [vmem:[%s10746_s5 + $0xa8] sm:$0xff] }
 0x3d5   : > { %v3921_v5 = vadd.f32 %v3878_v51, %v3765_v44  ;;  %v3922_v23 = vadd.f32 %v3891_v29, %v3766_v52  ;;  %v5299_v44 = vsel %vm1013_vm0, %v5263_v45, 0  ;;  %v7727_v52 = vld [vmem:[%s10746_s5 + $0x28] sm:$0xff]  ;;  %5316 = vmatpush.bf16.msra.mxu1 %v7735_v48  ;;  %5329 = vmatpush.bf16.msra.mxu2 %v7743_v46 }
 0x3d6   : > { %5340 = vmatpush.bf16.msra.mxu3 %v5299_v44  ;;  %5303 = vmatpush.bf16.msra.mxu0 %v7727_v52  ;;  %v7751_v51 = vld [vmem:[%s10746_s5 + $0xe8] sm:$0xff] }
 0x3d9   : > { %5317 = vmatpush.bf16.msra.mxu1 %v7734_v13 }
 0x3db   : > { %v3904_v18 = vpop.f32.mrf.mxu2  ;;  %v3917_v22 = vpop.f32.mrf.mxu3 }
 0x3dc   : > { %v3923_v26 = vadd.f32 %v3904_v18, %v3767_v55  ;;  %v3924_v10 = vadd.f32 %v3917_v22, %v3768_v30  ;;  %v3880_v61 = vpop.f32.mrf.mxu0  ;;  %v3893_v14 = vpop.f32.mrf.mxu1  ;;  %v7752_v55 = vld [vmem:[%s10746_s5 + $0xf0] sm:$0xff]  ;;  %v7726_v30 = vld [vmem:[%s10746_s5 + $0x20] sm:$0xff]  ;;  %v7733_v18 = vld [vmem:[%s10746_s5 + $0x58] sm:$0xff] }
 0x3dd   : > { %5341 = vmatpush.bf16.msra.mxu3 %v7752_v55  ;;  %5304 = vmatpush.bf16.msra.mxu0 %v7726_v30  ;;  %v7742_v22 = vld [vmem:[%s10746_s5 + $0xa0] sm:$0xff]  ;;  %v7732_v61 = vld [vmem:[%s10746_s5 + $0x50] sm:$0xff] }
 0x3de   : > { %5318 = vmatpush.bf16.msra.mxu1 %v7733_v18  ;;  %5330 = vmatpush.bf16.msra.mxu2 %v7742_v22 }
 0x3e1   : > { %5342 = vmatpush.bf16.msra.mxu3 %v7751_v51 }
 0x3e2   : > { %5319 = vmatpush.bf16.msra.mxu1 %v7732_v61 }
 0x3e3   : > { %v3906_v3 = vpop.f32.mrf.mxu2  ;;  %v3919_v28 = vpop.f32.mrf.mxu3 }
 0x3e4   : > { %v4034_v31 = vpop.f32.mrf.mxu0  ;;  %v4047_v25 = vpop.f32.mrf.mxu1  ;;  %v7741_v28 = vld [vmem:[%s10746_s5 + $0x98] sm:$0xff] }
 0x3e5   : > { %v4077_v42 = vadd.f32 %v4034_v31, %v3921_v5  ;;  %v4078_v50 = vadd.f32 %v4047_v25, %v3922_v23  ;;  %v7725_v23 = vld [vmem:[%s10746_s5 + $0x18] sm:$0xff]  ;;  %5331 = vmatpush.bf16.msra.mxu2 %v7741_v28 }
 0x3e6   : > { %5305 = vmatpush.bf16.msra.mxu0 %v7725_v23  ;;  %v7749_v31 = vld [vmem:[%s10746_s5 + $0xd8] sm:$0xff] }
 0x3eb   : > { %v4060_v1 = vpop.f32.mrf.mxu2  ;;  %v4073_v32 = vpop.f32.mrf.mxu3 }
 0x3ec   : > { %v4079_v9 = vadd.f32 %v4060_v1, %v3923_v26  ;;  %v4080_v62 = vadd.f32 %v4073_v32, %v3924_v10  ;;  %v4036_v47 = vpop.f32.mrf.mxu0  ;;  %v4049_v34 = vpop.f32.mrf.mxu1  ;;  %v7750_v26 = vld [vmem:[%s10746_s5 + $0xe0] sm:$0xff]  ;;  %v7724_v10 = vld [vmem:[%s10746_s5 + $0x10] sm:$0xff]  ;;  %v7731_v1 = vld [vmem:[%s10746_s5 + $0x48] sm:$0xff] }
 0x3ed   : > { %5343 = vmatpush.bf16.msra.mxu3 %v7750_v26  ;;  %5306 = vmatpush.bf16.msra.mxu0 %v7724_v10  ;;  %v7740_v32 = vld [vmem:[%s10746_s5 + $0x90] sm:$0xff]  ;;  %v7730_v47 = vld [vmem:[%s10746_s5 + $0x40] sm:$0xff] }
 0x3ee   : > { %5320 = vmatpush.bf16.msra.mxu1 %v7731_v1  ;;  %5332 = vmatpush.bf16.msra.mxu2 %v7740_v32 }
 0x3f1   : > { %5344 = vmatpush.bf16.msra.mxu3 %v7749_v31 }
 0x3f2   : > { %5321 = vmatpush.bf16.msra.mxu1 %v7730_v47 }
 0x3f3   : > { %v4062_v16 = vpop.f32.mrf.mxu2  ;;  %v4075_v12 = vpop.f32.mrf.mxu3 }
 0x3f4   : > { %v4190_v37 = vpop.f32.mrf.mxu0  ;;  %v4203_v56 = vpop.f32.mrf.mxu1  ;;  %v7739_v12 = vld [vmem:[%s10746_s5 + $0x88] sm:$0xff] }
 0x3f5   : > { %v10581_v49 = vadd.f32 %v4190_v37, %v4077_v42  ;;  %v10583_v57 = vadd.f32 %v4203_v56, %v4078_v50  ;;  %v7723_v50 = vld [vmem:[%s10746_s5 + $0x8] sm:$0xff]  ;;  %5333 = vmatpush.bf16.msra.mxu2 %v7739_v12 }
 0x3f6   : > { %5307 = vmatpush.bf16.msra.mxu0 %v7723_v50  ;;  %v7747_v37 = vld [vmem:[%s10746_s5 + $0xc8] sm:$0xff] }
 0x3fb   : > { %v4216_v41 = vpop.f32.mrf.mxu2  ;;  %v4229_v7 = vpop.f32.mrf.mxu3 }
 0x3fc   : > { %v10585_v38 = vadd.f32 %v4216_v41, %v4079_v9  ;;  %v10587_v24 = vadd.f32 %v4229_v7, %v4080_v62  ;;  %v4192_v63 = vpop.f32.mrf.mxu0  ;;  %v4205_v53 = vpop.f32.mrf.mxu1  ;;  %v7748_v9 = vld [vmem:[%s10746_s5 + $0xd0] sm:$0xff]  ;;  %v7722_v62 = vld [vmem:[%s10746_s5] sm:$0xff] }
 0x3fd   : > { %5345 = vmatpush.bf16.msra.mxu3 %v7748_v9  ;;  %5308 = vmatpush.bf16.msra.mxu0 %v7722_v62  ;;  %v7738_v7 = vld [vmem:[%s10746_s5 + $0x80] sm:$0xff] }
 0x3fe   : > { %v7746_v63 = vld [vmem:[%s10746_s5 + $0xc0] sm:$0xff]  ;;  %5334 = vmatpush.bf16.msra.mxu2 %v7738_v7 }
 0x401   : > { %5346 = vmatpush.bf16.msra.mxu3 %v7747_v37 }
 0x403   : > { %v4218_v33 = vpop.f32.mrf.mxu2  ;;  %v4231_v21 = vpop.f32.mrf.mxu3 }
 0x404   : > { %v10589_v0 = vpop.f32.mrf.mxu0  ;;  %v10591_v36 = vpop.f32.mrf.mxu1 }
 0x405   : > { %5347 = vmatpush.bf16.msra.mxu3 %v7746_v63  ;;  %v4389_v40 = vadd.f32 %v10589_v0, %v10581_v49  ;;  %v4390_v4 = vadd.f32 %v10591_v36, %v10583_v57 }
 0x40b   : > { %v10593_v15 = vpop.f32.mrf.mxu2  ;;  %v10595_v35 = vpop.f32.mrf.mxu3 }
 0x40c   : > { %v4348_v6 = vpop.f32.mrf.mxu0  ;;  %v4361_v19 = vpop.f32.mrf.mxu1  ;;  %v4391_v49 = vadd.f32 %v10593_v15, %v10585_v38  ;;  %v4392_v57 = vadd.f32 %v10595_v35, %v10587_v24 }
 0x413   : > { %v4374_v43 = vpop.f32.mrf.mxu2  ;;  %v4387_v54 = vpop.f32.mrf.mxu3 }
 0x414   : > { %v10615_v27 = vpop.f32.mrf.mxu0  ;;  %v10617_v59 = vpop.f32.mrf.mxu1  ;;  %v5017_v43 = vld [vmem:[%s10745_s4] sm:$0xf] }
 0x415   : > { %v4545_v17 = vadd.f32 %v10615_v27, %v4389_v40  ;;  %v4546_v45 = vadd.f32 %v10617_v59, %v4390_v4  ;;  %v5019_v55 = vperm.slane %v5017_v43, 0  ;;  %v5020_v30 = vperm.slane %v5017_v43, 1 }
 0x416   : > { %v5021_v38 = vperm.slane %v5017_v43, 2  ;;  %v5022_v15 = vperm.slane %v5017_v43, 3 }
 0x41b   : > { %v10638_v39 = vpop.f32.mrf.mxu2  ;;  %v10640_v58 = vpop.f32.mrf.mxu3 }
 0x41c   : > { %v4504_v29 = vpop.f32.mrf.mxu0  ;;  %v4517_v5 = vpop.f32.mrf.mxu1  ;;  %v4547_v13 = vadd.f32 %v10638_v39, %v4391_v49  ;;  %v4548_v46 = vadd.f32 %v10640_v58, %v4392_v57 }
 0x423   : > { %v4530_v14 = vpop.f32.mrf.mxu2  ;;  %v4543_v3 = vpop.f32.mrf.mxu3 }
 0x424   : > { %v4658_v25 = vpop.f32.mrf.mxu0  ;;  %v4671_v42 = vpop.f32.mrf.mxu1 }
 0x425   : > { %v4701_v54 = vadd.f32 %v4658_v25, %v4545_v17  ;;  %v4702_v20 = vadd.f32 %v4671_v42, %v4546_v45 }
 0x42b   : > { %v4684_v34 = vpop.f32.mrf.mxu2  ;;  %v4697_v16 = vpop.f32.mrf.mxu3 }
 0x42c   : > { %v4660_v56 = vpop.f32.mrf.mxu0  ;;  %v4673_v41 = vpop.f32.mrf.mxu1  ;;  %v4703_v5 = vadd.f32 %v4684_v34, %v4547_v13  ;;  %v4704_v23 = vadd.f32 %v4697_v16, %v4548_v46  ;;  %v7778_v16 = vld [vmem:[%s10747_s6] ss:$0 sm:$0xff] }
 0x433   : > { %v4686_v53 = vpop.f32.mrf.mxu2  ;;  %v4699_v33 = vpop.f32.mrf.mxu3 }
 0x434   : > { %v4814_v21 = vpop.f32.mrf.mxu0  ;;  %v4827_v6 = vpop.f32.mrf.mxu1 }
 0x435   : > { %v4857_v44 = vadd.f32 %v4814_v21, %v4701_v54  ;;  %v4858_v52 = vadd.f32 %v4827_v6, %v4702_v20 }
 0x43b   : > { %v4840_v19 = vpop.f32.mrf.mxu2  ;;  %v4853_v60 = vpop.f32.mrf.mxu3 }
 0x43c   : > { %v4816_v2 = vpop.f32.mrf.mxu0  ;;  %v4829_v11 = vpop.f32.mrf.mxu1  ;;  %v4859_v26 = vadd.f32 %v4840_v19, %v4703_v5  ;;  %v4860_v10 = vadd.f32 %v4853_v60, %v4704_v23 }
 0x443   : > { %v4842_v48 = vpop.f32.mrf.mxu2  ;;  %v4855_v8 = vpop.f32.mrf.mxu3 }
 0x444   : > { %v4970_v0 = vpop.f32.mrf.mxu0  ;;  %v4983_v36 = vpop.f32.mrf.mxu1 }
 0x445   : > { %v5013_v27 = vadd.f32 %v4970_v0, %v4857_v44  ;;  %v5014_v59 = vadd.f32 %v4983_v36, %v4858_v52 }
 0x447   : > { %v5027_v51 = vadd.f32 %v5019_v55, %v5013_v27  ;;  %v5028_v29 = vadd.f32 %v5020_v30, %v5014_v59 }
 0x449   : > { %v5031_v18 = vmax.f32 %v5027_v51, 0.0  ;;  %v5032_v22 = vmax.f32 %v5028_v29, 0.0 }
 0x44b   : > { %v5035_v61 = vpack.c.bf16 %v5031_v18, %v5031_v18  ;;  %v5036_v24 = vpack.c.bf16 %v5032_v22, %v5032_v22  ;;  %v4996_v35 = vpop.f32.mrf.mxu2  ;;  %v5009_v14 = vpop.f32.mrf.mxu3 }
 0x44c   : > { %v5015_v3 = vadd.f32 %v4996_v35, %v4859_v26  ;;  %v5016_v28 = vadd.f32 %v5009_v14, %v4860_v10  ;;  %v4972_v31 = vpop.f32.mrf.mxu0  ;;  %v4985_v39 = vpop.f32.mrf.mxu1 }
 0x44d   : > { %5309 = vmatmul.bf16.vlgmr.msra.gmra.mxu0 %v5035_v61  ;;  %5322 = vmatmul.bf16.vlgmr.msra.gmra.mxu1 %v5036_v24 }
 0x44e   : > { %v5029_v58 = vadd.f32 %v5021_v38, %v5015_v3  ;;  %v5030_v25 = vadd.f32 %v5022_v15, %v5016_v28 }
 0x450   : > { %v5033_v42 = vmax.f32 %v5029_v58, 0.0  ;;  %v5034_v50 = vmax.f32 %v5030_v25, 0.0 }
 0x452   : > { %v5037_v1 = vpack.c.bf16 %v5033_v42, %v5033_v42  ;;  %v5038_v32 = vpack.c.bf16 %v5034_v50, %v5034_v50 }
 0x453   : > { %v4998_v9 = vpop.f32.mrf.mxu2  ;;  %v5011_v62 = vpop.f32.mrf.mxu3 }
 0x454   : > { %5335 = vmatmul.bf16.vlgmr.msra.gmra.mxu2 %v5037_v1  ;;  %7367 = vmatmul.msk.bf16.vlgmr.msra.gmra.mxu3 %vm988_vm1, %v5038_v32 }
 0x4ca   : > { %v5310_v47 = vpop.f32.mrf.mxu0  ;;  %v5323_v34 = vpop.f32.mrf.mxu1 }
 0x4cb   : > { %v5311_v12 = vadd.f32 %v7778_v16, %v5310_v47 }
 0x4cd   : > { %v5324_v41 = vadd.f32 %v5323_v34, %v5311_v12 }
 0x4d2   : > { %v5312_v37 = vpop.f32.mrf.mxu0  ;;  %v5325_v56 = vpop.f32.mrf.mxu1 }
 0x4d7   : > { %v5336_v7 = vpop.f32.mrf.mxu2  ;;  %v5349_v63 = vpop.f32.mrf.mxu3 }
 0x4d8   : > { %v5337_v53 = vadd.f32 %v5336_v7, %v5324_v41 }
 0x4da   : > { %v5350_v33 = vadd.f32 %v5349_v63, %v5337_v53 }
 0x4dc   : > { %v5354_v21 = vsel %vm5353_vm4, %v5350_v33, -inf }
 0x4dd   : > { %5355 = vmax.xlane.f32.xlu0 %v5354_v21 }
 0x4df   : > { %v5338_v6 = vpop.f32.mrf.mxu2  ;;  %v5351_v19 = vpop.f32.mrf.mxu3 }
 0x550   : > { %v5356_v60 = vpop.xlane.xlu0 %5355 }
 0x551   : > { %v5357_v2 = vsub.f32 %v5350_v33, %v5356_v60 }
 0x553   : > { %v5358_v11 = vmul.f32 1.442695, %v5357_v2 }
 0x555   : > { %7779 = vpow2.f32 %v5358_v11 }
 0x55b   : > { %v7780_v40 = vpop.eup %7779 }
 0x55c   : > { %v5360_v4 = vsel %vm5353_vm4, %v7780_v40, 0.0 }
 0x55d   : > { %5361 = vadd.xlane.f32.xlu0 %v5360_v4 }
 0x5d0   : > { %v5362_v17 = vpop.xlane.xlu0 %5361 }
 0x5d1   : > { %7781 = vlog2.f32 %v5362_v17 }
 0x5d7   : > { %v7782_v45 = vpop.eup %7781 }
 0x5d8   : > { %v5364_v43 = vmul.f32 0.6931472, %v7782_v45 }
 0x5da   : > { %v5365_v54 = vadd.f32 %v5364_v43, %v5356_v60 }
 0x5dc   : > { %v5366_v20 = vsub.f32 %v5350_v33, %v5365_v54 }
 0x5de   : > { %5367 = vst.msk [vmem:[%s550_s29] sm:$0xff] %vm5353_vm4, %v5366_v20 }
 0x5df PF: > { %p14_p9 = scmp.ge.s32.totalorder %s7866_s28, 4   ;;  %s10797_s24 = smov %s7803_s25 }
 0x5e0   : > { %s10798_s25 = smov %s7875_s8  ;;  %s10799_s26 = smov %s7866_s28 }
 0x5e1   :  { %16 = sbr.rel (!%p14_p9) target bundleno = 2 (0x2), region = 124 }

</bundles_post_ra>
